<compile_context>
chip_gen: v7x
topology: tpu7x:2x2x1
jax: 0.10.0
libtpu: 0.0.40
codegen_flags: <defaults>
</compile_context>

<pallas_src>
import math

import jax
import jax.numpy as jnp
from jax.experimental import pallas as pl
from jax.experimental.pallas import tpu as pltpu


# ------------------------------- helpers -------------------------------

def _choose_tm(m, max_tm=512):
    """Largest M-tile (multiple of 16, for bf16 sublane packing) dividing m.

    max_tm=512 keeps a double-buffered bf16 (TM, 9*Cin<=2304) input block at
    ~4.6 MiB, comfortably inside v7x's 64 MiB VMEM (32 MiB scoped default) and
    v5e's 16 MiB scoped default.
    """
    if m <= max_tm:
        return m
    tm = (max_tm // 16) * 16
    while tm >= 16:
        if m % tm == 0:
            return tm
        tm -= 16
    return m


def _make_matmul_bias_kernel(n_in):
    """out = sum_i dot(x_i, w_i) + b, f32 accumulation on the MXU."""

    def kernel(*refs):
        xs = refs[:n_in]
        ws = refs[n_in:2 * n_in]
        b_ref = refs[2 * n_in]
        out_ref = refs[2 * n_in + 1]
        acc = jnp.dot(xs[0][...], ws[0][...], preferred_element_type=jnp.float32)
        for i in range(1, n_in):
            acc = acc + jnp.dot(xs[i][...], ws[i][...],
                                preferred_element_type=jnp.float32)
        out_ref[...] = acc + b_ref[...]

    return kernel


def _max4_kernel(a_ref, b_ref, c_ref, d_ref, out_ref):
    out_ref[...] = jnp.maximum(jnp.maximum(a_ref[...], b_ref[...]),
                               jnp.maximum(c_ref[...], d_ref[...]))


# ------------------------------- Pallas wrappers -------------------------------

def conv3x3(xs, w, b):
    """3x3 conv, padding=1, over (a list of) channel-concatenated NHWC inputs.

    xs: tensor or list of tensors (N,H,W,Ci) whose channel concat feeds the
        conv; w: (3,3,sum(Ci),Cout); b: (1,Cout).
    conv(cat(xs)) == sum_i conv(x_i, w[:, :, off_i:off_i+Ci]) -- so the concat
    never has to be materialized in HBM.
    """
    if not isinstance(xs, (list, tuple)):
        xs = [xs]
    N, H, W, _ = xs[0].shape
    Cout = w.shape[-1]
    M = N * H * W
    cins = [x.shape[-1] for x in xs]

    # TODO(synk): for large resolutions, form the 3x3 taps in-kernel from a
    # haloed row tile instead of this XLA im2col (cuts conv-input HBM ~9x).
    xcols, w9s = [], []
    off = 0
    for x, c in zip(xs, cins):
        xb = x.astype(jnp.bfloat16)
        xp = jnp.pad(xb, ((0, 0), (1, 1), (1, 1), (0, 0)))
        cols = [xp[:, dy:dy + H, dx:dx + W, :]
                for dy in range(3) for dx in range(3)]
        # (N,H,W,9*c): tap-major, channel-minor -- matches w.reshape below.
        xcols.append(jnp.concatenate(cols, axis=-1).reshape(M, 9 * c))
        w9s.append(w[:, :, off:off + c, :].reshape(9 * c, Cout)
                   .astype(jnp.bfloat16))
        off += c

    tm = _choose_tm(M)
    kernel = _make_matmul_bias_kernel(len(xs))
    in_specs = ([pl.BlockSpec((tm, 9 * c), lambda m: (m, 0)) for c in cins]
                + [pl.BlockSpec((9 * c, Cout), lambda m: (0, 0)) for c in cins]
                + [pl.BlockSpec((1, Cout), lambda m: (0, 0))])
    out = pl.pallas_call(
        kernel,
        out_shape=jax.ShapeDtypeStruct((M, Cout), jnp.float32),
        grid=(M // tm,),
        in_specs=in_specs,
        out_specs=pl.BlockSpec((tm, Cout), lambda m: (m, 0)),
        compiler_params=pltpu.CompilerParams(
            dimension_semantics=("parallel",)),
    )(*xcols, *w9s, b)
    return out.reshape(N, H, W, Cout)


def conv_transpose2x2(x, w, b):
    """ConvTranspose2d kernel=2, stride=2 as one lane-dense (M, 4*Cout) matmul.

    x: (N,H,W,Cin), w: (2,2,Cin,Cout), b: (1,Cout).
    """
    N, H, W, Cin = x.shape
    Cout = w.shape[-1]
    M = N * H * W
    # (Cin, 4*Cout): columns ordered (tap t = ky*2+kx, cout).
    wt = w.reshape(4, Cin, Cout).transpose(1, 0, 2).reshape(Cin, 4 * Cout)
    b4 = jnp.tile(b, (1, 4))
    tm = _choose_tm(M)
    y = pl.pallas_call(
        _make_matmul_bias_kernel(1),
        out_shape=jax.ShapeDtypeStruct((M, 4 * Cout), jnp.float32),
        grid=(M // tm,),
        in_specs=[pl.BlockSpec((tm, Cin), lambda m: (m, 0)),
                  pl.BlockSpec((Cin, 4 * Cout), lambda m: (0, 0)),
                  pl.BlockSpec((1, 4 * Cout), lambda m: (0, 0))],
        out_specs=pl.BlockSpec((tm, 4 * Cout), lambda m: (m, 0)),
        compiler_params=pltpu.CompilerParams(
            dimension_semantics=("parallel",)),
    )(x.reshape(M, Cin).astype(jnp.bfloat16), wt.astype(jnp.bfloat16), b4)
    # Interleave the 4 taps back onto the 2x-upsampled grid (layout glue).
    y = y.reshape(N, H, W, 2, 2, Cout).transpose(0, 1, 3, 2, 4, 5)
    return y.reshape(N, 2 * H, 2 * W, Cout)


def maxpool2x2(x):
    """MaxPool2d kernel=2, stride=2.  x: (N,H,W,C)."""
    N, H, W, C = x.shape
    Ho, Wo = H // 2, W // 2
    M = N * Ho * Wo
    # Four strided window views (XLA glue); the max runs in Pallas.
    parts = [x[:, dy::2, dx::2, :].reshape(M, C)
             for dy in range(2) for dx in range(2)]
    tm = _choose_tm(M)
    out = pl.pallas_call(
        _max4_kernel,
        out_shape=jax.ShapeDtypeStruct((M, C), x.dtype),
        grid=(M // tm,),
        in_specs=[pl.BlockSpec((tm, C), lambda m: (m, 0))] * 4,
        out_specs=pl.BlockSpec((tm, C), lambda m: (m, 0)),
        compiler_params=pltpu.CompilerParams(
            dimension_semantics=("parallel",)),
    )(*parts)
    return out.reshape(N, Ho, Wo, C)


def center_crop(enc, H, W):
    """torchvision CenterCrop semantics on an NHWC tensor (identity here)."""
    h, w = enc.shape[1], enc.shape[2]
    top = int(round((h - H) / 2.0))
    left = int(round((w - W) / 2.0))
    return enc[:, top:top + H, left:left + W, :]


# ------------------------------- Parameters -------------------------------

DOWN_CHANNELS = (3, 16, 16, 32, 32, 64, 64, 128, 128, 256, 256)
UP_CHANNELS = (256, 128, 128, 64, 64, 32, 32, 16, 16)
UPSAMPLE_CHANNELS = (256, 128, 64, 32, 16)
FINAL_CHANNEL = 1


def _conv_init(key, kh, kw, cin, cout):
    kw_key, kb_key = jax.random.split(key)
    bound = 1.0 / math.sqrt(cin * kh * kw)
    w = jax.random.uniform(kw_key, (kh, kw, cin, cout), jnp.float32, -bound, bound)
    b = jax.random.uniform(kb_key, (1, cout), jnp.float32, -bound, bound)
    return w, b


def init_params(key):
    n_down = len(DOWN_CHANNELS) - 1          # 10
    n_up = len(UP_CHANNELS) - 1              # 8
    n_ups = len(UPSAMPLE_CHANNELS) - 1       # 4
    keys = jax.random.split(key, n_down + n_up + n_ups + 1)
    k = iter(keys)
    params = {
        "down": [_conv_init(next(k), 3, 3, DOWN_CHANNELS[i], DOWN_CHANNELS[i + 1])
                 for i in range(n_down)],
        "up": [_conv_init(next(k), 3, 3, UP_CHANNELS[i], UP_CHANNELS[i + 1])
               for i in range(n_up)],
        "ups": [_conv_init(next(k), 2, 2, UPSAMPLE_CHANNELS[i], UPSAMPLE_CHANNELS[i + 1])
                for i in range(n_ups)],
        "final": _conv_init(next(k), 3, 3, UP_CHANNELS[-1], FINAL_CHANNEL),
    }
    return params


# ------------------------------- Forward pass -------------------------------

def unet_forward(params, x_nchw):
    # TODO(synk): fuse the back-to-back conv pairs (and conv->maxpool) of each
    # UNet stage into a single pallas_call keeping the intermediate in VMEM.
    x = jnp.transpose(x_nchw, (0, 2, 3, 1)).astype(jnp.float32)   # NCHW -> NHWC

    down = params["down"]
    out = conv3x3(x, *down[0])
    out = conv3x3(out, *down[1])

    intermediates = []
    for i in range(2, len(down)):
        if i % 2 == 0:
            intermediates.append(out)
            out = maxpool2x2(out)
        out = conv3x3(out, *down[i])

    for i in range(len(params["ups"])):
        out = conv_transpose2x2(out, *params["ups"][i])
        enc = center_crop(intermediates[-(i + 1)], out.shape[1], out.shape[2])
        # Channel concat folded into the conv kernel (decoder part + enc part).
        out = conv3x3([out, enc], *params["up"][2 * i])
        out = conv3x3(out, *params["up"][2 * i + 1])

    out = conv3x3(out, *params["final"])
    return jnp.transpose(out, (0, 3, 1, 2))            # NHWC -> NCHW


# ------------------------------- Main -------------------------------

if __name__ == "__main__":
    key = jax.random.PRNGKey(0)
    pkey, xkey = jax.random.split(key)
    params = init_params(pkey)
    # Input must have 3 channels (first conv is 3->16); 16x16 spatial survives
    # the 4 pool/upsample levels exactly (16 -> 8 -> 4 -> 2 -> 1 -> ... -> 16).
    x = jax.random.normal(xkey, (2, 3, 16, 16), dtype=jnp.float32)

    out = jax.jit(unet_forward)(params, x)
    out = jax.block_until_ready(out)
    assert out.shape == (2, 1, 16, 16), out.shape
    assert out.dtype == jnp.float32
    print("KERNEL_OK")
</pallas_src>

<mosaic_0001>
module attributes {stable_mosaic.version = 11 : i64} {
  func.func @kernel(%arg0: i32, %arg1: memref<512x27xbf16, #tpu.memory_space<vmem>>, %arg2: memref<27x16xbf16, #tpu.memory_space<vmem>>, %arg3: memref<1x16xf32, #tpu.memory_space<vmem>>, %arg4: memref<512x16xf32, #tpu.memory_space<vmem>>) attributes {dimension_semantics = [#tpu.dimension_semantics<parallel>], iteration_bounds = array<i64: 1>, scalar_prefetch = 0 : i64, scratch_operands = 0 : i64, tpu.core_type = #tpu.core_type<tc>, window_params = [{transform_indices = @transform_0, window_bounds = array<i64: 512, 27>}, {pipeline_mode = #tpu.pipeline_mode<synchronous>, transform_indices = @transform_1, window_bounds = array<i64: 27, 16>}, {pipeline_mode = #tpu.pipeline_mode<synchronous>, transform_indices = @transform_2, window_bounds = array<i64: 1, 16>}, {transform_indices = @transform_3, window_bounds = array<i64: 512, 16>}]} {
    %c0 = arith.constant 0 : index
    %c0_0 = arith.constant 0 : index
    %0 = vector.load %arg1[%c0, %c0_0] : memref<512x27xbf16, #tpu.memory_space<vmem>>, vector<512x27xbf16>
    %c0_1 = arith.constant 0 : index
    %c0_2 = arith.constant 0 : index
    %1 = vector.load %arg2[%c0_1, %c0_2] : memref<27x16xbf16, #tpu.memory_space<vmem>>, vector<27x16xbf16>
    %cst = arith.constant dense<0.000000e+00> : vector<512x16xf32>
    %2 = tpu.matmul %0, %1, %cst {dimension_numbers = #tpu.dot_dimension_numbers<[1], [0], [0], [1], [0, 0, 1, 1], [], []>} : vector<512x27xbf16>, vector<27x16xbf16>, vector<512x16xf32> -> vector<512x16xf32>
    %c0_3 = arith.constant 0 : index
    %c0_4 = arith.constant 0 : index
    %3 = vector.load %arg3[%c0_3, %c0_4] : memref<1x16xf32, #tpu.memory_space<vmem>>, vector<1x16xf32>
    %4 = vector.broadcast %3 : vector<1x16xf32> to vector<512x16xf32>
    %5 = arith.addf %2, %4 : vector<512x16xf32>
    %c0_5 = arith.constant 0 : index
    %c0_6 = arith.constant 0 : index
    %6 = vector.load %arg4[%c0_5, %c0_6] : memref<512x16xf32, #tpu.memory_space<vmem>>, vector<512x16xf32>
    tpu.vector_store %arg4[%c0_5, %c0_6], %5 {strides = array<i32>} : memref<512x16xf32, #tpu.memory_space<vmem>>, vector<512x16xf32>,
    return
  }
  func.func @transform_0(%arg0: i32) -> (i32, i32) {
    %c0_i32 = arith.constant 0 : i32
    %c0_i32_0 = arith.constant 0 : i32
    return %arg0, %c0_i32 : i32, i32
  }
  func.func @transform_1(%arg0: i32) -> (i32, i32) {
    %c0_i32 = arith.constant 0 : i32
    %c0_i32_0 = arith.constant 0 : i32
    %c0_i32_1 = arith.constant 0 : i32
    return %c0_i32, %c0_i32_0 : i32, i32
  }
  func.func @transform_2(%arg0: i32) -> (i32, i32) {
    %c0_i32 = arith.constant 0 : i32
    %c0_i32_0 = arith.constant 0 : i32
    %c0_i32_1 = arith.constant 0 : i32
    return %c0_i32, %c0_i32_0 : i32, i32
  }
  func.func @transform_3(%arg0: i32) -> (i32, i32) {
    %c0_i32 = arith.constant 0 : i32
    %c0_i32_0 = arith.constant 0 : i32
    return %arg0, %c0_i32 : i32, i32
  }
}

module attributes {stable_mosaic.version = 11 : i64} {
  func.func @kernel(%arg0: i32, %arg1: memref<512x144xbf16, #tpu.memory_space<vmem>>, %arg2: memref<144x16xbf16, #tpu.memory_space<vmem>>, %arg3: memref<1x16xf32, #tpu.memory_space<vmem>>, %arg4: memref<512x16xf32, #tpu.memory_space<vmem>>) attributes {dimension_semantics = [#tpu.dimension_semantics<parallel>], iteration_bounds = array<i64: 1>, scalar_prefetch = 0 : i64, scratch_operands = 0 : i64, tpu.core_type = #tpu.core_type<tc>, window_params = [{transform_indices = @transform_0, window_bounds = array<i64: 512, 144>}, {pipeline_mode = #tpu.pipeline_mode<synchronous>, transform_indices = @transform_1, window_bounds = array<i64: 144, 16>}, {pipeline_mode = #tpu.pipeline_mode<synchronous>, transform_indices = @transform_2, window_bounds = array<i64: 1, 16>}, {transform_indices = @transform_3, window_bounds = array<i64: 512, 16>}]} {
    %c0 = arith.constant 0 : index
    %c0_0 = arith.constant 0 : index
    %0 = vector.load %arg1[%c0, %c0_0] : memref<512x144xbf16, #tpu.memory_space<vmem>>, vector<512x144xbf16>
    %c0_1 = arith.constant 0 : index
    %c0_2 = arith.constant 0 : index
    %1 = vector.load %arg2[%c0_1, %c0_2] : memref<144x16xbf16, #tpu.memory_space<vmem>>, vector<144x16xbf16>
    %cst = arith.constant dense<0.000000e+00> : vector<512x16xf32>
    %2 = tpu.matmul %0, %1, %cst {dimension_numbers = #tpu.dot_dimension_numbers<[1], [0], [0], [1], [0, 0, 1, 1], [], []>} : vector<512x144xbf16>, vector<144x16xbf16>, vector<512x16xf32> -> vector<512x16xf32>
    %c0_3 = arith.constant 0 : index
    %c0_4 = arith.constant 0 : index
    %3 = vector.load %arg3[%c0_3, %c0_4] : memref<1x16xf32, #tpu.memory_space<vmem>>, vector<1x16xf32>
    %4 = vector.broadcast %3 : vector<1x16xf32> to vector<512x16xf32>
    %5 = arith.addf %2, %4 : vector<512x16xf32>
    %c0_5 = arith.constant 0 : index
    %c0_6 = arith.constant 0 : index
    %6 = vector.load %arg4[%c0_5, %c0_6] : memref<512x16xf32, #tpu.memory_space<vmem>>, vector<512x16xf32>
    tpu.vector_store %arg4[%c0_5, %c0_6], %5 {strides = array<i32>} : memref<512x16xf32, #tpu.memory_space<vmem>>, vector<512x16xf32>,
    return
  }
  func.func @transform_0(%arg0: i32) -> (i32, i32) {
    %c0_i32 = arith.constant 0 : i32
    %c0_i32_0 = arith.constant 0 : i32
    return %arg0, %c0_i32 : i32, i32
  }
  func.func @transform_1(%arg0: i32) -> (i32, i32) {
    %c0_i32 = arith.constant 0 : i32
    %c0_i32_0 = arith.constant 0 : i32
    %c0_i32_1 = arith.constant 0 : i32
    return %c0_i32, %c0_i32_0 : i32, i32
  }
  func.func @transform_2(%arg0: i32) -> (i32, i32) {
    %c0_i32 = arith.constant 0 : i32
    %c0_i32_0 = arith.constant 0 : i32
    %c0_i32_1 = arith.constant 0 : i32
    return %c0_i32, %c0_i32_0 : i32, i32
  }
  func.func @transform_3(%arg0: i32) -> (i32, i32) {
    %c0_i32 = arith.constant 0 : i32
    %c0_i32_0 = arith.constant 0 : i32
    return %arg0, %c0_i32 : i32, i32
  }
}

module attributes {stable_mosaic.version = 11 : i64} {
  func.func @_max4_kernel(%arg0: i32, %arg1: memref<128x16xf32, #tpu.memory_space<vmem>>, %arg2: memref<128x16xf32, #tpu.memory_space<vmem>>, %arg3: memref<128x16xf32, #tpu.memory_space<vmem>>, %arg4: memref<128x16xf32, #tpu.memory_space<vmem>>, %arg5: memref<128x16xf32, #tpu.memory_space<vmem>>) attributes {dimension_semantics = [#tpu.dimension_semantics<parallel>], iteration_bounds = array<i64: 1>, scalar_prefetch = 0 : i64, scratch_operands = 0 : i64, tpu.core_type = #tpu.core_type<tc>, window_params = [{transform_indices = @transform_0, window_bounds = array<i64: 128, 16>}, {transform_indices = @transform_1, window_bounds = array<i64: 128, 16>}, {transform_indices = @transform_2, window_bounds = array<i64: 128, 16>}, {transform_indices = @transform_3, window_bounds = array<i64: 128, 16>}, {transform_indices = @transform_4, window_bounds = array<i64: 128, 16>}]} {
    %c0 = arith.constant 0 : index
    %c0_0 = arith.constant 0 : index
    %0 = vector.load %arg1[%c0, %c0_0] : memref<128x16xf32, #tpu.memory_space<vmem>>, vector<128x16xf32>
    %c0_1 = arith.constant 0 : index
    %c0_2 = arith.constant 0 : index
    %1 = vector.load %arg2[%c0_1, %c0_2] : memref<128x16xf32, #tpu.memory_space<vmem>>, vector<128x16xf32>
    %2 = arith.maximumf %0, %1 : vector<128x16xf32>
    %c0_3 = arith.constant 0 : index
    %c0_4 = arith.constant 0 : index
    %3 = vector.load %arg3[%c0_3, %c0_4] : memref<128x16xf32, #tpu.memory_space<vmem>>, vector<128x16xf32>
    %c0_5 = arith.constant 0 : index
    %c0_6 = arith.constant 0 : index
    %4 = vector.load %arg4[%c0_5, %c0_6] : memref<128x16xf32, #tpu.memory_space<vmem>>, vector<128x16xf32>
    %5 = arith.maximumf %3, %4 : vector<128x16xf32>
    %6 = arith.maximumf %2, %5 : vector<128x16xf32>
    %c0_7 = arith.constant 0 : index
    %c0_8 = arith.constant 0 : index
    %7 = vector.load %arg5[%c0_7, %c0_8] : memref<128x16xf32, #tpu.memory_space<vmem>>, vector<128x16xf32>
    tpu.vector_store %arg5[%c0_7, %c0_8], %6 {strides = array<i32>} : memref<128x16xf32, #tpu.memory_space<vmem>>, vector<128x16xf32>,
    return
  }
  func.func @transform_0(%arg0: i32) -> (i32, i32) {
    %c0_i32 = arith.constant 0 : i32
    %c0_i32_0 = arith.constant 0 : i32
    return %arg0, %c0_i32 : i32, i32
  }
  func.func @transform_1(%arg0: i32) -> (i32, i32) {
    %c0_i32 = arith.constant 0 : i32
    %c0_i32_0 = arith.constant 0 : i32
    return %arg0, %c0_i32 : i32, i32
  }
  func.func @transform_2(%arg0: i32) -> (i32, i32) {
    %c0_i32 = arith.constant 0 : i32
    %c0_i32_0 = arith.constant 0 : i32
    return %arg0, %c0_i32 : i32, i32
  }
  func.func @transform_3(%arg0: i32) -> (i32, i32) {
    %c0_i32 = arith.constant 0 : i32
    %c0_i32_0 = arith.constant 0 : i32
    return %arg0, %c0_i32 : i32, i32
  }
  func.func @transform_4(%arg0: i32) -> (i32, i32) {
    %c0_i32 = arith.constant 0 : i32
    %c0_i32_0 = arith.constant 0 : i32
    return %arg0, %c0_i32 : i32, i32
  }
}

module attributes {stable_mosaic.version = 11 : i64} {
  func.func @kernel(%arg0: i32, %arg1: memref<128x144xbf16, #tpu.memory_space<vmem>>, %arg2: memref<144x32xbf16, #tpu.memory_space<vmem>>, %arg3: memref<1x32xf32, #tpu.memory_space<vmem>>, %arg4: memref<128x32xf32, #tpu.memory_space<vmem>>) attributes {dimension_semantics = [#tpu.dimension_semantics<parallel>], iteration_bounds = array<i64: 1>, scalar_prefetch = 0 : i64, scratch_operands = 0 : i64, tpu.core_type = #tpu.core_type<tc>, window_params = [{transform_indices = @transform_0, window_bounds = array<i64: 128, 144>}, {pipeline_mode = #tpu.pipeline_mode<synchronous>, transform_indices = @transform_1, window_bounds = array<i64: 144, 32>}, {pipeline_mode = #tpu.pipeline_mode<synchronous>, transform_indices = @transform_2, window_bounds = array<i64: 1, 32>}, {transform_indices = @transform_3, window_bounds = array<i64: 128, 32>}]} {
    %c0 = arith.constant 0 : index
    %c0_0 = arith.constant 0 : index
    %0 = vector.load %arg1[%c0, %c0_0] : memref<128x144xbf16, #tpu.memory_space<vmem>>, vector<128x144xbf16>
    %c0_1 = arith.constant 0 : index
    %c0_2 = arith.constant 0 : index
    %1 = vector.load %arg2[%c0_1, %c0_2] : memref<144x32xbf16, #tpu.memory_space<vmem>>, vector<144x32xbf16>
    %cst = arith.constant dense<0.000000e+00> : vector<128x32xf32>
    %2 = tpu.matmul %0, %1, %cst {dimension_numbers = #tpu.dot_dimension_numbers<[1], [0], [0], [1], [0, 0, 1, 1], [], []>} : vector<128x144xbf16>, vector<144x32xbf16>, vector<128x32xf32> -> vector<128x32xf32>
    %c0_3 = arith.constant 0 : index
    %c0_4 = arith.constant 0 : index
    %3 = vector.load %arg3[%c0_3, %c0_4] : memref<1x32xf32, #tpu.memory_space<vmem>>, vector<1x32xf32>
    %4 = vector.broadcast %3 : vector<1x32xf32> to vector<128x32xf32>
    %5 = arith.addf %2, %4 : vector<128x32xf32>
    %c0_5 = arith.constant 0 : index
    %c0_6 = arith.constant 0 : index
    %6 = vector.load %arg4[%c0_5, %c0_6] : memref<128x32xf32, #tpu.memory_space<vmem>>, vector<128x32xf32>
    tpu.vector_store %arg4[%c0_5, %c0_6], %5 {strides = array<i32>} : memref<128x32xf32, #tpu.memory_space<vmem>>, vector<128x32xf32>,
    return
  }
  func.func @transform_0(%arg0: i32) -> (i32, i32) {
    %c0_i32 = arith.constant 0 : i32
    %c0_i32_0 = arith.constant 0 : i32
    return %arg0, %c0_i32 : i32, i32
  }
  func.func @transform_1(%arg0: i32) -> (i32, i32) {
    %c0_i32 = arith.constant 0 : i32
    %c0_i32_0 = arith.constant 0 : i32
    %c0_i32_1 = arith.constant 0 : i32
    return %c0_i32, %c0_i32_0 : i32, i32
  }
  func.func @transform_2(%arg0: i32) -> (i32, i32) {
    %c0_i32 = arith.constant 0 : i32
    %c0_i32_0 = arith.constant 0 : i32
    %c0_i32_1 = arith.constant 0 : i32
    return %c0_i32, %c0_i32_0 : i32, i32
  }
  func.func @transform_3(%arg0: i32) -> (i32, i32) {
    %c0_i32 = arith.constant 0 : i32
    %c0_i32_0 = arith.constant 0 : i32
    return %arg0, %c0_i32 : i32, i32
  }
}

module attributes {stable_mosaic.version = 11 : i64} {
  func.func @kernel(%arg0: i32, %arg1: memref<128x288xbf16, #tpu.memory_space<vmem>>, %arg2: memref<288x32xbf16, #tpu.memory_space<vmem>>, %arg3: memref<1x32xf32, #tpu.memory_space<vmem>>, %arg4: memref<128x32xf32, #tpu.memory_space<vmem>>) attributes {dimension_semantics = [#tpu.dimension_semantics<parallel>], iteration_bounds = array<i64: 1>, scalar_prefetch = 0 : i64, scratch_operands = 0 : i64, tpu.core_type = #tpu.core_type<tc>, window_params = [{transform_indices = @transform_0, window_bounds = array<i64: 128, 288>}, {pipeline_mode = #tpu.pipeline_mode<synchronous>, transform_indices = @transform_1, window_bounds = array<i64: 288, 32>}, {pipeline_mode = #tpu.pipeline_mode<synchronous>, transform_indices = @transform_2, window_bounds = array<i64: 1, 32>}, {transform_indices = @transform_3, window_bounds = array<i64: 128, 32>}]} {
    %c0 = arith.constant 0 : index
    %c0_0 = arith.constant 0 : index
    %0 = vector.load %arg1[%c0, %c0_0] : memref<128x288xbf16, #tpu.memory_space<vmem>>, vector<128x288xbf16>
    %c0_1 = arith.constant 0 : index
    %c0_2 = arith.constant 0 : index
    %1 = vector.load %arg2[%c0_1, %c0_2] : memref<288x32xbf16, #tpu.memory_space<vmem>>, vector<288x32xbf16>
    %cst = arith.constant dense<0.000000e+00> : vector<128x32xf32>
    %2 = tpu.matmul %0, %1, %cst {dimension_numbers = #tpu.dot_dimension_numbers<[1], [0], [0], [1], [0, 0, 1, 1], [], []>} : vector<128x288xbf16>, vector<288x32xbf16>, vector<128x32xf32> -> vector<128x32xf32>
    %c0_3 = arith.constant 0 : index
    %c0_4 = arith.constant 0 : index
    %3 = vector.load %arg3[%c0_3, %c0_4] : memref<1x32xf32, #tpu.memory_space<vmem>>, vector<1x32xf32>
    %4 = vector.broadcast %3 : vector<1x32xf32> to vector<128x32xf32>
    %5 = arith.addf %2, %4 : vector<128x32xf32>
    %c0_5 = arith.constant 0 : index
    %c0_6 = arith.constant 0 : index
    %6 = vector.load %arg4[%c0_5, %c0_6] : memref<128x32xf32, #tpu.memory_space<vmem>>, vector<128x32xf32>
    tpu.vector_store %arg4[%c0_5, %c0_6], %5 {strides = array<i32>} : memref<128x32xf32, #tpu.memory_space<vmem>>, vector<128x32xf32>,
    return
  }
  func.func @transform_0(%arg0: i32) -> (i32, i32) {
    %c0_i32 = arith.constant 0 : i32
    %c0_i32_0 = arith.constant 0 : i32
    return %arg0, %c0_i32 : i32, i32
  }
  func.func @transform_1(%arg0: i32) -> (i32, i32) {
    %c0_i32 = arith.constant 0 : i32
    %c0_i32_0 = arith.constant 0 : i32
    %c0_i32_1 = arith.constant 0 : i32
    return %c0_i32, %c0_i32_0 : i32, i32
  }
  func.func @transform_2(%arg0: i32) -> (i32, i32) {
    %c0_i32 = arith.constant 0 : i32
    %c0_i32_0 = arith.constant 0 : i32
    %c0_i32_1 = arith.constant 0 : i32
    return %c0_i32, %c0_i32_0 : i32, i32
  }
  func.func @transform_3(%arg0: i32) -> (i32, i32) {
    %c0_i32 = arith.constant 0 : i32
    %c0_i32_0 = arith.constant 0 : i32
    return %arg0, %c0_i32 : i32, i32
  }
}

module attributes {stable_mosaic.version = 11 : i64} {
  func.func @_max4_kernel(%arg0: i32, %arg1: memref<32x32xf32, #tpu.memory_space<vmem>>, %arg2: memref<32x32xf32, #tpu.memory_space<vmem>>, %arg3: memref<32x32xf32, #tpu.memory_space<vmem>>, %arg4: memref<32x32xf32, #tpu.memory_space<vmem>>, %arg5: memref<32x32xf32, #tpu.memory_space<vmem>>) attributes {dimension_semantics = [#tpu.dimension_semantics<parallel>], iteration_bounds = array<i64: 1>, scalar_prefetch = 0 : i64, scratch_operands = 0 : i64, tpu.core_type = #tpu.core_type<tc>, window_params = [{transform_indices = @transform_0, window_bounds = array<i64: 32, 32>}, {transform_indices = @transform_1, window_bounds = array<i64: 32, 32>}, {transform_indices = @transform_2, window_bounds = array<i64: 32, 32>}, {transform_indices = @transform_3, window_bounds = array<i64: 32, 32>}, {transform_indices = @transform_4, window_bounds = array<i64: 32, 32>}]} {
    %c0 = arith.constant 0 : index
    %c0_0 = arith.constant 0 : index
    %0 = vector.load %arg1[%c0, %c0_0] : memref<32x32xf32, #tpu.memory_space<vmem>>, vector<32x32xf32>
    %c0_1 = arith.constant 0 : index
    %c0_2 = arith.constant 0 : index
    %1 = vector.load %arg2[%c0_1, %c0_2] : memref<32x32xf32, #tpu.memory_space<vmem>>, vector<32x32xf32>
    %2 = arith.maximumf %0, %1 : vector<32x32xf32>
    %c0_3 = arith.constant 0 : index
    %c0_4 = arith.constant 0 : index
    %3 = vector.load %arg3[%c0_3, %c0_4] : memref<32x32xf32, #tpu.memory_space<vmem>>, vector<32x32xf32>
    %c0_5 = arith.constant 0 : index
    %c0_6 = arith.constant 0 : index
    %4 = vector.load %arg4[%c0_5, %c0_6] : memref<32x32xf32, #tpu.memory_space<vmem>>, vector<32x32xf32>
    %5 = arith.maximumf %3, %4 : vector<32x32xf32>
    %6 = arith.maximumf %2, %5 : vector<32x32xf32>
    %c0_7 = arith.constant 0 : index
    %c0_8 = arith.constant 0 : index
    %7 = vector.load %arg5[%c0_7, %c0_8] : memref<32x32xf32, #tpu.memory_space<vmem>>, vector<32x32xf32>
    tpu.vector_store %arg5[%c0_7, %c0_8], %6 {strides = array<i32>} : memref<32x32xf32, #tpu.memory_space<vmem>>, vector<32x32xf32>,
    return
  }
  func.func @transform_0(%arg0: i32) -> (i32, i32) {
    %c0_i32 = arith.constant 0 : i32
    %c0_i32_0 = arith.constant 0 : i32
    return %arg0, %c0_i32 : i32, i32
  }
  func.func @transform_1(%arg0: i32) -> (i32, i32) {
    %c0_i32 = arith.constant 0 : i32
    %c0_i32_0 = arith.constant 0 : i32
    return %arg0, %c0_i32 : i32, i32
  }
  func.func @transform_2(%arg0: i32) -> (i32, i32) {
    %c0_i32 = arith.constant 0 : i32
    %c0_i32_0 = arith.constant 0 : i32
    return %arg0, %c0_i32 : i32, i32
  }
  func.func @transform_3(%arg0: i32) -> (i32, i32) {
    %c0_i32 = arith.constant 0 : i32
    %c0_i32_0 = arith.constant 0 : i32
    return %arg0, %c0_i32 : i32, i32
  }
  func.func @transform_4(%arg0: i32) -> (i32, i32) {
    %c0_i32 = arith.constant 0 : i32
    %c0_i32_0 = arith.constant 0 : i32
    return %arg0, %c0_i32 : i32, i32
  }
}

module attributes {stable_mosaic.version = 11 : i64} {
  func.func @kernel(%arg0: i32, %arg1: memref<32x288xbf16, #tpu.memory_space<vmem>>, %arg2: memref<288x64xbf16, #tpu.memory_space<vmem>>, %arg3: memref<1x64xf32, #tpu.memory_space<vmem>>, %arg4: memref<32x64xf32, #tpu.memory_space<vmem>>) attributes {dimension_semantics = [#tpu.dimension_semantics<parallel>], iteration_bounds = array<i64: 1>, scalar_prefetch = 0 : i64, scratch_operands = 0 : i64, tpu.core_type = #tpu.core_type<tc>, window_params = [{transform_indices = @transform_0, window_bounds = array<i64: 32, 288>}, {pipeline_mode = #tpu.pipeline_mode<synchronous>, transform_indices = @transform_1, window_bounds = array<i64: 288, 64>}, {pipeline_mode = #tpu.pipeline_mode<synchronous>, transform_indices = @transform_2, window_bounds = array<i64: 1, 64>}, {transform_indices = @transform_3, window_bounds = array<i64: 32, 64>}]} {
    %c0 = arith.constant 0 : index
    %c0_0 = arith.constant 0 : index
    %0 = vector.load %arg1[%c0, %c0_0] : memref<32x288xbf16, #tpu.memory_space<vmem>>, vector<32x288xbf16>
    %c0_1 = arith.constant 0 : index
    %c0_2 = arith.constant 0 : index
    %1 = vector.load %arg2[%c0_1, %c0_2] : memref<288x64xbf16, #tpu.memory_space<vmem>>, vector<288x64xbf16>
    %cst = arith.constant dense<0.000000e+00> : vector<32x64xf32>
    %2 = tpu.matmul %0, %1, %cst {dimension_numbers = #tpu.dot_dimension_numbers<[1], [0], [0], [1], [0, 0, 1, 1], [], []>} : vector<32x288xbf16>, vector<288x64xbf16>, vector<32x64xf32> -> vector<32x64xf32>
    %c0_3 = arith.constant 0 : index
    %c0_4 = arith.constant 0 : index
    %3 = vector.load %arg3[%c0_3, %c0_4] : memref<1x64xf32, #tpu.memory_space<vmem>>, vector<1x64xf32>
    %4 = vector.broadcast %3 : vector<1x64xf32> to vector<32x64xf32>
    %5 = arith.addf %2, %4 : vector<32x64xf32>
    %c0_5 = arith.constant 0 : index
    %c0_6 = arith.constant 0 : index
    %6 = vector.load %arg4[%c0_5, %c0_6] : memref<32x64xf32, #tpu.memory_space<vmem>>, vector<32x64xf32>
    tpu.vector_store %arg4[%c0_5, %c0_6], %5 {strides = array<i32>} : memref<32x64xf32, #tpu.memory_space<vmem>>, vector<32x64xf32>,
    return
  }
  func.func @transform_0(%arg0: i32) -> (i32, i32) {
    %c0_i32 = arith.constant 0 : i32
    %c0_i32_0 = arith.constant 0 : i32
    return %arg0, %c0_i32 : i32, i32
  }
  func.func @transform_1(%arg0: i32) -> (i32, i32) {
    %c0_i32 = arith.constant 0 : i32
    %c0_i32_0 = arith.constant 0 : i32
    %c0_i32_1 = arith.constant 0 : i32
    return %c0_i32, %c0_i32_0 : i32, i32
  }
  func.func @transform_2(%arg0: i32) -> (i32, i32) {
    %c0_i32 = arith.constant 0 : i32
    %c0_i32_0 = arith.constant 0 : i32
    %c0_i32_1 = arith.constant 0 : i32
    return %c0_i32, %c0_i32_0 : i32, i32
  }
  func.func @transform_3(%arg0: i32) -> (i32, i32) {
    %c0_i32 = arith.constant 0 : i32
    %c0_i32_0 = arith.constant 0 : i32
    return %arg0, %c0_i32 : i32, i32
  }
}

module attributes {stable_mosaic.version = 11 : i64} {
  func.func @kernel(%arg0: i32, %arg1: memref<32x576xbf16, #tpu.memory_space<vmem>>, %arg2: memref<576x64xbf16, #tpu.memory_space<vmem>>, %arg3: memref<1x64xf32, #tpu.memory_space<vmem>>, %arg4: memref<32x64xf32, #tpu.memory_space<vmem>>) attributes {dimension_semantics = [#tpu.dimension_semantics<parallel>], iteration_bounds = array<i64: 1>, scalar_prefetch = 0 : i64, scratch_operands = 0 : i64, tpu.core_type = #tpu.core_type<tc>, window_params = [{transform_indices = @transform_0, window_bounds = array<i64: 32, 576>}, {pipeline_mode = #tpu.pipeline_mode<synchronous>, transform_indices = @transform_1, window_bounds = array<i64: 576, 64>}, {pipeline_mode = #tpu.pipeline_mode<synchronous>, transform_indices = @transform_2, window_bounds = array<i64: 1, 64>}, {transform_indices = @transform_3, window_bounds = array<i64: 32, 64>}]} {
    %c0 = arith.constant 0 : index
    %c0_0 = arith.constant 0 : index
    %0 = vector.load %arg1[%c0, %c0_0] : memref<32x576xbf16, #tpu.memory_space<vmem>>, vector<32x576xbf16>
    %c0_1 = arith.constant 0 : index
    %c0_2 = arith.constant 0 : index
    %1 = vector.load %arg2[%c0_1, %c0_2] : memref<576x64xbf16, #tpu.memory_space<vmem>>, vector<576x64xbf16>
    %cst = arith.constant dense<0.000000e+00> : vector<32x64xf32>
    %2 = tpu.matmul %0, %1, %cst {dimension_numbers = #tpu.dot_dimension_numbers<[1], [0], [0], [1], [0, 0, 1, 1], [], []>} : vector<32x576xbf16>, vector<576x64xbf16>, vector<32x64xf32> -> vector<32x64xf32>
    %c0_3 = arith.constant 0 : index
    %c0_4 = arith.constant 0 : index
    %3 = vector.load %arg3[%c0_3, %c0_4] : memref<1x64xf32, #tpu.memory_space<vmem>>, vector<1x64xf32>
    %4 = vector.broadcast %3 : vector<1x64xf32> to vector<32x64xf32>
    %5 = arith.addf %2, %4 : vector<32x64xf32>
    %c0_5 = arith.constant 0 : index
    %c0_6 = arith.constant 0 : index
    %6 = vector.load %arg4[%c0_5, %c0_6] : memref<32x64xf32, #tpu.memory_space<vmem>>, vector<32x64xf32>
    tpu.vector_store %arg4[%c0_5, %c0_6], %5 {strides = array<i32>} : memref<32x64xf32, #tpu.memory_space<vmem>>, vector<32x64xf32>,
    return
  }
  func.func @transform_0(%arg0: i32) -> (i32, i32) {
    %c0_i32 = arith.constant 0 : i32
    %c0_i32_0 = arith.constant 0 : i32
    return %arg0, %c0_i32 : i32, i32
  }
  func.func @transform_1(%arg0: i32) -> (i32, i32) {
    %c0_i32 = arith.constant 0 : i32
    %c0_i32_0 = arith.constant 0 : i32
    %c0_i32_1 = arith.constant 0 : i32
    return %c0_i32, %c0_i32_0 : i32, i32
  }
  func.func @transform_2(%arg0: i32) -> (i32, i32) {
    %c0_i32 = arith.constant 0 : i32
    %c0_i32_0 = arith.constant 0 : i32
    %c0_i32_1 = arith.constant 0 : i32
    return %c0_i32, %c0_i32_0 : i32, i32
  }
  func.func @transform_3(%arg0: i32) -> (i32, i32) {
    %c0_i32 = arith.constant 0 : i32
    %c0_i32_0 = arith.constant 0 : i32
    return %arg0, %c0_i32 : i32, i32
  }
}

module attributes {stable_mosaic.version = 11 : i64} {
  func.func @_max4_kernel(%arg0: i32, %arg1: memref<8x64xf32, #tpu.memory_space<vmem>>, %arg2: memref<8x64xf32, #tpu.memory_space<vmem>>, %arg3: memref<8x64xf32, #tpu.memory_space<vmem>>, %arg4: memref<8x64xf32, #tpu.memory_space<vmem>>, %arg5: memref<8x64xf32, #tpu.memory_space<vmem>>) attributes {dimension_semantics = [#tpu.dimension_semantics<parallel>], iteration_bounds = array<i64: 1>, scalar_prefetch = 0 : i64, scratch_operands = 0 : i64, tpu.core_type = #tpu.core_type<tc>, window_params = [{transform_indices = @transform_0, window_bounds = array<i64: 8, 64>}, {transform_indices = @transform_1, window_bounds = array<i64: 8, 64>}, {transform_indices = @transform_2, window_bounds = array<i64: 8, 64>}, {transform_indices = @transform_3, window_bounds = array<i64: 8, 64>}, {transform_indices = @transform_4, window_bounds = array<i64: 8, 64>}]} {
    %c0 = arith.constant 0 : index
    %c0_0 = arith.constant 0 : index
    %0 = vector.load %arg1[%c0, %c0_0] : memref<8x64xf32, #tpu.memory_space<vmem>>, vector<8x64xf32>
    %c0_1 = arith.constant 0 : index
    %c0_2 = arith.constant 0 : index
    %1 = vector.load %arg2[%c0_1, %c0_2] : memref<8x64xf32, #tpu.memory_space<vmem>>, vector<8x64xf32>
    %2 = arith.maximumf %0, %1 : vector<8x64xf32>
    %c0_3 = arith.constant 0 : index
    %c0_4 = arith.constant 0 : index
    %3 = vector.load %arg3[%c0_3, %c0_4] : memref<8x64xf32, #tpu.memory_space<vmem>>, vector<8x64xf32>
    %c0_5 = arith.constant 0 : index
    %c0_6 = arith.constant 0 : index
    %4 = vector.load %arg4[%c0_5, %c0_6] : memref<8x64xf32, #tpu.memory_space<vmem>>, vector<8x64xf32>
    %5 = arith.maximumf %3, %4 : vector<8x64xf32>
    %6 = arith.maximumf %2, %5 : vector<8x64xf32>
    %c0_7 = arith.constant 0 : index
    %c0_8 = arith.constant 0 : index
    %7 = vector.load %arg5[%c0_7, %c0_8] : memref<8x64xf32, #tpu.memory_space<vmem>>, vector<8x64xf32>
    tpu.vector_store %arg5[%c0_7, %c0_8], %6 {strides = array<i32>} : memref<8x64xf32, #tpu.memory_space<vmem>>, vector<8x64xf32>,
    return
  }
  func.func @transform_0(%arg0: i32) -> (i32, i32) {
    %c0_i32 = arith.constant 0 : i32
    %c0_i32_0 = arith.constant 0 : i32
    return %arg0, %c0_i32 : i32, i32
  }
  func.func @transform_1(%arg0: i32) -> (i32, i32) {
    %c0_i32 = arith.constant 0 : i32
    %c0_i32_0 = arith.constant 0 : i32
    return %arg0, %c0_i32 : i32, i32
  }
  func.func @transform_2(%arg0: i32) -> (i32, i32) {
    %c0_i32 = arith.constant 0 : i32
    %c0_i32_0 = arith.constant 0 : i32
    return %arg0, %c0_i32 : i32, i32
  }
  func.func @transform_3(%arg0: i32) -> (i32, i32) {
    %c0_i32 = arith.constant 0 : i32
    %c0_i32_0 = arith.constant 0 : i32
    return %arg0, %c0_i32 : i32, i32
  }
  func.func @transform_4(%arg0: i32) -> (i32, i32) {
    %c0_i32 = arith.constant 0 : i32
    %c0_i32_0 = arith.constant 0 : i32
    return %arg0, %c0_i32 : i32, i32
  }
}

module attributes {stable_mosaic.version = 11 : i64} {
  func.func @kernel(%arg0: i32, %arg1: memref<8x576xbf16, #tpu.memory_space<vmem>>, %arg2: memref<576x128xbf16, #tpu.memory_space<vmem>>, %arg3: memref<1x128xf32, #tpu.memory_space<vmem>>, %arg4: memref<8x128xf32, #tpu.memory_space<vmem>>) attributes {dimension_semantics = [#tpu.dimension_semantics<parallel>], iteration_bounds = array<i64: 1>, scalar_prefetch = 0 : i64, scratch_operands = 0 : i64, tpu.core_type = #tpu.core_type<tc>, window_params = [{transform_indices = @transform_0, window_bounds = array<i64: 8, 576>}, {pipeline_mode = #tpu.pipeline_mode<synchronous>, transform_indices = @transform_1, window_bounds = array<i64: 576, 128>}, {pipeline_mode = #tpu.pipeline_mode<synchronous>, transform_indices = @transform_2, window_bounds = array<i64: 1, 128>}, {transform_indices = @transform_3, window_bounds = array<i64: 8, 128>}]} {
    %c0 = arith.constant 0 : index
    %c0_0 = arith.constant 0 : index
    %0 = vector.load %arg1[%c0, %c0_0] : memref<8x576xbf16, #tpu.memory_space<vmem>>, vector<8x576xbf16>
    %c0_1 = arith.constant 0 : index
    %c0_2 = arith.constant 0 : index
    %1 = vector.load %arg2[%c0_1, %c0_2] : memref<576x128xbf16, #tpu.memory_space<vmem>>, vector<576x128xbf16>
    %cst = arith.constant dense<0.000000e+00> : vector<8x128xf32>
    %2 = tpu.matmul %0, %1, %cst {dimension_numbers = #tpu.dot_dimension_numbers<[1], [0], [0], [1], [0, 0, 1, 1], [], []>} : vector<8x576xbf16>, vector<576x128xbf16>, vector<8x128xf32> -> vector<8x128xf32>
    %c0_3 = arith.constant 0 : index
    %c0_4 = arith.constant 0 : index
    %3 = vector.load %arg3[%c0_3, %c0_4] : memref<1x128xf32, #tpu.memory_space<vmem>>, vector<1x128xf32>
    %4 = vector.broadcast %3 : vector<1x128xf32> to vector<8x128xf32>
    %5 = arith.addf %2, %4 : vector<8x128xf32>
    %c0_5 = arith.constant 0 : index
    %c0_6 = arith.constant 0 : index
    %6 = vector.load %arg4[%c0_5, %c0_6] : memref<8x128xf32, #tpu.memory_space<vmem>>, vector<8x128xf32>
    tpu.vector_store %arg4[%c0_5, %c0_6], %5 {strides = array<i32>} : memref<8x128xf32, #tpu.memory_space<vmem>>, vector<8x128xf32>,
    return
  }
  func.func @transform_0(%arg0: i32) -> (i32, i32) {
    %c0_i32 = arith.constant 0 : i32
    %c0_i32_0 = arith.constant 0 : i32
    return %arg0, %c0_i32 : i32, i32
  }
  func.func @transform_1(%arg0: i32) -> (i32, i32) {
    %c0_i32 = arith.constant 0 : i32
    %c0_i32_0 = arith.constant 0 : i32
    %c0_i32_1 = arith.constant 0 : i32
    return %c0_i32, %c0_i32_0 : i32, i32
  }
  func.func @transform_2(%arg0: i32) -> (i32, i32) {
    %c0_i32 = arith.constant 0 : i32
    %c0_i32_0 = arith.constant 0 : i32
    %c0_i32_1 = arith.constant 0 : i32
    return %c0_i32, %c0_i32_0 : i32, i32
  }
  func.func @transform_3(%arg0: i32) -> (i32, i32) {
    %c0_i32 = arith.constant 0 : i32
    %c0_i32_0 = arith.constant 0 : i32
    return %arg0, %c0_i32 : i32, i32
  }
}

module attributes {stable_mosaic.version = 11 : i64} {
  func.func @kernel(%arg0: i32, %arg1: memref<8x1152xbf16, #tpu.memory_space<vmem>>, %arg2: memref<1152x128xbf16, #tpu.memory_space<vmem>>, %arg3: memref<1x128xf32, #tpu.memory_space<vmem>>, %arg4: memref<8x128xf32, #tpu.memory_space<vmem>>) attributes {dimension_semantics = [#tpu.dimension_semantics<parallel>], iteration_bounds = array<i64: 1>, scalar_prefetch = 0 : i64, scratch_operands = 0 : i64, tpu.core_type = #tpu.core_type<tc>, window_params = [{transform_indices = @transform_0, window_bounds = array<i64: 8, 1152>}, {pipeline_mode = #tpu.pipeline_mode<synchronous>, transform_indices = @transform_1, window_bounds = array<i64: 1152, 128>}, {pipeline_mode = #tpu.pipeline_mode<synchronous>, transform_indices = @transform_2, window_bounds = array<i64: 1, 128>}, {transform_indices = @transform_3, window_bounds = array<i64: 8, 128>}]} {
    %c0 = arith.constant 0 : index
    %c0_0 = arith.constant 0 : index
    %0 = vector.load %arg1[%c0, %c0_0] : memref<8x1152xbf16, #tpu.memory_space<vmem>>, vector<8x1152xbf16>
    %c0_1 = arith.constant 0 : index
    %c0_2 = arith.constant 0 : index
    %1 = vector.load %arg2[%c0_1, %c0_2] : memref<1152x128xbf16, #tpu.memory_space<vmem>>, vector<1152x128xbf16>
    %cst = arith.constant dense<0.000000e+00> : vector<8x128xf32>
    %2 = tpu.matmul %0, %1, %cst {dimension_numbers = #tpu.dot_dimension_numbers<[1], [0], [0], [1], [0, 0, 1, 1], [], []>} : vector<8x1152xbf16>, vector<1152x128xbf16>, vector<8x128xf32> -> vector<8x128xf32>
    %c0_3 = arith.constant 0 : index
    %c0_4 = arith.constant 0 : index
    %3 = vector.load %arg3[%c0_3, %c0_4] : memref<1x128xf32, #tpu.memory_space<vmem>>, vector<1x128xf32>
    %4 = vector.broadcast %3 : vector<1x128xf32> to vector<8x128xf32>
    %5 = arith.addf %2, %4 : vector<8x128xf32>
    %c0_5 = arith.constant 0 : index
    %c0_6 = arith.constant 0 : index
    %6 = vector.load %arg4[%c0_5, %c0_6] : memref<8x128xf32, #tpu.memory_space<vmem>>, vector<8x128xf32>
    tpu.vector_store %arg4[%c0_5, %c0_6], %5 {strides = array<i32>} : memref<8x128xf32, #tpu.memory_space<vmem>>, vector<8x128xf32>,
    return
  }
  func.func @transform_0(%arg0: i32) -> (i32, i32) {
    %c0_i32 = arith.constant 0 : i32
    %c0_i32_0 = arith.constant 0 : i32
    return %arg0, %c0_i32 : i32, i32
  }
  func.func @transform_1(%arg0: i32) -> (i32, i32) {
    %c0_i32 = arith.constant 0 : i32
    %c0_i32_0 = arith.constant 0 : i32
    %c0_i32_1 = arith.constant 0 : i32
    return %c0_i32, %c0_i32_0 : i32, i32
  }
  func.func @transform_2(%arg0: i32) -> (i32, i32) {
    %c0_i32 = arith.constant 0 : i32
    %c0_i32_0 = arith.constant 0 : i32
    %c0_i32_1 = arith.constant 0 : i32
    return %c0_i32, %c0_i32_0 : i32, i32
  }
  func.func @transform_3(%arg0: i32) -> (i32, i32) {
    %c0_i32 = arith.constant 0 : i32
    %c0_i32_0 = arith.constant 0 : i32
    return %arg0, %c0_i32 : i32, i32
  }
}

module attributes {stable_mosaic.version = 11 : i64} {
  func.func @kernel(%arg0: i32, %arg1: memref<2x1152xbf16, #tpu.memory_space<vmem>>, %arg2: memref<1152x256xbf16, #tpu.memory_space<vmem>>, %arg3: memref<1x256xf32, #tpu.memory_space<vmem>>, %arg4: memref<2x256xf32, #tpu.memory_space<vmem>>) attributes {dimension_semantics = [#tpu.dimension_semantics<parallel>], iteration_bounds = array<i64: 1>, scalar_prefetch = 0 : i64, scratch_operands = 0 : i64, tpu.core_type = #tpu.core_type<tc>, window_params = [{transform_indices = @transform_0, window_bounds = array<i64: 2, 1152>}, {pipeline_mode = #tpu.pipeline_mode<synchronous>, transform_indices = @transform_1, window_bounds = array<i64: 1152, 256>}, {pipeline_mode = #tpu.pipeline_mode<synchronous>, transform_indices = @transform_2, window_bounds = array<i64: 1, 256>}, {transform_indices = @transform_3, window_bounds = array<i64: 2, 256>}]} {
    %c0 = arith.constant 0 : index
    %c0_0 = arith.constant 0 : index
    %0 = vector.load %arg1[%c0, %c0_0] : memref<2x1152xbf16, #tpu.memory_space<vmem>>, vector<2x1152xbf16>
    %c0_1 = arith.constant 0 : index
    %c0_2 = arith.constant 0 : index
    %1 = vector.load %arg2[%c0_1, %c0_2] : memref<1152x256xbf16, #tpu.memory_space<vmem>>, vector<1152x256xbf16>
    %cst = arith.constant dense<0.000000e+00> : vector<2x256xf32>
    %2 = tpu.matmul %0, %1, %cst {dimension_numbers = #tpu.dot_dimension_numbers<[1], [0], [0], [1], [0, 0, 1, 1], [], []>} : vector<2x1152xbf16>, vector<1152x256xbf16>, vector<2x256xf32> -> vector<2x256xf32>
    %c0_3 = arith.constant 0 : index
    %c0_4 = arith.constant 0 : index
    %3 = vector.load %arg3[%c0_3, %c0_4] : memref<1x256xf32, #tpu.memory_space<vmem>>, vector<1x256xf32>
    %4 = vector.broadcast %3 : vector<1x256xf32> to vector<2x256xf32>
    %5 = arith.addf %2, %4 : vector<2x256xf32>
    %c0_5 = arith.constant 0 : index
    %c0_6 = arith.constant 0 : index
    %6 = vector.load %arg4[%c0_5, %c0_6] : memref<2x256xf32, #tpu.memory_space<vmem>>, vector<2x256xf32>
    tpu.vector_store %arg4[%c0_5, %c0_6], %5 {strides = array<i32>} : memref<2x256xf32, #tpu.memory_space<vmem>>, vector<2x256xf32>,
    return
  }
  func.func @transform_0(%arg0: i32) -> (i32, i32) {
    %c0_i32 = arith.constant 0 : i32
    %c0_i32_0 = arith.constant 0 : i32
    return %arg0, %c0_i32 : i32, i32
  }
  func.func @transform_1(%arg0: i32) -> (i32, i32) {
    %c0_i32 = arith.constant 0 : i32
    %c0_i32_0 = arith.constant 0 : i32
    %c0_i32_1 = arith.constant 0 : i32
    return %c0_i32, %c0_i32_0 : i32, i32
  }
  func.func @transform_2(%arg0: i32) -> (i32, i32) {
    %c0_i32 = arith.constant 0 : i32
    %c0_i32_0 = arith.constant 0 : i32
    %c0_i32_1 = arith.constant 0 : i32
    return %c0_i32, %c0_i32_0 : i32, i32
  }
  func.func @transform_3(%arg0: i32) -> (i32, i32) {
    %c0_i32 = arith.constant 0 : i32
    %c0_i32_0 = arith.constant 0 : i32
    return %arg0, %c0_i32 : i32, i32
  }
}

module attributes {stable_mosaic.version = 11 : i64} {
  func.func @_max4_kernel(%arg0: i32, %arg1: memref<2x128xf32, #tpu.memory_space<vmem>>, %arg2: memref<2x128xf32, #tpu.memory_space<vmem>>, %arg3: memref<2x128xf32, #tpu.memory_space<vmem>>, %arg4: memref<2x128xf32, #tpu.memory_space<vmem>>, %arg5: memref<2x128xf32, #tpu.memory_space<vmem>>) attributes {dimension_semantics = [#tpu.dimension_semantics<parallel>], iteration_bounds = array<i64: 1>, scalar_prefetch = 0 : i64, scratch_operands = 0 : i64, tpu.core_type = #tpu.core_type<tc>, window_params = [{transform_indices = @transform_0, window_bounds = array<i64: 2, 128>}, {transform_indices = @transform_1, window_bounds = array<i64: 2, 128>}, {transform_indices = @transform_2, window_bounds = array<i64: 2, 128>}, {transform_indices = @transform_3, window_bounds = array<i64: 2, 128>}, {transform_indices = @transform_4, window_bounds = array<i64: 2, 128>}]} {
    %c0 = arith.constant 0 : index
    %c0_0 = arith.constant 0 : index
    %0 = vector.load %arg1[%c0, %c0_0] : memref<2x128xf32, #tpu.memory_space<vmem>>, vector<2x128xf32>
    %c0_1 = arith.constant 0 : index
    %c0_2 = arith.constant 0 : index
    %1 = vector.load %arg2[%c0_1, %c0_2] : memref<2x128xf32, #tpu.memory_space<vmem>>, vector<2x128xf32>
    %2 = arith.maximumf %0, %1 : vector<2x128xf32>
    %c0_3 = arith.constant 0 : index
    %c0_4 = arith.constant 0 : index
    %3 = vector.load %arg3[%c0_3, %c0_4] : memref<2x128xf32, #tpu.memory_space<vmem>>, vector<2x128xf32>
    %c0_5 = arith.constant 0 : index
    %c0_6 = arith.constant 0 : index
    %4 = vector.load %arg4[%c0_5, %c0_6] : memref<2x128xf32, #tpu.memory_space<vmem>>, vector<2x128xf32>
    %5 = arith.maximumf %3, %4 : vector<2x128xf32>
    %6 = arith.maximumf %2, %5 : vector<2x128xf32>
    %c0_7 = arith.constant 0 : index
    %c0_8 = arith.constant 0 : index
    %7 = vector.load %arg5[%c0_7, %c0_8] : memref<2x128xf32, #tpu.memory_space<vmem>>, vector<2x128xf32>
    tpu.vector_store %arg5[%c0_7, %c0_8], %6 {strides = array<i32>} : memref<2x128xf32, #tpu.memory_space<vmem>>, vector<2x128xf32>,
    return
  }
  func.func @transform_0(%arg0: i32) -> (i32, i32) {
    %c0_i32 = arith.constant 0 : i32
    %c0_i32_0 = arith.constant 0 : i32
    return %arg0, %c0_i32 : i32, i32
  }
  func.func @transform_1(%arg0: i32) -> (i32, i32) {
    %c0_i32 = arith.constant 0 : i32
    %c0_i32_0 = arith.constant 0 : i32
    return %arg0, %c0_i32 : i32, i32
  }
  func.func @transform_2(%arg0: i32) -> (i32, i32) {
    %c0_i32 = arith.constant 0 : i32
    %c0_i32_0 = arith.constant 0 : i32
    return %arg0, %c0_i32 : i32, i32
  }
  func.func @transform_3(%arg0: i32) -> (i32, i32) {
    %c0_i32 = arith.constant 0 : i32
    %c0_i32_0 = arith.constant 0 : i32
    return %arg0, %c0_i32 : i32, i32
  }
  func.func @transform_4(%arg0: i32) -> (i32, i32) {
    %c0_i32 = arith.constant 0 : i32
    %c0_i32_0 = arith.constant 0 : i32
    return %arg0, %c0_i32 : i32, i32
  }
}

module attributes {stable_mosaic.version = 11 : i64} {
  func.func @kernel(%arg0: i32, %arg1: memref<2x2304xbf16, #tpu.memory_space<vmem>>, %arg2: memref<2304x256xbf16, #tpu.memory_space<vmem>>, %arg3: memref<1x256xf32, #tpu.memory_space<vmem>>, %arg4: memref<2x256xf32, #tpu.memory_space<vmem>>) attributes {dimension_semantics = [#tpu.dimension_semantics<parallel>], iteration_bounds = array<i64: 1>, scalar_prefetch = 0 : i64, scratch_operands = 0 : i64, tpu.core_type = #tpu.core_type<tc>, window_params = [{transform_indices = @transform_0, window_bounds = array<i64: 2, 2304>}, {pipeline_mode = #tpu.pipeline_mode<synchronous>, transform_indices = @transform_1, window_bounds = array<i64: 2304, 256>}, {pipeline_mode = #tpu.pipeline_mode<synchronous>, transform_indices = @transform_2, window_bounds = array<i64: 1, 256>}, {transform_indices = @transform_3, window_bounds = array<i64: 2, 256>}]} {
    %c0 = arith.constant 0 : index
    %c0_0 = arith.constant 0 : index
    %0 = vector.load %arg1[%c0, %c0_0] : memref<2x2304xbf16, #tpu.memory_space<vmem>>, vector<2x2304xbf16>
    %c0_1 = arith.constant 0 : index
    %c0_2 = arith.constant 0 : index
    %1 = vector.load %arg2[%c0_1, %c0_2] : memref<2304x256xbf16, #tpu.memory_space<vmem>>, vector<2304x256xbf16>
    %cst = arith.constant dense<0.000000e+00> : vector<2x256xf32>
    %2 = tpu.matmul %0, %1, %cst {dimension_numbers = #tpu.dot_dimension_numbers<[1], [0], [0], [1], [0, 0, 1, 1], [], []>} : vector<2x2304xbf16>, vector<2304x256xbf16>, vector<2x256xf32> -> vector<2x256xf32>
    %c0_3 = arith.constant 0 : index
    %c0_4 = arith.constant 0 : index
    %3 = vector.load %arg3[%c0_3, %c0_4] : memref<1x256xf32, #tpu.memory_space<vmem>>, vector<1x256xf32>
    %4 = vector.broadcast %3 : vector<1x256xf32> to vector<2x256xf32>
    %5 = arith.addf %2, %4 : vector<2x256xf32>
    %c0_5 = arith.constant 0 : index
    %c0_6 = arith.constant 0 : index
    %6 = vector.load %arg4[%c0_5, %c0_6] : memref<2x256xf32, #tpu.memory_space<vmem>>, vector<2x256xf32>
    tpu.vector_store %arg4[%c0_5, %c0_6], %5 {strides = array<i32>} : memref<2x256xf32, #tpu.memory_space<vmem>>, vector<2x256xf32>,
    return
  }
  func.func @transform_0(%arg0: i32) -> (i32, i32) {
    %c0_i32 = arith.constant 0 : i32
    %c0_i32_0 = arith.constant 0 : i32
    return %arg0, %c0_i32 : i32, i32
  }
  func.func @transform_1(%arg0: i32) -> (i32, i32) {
    %c0_i32 = arith.constant 0 : i32
    %c0_i32_0 = arith.constant 0 : i32
    %c0_i32_1 = arith.constant 0 : i32
    return %c0_i32, %c0_i32_0 : i32, i32
  }
  func.func @transform_2(%arg0: i32) -> (i32, i32) {
    %c0_i32 = arith.constant 0 : i32
    %c0_i32_0 = arith.constant 0 : i32
    %c0_i32_1 = arith.constant 0 : i32
    return %c0_i32, %c0_i32_0 : i32, i32
  }
  func.func @transform_3(%arg0: i32) -> (i32, i32) {
    %c0_i32 = arith.constant 0 : i32
    %c0_i32_0 = arith.constant 0 : i32
    return %arg0, %c0_i32 : i32, i32
  }
}

module attributes {stable_mosaic.version = 11 : i64} {
  func.func @kernel(%arg0: i32, %arg1: memref<2x256xbf16, #tpu.memory_space<vmem>>, %arg2: memref<256x512xbf16, #tpu.memory_space<vmem>>, %arg3: memref<1x512xf32, #tpu.memory_space<vmem>>, %arg4: memref<2x512xf32, #tpu.memory_space<vmem>>) attributes {dimension_semantics = [#tpu.dimension_semantics<parallel>], iteration_bounds = array<i64: 1>, scalar_prefetch = 0 : i64, scratch_operands = 0 : i64, tpu.core_type = #tpu.core_type<tc>, window_params = [{transform_indices = @transform_0, window_bounds = array<i64: 2, 256>}, {pipeline_mode = #tpu.pipeline_mode<synchronous>, transform_indices = @transform_1, window_bounds = array<i64: 256, 512>}, {pipeline_mode = #tpu.pipeline_mode<synchronous>, transform_indices = @transform_2, window_bounds = array<i64: 1, 512>}, {transform_indices = @transform_3, window_bounds = array<i64: 2, 512>}]} {
    %c0 = arith.constant 0 : index
    %c0_0 = arith.constant 0 : index
    %0 = vector.load %arg1[%c0, %c0_0] : memref<2x256xbf16, #tpu.memory_space<vmem>>, vector<2x256xbf16>
    %c0_1 = arith.constant 0 : index
    %c0_2 = arith.constant 0 : index
    %1 = vector.load %arg2[%c0_1, %c0_2] : memref<256x512xbf16, #tpu.memory_space<vmem>>, vector<256x512xbf16>
    %cst = arith.constant dense<0.000000e+00> : vector<2x512xf32>
    %2 = tpu.matmul %0, %1, %cst {dimension_numbers = #tpu.dot_dimension_numbers<[1], [0], [0], [1], [0, 0, 1, 1], [], []>} : vector<2x256xbf16>, vector<256x512xbf16>, vector<2x512xf32> -> vector<2x512xf32>
    %c0_3 = arith.constant 0 : index
    %c0_4 = arith.constant 0 : index
    %3 = vector.load %arg3[%c0_3, %c0_4] : memref<1x512xf32, #tpu.memory_space<vmem>>, vector<1x512xf32>
    %4 = vector.broadcast %3 : vector<1x512xf32> to vector<2x512xf32>
    %5 = arith.addf %2, %4 : vector<2x512xf32>
    %c0_5 = arith.constant 0 : index
    %c0_6 = arith.constant 0 : index
    %6 = vector.load %arg4[%c0_5, %c0_6] : memref<2x512xf32, #tpu.memory_space<vmem>>, vector<2x512xf32>
    tpu.vector_store %arg4[%c0_5, %c0_6], %5 {strides = array<i32>} : memref<2x512xf32, #tpu.memory_space<vmem>>, vector<2x512xf32>,
    return
  }
  func.func @transform_0(%arg0: i32) -> (i32, i32) {
    %c0_i32 = arith.constant 0 : i32
    %c0_i32_0 = arith.constant 0 : i32
    return %arg0, %c0_i32 : i32, i32
  }
  func.func @transform_1(%arg0: i32) -> (i32, i32) {
    %c0_i32 = arith.constant 0 : i32
    %c0_i32_0 = arith.constant 0 : i32
    %c0_i32_1 = arith.constant 0 : i32
    return %c0_i32, %c0_i32_0 : i32, i32
  }
  func.func @transform_2(%arg0: i32) -> (i32, i32) {
    %c0_i32 = arith.constant 0 : i32
    %c0_i32_0 = arith.constant 0 : i32
    %c0_i32_1 = arith.constant 0 : i32
    return %c0_i32, %c0_i32_0 : i32, i32
  }
  func.func @transform_3(%arg0: i32) -> (i32, i32) {
    %c0_i32 = arith.constant 0 : i32
    %c0_i32_0 = arith.constant 0 : i32
    return %arg0, %c0_i32 : i32, i32
  }
}

module attributes {stable_mosaic.version = 11 : i64} {
  func.func @kernel(%arg0: i32, %arg1: memref<8x1152xbf16, #tpu.memory_space<vmem>>, %arg2: memref<8x1152xbf16, #tpu.memory_space<vmem>>, %arg3: memref<1152x128xbf16, #tpu.memory_space<vmem>>, %arg4: memref<1152x128xbf16, #tpu.memory_space<vmem>>, %arg5: memref<1x128xf32, #tpu.memory_space<vmem>>, %arg6: memref<8x128xf32, #tpu.memory_space<vmem>>) attributes {dimension_semantics = [#tpu.dimension_semantics<parallel>], iteration_bounds = array<i64: 1>, scalar_prefetch = 0 : i64, scratch_operands = 0 : i64, tpu.core_type = #tpu.core_type<tc>, window_params = [{transform_indices = @transform_0, window_bounds = array<i64: 8, 1152>}, {transform_indices = @transform_1, window_bounds = array<i64: 8, 1152>}, {pipeline_mode = #tpu.pipeline_mode<synchronous>, transform_indices = @transform_2, window_bounds = array<i64: 1152, 128>}, {pipeline_mode = #tpu.pipeline_mode<synchronous>, transform_indices = @transform_3, window_bounds = array<i64: 1152, 128>}, {pipeline_mode = #tpu.pipeline_mode<synchronous>, transform_indices = @transform_4, window_bounds = array<i64: 1, 128>}, {transform_indices = @transform_5, window_bounds = array<i64: 8, 128>}]} {
    %c0 = arith.constant 0 : index
    %c0_0 = arith.constant 0 : index
    %0 = vector.load %arg1[%c0, %c0_0] : memref<8x1152xbf16, #tpu.memory_space<vmem>>, vector<8x1152xbf16>
    %c0_1 = arith.constant 0 : index
    %c0_2 = arith.constant 0 : index
    %1 = vector.load %arg3[%c0_1, %c0_2] : memref<1152x128xbf16, #tpu.memory_space<vmem>>, vector<1152x128xbf16>
    %cst = arith.constant dense<0.000000e+00> : vector<8x128xf32>
    %2 = tpu.matmul %0, %1, %cst {dimension_numbers = #tpu.dot_dimension_numbers<[1], [0], [0], [1], [0, 0, 1, 1], [], []>} : vector<8x1152xbf16>, vector<1152x128xbf16>, vector<8x128xf32> -> vector<8x128xf32>
    %c0_3 = arith.constant 0 : index
    %c0_4 = arith.constant 0 : index
    %3 = vector.load %arg2[%c0_3, %c0_4] : memref<8x1152xbf16, #tpu.memory_space<vmem>>, vector<8x1152xbf16>
    %c0_5 = arith.constant 0 : index
    %c0_6 = arith.constant 0 : index
    %4 = vector.load %arg4[%c0_5, %c0_6] : memref<1152x128xbf16, #tpu.memory_space<vmem>>, vector<1152x128xbf16>
    %cst_7 = arith.constant dense<0.000000e+00> : vector<8x128xf32>
    %5 = tpu.matmul %3, %4, %cst_7 {dimension_numbers = #tpu.dot_dimension_numbers<[1], [0], [0], [1], [0, 0, 1, 1], [], []>} : vector<8x1152xbf16>, vector<1152x128xbf16>, vector<8x128xf32> -> vector<8x128xf32>
    %6 = arith.addf %2, %5 : vector<8x128xf32>
    %c0_8 = arith.constant 0 : index
    %c0_9 = arith.constant 0 : index
    %7 = vector.load %arg5[%c0_8, %c0_9] : memref<1x128xf32, #tpu.memory_space<vmem>>, vector<1x128xf32>
    %8 = vector.broadcast %7 : vector<1x128xf32> to vector<8x128xf32>
    %9 = arith.addf %6, %8 : vector<8x128xf32>
    %c0_10 = arith.constant 0 : index
    %c0_11 = arith.constant 0 : index
    %10 = vector.load %arg6[%c0_10, %c0_11] : memref<8x128xf32, #tpu.memory_space<vmem>>, vector<8x128xf32>
    tpu.vector_store %arg6[%c0_10, %c0_11], %9 {strides = array<i32>} : memref<8x128xf32, #tpu.memory_space<vmem>>, vector<8x128xf32>,
    return
  }
  func.func @transform_0(%arg0: i32) -> (i32, i32) {
    %c0_i32 = arith.constant 0 : i32
    %c0_i32_0 = arith.constant 0 : i32
    return %arg0, %c0_i32 : i32, i32
  }
  func.func @transform_1(%arg0: i32) -> (i32, i32) {
    %c0_i32 = arith.constant 0 : i32
    %c0_i32_0 = arith.constant 0 : i32
    return %arg0, %c0_i32 : i32, i32
  }
  func.func @transform_2(%arg0: i32) -> (i32, i32) {
    %c0_i32 = arith.constant 0 : i32
    %c0_i32_0 = arith.constant 0 : i32
    %c0_i32_1 = arith.constant 0 : i32
    return %c0_i32, %c0_i32_0 : i32, i32
  }
  func.func @transform_3(%arg0: i32) -> (i32, i32) {
    %c0_i32 = arith.constant 0 : i32
    %c0_i32_0 = arith.constant 0 : i32
    %c0_i32_1 = arith.constant 0 : i32
    return %c0_i32, %c0_i32_0 : i32, i32
  }
  func.func @transform_4(%arg0: i32) -> (i32, i32) {
    %c0_i32 = arith.constant 0 : i32
    %c0_i32_0 = arith.constant 0 : i32
    %c0_i32_1 = arith.constant 0 : i32
    return %c0_i32, %c0_i32_0 : i32, i32
  }
  func.func @transform_5(%arg0: i32) -> (i32, i32) {
    %c0_i32 = arith.constant 0 : i32
    %c0_i32_0 = arith.constant 0 : i32
    return %arg0, %c0_i32 : i32, i32
  }
}

module attributes {stable_mosaic.version = 11 : i64} {
  func.func @kernel(%arg0: i32, %arg1: memref<8x128xbf16, #tpu.memory_space<vmem>>, %arg2: memref<128x256xbf16, #tpu.memory_space<vmem>>, %arg3: memref<1x256xf32, #tpu.memory_space<vmem>>, %arg4: memref<8x256xf32, #tpu.memory_space<vmem>>) attributes {dimension_semantics = [#tpu.dimension_semantics<parallel>], iteration_bounds = array<i64: 1>, scalar_prefetch = 0 : i64, scratch_operands = 0 : i64, tpu.core_type = #tpu.core_type<tc>, window_params = [{transform_indices = @transform_0, window_bounds = array<i64: 8, 128>}, {pipeline_mode = #tpu.pipeline_mode<synchronous>, transform_indices = @transform_1, window_bounds = array<i64: 128, 256>}, {pipeline_mode = #tpu.pipeline_mode<synchronous>, transform_indices = @transform_2, window_bounds = array<i64: 1, 256>}, {transform_indices = @transform_3, window_bounds = array<i64: 8, 256>}]} {
    %c0 = arith.constant 0 : index
    %c0_0 = arith.constant 0 : index
    %0 = vector.load %arg1[%c0, %c0_0] : memref<8x128xbf16, #tpu.memory_space<vmem>>, vector<8x128xbf16>
    %c0_1 = arith.constant 0 : index
    %c0_2 = arith.constant 0 : index
    %1 = vector.load %arg2[%c0_1, %c0_2] : memref<128x256xbf16, #tpu.memory_space<vmem>>, vector<128x256xbf16>
    %cst = arith.constant dense<0.000000e+00> : vector<8x256xf32>
    %2 = tpu.matmul %0, %1, %cst {dimension_numbers = #tpu.dot_dimension_numbers<[1], [0], [0], [1], [0, 0, 1, 1], [], []>} : vector<8x128xbf16>, vector<128x256xbf16>, vector<8x256xf32> -> vector<8x256xf32>
    %c0_3 = arith.constant 0 : index
    %c0_4 = arith.constant 0 : index
    %3 = vector.load %arg3[%c0_3, %c0_4] : memref<1x256xf32, #tpu.memory_space<vmem>>, vector<1x256xf32>
    %4 = vector.broadcast %3 : vector<1x256xf32> to vector<8x256xf32>
    %5 = arith.addf %2, %4 : vector<8x256xf32>
    %c0_5 = arith.constant 0 : index
    %c0_6 = arith.constant 0 : index
    %6 = vector.load %arg4[%c0_5, %c0_6] : memref<8x256xf32, #tpu.memory_space<vmem>>, vector<8x256xf32>
    tpu.vector_store %arg4[%c0_5, %c0_6], %5 {strides = array<i32>} : memref<8x256xf32, #tpu.memory_space<vmem>>, vector<8x256xf32>,
    return
  }
  func.func @transform_0(%arg0: i32) -> (i32, i32) {
    %c0_i32 = arith.constant 0 : i32
    %c0_i32_0 = arith.constant 0 : i32
    return %arg0, %c0_i32 : i32, i32
  }
  func.func @transform_1(%arg0: i32) -> (i32, i32) {
    %c0_i32 = arith.constant 0 : i32
    %c0_i32_0 = arith.constant 0 : i32
    %c0_i32_1 = arith.constant 0 : i32
    return %c0_i32, %c0_i32_0 : i32, i32
  }
  func.func @transform_2(%arg0: i32) -> (i32, i32) {
    %c0_i32 = arith.constant 0 : i32
    %c0_i32_0 = arith.constant 0 : i32
    %c0_i32_1 = arith.constant 0 : i32
    return %c0_i32, %c0_i32_0 : i32, i32
  }
  func.func @transform_3(%arg0: i32) -> (i32, i32) {
    %c0_i32 = arith.constant 0 : i32
    %c0_i32_0 = arith.constant 0 : i32
    return %arg0, %c0_i32 : i32, i32
  }
}

module attributes {stable_mosaic.version = 11 : i64} {
  func.func @kernel(%arg0: i32, %arg1: memref<32x576xbf16, #tpu.memory_space<vmem>>, %arg2: memref<32x576xbf16, #tpu.memory_space<vmem>>, %arg3: memref<576x64xbf16, #tpu.memory_space<vmem>>, %arg4: memref<576x64xbf16, #tpu.memory_space<vmem>>, %arg5: memref<1x64xf32, #tpu.memory_space<vmem>>, %arg6: memref<32x64xf32, #tpu.memory_space<vmem>>) attributes {dimension_semantics = [#tpu.dimension_semantics<parallel>], iteration_bounds = array<i64: 1>, scalar_prefetch = 0 : i64, scratch_operands = 0 : i64, tpu.core_type = #tpu.core_type<tc>, window_params = [{transform_indices = @transform_0, window_bounds = array<i64: 32, 576>}, {transform_indices = @transform_1, window_bounds = array<i64: 32, 576>}, {pipeline_mode = #tpu.pipeline_mode<synchronous>, transform_indices = @transform_2, window_bounds = array<i64: 576, 64>}, {pipeline_mode = #tpu.pipeline_mode<synchronous>, transform_indices = @transform_3, window_bounds = array<i64: 576, 64>}, {pipeline_mode = #tpu.pipeline_mode<synchronous>, transform_indices = @transform_4, window_bounds = array<i64: 1, 64>}, {transform_indices = @transform_5, window_bounds = array<i64: 32, 64>}]} {
    %c0 = arith.constant 0 : index
    %c0_0 = arith.constant 0 : index
    %0 = vector.load %arg1[%c0, %c0_0] : memref<32x576xbf16, #tpu.memory_space<vmem>>, vector<32x576xbf16>
    %c0_1 = arith.constant 0 : index
    %c0_2 = arith.constant 0 : index
    %1 = vector.load %arg3[%c0_1, %c0_2] : memref<576x64xbf16, #tpu.memory_space<vmem>>, vector<576x64xbf16>
    %cst = arith.constant dense<0.000000e+00> : vector<32x64xf32>
    %2 = tpu.matmul %0, %1, %cst {dimension_numbers = #tpu.dot_dimension_numbers<[1], [0], [0], [1], [0, 0, 1, 1], [], []>} : vector<32x576xbf16>, vector<576x64xbf16>, vector<32x64xf32> -> vector<32x64xf32>
    %c0_3 = arith.constant 0 : index
    %c0_4 = arith.constant 0 : index
    %3 = vector.load %arg2[%c0_3, %c0_4] : memref<32x576xbf16, #tpu.memory_space<vmem>>, vector<32x576xbf16>
    %c0_5 = arith.constant 0 : index
    %c0_6 = arith.constant 0 : index
    %4 = vector.load %arg4[%c0_5, %c0_6] : memref<576x64xbf16, #tpu.memory_space<vmem>>, vector<576x64xbf16>
    %cst_7 = arith.constant dense<0.000000e+00> : vector<32x64xf32>
    %5 = tpu.matmul %3, %4, %cst_7 {dimension_numbers = #tpu.dot_dimension_numbers<[1], [0], [0], [1], [0, 0, 1, 1], [], []>} : vector<32x576xbf16>, vector<576x64xbf16>, vector<32x64xf32> -> vector<32x64xf32>
    %6 = arith.addf %2, %5 : vector<32x64xf32>
    %c0_8 = arith.constant 0 : index
    %c0_9 = arith.constant 0 : index
    %7 = vector.load %arg5[%c0_8, %c0_9] : memref<1x64xf32, #tpu.memory_space<vmem>>, vector<1x64xf32>
    %8 = vector.broadcast %7 : vector<1x64xf32> to vector<32x64xf32>
    %9 = arith.addf %6, %8 : vector<32x64xf32>
    %c0_10 = arith.constant 0 : index
    %c0_11 = arith.constant 0 : index
    %10 = vector.load %arg6[%c0_10, %c0_11] : memref<32x64xf32, #tpu.memory_space<vmem>>, vector<32x64xf32>
    tpu.vector_store %arg6[%c0_10, %c0_11], %9 {strides = array<i32>} : memref<32x64xf32, #tpu.memory_space<vmem>>, vector<32x64xf32>,
    return
  }
  func.func @transform_0(%arg0: i32) -> (i32, i32) {
    %c0_i32 = arith.constant 0 : i32
    %c0_i32_0 = arith.constant 0 : i32
    return %arg0, %c0_i32 : i32, i32
  }
  func.func @transform_1(%arg0: i32) -> (i32, i32) {
    %c0_i32 = arith.constant 0 : i32
    %c0_i32_0 = arith.constant 0 : i32
    return %arg0, %c0_i32 : i32, i32
  }
  func.func @transform_2(%arg0: i32) -> (i32, i32) {
    %c0_i32 = arith.constant 0 : i32
    %c0_i32_0 = arith.constant 0 : i32
    %c0_i32_1 = arith.constant 0 : i32
    return %c0_i32, %c0_i32_0 : i32, i32
  }
  func.func @transform_3(%arg0: i32) -> (i32, i32) {
    %c0_i32 = arith.constant 0 : i32
    %c0_i32_0 = arith.constant 0 : i32
    %c0_i32_1 = arith.constant 0 : i32
    return %c0_i32, %c0_i32_0 : i32, i32
  }
  func.func @transform_4(%arg0: i32) -> (i32, i32) {
    %c0_i32 = arith.constant 0 : i32
    %c0_i32_0 = arith.constant 0 : i32
    %c0_i32_1 = arith.constant 0 : i32
    return %c0_i32, %c0_i32_0 : i32, i32
  }
  func.func @transform_5(%arg0: i32) -> (i32, i32) {
    %c0_i32 = arith.constant 0 : i32
    %c0_i32_0 = arith.constant 0 : i32
    return %arg0, %c0_i32 : i32, i32
  }
}

module attributes {stable_mosaic.version = 11 : i64} {
  func.func @kernel(%arg0: i32, %arg1: memref<32x64xbf16, #tpu.memory_space<vmem>>, %arg2: memref<64x128xbf16, #tpu.memory_space<vmem>>, %arg3: memref<1x128xf32, #tpu.memory_space<vmem>>, %arg4: memref<32x128xf32, #tpu.memory_space<vmem>>) attributes {dimension_semantics = [#tpu.dimension_semantics<parallel>], iteration_bounds = array<i64: 1>, scalar_prefetch = 0 : i64, scratch_operands = 0 : i64, tpu.core_type = #tpu.core_type<tc>, window_params = [{transform_indices = @transform_0, window_bounds = array<i64: 32, 64>}, {pipeline_mode = #tpu.pipeline_mode<synchronous>, transform_indices = @transform_1, window_bounds = array<i64: 64, 128>}, {pipeline_mode = #tpu.pipeline_mode<synchronous>, transform_indices = @transform_2, window_bounds = array<i64: 1, 128>}, {transform_indices = @transform_3, window_bounds = array<i64: 32, 128>}]} {
    %c0 = arith.constant 0 : index
    %c0_0 = arith.constant 0 : index
    %0 = vector.load %arg1[%c0, %c0_0] : memref<32x64xbf16, #tpu.memory_space<vmem>>, vector<32x64xbf16>
    %c0_1 = arith.constant 0 : index
    %c0_2 = arith.constant 0 : index
    %1 = vector.load %arg2[%c0_1, %c0_2] : memref<64x128xbf16, #tpu.memory_space<vmem>>, vector<64x128xbf16>
    %cst = arith.constant dense<0.000000e+00> : vector<32x128xf32>
    %2 = tpu.matmul %0, %1, %cst {dimension_numbers = #tpu.dot_dimension_numbers<[1], [0], [0], [1], [0, 0, 1, 1], [], []>} : vector<32x64xbf16>, vector<64x128xbf16>, vector<32x128xf32> -> vector<32x128xf32>
    %c0_3 = arith.constant 0 : index
    %c0_4 = arith.constant 0 : index
    %3 = vector.load %arg3[%c0_3, %c0_4] : memref<1x128xf32, #tpu.memory_space<vmem>>, vector<1x128xf32>
    %4 = vector.broadcast %3 : vector<1x128xf32> to vector<32x128xf32>
    %5 = arith.addf %2, %4 : vector<32x128xf32>
    %c0_5 = arith.constant 0 : index
    %c0_6 = arith.constant 0 : index
    %6 = vector.load %arg4[%c0_5, %c0_6] : memref<32x128xf32, #tpu.memory_space<vmem>>, vector<32x128xf32>
    tpu.vector_store %arg4[%c0_5, %c0_6], %5 {strides = array<i32>} : memref<32x128xf32, #tpu.memory_space<vmem>>, vector<32x128xf32>,
    return
  }
  func.func @transform_0(%arg0: i32) -> (i32, i32) {
    %c0_i32 = arith.constant 0 : i32
    %c0_i32_0 = arith.constant 0 : i32
    return %arg0, %c0_i32 : i32, i32
  }
  func.func @transform_1(%arg0: i32) -> (i32, i32) {
    %c0_i32 = arith.constant 0 : i32
    %c0_i32_0 = arith.constant 0 : i32
    %c0_i32_1 = arith.constant 0 : i32
    return %c0_i32, %c0_i32_0 : i32, i32
  }
  func.func @transform_2(%arg0: i32) -> (i32, i32) {
    %c0_i32 = arith.constant 0 : i32
    %c0_i32_0 = arith.constant 0 : i32
    %c0_i32_1 = arith.constant 0 : i32
    return %c0_i32, %c0_i32_0 : i32, i32
  }
  func.func @transform_3(%arg0: i32) -> (i32, i32) {
    %c0_i32 = arith.constant 0 : i32
    %c0_i32_0 = arith.constant 0 : i32
    return %arg0, %c0_i32 : i32, i32
  }
}

module attributes {stable_mosaic.version = 11 : i64} {
  func.func @kernel(%arg0: i32, %arg1: memref<128x288xbf16, #tpu.memory_space<vmem>>, %arg2: memref<128x288xbf16, #tpu.memory_space<vmem>>, %arg3: memref<288x32xbf16, #tpu.memory_space<vmem>>, %arg4: memref<288x32xbf16, #tpu.memory_space<vmem>>, %arg5: memref<1x32xf32, #tpu.memory_space<vmem>>, %arg6: memref<128x32xf32, #tpu.memory_space<vmem>>) attributes {dimension_semantics = [#tpu.dimension_semantics<parallel>], iteration_bounds = array<i64: 1>, scalar_prefetch = 0 : i64, scratch_operands = 0 : i64, tpu.core_type = #tpu.core_type<tc>, window_params = [{transform_indices = @transform_0, window_bounds = array<i64: 128, 288>}, {transform_indices = @transform_1, window_bounds = array<i64: 128, 288>}, {pipeline_mode = #tpu.pipeline_mode<synchronous>, transform_indices = @transform_2, window_bounds = array<i64: 288, 32>}, {pipeline_mode = #tpu.pipeline_mode<synchronous>, transform_indices = @transform_3, window_bounds = array<i64: 288, 32>}, {pipeline_mode = #tpu.pipeline_mode<synchronous>, transform_indices = @transform_4, window_bounds = array<i64: 1, 32>}, {transform_indices = @transform_5, window_bounds = array<i64: 128, 32>}]} {
    %c0 = arith.constant 0 : index
    %c0_0 = arith.constant 0 : index
    %0 = vector.load %arg1[%c0, %c0_0] : memref<128x288xbf16, #tpu.memory_space<vmem>>, vector<128x288xbf16>
    %c0_1 = arith.constant 0 : index
    %c0_2 = arith.constant 0 : index
    %1 = vector.load %arg3[%c0_1, %c0_2] : memref<288x32xbf16, #tpu.memory_space<vmem>>, vector<288x32xbf16>
    %cst = arith.constant dense<0.000000e+00> : vector<128x32xf32>
    %2 = tpu.matmul %0, %1, %cst {dimension_numbers = #tpu.dot_dimension_numbers<[1], [0], [0], [1], [0, 0, 1, 1], [], []>} : vector<128x288xbf16>, vector<288x32xbf16>, vector<128x32xf32> -> vector<128x32xf32>
    %c0_3 = arith.constant 0 : index
    %c0_4 = arith.constant 0 : index
    %3 = vector.load %arg2[%c0_3, %c0_4] : memref<128x288xbf16, #tpu.memory_space<vmem>>, vector<128x288xbf16>
    %c0_5 = arith.constant 0 : index
    %c0_6 = arith.constant 0 : index
    %4 = vector.load %arg4[%c0_5, %c0_6] : memref<288x32xbf16, #tpu.memory_space<vmem>>, vector<288x32xbf16>
    %cst_7 = arith.constant dense<0.000000e+00> : vector<128x32xf32>
    %5 = tpu.matmul %3, %4, %cst_7 {dimension_numbers = #tpu.dot_dimension_numbers<[1], [0], [0], [1], [0, 0, 1, 1], [], []>} : vector<128x288xbf16>, vector<288x32xbf16>, vector<128x32xf32> -> vector<128x32xf32>
    %6 = arith.addf %2, %5 : vector<128x32xf32>
    %c0_8 = arith.constant 0 : index
    %c0_9 = arith.constant 0 : index
    %7 = vector.load %arg5[%c0_8, %c0_9] : memref<1x32xf32, #tpu.memory_space<vmem>>, vector<1x32xf32>
    %8 = vector.broadcast %7 : vector<1x32xf32> to vector<128x32xf32>
    %9 = arith.addf %6, %8 : vector<128x32xf32>
    %c0_10 = arith.constant 0 : index
    %c0_11 = arith.constant 0 : index
    %10 = vector.load %arg6[%c0_10, %c0_11] : memref<128x32xf32, #tpu.memory_space<vmem>>, vector<128x32xf32>
    tpu.vector_store %arg6[%c0_10, %c0_11], %9 {strides = array<i32>} : memref<128x32xf32, #tpu.memory_space<vmem>>, vector<128x32xf32>,
    return
  }
  func.func @transform_0(%arg0: i32) -> (i32, i32) {
    %c0_i32 = arith.constant 0 : i32
    %c0_i32_0 = arith.constant 0 : i32
    return %arg0, %c0_i32 : i32, i32
  }
  func.func @transform_1(%arg0: i32) -> (i32, i32) {
    %c0_i32 = arith.constant 0 : i32
    %c0_i32_0 = arith.constant 0 : i32
    return %arg0, %c0_i32 : i32, i32
  }
  func.func @transform_2(%arg0: i32) -> (i32, i32) {
    %c0_i32 = arith.constant 0 : i32
    %c0_i32_0 = arith.constant 0 : i32
    %c0_i32_1 = arith.constant 0 : i32
    return %c0_i32, %c0_i32_0 : i32, i32
  }
  func.func @transform_3(%arg0: i32) -> (i32, i32) {
    %c0_i32 = arith.constant 0 : i32
    %c0_i32_0 = arith.constant 0 : i32
    %c0_i32_1 = arith.constant 0 : i32
    return %c0_i32, %c0_i32_0 : i32, i32
  }
  func.func @transform_4(%arg0: i32) -> (i32, i32) {
    %c0_i32 = arith.constant 0 : i32
    %c0_i32_0 = arith.constant 0 : i32
    %c0_i32_1 = arith.constant 0 : i32
    return %c0_i32, %c0_i32_0 : i32, i32
  }
  func.func @transform_5(%arg0: i32) -> (i32, i32) {
    %c0_i32 = arith.constant 0 : i32
    %c0_i32_0 = arith.constant 0 : i32
    return %arg0, %c0_i32 : i32, i32
  }
}

module attributes {stable_mosaic.version = 11 : i64} {
  func.func @kernel(%arg0: i32, %arg1: memref<128x32xbf16, #tpu.memory_space<vmem>>, %arg2: memref<32x64xbf16, #tpu.memory_space<vmem>>, %arg3: memref<1x64xf32, #tpu.memory_space<vmem>>, %arg4: memref<128x64xf32, #tpu.memory_space<vmem>>) attributes {dimension_semantics = [#tpu.dimension_semantics<parallel>], iteration_bounds = array<i64: 1>, scalar_prefetch = 0 : i64, scratch_operands = 0 : i64, tpu.core_type = #tpu.core_type<tc>, window_params = [{transform_indices = @transform_0, window_bounds = array<i64: 128, 32>}, {pipeline_mode = #tpu.pipeline_mode<synchronous>, transform_indices = @transform_1, window_bounds = array<i64: 32, 64>}, {pipeline_mode = #tpu.pipeline_mode<synchronous>, transform_indices = @transform_2, window_bounds = array<i64: 1, 64>}, {transform_indices = @transform_3, window_bounds = array<i64: 128, 64>}]} {
    %c0 = arith.constant 0 : index
    %c0_0 = arith.constant 0 : index
    %0 = vector.load %arg1[%c0, %c0_0] : memref<128x32xbf16, #tpu.memory_space<vmem>>, vector<128x32xbf16>
    %c0_1 = arith.constant 0 : index
    %c0_2 = arith.constant 0 : index
    %1 = vector.load %arg2[%c0_1, %c0_2] : memref<32x64xbf16, #tpu.memory_space<vmem>>, vector<32x64xbf16>
    %cst = arith.constant dense<0.000000e+00> : vector<128x64xf32>
    %2 = tpu.matmul %0, %1, %cst {dimension_numbers = #tpu.dot_dimension_numbers<[1], [0], [0], [1], [0, 0, 1, 1], [], []>} : vector<128x32xbf16>, vector<32x64xbf16>, vector<128x64xf32> -> vector<128x64xf32>
    %c0_3 = arith.constant 0 : index
    %c0_4 = arith.constant 0 : index
    %3 = vector.load %arg3[%c0_3, %c0_4] : memref<1x64xf32, #tpu.memory_space<vmem>>, vector<1x64xf32>
    %4 = vector.broadcast %3 : vector<1x64xf32> to vector<128x64xf32>
    %5 = arith.addf %2, %4 : vector<128x64xf32>
    %c0_5 = arith.constant 0 : index
    %c0_6 = arith.constant 0 : index
    %6 = vector.load %arg4[%c0_5, %c0_6] : memref<128x64xf32, #tpu.memory_space<vmem>>, vector<128x64xf32>
    tpu.vector_store %arg4[%c0_5, %c0_6], %5 {strides = array<i32>} : memref<128x64xf32, #tpu.memory_space<vmem>>, vector<128x64xf32>,
    return
  }
  func.func @transform_0(%arg0: i32) -> (i32, i32) {
    %c0_i32 = arith.constant 0 : i32
    %c0_i32_0 = arith.constant 0 : i32
    return %arg0, %c0_i32 : i32, i32
  }
  func.func @transform_1(%arg0: i32) -> (i32, i32) {
    %c0_i32 = arith.constant 0 : i32
    %c0_i32_0 = arith.constant 0 : i32
    %c0_i32_1 = arith.constant 0 : i32
    return %c0_i32, %c0_i32_0 : i32, i32
  }
  func.func @transform_2(%arg0: i32) -> (i32, i32) {
    %c0_i32 = arith.constant 0 : i32
    %c0_i32_0 = arith.constant 0 : i32
    %c0_i32_1 = arith.constant 0 : i32
    return %c0_i32, %c0_i32_0 : i32, i32
  }
  func.func @transform_3(%arg0: i32) -> (i32, i32) {
    %c0_i32 = arith.constant 0 : i32
    %c0_i32_0 = arith.constant 0 : i32
    return %arg0, %c0_i32 : i32, i32
  }
}

module attributes {stable_mosaic.version = 11 : i64} {
  func.func @kernel(%arg0: i32, %arg1: memref<512x144xbf16, #tpu.memory_space<vmem>>, %arg2: memref<512x144xbf16, #tpu.memory_space<vmem>>, %arg3: memref<144x16xbf16, #tpu.memory_space<vmem>>, %arg4: memref<144x16xbf16, #tpu.memory_space<vmem>>, %arg5: memref<1x16xf32, #tpu.memory_space<vmem>>, %arg6: memref<512x16xf32, #tpu.memory_space<vmem>>) attributes {dimension_semantics = [#tpu.dimension_semantics<parallel>], iteration_bounds = array<i64: 1>, scalar_prefetch = 0 : i64, scratch_operands = 0 : i64, tpu.core_type = #tpu.core_type<tc>, window_params = [{transform_indices = @transform_0, window_bounds = array<i64: 512, 144>}, {transform_indices = @transform_1, window_bounds = array<i64: 512, 144>}, {pipeline_mode = #tpu.pipeline_mode<synchronous>, transform_indices = @transform_2, window_bounds = array<i64: 144, 16>}, {pipeline_mode = #tpu.pipeline_mode<synchronous>, transform_indices = @transform_3, window_bounds = array<i64: 144, 16>}, {pipeline_mode = #tpu.pipeline_mode<synchronous>, transform_indices = @transform_4, window_bounds = array<i64: 1, 16>}, {transform_indices = @transform_5, window_bounds = array<i64: 512, 16>}]} {
    %c0 = arith.constant 0 : index
    %c0_0 = arith.constant 0 : index
    %0 = vector.load %arg1[%c0, %c0_0] : memref<512x144xbf16, #tpu.memory_space<vmem>>, vector<512x144xbf16>
    %c0_1 = arith.constant 0 : index
    %c0_2 = arith.constant 0 : index
    %1 = vector.load %arg3[%c0_1, %c0_2] : memref<144x16xbf16, #tpu.memory_space<vmem>>, vector<144x16xbf16>
    %cst = arith.constant dense<0.000000e+00> : vector<512x16xf32>
    %2 = tpu.matmul %0, %1, %cst {dimension_numbers = #tpu.dot_dimension_numbers<[1], [0], [0], [1], [0, 0, 1, 1], [], []>} : vector<512x144xbf16>, vector<144x16xbf16>, vector<512x16xf32> -> vector<512x16xf32>
    %c0_3 = arith.constant 0 : index
    %c0_4 = arith.constant 0 : index
    %3 = vector.load %arg2[%c0_3, %c0_4] : memref<512x144xbf16, #tpu.memory_space<vmem>>, vector<512x144xbf16>
    %c0_5 = arith.constant 0 : index
    %c0_6 = arith.constant 0 : index
    %4 = vector.load %arg4[%c0_5, %c0_6] : memref<144x16xbf16, #tpu.memory_space<vmem>>, vector<144x16xbf16>
    %cst_7 = arith.constant dense<0.000000e+00> : vector<512x16xf32>
    %5 = tpu.matmul %3, %4, %cst_7 {dimension_numbers = #tpu.dot_dimension_numbers<[1], [0], [0], [1], [0, 0, 1, 1], [], []>} : vector<512x144xbf16>, vector<144x16xbf16>, vector<512x16xf32> -> vector<512x16xf32>
    %6 = arith.addf %2, %5 : vector<512x16xf32>
    %c0_8 = arith.constant 0 : index
    %c0_9 = arith.constant 0 : index
    %7 = vector.load %arg5[%c0_8, %c0_9] : memref<1x16xf32, #tpu.memory_space<vmem>>, vector<1x16xf32>
    %8 = vector.broadcast %7 : vector<1x16xf32> to vector<512x16xf32>
    %9 = arith.addf %6, %8 : vector<512x16xf32>
    %c0_10 = arith.constant 0 : index
    %c0_11 = arith.constant 0 : index
    %10 = vector.load %arg6[%c0_10, %c0_11] : memref<512x16xf32, #tpu.memory_space<vmem>>, vector<512x16xf32>
    tpu.vector_store %arg6[%c0_10, %c0_11], %9 {strides = array<i32>} : memref<512x16xf32, #tpu.memory_space<vmem>>, vector<512x16xf32>,
    return
  }
  func.func @transform_0(%arg0: i32) -> (i32, i32) {
    %c0_i32 = arith.constant 0 : i32
    %c0_i32_0 = arith.constant 0 : i32
    return %arg0, %c0_i32 : i32, i32
  }
  func.func @transform_1(%arg0: i32) -> (i32, i32) {
    %c0_i32 = arith.constant 0 : i32
    %c0_i32_0 = arith.constant 0 : i32
    return %arg0, %c0_i32 : i32, i32
  }
  func.func @transform_2(%arg0: i32) -> (i32, i32) {
    %c0_i32 = arith.constant 0 : i32
    %c0_i32_0 = arith.constant 0 : i32
    %c0_i32_1 = arith.constant 0 : i32
    return %c0_i32, %c0_i32_0 : i32, i32
  }
  func.func @transform_3(%arg0: i32) -> (i32, i32) {
    %c0_i32 = arith.constant 0 : i32
    %c0_i32_0 = arith.constant 0 : i32
    %c0_i32_1 = arith.constant 0 : i32
    return %c0_i32, %c0_i32_0 : i32, i32
  }
  func.func @transform_4(%arg0: i32) -> (i32, i32) {
    %c0_i32 = arith.constant 0 : i32
    %c0_i32_0 = arith.constant 0 : i32
    %c0_i32_1 = arith.constant 0 : i32
    return %c0_i32, %c0_i32_0 : i32, i32
  }
  func.func @transform_5(%arg0: i32) -> (i32, i32) {
    %c0_i32 = arith.constant 0 : i32
    %c0_i32_0 = arith.constant 0 : i32
    return %arg0, %c0_i32 : i32, i32
  }
}

module attributes {stable_mosaic.version = 11 : i64} {
  func.func @kernel(%arg0: i32, %arg1: memref<512x144xbf16, #tpu.memory_space<vmem>>, %arg2: memref<144x1xbf16, #tpu.memory_space<vmem>>, %arg3: memref<1x1xf32, #tpu.memory_space<vmem>>, %arg4: memref<512x1xf32, #tpu.memory_space<vmem>>) attributes {dimension_semantics = [#tpu.dimension_semantics<parallel>], iteration_bounds = array<i64: 1>, scalar_prefetch = 0 : i64, scratch_operands = 0 : i64, tpu.core_type = #tpu.core_type<tc>, window_params = [{transform_indices = @transform_0, window_bounds = array<i64: 512, 144>}, {pipeline_mode = #tpu.pipeline_mode<synchronous>, transform_indices = @transform_1, window_bounds = array<i64: 144, 1>}, {pipeline_mode = #tpu.pipeline_mode<synchronous>, transform_indices = @transform_2, window_bounds = array<i64: 1, 1>}, {transform_indices = @transform_3, window_bounds = array<i64: 512, 1>}]} {
    %c0 = arith.constant 0 : index
    %c0_0 = arith.constant 0 : index
    %0 = vector.load %arg1[%c0, %c0_0] : memref<512x144xbf16, #tpu.memory_space<vmem>>, vector<512x144xbf16>
    %c0_1 = arith.constant 0 : index
    %c0_2 = arith.constant 0 : index
    %1 = vector.load %arg2[%c0_1, %c0_2] : memref<144x1xbf16, #tpu.memory_space<vmem>>, vector<144x1xbf16>
    %cst = arith.constant dense<0.000000e+00> : vector<512x1xf32>
    %2 = tpu.matmul %0, %1, %cst {dimension_numbers = #tpu.dot_dimension_numbers<[1], [0], [0], [1], [0, 0, 1, 1], [], []>} : vector<512x144xbf16>, vector<144x1xbf16>, vector<512x1xf32> -> vector<512x1xf32>
    %c0_3 = arith.constant 0 : index
    %c0_4 = arith.constant 0 : index
    %3 = vector.load %arg3[%c0_3, %c0_4] : memref<1x1xf32, #tpu.memory_space<vmem>>, vector<1x1xf32>
    %4 = vector.broadcast %3 : vector<1x1xf32> to vector<512x1xf32>
    %5 = arith.addf %2, %4 : vector<512x1xf32>
    %c0_5 = arith.constant 0 : index
    %c0_6 = arith.constant 0 : index
    %6 = vector.load %arg4[%c0_5, %c0_6] : memref<512x1xf32, #tpu.memory_space<vmem>>, vector<512x1xf32>
    tpu.vector_store %arg4[%c0_5, %c0_6], %5 {strides = array<i32>} : memref<512x1xf32, #tpu.memory_space<vmem>>, vector<512x1xf32>,
    return
  }
  func.func @transform_0(%arg0: i32) -> (i32, i32) {
    %c0_i32 = arith.constant 0 : i32
    %c0_i32_0 = arith.constant 0 : i32
    return %arg0, %c0_i32 : i32, i32
  }
  func.func @transform_1(%arg0: i32) -> (i32, i32) {
    %c0_i32 = arith.constant 0 : i32
    %c0_i32_0 = arith.constant 0 : i32
    %c0_i32_1 = arith.constant 0 : i32
    return %c0_i32, %c0_i32_0 : i32, i32
  }
  func.func @transform_2(%arg0: i32) -> (i32, i32) {
    %c0_i32 = arith.constant 0 : i32
    %c0_i32_0 = arith.constant 0 : i32
    %c0_i32_1 = arith.constant 0 : i32
    return %c0_i32, %c0_i32_0 : i32, i32
  }
  func.func @transform_3(%arg0: i32) -> (i32, i32) {
    %c0_i32 = arith.constant 0 : i32
    %c0_i32_0 = arith.constant 0 : i32
    return %arg0, %c0_i32 : i32, i32
  }
}

</mosaic_0001>

<bundles_post_ra>
// kernel: unet_forward.27
= control target key start
LH: loop header
LB: loop body
LE: loop exit
PB: predicated region body
PF: predicated region fallthrough
CT: control target
= control target key end

     0   :  { %8 = vsyncpa [#allocation3], 0  ;;  %s969_s12 = smov [#allocation2]   ;;  %s1459_s0 = inlined_call_operand.vmem [shape: bf16[512,27], index: 0, kind: input, shape index: {}]   ;;  %s1460_s1 = inlined_call_operand.vmem [shape: bf16[27,16], index: 1, kind: input, shape index: {}]   ;;  %s1461_s2 = inlined_call_operand.hbm [shape: f32[1,16], index: 2, kind: input, shape index: {}]   ;;  %s1462_s3 = inlined_call_operand.vmem [shape: f32[512,16], index: 3, kind: output, shape index: {}]  }
   0x1   :  { %s19_s13 = sshll.u32 %s969_s12, 4  ;;  %s945_s16 = scalar_lea.hbm %s1461_s2, 16  ;;  %s20_s13 = int_to_ptr.vmem [resolvable:$true] %s19_s13 }
   0x2   :  { %p946_p0 = scmp.ne.s32.totalorder %s1461_s2, %s945_s16  ;;  %p949_p1 = scmp.lt.u32.totalorder %s945_s16, %s1461_s2 }
   0x4   :  { %p951_p2 = pnand %p949_p1, %p946_p0 }
   0x6   :  { %954 = shalt.err (!%p951_p2)
}
   0x7   :  { %s955_s21 = scalar_lea.vmem %s20_s13, 16  ;;  %s959_s22 = scalar_lea.vmem %s20_s13, 32 }
   0x8   :  { %p956_p3 = scmp.ne.s32.totalorder %s20_s13, %s955_s21  ;;  %p960_p4 = scmp.lt.s32.totalorder %s20_s13, %s20_s13 }
   0x9   :  { %p961_p5 = scmp.lt.s32.totalorder %s959_s22, %s955_s21 }
   0xb   :  { %p962_p6 = por %p961_p5, %p960_p4 }
   0xd   :  { %p963_p7 = pnand %p962_p6, %p956_p3 }
   0xf   :  { %966 = shalt.err (!%p963_p7)
}
  0x10   :  { %22 = dma.hbm_to_vmem [thread:$0]  %s1461_s2, 16, %s20_s13, [#allocation3]  }
  0x11   :  { %967 = dma.done.wait [#allocation3], 16  }
  0x12   :  { %968 = vsyncadd [#allocation3], 4294967280  ;;  %vm370_vm0 = vcmask 1044480   ;;  %vm371_vm1 = vcmask 1045504   ;;  %v970_v0 = vmov 65535   ;;  %vm273_vm2 = vcmask 220160  }
  0x13   :  { %v372_v1 = vsel %vm370_vm0, 4294967295, %v970_v0  ;;  %v911_v2 = vld [vmem:[%s1460_s1] sm:$0xff]   ;;  %v912_v4 = vld [vmem:[%s1460_s1 + $0x8] sm:$0x3f]   ;;  %v917_v10 = vld [vmem:[%s1459_s0 + $0x10] sm:$0xff]   ;;  %vm666_vm3 = vcmask 130048  }
  0x14   :  { %v373_v3 = vsel %vm371_vm1, %v372_v1, 0  ;;  %837 = vmatprep.subr.bf16.mxu0 %v911_v2  ;;  %905 = vmatprep.subr.bf16.mxu1 %v911_v2  ;;  %v913_v5 = vld [vmem:[%s1459_s0] sm:$0xff]   ;;  %v915_v8 = vld [vmem:[%s1459_s0 + $0x8] sm:$0xff]   ;;  %v918_v11 = vld [vmem:[%s1459_s0 + $0x90] sm:$0xff]  }
  0x15   :  { %838 = vmatpush3.bf16.msra.mxu0 %v911_v2  ;;  %907 = vmatpush3.bf16.msra.mxu1 %v911_v2  ;;  %v375_v6 = vand.u32 %v912_v4, %v373_v3  ;;  %v914_v7 = vld [vmem:[%s1459_s0 + $0x80] sm:$0xff]   ;;  %v916_v9 = vld [vmem:[%s1459_s0 + $0x88] sm:$0xff]   ;;  %v919_v12 = vld [vmem:[%s1459_s0 + $0x18] sm:$0xff]  }
  0x16   :  { %841 = vmatprep.mubr.msk.bf16.mxu0 %vm273_vm2, %v913_v5  ;;  %873 = vmatprep.mubr.msk.bf16.mxu1 %vm273_vm2, %v914_v7  ;;  %v920_v13 = vld [vmem:[%s1459_s0 + $0x98] sm:$0xff]   ;;  %v921_v14 = vld [vmem:[%s1459_s0 + $0x20] sm:$0xff]   ;;  %v923_v16 = vld [vmem:[%s1459_s0 + $0x28] sm:$0xff]  }
  0x17   :  { %839 = vmatprep.subr.bf16.mxu0 %v375_v6  ;;  %906 = vmatprep.subr.bf16.mxu1 %v375_v6  ;;  %v922_v15 = vld [vmem:[%s1459_s0 + $0xa0] sm:$0xff]   ;;  %v924_v17 = vld [vmem:[%s1459_s0 + $0xa8] sm:$0xff]   ;;  %v925_v18 = vld [vmem:[%s1459_s0 + $0x30] sm:$0xff]  }
  0x18   :  { %v926_v19 = vld [vmem:[%s1459_s0 + $0xb0] sm:$0xff]   ;;  %v927_v20 = vld [vmem:[%s1459_s0 + $0x38] sm:$0xff]   ;;  %v929_v22 = vld [vmem:[%s1459_s0 + $0x40] sm:$0xff]  }
  0x19   :  { %840 = vmatpush3.bf16.msra.mxu0 %v375_v6  ;;  %908 = vmatpush3.bf16.msra.mxu1 %v375_v6  ;;  %v928_v21 = vld [vmem:[%s1459_s0 + $0xb8] sm:$0xff]   ;;  %v930_v23 = vld [vmem:[%s1459_s0 + $0xc0] sm:$0xff]   ;;  %v931_v24 = vld [vmem:[%s1459_s0 + $0x48] sm:$0xff]  }
  0x1a   :  { %v932_v25 = vld [vmem:[%s1459_s0 + $0xc8] sm:$0xff]   ;;  %v933_v26 = vld [vmem:[%s1459_s0 + $0x50] sm:$0xff]   ;;  %v935_v28 = vld [vmem:[%s1459_s0 + $0x58] sm:$0xff]  }
  0x1b   :  { %v934_v27 = vld [vmem:[%s1459_s0 + $0xd0] sm:$0xff]   ;;  %v936_v29 = vld [vmem:[%s1459_s0 + $0xd8] sm:$0xff]   ;;  %v937_v30 = vld [vmem:[%s1459_s0 + $0x60] sm:$0xff]  }
  0x1c   :  { %842 = vmatmul.mubr.msk.bf16.vlgmr.msra.gmra.mrb[0].mxu0 %vm273_vm2, %v915_v8  ;;  %874 = vmatmul.mubr.msk.bf16.vlgmr.msra.gmra.mrb[0].mxu1 %vm273_vm2, %v916_v9  ;;  %v938_v31 = vld [vmem:[%s1459_s0 + $0xe0] sm:$0xff]   ;;  %v939_v32 = vld [vmem:[%s1459_s0 + $0x68] sm:$0xff]   ;;  %v941_v34 = vld [vmem:[%s1459_s0 + $0x70] sm:$0xff]  }
  0x1d   :  { %845 = vmatprep.mubr.msk.bf16.mxu0 %vm273_vm2, %v917_v10  ;;  %877 = vmatprep.mubr.msk.bf16.mxu1 %vm273_vm2, %v918_v11  ;;  %v940_v33 = vld [vmem:[%s1459_s0 + $0xe8] sm:$0xff]   ;;  %v942_v35 = vld [vmem:[%s1459_s0 + $0xf0] sm:$0xff]   ;;  %v943_v36 = vld [vmem:[%s1459_s0 + $0x78] sm:$0xff]  }
  0x1e   :  { %v944_v37 = vld [vmem:[%s1459_s0 + $0xf8] sm:$0xff]   ;;  %v1137_v38 = vld [vmem:[#allocation2] ss:$0 sm:$0xff] }
  0x24   :  { %846 = vmatmul.mubr.msk.bf16.gmra.mrb[4].mxu0 %vm273_vm2, %v919_v12  ;;  %878 = vmatmul.mubr.msk.bf16.gmra.mrb[4].mxu1 %vm273_vm2, %v920_v13 }
  0x25   :  { %849 = vmatprep.mubr.msk.bf16.mxu0 %vm273_vm2, %v921_v14  ;;  %881 = vmatprep.mubr.msk.bf16.mxu1 %vm273_vm2, %v922_v15 }
  0x2c   :  { %850 = vmatmul.mubr.msk.bf16.gmra.mrb[8].mxu0 %vm273_vm2, %v923_v16  ;;  %882 = vmatmul.mubr.msk.bf16.gmra.mrb[8].mxu1 %vm273_vm2, %v924_v17 }
  0x2d   :  { %853 = vmatprep.mubr.msk.bf16.mxu0 %vm273_vm2, %v925_v18  ;;  %885 = vmatprep.mubr.msk.bf16.mxu1 %vm273_vm2, %v926_v19 }
  0x34   :  { %854 = vmatmul.mubr.msk.bf16.gmra.mrb[12].mxu0 %vm273_vm2, %v927_v20  ;;  %886 = vmatmul.mubr.msk.bf16.gmra.mrb[12].mxu1 %vm273_vm2, %v928_v21 }
  0x35   :  { %857 = vmatprep.mubr.msk.bf16.mxu0 %vm273_vm2, %v929_v22  ;;  %889 = vmatprep.mubr.msk.bf16.mxu1 %vm273_vm2, %v930_v23 }
  0x3c   :  { %858 = vmatmul.mubr.msk.bf16.gmra.mrb[16].mxu0 %vm273_vm2, %v931_v24  ;;  %890 = vmatmul.mubr.msk.bf16.gmra.mrb[16].mxu1 %vm273_vm2, %v932_v25 }
  0x3d   :  { %861 = vmatprep.mubr.msk.bf16.mxu0 %vm273_vm2, %v933_v26  ;;  %893 = vmatprep.mubr.msk.bf16.mxu1 %vm273_vm2, %v934_v27 }
  0x44   :  { %862 = vmatmul.mubr.msk.bf16.gmra.mrb[20].mxu0 %vm273_vm2, %v935_v28  ;;  %894 = vmatmul.mubr.msk.bf16.gmra.mrb[20].mxu1 %vm273_vm2, %v936_v29 }
  0x45   :  { %865 = vmatprep.mubr.msk.bf16.mxu0 %vm273_vm2, %v937_v30  ;;  %897 = vmatprep.mubr.msk.bf16.mxu1 %vm273_vm2, %v938_v31 }
  0x4c   :  { %866 = vmatmul.mubr.msk.bf16.gmra.mrb[24].mxu0 %vm273_vm2, %v939_v32  ;;  %898 = vmatmul.mubr.msk.bf16.gmra.mrb[24].mxu1 %vm273_vm2, %v940_v33 }
  0x4d   :  { %869 = vmatprep.mubr.msk.bf16.mxu0 %vm273_vm2, %v941_v34  ;;  %901 = vmatprep.mubr.msk.bf16.mxu1 %vm273_vm2, %v942_v35 }
  0x54   :  { %870 = vmatmul.mubr.msk.bf16.gmra.mrb[28].mxu0 %vm273_vm2, %v943_v36  ;;  %902 = vmatmul.mubr.msk.bf16.gmra.mrb[28].mxu1 %vm273_vm2, %v944_v37 }
  0xef   :  { %v843_v39 = vpop.f32.mrb[0].mxu0  ;;  %v875_v40 = vpop.f32.mrb[0].mxu1 }
  0xf0   :  { %v420_v41 = vadd.f32 %v843_v39, %v1137_v38  ;;  %v548_v42 = vadd.f32 %v875_v40, %v1137_v38  ;;  %v411_v43 = vpop.f32.mrb[1].mxu0  ;;  %v539_v44 = vpop.f32.mrb[1].mxu1 }
  0xf1   :  { %v412_v45 = vadd.f32 %v1137_v38, %v411_v43  ;;  %v540_v46 = vadd.f32 %v1137_v38, %v539_v44  ;;  %v844_v47 = vpop.f32.mrb[2].mxu0  ;;  %v876_v48 = vpop.f32.mrb[2].mxu1 }
  0xf2   :  { %669 = vst.msk [vmem:[%s1462_s3 + $0x10] sm:$0xff] %vm666_vm3, %v420_v41  ;;  %701 = vst.msk [vmem:[%s1462_s3 + $0x110] sm:$0xff] %vm666_vm3, %v548_v42  ;;  %v423_v49 = vadd.f32 %v844_v47, %v1137_v38  ;;  %v551_v50 = vadd.f32 %v876_v48, %v1137_v38  ;;  %v414_v51 = vpop.f32.mrb[3].mxu0  ;;  %v542_v52 = vpop.f32.mrb[3].mxu1 }
  0xf3   :  { %667 = vst.msk [vmem:[%s1462_s3] sm:$0xff] %vm666_vm3, %v412_v45  ;;  %699 = vst.msk [vmem:[%s1462_s3 + $0x100] sm:$0xff] %vm666_vm3, %v540_v46  ;;  %v415_v53 = vadd.f32 %v1137_v38, %v414_v51  ;;  %v543_v54 = vadd.f32 %v1137_v38, %v542_v52 }
  0xf4   :  { %670 = vst.msk [vmem:[%s1462_s3 + $0x18] sm:$0xff] %vm666_vm3, %v423_v49  ;;  %702 = vst.msk [vmem:[%s1462_s3 + $0x118] sm:$0xff] %vm666_vm3, %v551_v50 }
  0xf5   :  { %668 = vst.msk [vmem:[%s1462_s3 + $0x8] sm:$0xff] %vm666_vm3, %v415_v53  ;;  %700 = vst.msk [vmem:[%s1462_s3 + $0x108] sm:$0xff] %vm666_vm3, %v543_v54 }
  0xf7   :  { %v847_v55 = vpop.f32.mrb[4].mxu0  ;;  %v879_v56 = vpop.f32.mrb[4].mxu1 }
  0xf8   :  { %v436_v57 = vadd.f32 %v847_v55, %v1137_v38  ;;  %v564_v58 = vadd.f32 %v879_v56, %v1137_v38  ;;  %v427_v59 = vpop.f32.mrb[5].mxu0  ;;  %v555_v60 = vpop.f32.mrb[5].mxu1 }
  0xf9   :  { %v428_v61 = vadd.f32 %v1137_v38, %v427_v59  ;;  %v556_v62 = vadd.f32 %v1137_v38, %v555_v60  ;;  %v848_v63 = vpop.f32.mrb[6].mxu0  ;;  %v880_v0 = vpop.f32.mrb[6].mxu1 }
  0xfa   :  { %673 = vst.msk [vmem:[%s1462_s3 + $0x30] sm:$0xff] %vm666_vm3, %v436_v57  ;;  %705 = vst.msk [vmem:[%s1462_s3 + $0x130] sm:$0xff] %vm666_vm3, %v564_v58  ;;  %v439_v1 = vadd.f32 %v848_v63, %v1137_v38  ;;  %v567_v2 = vadd.f32 %v880_v0, %v1137_v38  ;;  %v430_v3 = vpop.f32.mrb[7].mxu0  ;;  %v558_v4 = vpop.f32.mrb[7].mxu1 }
  0xfb   :  { %671 = vst.msk [vmem:[%s1462_s3 + $0x20] sm:$0xff] %vm666_vm3, %v428_v61  ;;  %703 = vst.msk [vmem:[%s1462_s3 + $0x120] sm:$0xff] %vm666_vm3, %v556_v62  ;;  %v431_v5 = vadd.f32 %v1137_v38, %v430_v3  ;;  %v559_v6 = vadd.f32 %v1137_v38, %v558_v4 }
  0xfc   :  { %674 = vst.msk [vmem:[%s1462_s3 + $0x38] sm:$0xff] %vm666_vm3, %v439_v1  ;;  %706 = vst.msk [vmem:[%s1462_s3 + $0x138] sm:$0xff] %vm666_vm3, %v567_v2 }
  0xfd   :  { %672 = vst.msk [vmem:[%s1462_s3 + $0x28] sm:$0xff] %vm666_vm3, %v431_v5  ;;  %704 = vst.msk [vmem:[%s1462_s3 + $0x128] sm:$0xff] %vm666_vm3, %v559_v6 }
  0xff   :  { %v851_v7 = vpop.f32.mrb[8].mxu0  ;;  %v883_v8 = vpop.f32.mrb[8].mxu1 }
 0x100   :  { %v452_v9 = vadd.f32 %v851_v7, %v1137_v38  ;;  %v580_v10 = vadd.f32 %v883_v8, %v1137_v38  ;;  %v443_v11 = vpop.f32.mrb[9].mxu0  ;;  %v571_v12 = vpop.f32.mrb[9].mxu1 }
 0x101   :  { %v444_v13 = vadd.f32 %v1137_v38, %v443_v11  ;;  %v572_v14 = vadd.f32 %v1137_v38, %v571_v12  ;;  %v852_v15 = vpop.f32.mrb[10].mxu0  ;;  %v884_v16 = vpop.f32.mrb[10].mxu1 }
 0x102   :  { %677 = vst.msk [vmem:[%s1462_s3 + $0x50] sm:$0xff] %vm666_vm3, %v452_v9  ;;  %709 = vst.msk [vmem:[%s1462_s3 + $0x150] sm:$0xff] %vm666_vm3, %v580_v10  ;;  %v455_v17 = vadd.f32 %v852_v15, %v1137_v38  ;;  %v583_v18 = vadd.f32 %v884_v16, %v1137_v38  ;;  %v446_v19 = vpop.f32.mrb[11].mxu0  ;;  %v574_v20 = vpop.f32.mrb[11].mxu1 }
 0x103   :  { %675 = vst.msk [vmem:[%s1462_s3 + $0x40] sm:$0xff] %vm666_vm3, %v444_v13  ;;  %707 = vst.msk [vmem:[%s1462_s3 + $0x140] sm:$0xff] %vm666_vm3, %v572_v14  ;;  %v447_v21 = vadd.f32 %v1137_v38, %v446_v19  ;;  %v575_v22 = vadd.f32 %v1137_v38, %v574_v20 }
 0x104   :  { %678 = vst.msk [vmem:[%s1462_s3 + $0x58] sm:$0xff] %vm666_vm3, %v455_v17  ;;  %710 = vst.msk [vmem:[%s1462_s3 + $0x158] sm:$0xff] %vm666_vm3, %v583_v18 }
 0x105   :  { %676 = vst.msk [vmem:[%s1462_s3 + $0x48] sm:$0xff] %vm666_vm3, %v447_v21  ;;  %708 = vst.msk [vmem:[%s1462_s3 + $0x148] sm:$0xff] %vm666_vm3, %v575_v22 }
 0x107   :  { %v855_v23 = vpop.f32.mrb[12].mxu0  ;;  %v887_v24 = vpop.f32.mrb[12].mxu1 }
 0x108   :  { %v468_v25 = vadd.f32 %v855_v23, %v1137_v38  ;;  %v596_v26 = vadd.f32 %v887_v24, %v1137_v38  ;;  %v459_v27 = vpop.f32.mrb[13].mxu0  ;;  %v587_v28 = vpop.f32.mrb[13].mxu1 }
 0x109   :  { %v460_v29 = vadd.f32 %v1137_v38, %v459_v27  ;;  %v588_v30 = vadd.f32 %v1137_v38, %v587_v28  ;;  %v856_v31 = vpop.f32.mrb[14].mxu0  ;;  %v888_v32 = vpop.f32.mrb[14].mxu1 }
 0x10a   :  { %681 = vst.msk [vmem:[%s1462_s3 + $0x70] sm:$0xff] %vm666_vm3, %v468_v25  ;;  %713 = vst.msk [vmem:[%s1462_s3 + $0x170] sm:$0xff] %vm666_vm3, %v596_v26  ;;  %v471_v33 = vadd.f32 %v856_v31, %v1137_v38  ;;  %v599_v34 = vadd.f32 %v888_v32, %v1137_v38  ;;  %v462_v35 = vpop.f32.mrb[15].mxu0  ;;  %v590_v36 = vpop.f32.mrb[15].mxu1 }
 0x10b   :  { %679 = vst.msk [vmem:[%s1462_s3 + $0x60] sm:$0xff] %vm666_vm3, %v460_v29  ;;  %711 = vst.msk [vmem:[%s1462_s3 + $0x160] sm:$0xff] %vm666_vm3, %v588_v30  ;;  %v463_v37 = vadd.f32 %v1137_v38, %v462_v35  ;;  %v591_v39 = vadd.f32 %v1137_v38, %v590_v36 }
 0x10c   :  { %682 = vst.msk [vmem:[%s1462_s3 + $0x78] sm:$0xff] %vm666_vm3, %v471_v33  ;;  %714 = vst.msk [vmem:[%s1462_s3 + $0x178] sm:$0xff] %vm666_vm3, %v599_v34 }
 0x10d   :  { %680 = vst.msk [vmem:[%s1462_s3 + $0x68] sm:$0xff] %vm666_vm3, %v463_v37  ;;  %712 = vst.msk [vmem:[%s1462_s3 + $0x168] sm:$0xff] %vm666_vm3, %v591_v39 }
 0x10f   :  { %v859_v40 = vpop.f32.mrb[16].mxu0  ;;  %v891_v41 = vpop.f32.mrb[16].mxu1 }
 0x110   :  { %v484_v42 = vadd.f32 %v859_v40, %v1137_v38  ;;  %v612_v43 = vadd.f32 %v891_v41, %v1137_v38  ;;  %v475_v44 = vpop.f32.mrb[17].mxu0  ;;  %v603_v45 = vpop.f32.mrb[17].mxu1 }
 0x111   :  { %v476_v46 = vadd.f32 %v1137_v38, %v475_v44  ;;  %v604_v47 = vadd.f32 %v1137_v38, %v603_v45  ;;  %v860_v48 = vpop.f32.mrb[18].mxu0  ;;  %v892_v49 = vpop.f32.mrb[18].mxu1 }
 0x112   :  { %685 = vst.msk [vmem:[%s1462_s3 + $0x90] sm:$0xff] %vm666_vm3, %v484_v42  ;;  %717 = vst.msk [vmem:[%s1462_s3 + $0x190] sm:$0xff] %vm666_vm3, %v612_v43  ;;  %v487_v50 = vadd.f32 %v860_v48, %v1137_v38  ;;  %v615_v51 = vadd.f32 %v892_v49, %v1137_v38  ;;  %v478_v52 = vpop.f32.mrb[19].mxu0  ;;  %v606_v53 = vpop.f32.mrb[19].mxu1 }
 0x113   :  { %683 = vst.msk [vmem:[%s1462_s3 + $0x80] sm:$0xff] %vm666_vm3, %v476_v46  ;;  %715 = vst.msk [vmem:[%s1462_s3 + $0x180] sm:$0xff] %vm666_vm3, %v604_v47  ;;  %v479_v54 = vadd.f32 %v1137_v38, %v478_v52  ;;  %v607_v55 = vadd.f32 %v1137_v38, %v606_v53 }
 0x114   :  { %686 = vst.msk [vmem:[%s1462_s3 + $0x98] sm:$0xff] %vm666_vm3, %v487_v50  ;;  %718 = vst.msk [vmem:[%s1462_s3 + $0x198] sm:$0xff] %vm666_vm3, %v615_v51 }
 0x115   :  { %684 = vst.msk [vmem:[%s1462_s3 + $0x88] sm:$0xff] %vm666_vm3, %v479_v54  ;;  %716 = vst.msk [vmem:[%s1462_s3 + $0x188] sm:$0xff] %vm666_vm3, %v607_v55 }
 0x117   :  { %v863_v56 = vpop.f32.mrb[20].mxu0  ;;  %v895_v57 = vpop.f32.mrb[20].mxu1 }
 0x118   :  { %v500_v58 = vadd.f32 %v863_v56, %v1137_v38  ;;  %v628_v59 = vadd.f32 %v895_v57, %v1137_v38  ;;  %v491_v60 = vpop.f32.mrb[21].mxu0  ;;  %v619_v61 = vpop.f32.mrb[21].mxu1 }
 0x119   :  { %v492_v62 = vadd.f32 %v1137_v38, %v491_v60  ;;  %v620_v63 = vadd.f32 %v1137_v38, %v619_v61  ;;  %v864_v0 = vpop.f32.mrb[22].mxu0  ;;  %v896_v1 = vpop.f32.mrb[22].mxu1 }
 0x11a   :  { %689 = vst.msk [vmem:[%s1462_s3 + $0xb0] sm:$0xff] %vm666_vm3, %v500_v58  ;;  %721 = vst.msk [vmem:[%s1462_s3 + $0x1b0] sm:$0xff] %vm666_vm3, %v628_v59  ;;  %v503_v2 = vadd.f32 %v864_v0, %v1137_v38  ;;  %v631_v3 = vadd.f32 %v896_v1, %v1137_v38  ;;  %v494_v4 = vpop.f32.mrb[23].mxu0  ;;  %v622_v5 = vpop.f32.mrb[23].mxu1 }
 0x11b   :  { %687 = vst.msk [vmem:[%s1462_s3 + $0xa0] sm:$0xff] %vm666_vm3, %v492_v62  ;;  %719 = vst.msk [vmem:[%s1462_s3 + $0x1a0] sm:$0xff] %vm666_vm3, %v620_v63  ;;  %v495_v6 = vadd.f32 %v1137_v38, %v494_v4  ;;  %v623_v7 = vadd.f32 %v1137_v38, %v622_v5 }
 0x11c   :  { %690 = vst.msk [vmem:[%s1462_s3 + $0xb8] sm:$0xff] %vm666_vm3, %v503_v2  ;;  %722 = vst.msk [vmem:[%s1462_s3 + $0x1b8] sm:$0xff] %vm666_vm3, %v631_v3 }
 0x11d   :  { %688 = vst.msk [vmem:[%s1462_s3 + $0xa8] sm:$0xff] %vm666_vm3, %v495_v6  ;;  %720 = vst.msk [vmem:[%s1462_s3 + $0x1a8] sm:$0xff] %vm666_vm3, %v623_v7 }
 0x11f   :  { %v867_v8 = vpop.f32.mrb[24].mxu0  ;;  %v899_v9 = vpop.f32.mrb[24].mxu1 }
 0x120   :  { %v516_v10 = vadd.f32 %v867_v8, %v1137_v38  ;;  %v644_v11 = vadd.f32 %v899_v9, %v1137_v38  ;;  %v507_v12 = vpop.f32.mrb[25].mxu0  ;;  %v635_v13 = vpop.f32.mrb[25].mxu1 }
 0x121   :  { %v508_v14 = vadd.f32 %v1137_v38, %v507_v12  ;;  %v636_v15 = vadd.f32 %v1137_v38, %v635_v13  ;;  %v868_v16 = vpop.f32.mrb[26].mxu0  ;;  %v900_v17 = vpop.f32.mrb[26].mxu1 }
 0x122   :  { %693 = vst.msk [vmem:[%s1462_s3 + $0xd0] sm:$0xff] %vm666_vm3, %v516_v10  ;;  %725 = vst.msk [vmem:[%s1462_s3 + $0x1d0] sm:$0xff] %vm666_vm3, %v644_v11  ;;  %v519_v18 = vadd.f32 %v868_v16, %v1137_v38  ;;  %v647_v19 = vadd.f32 %v900_v17, %v1137_v38  ;;  %v510_v20 = vpop.f32.mrb[27].mxu0  ;;  %v638_v21 = vpop.f32.mrb[27].mxu1 }
 0x123   :  { %691 = vst.msk [vmem:[%s1462_s3 + $0xc0] sm:$0xff] %vm666_vm3, %v508_v14  ;;  %723 = vst.msk [vmem:[%s1462_s3 + $0x1c0] sm:$0xff] %vm666_vm3, %v636_v15  ;;  %v511_v22 = vadd.f32 %v1137_v38, %v510_v20  ;;  %v639_v23 = vadd.f32 %v1137_v38, %v638_v21 }
 0x124   :  { %694 = vst.msk [vmem:[%s1462_s3 + $0xd8] sm:$0xff] %vm666_vm3, %v519_v18  ;;  %726 = vst.msk [vmem:[%s1462_s3 + $0x1d8] sm:$0xff] %vm666_vm3, %v647_v19 }
 0x125   :  { %692 = vst.msk [vmem:[%s1462_s3 + $0xc8] sm:$0xff] %vm666_vm3, %v511_v22  ;;  %724 = vst.msk [vmem:[%s1462_s3 + $0x1c8] sm:$0xff] %vm666_vm3, %v639_v23 }
 0x127   :  { %v871_v24 = vpop.f32.mrb[28].mxu0  ;;  %v903_v25 = vpop.f32.mrb[28].mxu1 }
 0x128   :  { %v532_v26 = vadd.f32 %v871_v24, %v1137_v38  ;;  %v660_v27 = vadd.f32 %v903_v25, %v1137_v38  ;;  %v523_v28 = vpop.f32.mrb[29].mxu0  ;;  %v651_v29 = vpop.f32.mrb[29].mxu1 }
 0x129   :  { %v524_v30 = vadd.f32 %v1137_v38, %v523_v28  ;;  %v652_v31 = vadd.f32 %v1137_v38, %v651_v29  ;;  %v872_v32 = vpop.f32.mrb[30].mxu0  ;;  %v904_v33 = vpop.f32.mrb[30].mxu1 }
 0x12a   :  { %697 = vst.msk [vmem:[%s1462_s3 + $0xf0] sm:$0xff] %vm666_vm3, %v532_v26  ;;  %729 = vst.msk [vmem:[%s1462_s3 + $0x1f0] sm:$0xff] %vm666_vm3, %v660_v27  ;;  %v535_v34 = vadd.f32 %v872_v32, %v1137_v38  ;;  %v663_v35 = vadd.f32 %v904_v33, %v1137_v38  ;;  %v526_v36 = vpop.f32.mrb[31].mxu0  ;;  %v654_v37 = vpop.f32.mrb[31].mxu1 }
 0x12b   :  { %695 = vst.msk [vmem:[%s1462_s3 + $0xe0] sm:$0xff] %vm666_vm3, %v524_v30  ;;  %727 = vst.msk [vmem:[%s1462_s3 + $0x1e0] sm:$0xff] %vm666_vm3, %v652_v31  ;;  %v527_v39 = vadd.f32 %v1137_v38, %v526_v36  ;;  %v655_v40 = vadd.f32 %v1137_v38, %v654_v37 }
 0x12c   :  { %698 = vst.msk [vmem:[%s1462_s3 + $0xf8] sm:$0xff] %vm666_vm3, %v535_v34  ;;  %730 = vst.msk [vmem:[%s1462_s3 + $0x1f8] sm:$0xff] %vm666_vm3, %v663_v35 }
 0x12d   :  { %696 = vst.msk [vmem:[%s1462_s3 + $0xe8] sm:$0xff] %vm666_vm3, %v527_v39  ;;  %728 = vst.msk [vmem:[%s1462_s3 + $0x1e8] sm:$0xff] %vm666_vm3, %v655_v40 }
 0x12e   :  { %735 = vsyncpa [#allocation3], 1 }

// kernel: unet_forward.28
= control target key start
LH: loop header
LB: loop body
LE: loop exit
PB: predicated region body
PF: predicated region fallthrough
CT: control target
= control target key end

     0   :  { %v1130_v0 = vmov 0   ;;  %vm446_vm0 = vcmask 130048   ;;  %s1727_s1 = inlined_call_operand.vmem [shape: bf16[144,16], index: 1, kind: input, shape index: {}]   ;;  %s1728_s0 = inlined_call_operand.vmem [shape: bf16[512,144], index: 0, kind: input, shape index: {}]   ;;  %s1729_s2 = inlined_call_operand.vmem [shape: f32[1,16], index: 2, kind: input, shape index: {}]   ;;  %s1730_s3 = inlined_call_operand.vmem [shape: f32[512,16], index: 3, kind: output, shape index: {}]  }
   0x1   :  { %543 = vmatprep.subr.bf16.mxu0 %v1130_v0  ;;  %1006 = vmatprep.subr.bf16.mxu1 %v1130_v0  ;;  %v1025_v1 = vld [vmem:[%s1727_s1] sm:$0xff]   ;;  %v1026_v2 = vld [vmem:[%s1727_s1 + $0x8] sm:$0xff]   ;;  %v1027_v3 = vld [vmem:[%s1727_s1 + $0x10] sm:$0xff]  }
   0x2   :  { %544 = vmatpush1.bf16.msra.mxu0 %v1025_v1  ;;  %1015 = vmatpush1.bf16.msra.mxu1 %v1025_v1  ;;  %v1028_v4 = vld [vmem:[%s1727_s1 + $0x18] sm:$0xff]   ;;  %v1036_v5 = vld [vmem:[%s1728_s0 + $0x4] ss:$8 sps:$4 sm:$0xff]   ;;  %v1031_v9 = vld [vmem:[%s1727_s1 + $0x30] sm:$0xff]  }
   0x3   :  { %545 = vmatprep.subr.bf16.mxu0 %v1130_v0  ;;  %1007 = vmatprep.subr.bf16.mxu1 %v1130_v0  ;;  %v1039_v6 = vld [vmem:[%s1728_s0 + $0x104] ss:$8 sps:$4 sm:$0xff]   ;;  %v1032_v10 = vld [vmem:[%s1727_s1 + $0x38] sm:$0xff]   ;;  %v1034_v12 = vld [vmem:[%s1728_s0] ss:$8 sps:$4 sm:$0xff]  }
   0x4   :  { %974 = vmatprep.mubr.msk.bf16.mxu0 %vm446_vm0, %v1036_v5  ;;  %990 = vmatprep.mubr.msk.bf16.mxu1 %vm446_vm0, %v1039_v6  ;;  %v1029_v7 = vld [vmem:[%s1727_s1 + $0x20] sm:$0xff]   ;;  %v1030_v8 = vld [vmem:[%s1727_s1 + $0x28] sm:$0xff]   ;;  %v1040_v14 = vld [vmem:[%s1728_s0 + $0x14] ss:$8 sps:$4 sm:$0xff]  }
   0x5   :  { %v1033_v11 = vld [vmem:[%s1727_s1 + $0x40] sm:$0xff]   ;;  %v1042_v15 = vld [vmem:[%s1728_s0 + $0x114] ss:$8 sps:$4 sm:$0xff]   ;;  %v1044_v16 = vld [vmem:[%s1728_s0 + $0x10] ss:$8 sps:$4 sm:$0xff]  }
   0x6   :  { %546 = vmatpush1.bf16.msra.mxu0 %v1026_v2  ;;  %1016 = vmatpush1.bf16.msra.mxu1 %v1026_v2  ;;  %v1037_v13 = vld [vmem:[%s1728_s0 + $0x100] ss:$8 sps:$4 sm:$0xff]   ;;  %v1045_v17 = vld [vmem:[%s1728_s0 + $0x110] ss:$8 sps:$4 sm:$0xff]   ;;  %v1046_v18 = vld [vmem:[%s1728_s0 + $0x24] ss:$8 sps:$4 sm:$0xff]  }
   0x7   :  { %547 = vmatprep.subr.bf16.mxu0 %v1130_v0  ;;  %1008 = vmatprep.subr.bf16.mxu1 %v1130_v0  ;;  %v1048_v19 = vld [vmem:[%s1728_s0 + $0x124] ss:$8 sps:$4 sm:$0xff]   ;;  %v1050_v20 = vld [vmem:[%s1728_s0 + $0x20] ss:$8 sps:$4 sm:$0xff]   ;;  %v1052_v22 = vld [vmem:[%s1728_s0 + $0x34] ss:$8 sps:$4 sm:$0xff]  }
   0x8   :  { %v1051_v21 = vld [vmem:[%s1728_s0 + $0x120] ss:$8 sps:$4 sm:$0xff]   ;;  %v1054_v23 = vld [vmem:[%s1728_s0 + $0x134] ss:$8 sps:$4 sm:$0xff]   ;;  %v1056_v24 = vld [vmem:[%s1728_s0 + $0x30] ss:$8 sps:$4 sm:$0xff]  }
   0x9   :  { %v1057_v25 = vld [vmem:[%s1728_s0 + $0x130] ss:$8 sps:$4 sm:$0xff]   ;;  %v1058_v26 = vld [vmem:[%s1728_s0 + $0x44] ss:$8 sps:$4 sm:$0xff]   ;;  %v1062_v28 = vld [vmem:[%s1728_s0 + $0x40] ss:$8 sps:$4 sm:$0xff]  }
   0xa   :  { %548 = vmatpush1.bf16.msra.mxu0 %v1027_v3  ;;  %1017 = vmatpush1.bf16.msra.mxu1 %v1027_v3  ;;  %v1060_v27 = vld [vmem:[%s1728_s0 + $0x144] ss:$8 sps:$4 sm:$0xff]   ;;  %v1063_v29 = vld [vmem:[%s1728_s0 + $0x140] ss:$8 sps:$4 sm:$0xff]   ;;  %v1064_v30 = vld [vmem:[%s1728_s0 + $0x54] ss:$8 sps:$4 sm:$0xff]  }
   0xb   :  { %549 = vmatprep.subr.bf16.mxu0 %v1130_v0  ;;  %1009 = vmatprep.subr.bf16.mxu1 %v1130_v0  ;;  %v1066_v31 = vld [vmem:[%s1728_s0 + $0x154] ss:$8 sps:$4 sm:$0xff]   ;;  %v1068_v32 = vld [vmem:[%s1728_s0 + $0x50] ss:$8 sps:$4 sm:$0xff]   ;;  %v1070_v34 = vld [vmem:[%s1728_s0 + $0x64] ss:$8 sps:$4 sm:$0xff]  }
   0xc   :  { %v1069_v33 = vld [vmem:[%s1728_s0 + $0x150] ss:$8 sps:$4 sm:$0xff]   ;;  %v1072_v35 = vld [vmem:[%s1728_s0 + $0x164] ss:$8 sps:$4 sm:$0xff]   ;;  %v1074_v36 = vld [vmem:[%s1728_s0 + $0x60] ss:$8 sps:$4 sm:$0xff]  }
   0xd   :  { %v1075_v37 = vld [vmem:[%s1728_s0 + $0x160] ss:$8 sps:$4 sm:$0xff]   ;;  %v1076_v38 = vld [vmem:[%s1728_s0 + $0x74] ss:$8 sps:$4 sm:$0xff]   ;;  %v1080_v40 = vld [vmem:[%s1728_s0 + $0x70] ss:$8 sps:$4 sm:$0xff]  }
   0xe   :  { %550 = vmatpush1.bf16.msra.mxu0 %v1028_v4  ;;  %1018 = vmatpush1.bf16.msra.mxu1 %v1028_v4  ;;  %v1078_v39 = vld [vmem:[%s1728_s0 + $0x174] ss:$8 sps:$4 sm:$0xff]   ;;  %v1081_v41 = vld [vmem:[%s1728_s0 + $0x170] ss:$8 sps:$4 sm:$0xff]   ;;  %v1082_v42 = vld [vmem:[%s1728_s0 + $0x84] ss:$8 sps:$4 sm:$0xff]  }
   0xf   :  { %551 = vmatprep.subr.bf16.mxu0 %v1130_v0  ;;  %1010 = vmatprep.subr.bf16.mxu1 %v1130_v0  ;;  %v1084_v43 = vld [vmem:[%s1728_s0 + $0x184] ss:$8 sps:$4 sm:$0xff]   ;;  %v1086_v44 = vld [vmem:[%s1728_s0 + $0x80] ss:$8 sps:$4 sm:$0xff]   ;;  %v1088_v46 = vld [vmem:[%s1728_s0 + $0x94] ss:$8 sps:$4 sm:$0xff]  }
  0x10   :  { %v1087_v45 = vld [vmem:[%s1728_s0 + $0x180] ss:$8 sps:$4 sm:$0xff]   ;;  %v1090_v47 = vld [vmem:[%s1728_s0 + $0x194] ss:$8 sps:$4 sm:$0xff]   ;;  %v1092_v48 = vld [vmem:[%s1728_s0 + $0x90] ss:$8 sps:$4 sm:$0xff]  }
  0x11   :  { %v1093_v49 = vld [vmem:[%s1728_s0 + $0x190] ss:$8 sps:$4 sm:$0xff]   ;;  %v1094_v50 = vld [vmem:[%s1728_s0 + $0xa4] ss:$8 sps:$4 sm:$0xff]   ;;  %v1098_v52 = vld [vmem:[%s1728_s0 + $0xa0] ss:$8 sps:$4 sm:$0xff]  }
  0x12   :  { %552 = vmatpush1.bf16.msra.mxu0 %v1029_v7  ;;  %1019 = vmatpush1.bf16.msra.mxu1 %v1029_v7  ;;  %v1096_v51 = vld [vmem:[%s1728_s0 + $0x1a4] ss:$8 sps:$4 sm:$0xff]   ;;  %v1099_v53 = vld [vmem:[%s1728_s0 + $0x1a0] ss:$8 sps:$4 sm:$0xff]   ;;  %v1100_v54 = vld [vmem:[%s1728_s0 + $0xb4] ss:$8 sps:$4 sm:$0xff]  }
  0x13   :  { %553 = vmatprep.subr.bf16.mxu0 %v1130_v0  ;;  %1011 = vmatprep.subr.bf16.mxu1 %v1130_v0  ;;  %v1102_v55 = vld [vmem:[%s1728_s0 + $0x1b4] ss:$8 sps:$4 sm:$0xff]   ;;  %v1104_v56 = vld [vmem:[%s1728_s0 + $0xb0] ss:$8 sps:$4 sm:$0xff]   ;;  %v1106_v58 = vld [vmem:[%s1728_s0 + $0xc4] ss:$8 sps:$4 sm:$0xff]  }
  0x14   :  { %v1105_v57 = vld [vmem:[%s1728_s0 + $0x1b0] ss:$8 sps:$4 sm:$0xff]   ;;  %v1108_v59 = vld [vmem:[%s1728_s0 + $0x1c4] ss:$8 sps:$4 sm:$0xff]   ;;  %v1110_v60 = vld [vmem:[%s1728_s0 + $0xc0] ss:$8 sps:$4 sm:$0xff]  }
  0x15   :  { %v1111_v61 = vld [vmem:[%s1728_s0 + $0x1c0] ss:$8 sps:$4 sm:$0xff]   ;;  %v1112_v62 = vld [vmem:[%s1728_s0 + $0xd4] ss:$8 sps:$4 sm:$0xff]   ;;  %v1117_v1 = vld [vmem:[%s1728_s0 + $0x1d0] ss:$8 sps:$4 sm:$0xff]  }
  0x16   :  { %554 = vmatpush1.bf16.msra.mxu0 %v1030_v8  ;;  %1020 = vmatpush1.bf16.msra.mxu1 %v1030_v8  ;;  %v1114_v63 = vld [vmem:[%s1728_s0 + $0x1d4] ss:$8 sps:$4 sm:$0xff]   ;;  %v1118_v2 = vld [vmem:[%s1728_s0 + $0xe4] ss:$8 sps:$4 sm:$0xff]   ;;  %v1122_v4 = vld [vmem:[%s1728_s0 + $0xe0] ss:$8 sps:$4 sm:$0xff]  }
  0x17   :  { %555 = vmatprep.subr.bf16.mxu0 %v1130_v0  ;;  %1012 = vmatprep.subr.bf16.mxu1 %v1130_v0  ;;  %v1120_v3 = vld [vmem:[%s1728_s0 + $0x1e4] ss:$8 sps:$4 sm:$0xff]   ;;  %v1123_v5 = vld [vmem:[%s1728_s0 + $0x1e0] ss:$8 sps:$4 sm:$0xff]   ;;  %v1124_v6 = vld [vmem:[%s1728_s0 + $0xf4] ss:$8 sps:$4 sm:$0xff]  }
  0x18   :  { %v1126_v7 = vld [vmem:[%s1728_s0 + $0x1f4] ss:$8 sps:$4 sm:$0xff]   ;;  %v1128_v8 = vld [vmem:[%s1728_s0 + $0xf0] ss:$8 sps:$4 sm:$0xff]  }
  0x1a   :  { %556 = vmatpush1.bf16.msra.mxu0 %v1031_v9  ;;  %1021 = vmatpush1.bf16.msra.mxu1 %v1031_v9  ;;  %v1129_v9 = vld [vmem:[%s1728_s0 + $0x1f0] ss:$8 sps:$4 sm:$0xff]  }
  0x1b   :  { %557 = vmatprep.subr.bf16.mxu0 %v1130_v0  ;;  %1013 = vmatprep.subr.bf16.mxu1 %v1130_v0 }
  0x1e   :  { %558 = vmatpush1.bf16.msra.mxu0 %v1032_v10  ;;  %1022 = vmatpush1.bf16.msra.mxu1 %v1032_v10  ;;  %v1405_v10 = vld [vmem:[%s1729_s2] ss:$0 sm:$0xff] }
  0x1f   :  { %559 = vmatprep.subr.bf16.mxu0 %v1130_v0  ;;  %1014 = vmatprep.subr.bf16.mxu1 %v1130_v0  ;;  %v1116_v0 = vld [vmem:[%s1728_s0 + $0xd0] ss:$8 sps:$4 sm:$0xff]  }
  0x22   :  { %560 = vmatpush1.bf16.msra.mxu0 %v1033_v11  ;;  %1023 = vmatpush1.bf16.msra.mxu1 %v1033_v11 }
  0x25   :  { %576 = vmatmul.mubr.bf16.vlgmr.msra.gmra.mrb[0].mxu0 %v1034_v12  ;;  %704 = vmatmul.mubr.bf16.vlgmr.msra.gmra.mrb[0].mxu1 %v1037_v13 }
  0x26   :  { %975 = vmatprep.mubr.msk.bf16.mxu0 %vm446_vm0, %v1040_v14  ;;  %991 = vmatprep.mubr.msk.bf16.mxu1 %vm446_vm0, %v1042_v15 }
  0x2d   :  { %584 = vmatmul.mubr.bf16.gmra.mrb[4].mxu0 %v1044_v16  ;;  %712 = vmatmul.mubr.bf16.gmra.mrb[4].mxu1 %v1045_v17 }
  0x2e   :  { %976 = vmatprep.mubr.msk.bf16.mxu0 %vm446_vm0, %v1046_v18  ;;  %992 = vmatprep.mubr.msk.bf16.mxu1 %vm446_vm0, %v1048_v19 }
  0x35   :  { %592 = vmatmul.mubr.bf16.gmra.mrb[8].mxu0 %v1050_v20  ;;  %720 = vmatmul.mubr.bf16.gmra.mrb[8].mxu1 %v1051_v21 }
  0x36   :  { %977 = vmatprep.mubr.msk.bf16.mxu0 %vm446_vm0, %v1052_v22  ;;  %993 = vmatprep.mubr.msk.bf16.mxu1 %vm446_vm0, %v1054_v23 }
  0x3d   :  { %600 = vmatmul.mubr.bf16.gmra.mrb[12].mxu0 %v1056_v24  ;;  %728 = vmatmul.mubr.bf16.gmra.mrb[12].mxu1 %v1057_v25 }
  0x3e   :  { %978 = vmatprep.mubr.msk.bf16.mxu0 %vm446_vm0, %v1058_v26  ;;  %994 = vmatprep.mubr.msk.bf16.mxu1 %vm446_vm0, %v1060_v27 }
  0x45   :  { %608 = vmatmul.mubr.bf16.gmra.mrb[16].mxu0 %v1062_v28  ;;  %736 = vmatmul.mubr.bf16.gmra.mrb[16].mxu1 %v1063_v29 }
  0x46   :  { %979 = vmatprep.mubr.msk.bf16.mxu0 %vm446_vm0, %v1064_v30  ;;  %995 = vmatprep.mubr.msk.bf16.mxu1 %vm446_vm0, %v1066_v31 }
  0x4d   :  { %616 = vmatmul.mubr.bf16.gmra.mrb[20].mxu0 %v1068_v32  ;;  %744 = vmatmul.mubr.bf16.gmra.mrb[20].mxu1 %v1069_v33 }
  0x4e   :  { %980 = vmatprep.mubr.msk.bf16.mxu0 %vm446_vm0, %v1070_v34  ;;  %996 = vmatprep.mubr.msk.bf16.mxu1 %vm446_vm0, %v1072_v35 }
  0x55   :  { %624 = vmatmul.mubr.bf16.gmra.mrb[24].mxu0 %v1074_v36  ;;  %752 = vmatmul.mubr.bf16.gmra.mrb[24].mxu1 %v1075_v37 }
  0x56   :  { %981 = vmatprep.mubr.msk.bf16.mxu0 %vm446_vm0, %v1076_v38  ;;  %997 = vmatprep.mubr.msk.bf16.mxu1 %vm446_vm0, %v1078_v39 }
  0x5d   :  { %632 = vmatmul.mubr.bf16.gmra.mrb[28].mxu0 %v1080_v40  ;;  %760 = vmatmul.mubr.bf16.gmra.mrb[28].mxu1 %v1081_v41 }
  0x5e   :  { %982 = vmatprep.mubr.msk.bf16.mxu0 %vm446_vm0, %v1082_v42  ;;  %998 = vmatprep.mubr.msk.bf16.mxu1 %vm446_vm0, %v1084_v43 }
  0x65   :  { %640 = vmatmul.mubr.bf16.gmra.mrb[32].mxu0 %v1086_v44  ;;  %768 = vmatmul.mubr.bf16.gmra.mrb[32].mxu1 %v1087_v45 }
  0x66   :  { %983 = vmatprep.mubr.msk.bf16.mxu0 %vm446_vm0, %v1088_v46  ;;  %999 = vmatprep.mubr.msk.bf16.mxu1 %vm446_vm0, %v1090_v47 }
  0x6d   :  { %648 = vmatmul.mubr.bf16.gmra.mrb[36].mxu0 %v1092_v48  ;;  %776 = vmatmul.mubr.bf16.gmra.mrb[36].mxu1 %v1093_v49 }
  0x6e   :  { %984 = vmatprep.mubr.msk.bf16.mxu0 %vm446_vm0, %v1094_v50  ;;  %1000 = vmatprep.mubr.msk.bf16.mxu1 %vm446_vm0, %v1096_v51 }
  0x75   :  { %656 = vmatmul.mubr.bf16.gmra.mrb[40].mxu0 %v1098_v52  ;;  %784 = vmatmul.mubr.bf16.gmra.mrb[40].mxu1 %v1099_v53 }
  0x76   :  { %985 = vmatprep.mubr.msk.bf16.mxu0 %vm446_vm0, %v1100_v54  ;;  %1001 = vmatprep.mubr.msk.bf16.mxu1 %vm446_vm0, %v1102_v55 }
  0x7d   :  { %664 = vmatmul.mubr.bf16.gmra.mrb[44].mxu0 %v1104_v56  ;;  %792 = vmatmul.mubr.bf16.gmra.mrb[44].mxu1 %v1105_v57 }
  0x7e   :  { %986 = vmatprep.mubr.msk.bf16.mxu0 %vm446_vm0, %v1106_v58  ;;  %1002 = vmatprep.mubr.msk.bf16.mxu1 %vm446_vm0, %v1108_v59 }
  0x85   :  { %672 = vmatmul.mubr.bf16.gmra.mrb[48].mxu0 %v1110_v60  ;;  %800 = vmatmul.mubr.bf16.gmra.mrb[48].mxu1 %v1111_v61 }
  0x86   :  { %987 = vmatprep.mubr.msk.bf16.mxu0 %vm446_vm0, %v1112_v62  ;;  %1003 = vmatprep.mubr.msk.bf16.mxu1 %vm446_vm0, %v1114_v63 }
  0x8d   :  { %680 = vmatmul.mubr.bf16.gmra.mrb[52].mxu0 %v1116_v0  ;;  %808 = vmatmul.mubr.bf16.gmra.mrb[52].mxu1 %v1117_v1 }
  0x8e   :  { %988 = vmatprep.mubr.msk.bf16.mxu0 %vm446_vm0, %v1118_v2  ;;  %1004 = vmatprep.mubr.msk.bf16.mxu1 %vm446_vm0, %v1120_v3 }
  0x95   :  { %688 = vmatmul.mubr.bf16.gmra.mrb[56].mxu0 %v1122_v4  ;;  %816 = vmatmul.mubr.bf16.gmra.mrb[56].mxu1 %v1123_v5 }
  0x96   :  { %989 = vmatprep.mubr.msk.bf16.mxu0 %vm446_vm0, %v1124_v6  ;;  %1005 = vmatprep.mubr.msk.bf16.mxu1 %vm446_vm0, %v1126_v7 }
  0x9d   :  { %696 = vmatmul.mubr.bf16.gmra.mrb[60].mxu0 %v1128_v8  ;;  %824 = vmatmul.mubr.bf16.gmra.mrb[60].mxu1 %v1129_v9 }
  0xf8   :  { %v577_v11 = vpop.f32.mrb[0].mxu0  ;;  %v705_v12 = vpop.f32.mrb[0].mxu1 }
  0xf9   :  { %v578_v13 = vadd.f32 %v1405_v10, %v577_v11  ;;  %v706_v14 = vadd.f32 %v1405_v10, %v705_v12  ;;  %v579_v15 = vpop.f32.mrb[1].mxu0  ;;  %v707_v16 = vpop.f32.mrb[1].mxu1 }
  0xfa   :  { %v580_v17 = vpop.f32.mrb[2].mxu0  ;;  %v708_v18 = vpop.f32.mrb[2].mxu1 }
  0xfb   :  { %832 = vst.msk [vmem:[%s1730_s3] sm:$0xff] %vm446_vm0, %v578_v13  ;;  %864 = vst.msk [vmem:[%s1730_s3 + $0x100] sm:$0xff] %vm446_vm0, %v706_v14  ;;  %v581_v19 = vadd.f32 %v1405_v10, %v580_v17  ;;  %v709_v20 = vadd.f32 %v1405_v10, %v708_v18  ;;  %v582_v21 = vpop.f32.mrb[3].mxu0  ;;  %v710_v22 = vpop.f32.mrb[3].mxu1 }
  0xfd   :  { %833 = vst.msk [vmem:[%s1730_s3 + $0x8] sm:$0xff] %vm446_vm0, %v581_v19  ;;  %865 = vst.msk [vmem:[%s1730_s3 + $0x108] sm:$0xff] %vm446_vm0, %v709_v20 }
 0x100   :  { %v585_v23 = vpop.f32.mrb[4].mxu0  ;;  %v713_v24 = vpop.f32.mrb[4].mxu1 }
 0x101   :  { %v586_v25 = vadd.f32 %v1405_v10, %v585_v23  ;;  %v714_v26 = vadd.f32 %v1405_v10, %v713_v24  ;;  %v587_v27 = vpop.f32.mrb[5].mxu0  ;;  %v715_v28 = vpop.f32.mrb[5].mxu1 }
 0x102   :  { %v588_v29 = vpop.f32.mrb[6].mxu0  ;;  %v716_v30 = vpop.f32.mrb[6].mxu1 }
 0x103   :  { %834 = vst.msk [vmem:[%s1730_s3 + $0x10] sm:$0xff] %vm446_vm0, %v586_v25  ;;  %866 = vst.msk [vmem:[%s1730_s3 + $0x110] sm:$0xff] %vm446_vm0, %v714_v26  ;;  %v589_v31 = vadd.f32 %v1405_v10, %v588_v29  ;;  %v717_v32 = vadd.f32 %v1405_v10, %v716_v30  ;;  %v590_v33 = vpop.f32.mrb[7].mxu0  ;;  %v718_v34 = vpop.f32.mrb[7].mxu1 }
 0x105   :  { %835 = vst.msk [vmem:[%s1730_s3 + $0x18] sm:$0xff] %vm446_vm0, %v589_v31  ;;  %867 = vst.msk [vmem:[%s1730_s3 + $0x118] sm:$0xff] %vm446_vm0, %v717_v32 }
 0x108   :  { %v593_v35 = vpop.f32.mrb[8].mxu0  ;;  %v721_v36 = vpop.f32.mrb[8].mxu1 }
 0x109   :  { %v594_v37 = vadd.f32 %v1405_v10, %v593_v35  ;;  %v722_v38 = vadd.f32 %v1405_v10, %v721_v36  ;;  %v595_v39 = vpop.f32.mrb[9].mxu0  ;;  %v723_v40 = vpop.f32.mrb[9].mxu1 }
 0x10a   :  { %v596_v41 = vpop.f32.mrb[10].mxu0  ;;  %v724_v42 = vpop.f32.mrb[10].mxu1 }
 0x10b   :  { %836 = vst.msk [vmem:[%s1730_s3 + $0x20] sm:$0xff] %vm446_vm0, %v594_v37  ;;  %868 = vst.msk [vmem:[%s1730_s3 + $0x120] sm:$0xff] %vm446_vm0, %v722_v38  ;;  %v597_v43 = vadd.f32 %v1405_v10, %v596_v41  ;;  %v725_v44 = vadd.f32 %v1405_v10, %v724_v42  ;;  %v598_v45 = vpop.f32.mrb[11].mxu0  ;;  %v726_v46 = vpop.f32.mrb[11].mxu1 }
 0x10d   :  { %837 = vst.msk [vmem:[%s1730_s3 + $0x28] sm:$0xff] %vm446_vm0, %v597_v43  ;;  %869 = vst.msk [vmem:[%s1730_s3 + $0x128] sm:$0xff] %vm446_vm0, %v725_v44 }
 0x110   :  { %v601_v47 = vpop.f32.mrb[12].mxu0  ;;  %v729_v48 = vpop.f32.mrb[12].mxu1 }
 0x111   :  { %v602_v49 = vadd.f32 %v1405_v10, %v601_v47  ;;  %v730_v50 = vadd.f32 %v1405_v10, %v729_v48  ;;  %v603_v51 = vpop.f32.mrb[13].mxu0  ;;  %v731_v52 = vpop.f32.mrb[13].mxu1 }
 0x112   :  { %v604_v53 = vpop.f32.mrb[14].mxu0  ;;  %v732_v54 = vpop.f32.mrb[14].mxu1 }
 0x113   :  { %838 = vst.msk [vmem:[%s1730_s3 + $0x30] sm:$0xff] %vm446_vm0, %v602_v49  ;;  %870 = vst.msk [vmem:[%s1730_s3 + $0x130] sm:$0xff] %vm446_vm0, %v730_v50  ;;  %v605_v55 = vadd.f32 %v1405_v10, %v604_v53  ;;  %v733_v56 = vadd.f32 %v1405_v10, %v732_v54  ;;  %v606_v57 = vpop.f32.mrb[15].mxu0  ;;  %v734_v58 = vpop.f32.mrb[15].mxu1 }
 0x115   :  { %839 = vst.msk [vmem:[%s1730_s3 + $0x38] sm:$0xff] %vm446_vm0, %v605_v55  ;;  %871 = vst.msk [vmem:[%s1730_s3 + $0x138] sm:$0xff] %vm446_vm0, %v733_v56 }
 0x118   :  { %v609_v59 = vpop.f32.mrb[16].mxu0  ;;  %v737_v60 = vpop.f32.mrb[16].mxu1 }
 0x119   :  { %v610_v61 = vadd.f32 %v1405_v10, %v609_v59  ;;  %v738_v62 = vadd.f32 %v1405_v10, %v737_v60  ;;  %v611_v63 = vpop.f32.mrb[17].mxu0  ;;  %v739_v0 = vpop.f32.mrb[17].mxu1 }
 0x11a   :  { %v612_v1 = vpop.f32.mrb[18].mxu0  ;;  %v740_v2 = vpop.f32.mrb[18].mxu1 }
 0x11b   :  { %840 = vst.msk [vmem:[%s1730_s3 + $0x40] sm:$0xff] %vm446_vm0, %v610_v61  ;;  %872 = vst.msk [vmem:[%s1730_s3 + $0x140] sm:$0xff] %vm446_vm0, %v738_v62  ;;  %v613_v3 = vadd.f32 %v1405_v10, %v612_v1  ;;  %v741_v4 = vadd.f32 %v1405_v10, %v740_v2  ;;  %v614_v5 = vpop.f32.mrb[19].mxu0  ;;  %v742_v6 = vpop.f32.mrb[19].mxu1 }
 0x11d   :  { %841 = vst.msk [vmem:[%s1730_s3 + $0x48] sm:$0xff] %vm446_vm0, %v613_v3  ;;  %873 = vst.msk [vmem:[%s1730_s3 + $0x148] sm:$0xff] %vm446_vm0, %v741_v4 }
 0x120   :  { %v617_v7 = vpop.f32.mrb[20].mxu0  ;;  %v745_v8 = vpop.f32.mrb[20].mxu1 }
 0x121   :  { %v618_v9 = vadd.f32 %v1405_v10, %v617_v7  ;;  %v746_v11 = vadd.f32 %v1405_v10, %v745_v8  ;;  %v619_v12 = vpop.f32.mrb[21].mxu0  ;;  %v747_v13 = vpop.f32.mrb[21].mxu1 }
 0x122   :  { %v620_v14 = vpop.f32.mrb[22].mxu0  ;;  %v748_v15 = vpop.f32.mrb[22].mxu1 }
 0x123   :  { %842 = vst.msk [vmem:[%s1730_s3 + $0x50] sm:$0xff] %vm446_vm0, %v618_v9  ;;  %874 = vst.msk [vmem:[%s1730_s3 + $0x150] sm:$0xff] %vm446_vm0, %v746_v11  ;;  %v621_v16 = vadd.f32 %v1405_v10, %v620_v14  ;;  %v749_v17 = vadd.f32 %v1405_v10, %v748_v15  ;;  %v622_v18 = vpop.f32.mrb[23].mxu0  ;;  %v750_v19 = vpop.f32.mrb[23].mxu1 }
 0x125   :  { %843 = vst.msk [vmem:[%s1730_s3 + $0x58] sm:$0xff] %vm446_vm0, %v621_v16  ;;  %875 = vst.msk [vmem:[%s1730_s3 + $0x158] sm:$0xff] %vm446_vm0, %v749_v17 }
 0x128   :  { %v625_v20 = vpop.f32.mrb[24].mxu0  ;;  %v753_v21 = vpop.f32.mrb[24].mxu1 }
 0x129   :  { %v626_v22 = vadd.f32 %v1405_v10, %v625_v20  ;;  %v754_v23 = vadd.f32 %v1405_v10, %v753_v21  ;;  %v627_v24 = vpop.f32.mrb[25].mxu0  ;;  %v755_v25 = vpop.f32.mrb[25].mxu1 }
 0x12a   :  { %v628_v26 = vpop.f32.mrb[26].mxu0  ;;  %v756_v27 = vpop.f32.mrb[26].mxu1 }
 0x12b   :  { %844 = vst.msk [vmem:[%s1730_s3 + $0x60] sm:$0xff] %vm446_vm0, %v626_v22  ;;  %876 = vst.msk [vmem:[%s1730_s3 + $0x160] sm:$0xff] %vm446_vm0, %v754_v23  ;;  %v629_v28 = vadd.f32 %v1405_v10, %v628_v26  ;;  %v757_v29 = vadd.f32 %v1405_v10, %v756_v27  ;;  %v630_v30 = vpop.f32.mrb[27].mxu0  ;;  %v758_v31 = vpop.f32.mrb[27].mxu1 }
 0x12d   :  { %845 = vst.msk [vmem:[%s1730_s3 + $0x68] sm:$0xff] %vm446_vm0, %v629_v28  ;;  %877 = vst.msk [vmem:[%s1730_s3 + $0x168] sm:$0xff] %vm446_vm0, %v757_v29 }
 0x130   :  { %v633_v32 = vpop.f32.mrb[28].mxu0  ;;  %v761_v33 = vpop.f32.mrb[28].mxu1 }
 0x131   :  { %v634_v34 = vadd.f32 %v1405_v10, %v633_v32  ;;  %v762_v35 = vadd.f32 %v1405_v10, %v761_v33  ;;  %v635_v36 = vpop.f32.mrb[29].mxu0  ;;  %v763_v37 = vpop.f32.mrb[29].mxu1 }
 0x132   :  { %v636_v38 = vpop.f32.mrb[30].mxu0  ;;  %v764_v39 = vpop.f32.mrb[30].mxu1 }
 0x133   :  { %846 = vst.msk [vmem:[%s1730_s3 + $0x70] sm:$0xff] %vm446_vm0, %v634_v34  ;;  %878 = vst.msk [vmem:[%s1730_s3 + $0x170] sm:$0xff] %vm446_vm0, %v762_v35  ;;  %v637_v40 = vadd.f32 %v1405_v10, %v636_v38  ;;  %v765_v41 = vadd.f32 %v1405_v10, %v764_v39  ;;  %v638_v42 = vpop.f32.mrb[31].mxu0  ;;  %v766_v43 = vpop.f32.mrb[31].mxu1 }
 0x135   :  { %847 = vst.msk [vmem:[%s1730_s3 + $0x78] sm:$0xff] %vm446_vm0, %v637_v40  ;;  %879 = vst.msk [vmem:[%s1730_s3 + $0x178] sm:$0xff] %vm446_vm0, %v765_v41 }
 0x138   :  { %v641_v44 = vpop.f32.mrb[32].mxu0  ;;  %v769_v45 = vpop.f32.mrb[32].mxu1 }
 0x139   :  { %v642_v46 = vadd.f32 %v1405_v10, %v641_v44  ;;  %v770_v47 = vadd.f32 %v1405_v10, %v769_v45  ;;  %v643_v48 = vpop.f32.mrb[33].mxu0  ;;  %v771_v49 = vpop.f32.mrb[33].mxu1 }
 0x13a   :  { %v644_v50 = vpop.f32.mrb[34].mxu0  ;;  %v772_v51 = vpop.f32.mrb[34].mxu1 }
 0x13b   :  { %848 = vst.msk [vmem:[%s1730_s3 + $0x80] sm:$0xff] %vm446_vm0, %v642_v46  ;;  %880 = vst.msk [vmem:[%s1730_s3 + $0x180] sm:$0xff] %vm446_vm0, %v770_v47  ;;  %v645_v52 = vadd.f32 %v1405_v10, %v644_v50  ;;  %v773_v53 = vadd.f32 %v1405_v10, %v772_v51  ;;  %v646_v54 = vpop.f32.mrb[35].mxu0  ;;  %v774_v55 = vpop.f32.mrb[35].mxu1 }
 0x13d   :  { %849 = vst.msk [vmem:[%s1730_s3 + $0x88] sm:$0xff] %vm446_vm0, %v645_v52  ;;  %881 = vst.msk [vmem:[%s1730_s3 + $0x188] sm:$0xff] %vm446_vm0, %v773_v53 }
 0x140   :  { %v649_v56 = vpop.f32.mrb[36].mxu0  ;;  %v777_v57 = vpop.f32.mrb[36].mxu1 }
 0x141   :  { %v650_v58 = vadd.f32 %v1405_v10, %v649_v56  ;;  %v778_v59 = vadd.f32 %v1405_v10, %v777_v57  ;;  %v651_v60 = vpop.f32.mrb[37].mxu0  ;;  %v779_v61 = vpop.f32.mrb[37].mxu1 }
 0x142   :  { %v652_v62 = vpop.f32.mrb[38].mxu0  ;;  %v780_v63 = vpop.f32.mrb[38].mxu1 }
 0x143   :  { %850 = vst.msk [vmem:[%s1730_s3 + $0x90] sm:$0xff] %vm446_vm0, %v650_v58  ;;  %882 = vst.msk [vmem:[%s1730_s3 + $0x190] sm:$0xff] %vm446_vm0, %v778_v59  ;;  %v653_v0 = vadd.f32 %v1405_v10, %v652_v62  ;;  %v781_v1 = vadd.f32 %v1405_v10, %v780_v63  ;;  %v654_v2 = vpop.f32.mrb[39].mxu0  ;;  %v782_v3 = vpop.f32.mrb[39].mxu1 }
 0x145   :  { %851 = vst.msk [vmem:[%s1730_s3 + $0x98] sm:$0xff] %vm446_vm0, %v653_v0  ;;  %883 = vst.msk [vmem:[%s1730_s3 + $0x198] sm:$0xff] %vm446_vm0, %v781_v1 }
 0x148   :  { %v657_v4 = vpop.f32.mrb[40].mxu0  ;;  %v785_v5 = vpop.f32.mrb[40].mxu1 }
 0x149   :  { %v658_v6 = vadd.f32 %v1405_v10, %v657_v4  ;;  %v786_v7 = vadd.f32 %v1405_v10, %v785_v5  ;;  %v659_v8 = vpop.f32.mrb[41].mxu0  ;;  %v787_v9 = vpop.f32.mrb[41].mxu1 }
 0x14a   :  { %v660_v11 = vpop.f32.mrb[42].mxu0  ;;  %v788_v12 = vpop.f32.mrb[42].mxu1 }
 0x14b   :  { %852 = vst.msk [vmem:[%s1730_s3 + $0xa0] sm:$0xff] %vm446_vm0, %v658_v6  ;;  %884 = vst.msk [vmem:[%s1730_s3 + $0x1a0] sm:$0xff] %vm446_vm0, %v786_v7  ;;  %v661_v13 = vadd.f32 %v1405_v10, %v660_v11  ;;  %v789_v14 = vadd.f32 %v1405_v10, %v788_v12  ;;  %v662_v15 = vpop.f32.mrb[43].mxu0  ;;  %v790_v16 = vpop.f32.mrb[43].mxu1 }
 0x14d   :  { %853 = vst.msk [vmem:[%s1730_s3 + $0xa8] sm:$0xff] %vm446_vm0, %v661_v13  ;;  %885 = vst.msk [vmem:[%s1730_s3 + $0x1a8] sm:$0xff] %vm446_vm0, %v789_v14 }
 0x150   :  { %v665_v17 = vpop.f32.mrb[44].mxu0  ;;  %v793_v18 = vpop.f32.mrb[44].mxu1 }
 0x151   :  { %v666_v19 = vadd.f32 %v1405_v10, %v665_v17  ;;  %v794_v20 = vadd.f32 %v1405_v10, %v793_v18  ;;  %v667_v21 = vpop.f32.mrb[45].mxu0  ;;  %v795_v22 = vpop.f32.mrb[45].mxu1 }
 0x152   :  { %v668_v23 = vpop.f32.mrb[46].mxu0  ;;  %v796_v24 = vpop.f32.mrb[46].mxu1 }
 0x153   :  { %854 = vst.msk [vmem:[%s1730_s3 + $0xb0] sm:$0xff] %vm446_vm0, %v666_v19  ;;  %886 = vst.msk [vmem:[%s1730_s3 + $0x1b0] sm:$0xff] %vm446_vm0, %v794_v20  ;;  %v669_v25 = vadd.f32 %v1405_v10, %v668_v23  ;;  %v797_v26 = vadd.f32 %v1405_v10, %v796_v24  ;;  %v670_v27 = vpop.f32.mrb[47].mxu0  ;;  %v798_v28 = vpop.f32.mrb[47].mxu1 }
 0x155   :  { %855 = vst.msk [vmem:[%s1730_s3 + $0xb8] sm:$0xff] %vm446_vm0, %v669_v25  ;;  %887 = vst.msk [vmem:[%s1730_s3 + $0x1b8] sm:$0xff] %vm446_vm0, %v797_v26 }
 0x158   :  { %v673_v29 = vpop.f32.mrb[48].mxu0  ;;  %v801_v30 = vpop.f32.mrb[48].mxu1 }
 0x159   :  { %v674_v31 = vadd.f32 %v1405_v10, %v673_v29  ;;  %v802_v32 = vadd.f32 %v1405_v10, %v801_v30  ;;  %v675_v33 = vpop.f32.mrb[49].mxu0  ;;  %v803_v34 = vpop.f32.mrb[49].mxu1 }
 0x15a   :  { %v676_v35 = vpop.f32.mrb[50].mxu0  ;;  %v804_v36 = vpop.f32.mrb[50].mxu1 }
 0x15b   :  { %856 = vst.msk [vmem:[%s1730_s3 + $0xc0] sm:$0xff] %vm446_vm0, %v674_v31  ;;  %888 = vst.msk [vmem:[%s1730_s3 + $0x1c0] sm:$0xff] %vm446_vm0, %v802_v32  ;;  %v677_v37 = vadd.f32 %v1405_v10, %v676_v35  ;;  %v805_v38 = vadd.f32 %v1405_v10, %v804_v36  ;;  %v678_v39 = vpop.f32.mrb[51].mxu0  ;;  %v806_v40 = vpop.f32.mrb[51].mxu1 }
 0x15d   :  { %857 = vst.msk [vmem:[%s1730_s3 + $0xc8] sm:$0xff] %vm446_vm0, %v677_v37  ;;  %889 = vst.msk [vmem:[%s1730_s3 + $0x1c8] sm:$0xff] %vm446_vm0, %v805_v38 }
 0x160   :  { %v681_v41 = vpop.f32.mrb[52].mxu0  ;;  %v809_v42 = vpop.f32.mrb[52].mxu1 }
 0x161   :  { %v682_v43 = vadd.f32 %v1405_v10, %v681_v41  ;;  %v810_v44 = vadd.f32 %v1405_v10, %v809_v42  ;;  %v683_v45 = vpop.f32.mrb[53].mxu0  ;;  %v811_v46 = vpop.f32.mrb[53].mxu1 }
 0x162   :  { %v684_v47 = vpop.f32.mrb[54].mxu0  ;;  %v812_v48 = vpop.f32.mrb[54].mxu1 }
 0x163   :  { %858 = vst.msk [vmem:[%s1730_s3 + $0xd0] sm:$0xff] %vm446_vm0, %v682_v43  ;;  %890 = vst.msk [vmem:[%s1730_s3 + $0x1d0] sm:$0xff] %vm446_vm0, %v810_v44  ;;  %v685_v49 = vadd.f32 %v1405_v10, %v684_v47  ;;  %v813_v50 = vadd.f32 %v1405_v10, %v812_v48  ;;  %v686_v51 = vpop.f32.mrb[55].mxu0  ;;  %v814_v52 = vpop.f32.mrb[55].mxu1 }
 0x165   :  { %859 = vst.msk [vmem:[%s1730_s3 + $0xd8] sm:$0xff] %vm446_vm0, %v685_v49  ;;  %891 = vst.msk [vmem:[%s1730_s3 + $0x1d8] sm:$0xff] %vm446_vm0, %v813_v50 }
 0x168   :  { %v689_v53 = vpop.f32.mrb[56].mxu0  ;;  %v817_v54 = vpop.f32.mrb[56].mxu1 }
 0x169   :  { %v690_v55 = vadd.f32 %v1405_v10, %v689_v53  ;;  %v818_v56 = vadd.f32 %v1405_v10, %v817_v54  ;;  %v691_v57 = vpop.f32.mrb[57].mxu0  ;;  %v819_v58 = vpop.f32.mrb[57].mxu1 }
 0x16a   :  { %v692_v59 = vpop.f32.mrb[58].mxu0  ;;  %v820_v60 = vpop.f32.mrb[58].mxu1 }
 0x16b   :  { %860 = vst.msk [vmem:[%s1730_s3 + $0xe0] sm:$0xff] %vm446_vm0, %v690_v55  ;;  %892 = vst.msk [vmem:[%s1730_s3 + $0x1e0] sm:$0xff] %vm446_vm0, %v818_v56  ;;  %v693_v61 = vadd.f32 %v1405_v10, %v692_v59  ;;  %v821_v62 = vadd.f32 %v1405_v10, %v820_v60  ;;  %v694_v63 = vpop.f32.mrb[59].mxu0  ;;  %v822_v0 = vpop.f32.mrb[59].mxu1 }
 0x16d   :  { %861 = vst.msk [vmem:[%s1730_s3 + $0xe8] sm:$0xff] %vm446_vm0, %v693_v61  ;;  %893 = vst.msk [vmem:[%s1730_s3 + $0x1e8] sm:$0xff] %vm446_vm0, %v821_v62 }
 0x170   :  { %v697_v1 = vpop.f32.mrb[60].mxu0  ;;  %v825_v2 = vpop.f32.mrb[60].mxu1 }
 0x171   :  { %v698_v3 = vadd.f32 %v1405_v10, %v697_v1  ;;  %v826_v4 = vadd.f32 %v1405_v10, %v825_v2  ;;  %v699_v5 = vpop.f32.mrb[61].mxu0  ;;  %v827_v6 = vpop.f32.mrb[61].mxu1 }
 0x172   :  { %v700_v7 = vpop.f32.mrb[62].mxu0  ;;  %v828_v8 = vpop.f32.mrb[62].mxu1 }
 0x173   :  { %862 = vst.msk [vmem:[%s1730_s3 + $0xf0] sm:$0xff] %vm446_vm0, %v698_v3  ;;  %894 = vst.msk [vmem:[%s1730_s3 + $0x1f0] sm:$0xff] %vm446_vm0, %v826_v4  ;;  %v701_v9 = vadd.f32 %v1405_v10, %v700_v7  ;;  %v829_v11 = vadd.f32 %v1405_v10, %v828_v8  ;;  %v702_v12 = vpop.f32.mrb[63].mxu0  ;;  %v830_v13 = vpop.f32.mrb[63].mxu1 }
 0x175   :  { %863 = vst.msk [vmem:[%s1730_s3 + $0xf8] sm:$0xff] %vm446_vm0, %v701_v9  ;;  %895 = vst.msk [vmem:[%s1730_s3 + $0x1f8] sm:$0xff] %vm446_vm0, %v829_v11 }

// kernel: unet_forward.29
= control target key start
LH: loop header
LB: loop body
LE: loop exit
PB: predicated region body
PF: predicated region fallthrough
CT: control target
= control target key end

     0   :  { %vm129_vm0 = vcmask 130048   ;;  %s431_s0 = inlined_call_operand.vmem [shape: f32[128,16], index: 0, kind: input, shape index: {}]   ;;  %s432_s1 = inlined_call_operand.vmem [shape: f32[128,16], index: 1, kind: input, shape index: {}]   ;;  %s433_s2 = inlined_call_operand.vmem [shape: f32[128,16], index: 2, kind: input, shape index: {}]   ;;  %s434_s3 = inlined_call_operand.vmem [shape: f32[128,16], index: 3, kind: input, shape index: {}]   ;;  %s435_s4 = inlined_call_operand.vmem [shape: f32[128,16], index: 4, kind: output, shape index: {}]  }
   0x1   :  { %v17_v0 = vld [vmem:[%s431_s0] sm:$0xff]  ;;  %v18_v5 = vld [vmem:[%s431_s0 + $0x8] sm:$0xff]  ;;  %v19_v11 = vld [vmem:[%s431_s0 + $0x10] sm:$0xff] }
   0x2   :  { %v33_v1 = vld [vmem:[%s432_s1] sm:$0xff]  ;;  %v34_v6 = vld [vmem:[%s432_s1 + $0x8] sm:$0xff]  ;;  %v35_v13 = vld [vmem:[%s432_s1 + $0x10] sm:$0xff] }
   0x3   :  { %v65_v2 = vld [vmem:[%s433_s2] sm:$0xff]  ;;  %v49_v3 = vmax.f32 %v17_v0, %v33_v1  ;;  %v50_v8 = vmax.f32 %v18_v5, %v34_v6  ;;  %v66_v9 = vld [vmem:[%s433_s2 + $0x8] sm:$0xff]  ;;  %v67_v14 = vld [vmem:[%s433_s2 + $0x10] sm:$0xff]  ;;  %v51_v17 = vmax.f32 %v19_v11, %v35_v13 }
   0x4   :  { %v81_v4 = vld [vmem:[%s434_s3] sm:$0xff]  ;;  %v82_v10 = vld [vmem:[%s434_s3 + $0x8] sm:$0xff]  ;;  %v83_v15 = vld [vmem:[%s434_s3 + $0x10] sm:$0xff] }
   0x5   :  { %v97_v7 = vmax.f32 %v65_v2, %v81_v4  ;;  %v98_v12 = vmax.f32 %v66_v9, %v82_v10  ;;  %v99_v18 = vmax.f32 %v67_v14, %v83_v15  ;;  %v20_v19 = vld [vmem:[%s431_s0 + $0x18] sm:$0xff]  ;;  %v21_v25 = vld [vmem:[%s431_s0 + $0x20] sm:$0xff]  ;;  %v22_v32 = vld [vmem:[%s431_s0 + $0x28] sm:$0xff] }
   0x6   :  { %v36_v20 = vld [vmem:[%s432_s1 + $0x18] sm:$0xff]  ;;  %v37_v26 = vld [vmem:[%s432_s1 + $0x20] sm:$0xff]  ;;  %v38_v34 = vld [vmem:[%s432_s1 + $0x28] sm:$0xff] }
   0x7   :  { %v113_v16 = vmax.f32 %v49_v3, %v97_v7  ;;  %v68_v21 = vld [vmem:[%s433_s2 + $0x18] sm:$0xff]  ;;  %v114_v22 = vmax.f32 %v50_v8, %v98_v12  ;;  %v52_v23 = vmax.f32 %v20_v19, %v36_v20  ;;  %v115_v27 = vmax.f32 %v51_v17, %v99_v18  ;;  %v69_v30 = vld [vmem:[%s433_s2 + $0x20] sm:$0xff]  ;;  %v70_v35 = vld [vmem:[%s433_s2 + $0x28] sm:$0xff] }
   0x8   :  { %v84_v24 = vld [vmem:[%s434_s3 + $0x18] sm:$0xff]  ;;  %v53_v29 = vmax.f32 %v21_v25, %v37_v26  ;;  %v85_v31 = vld [vmem:[%s434_s3 + $0x20] sm:$0xff]  ;;  %v86_v36 = vld [vmem:[%s434_s3 + $0x28] sm:$0xff]  ;;  %v54_v38 = vmax.f32 %v22_v32, %v38_v34 }
   0x9   :  { %130 = vst.msk [vmem:[%s435_s4] sm:$0xff] %vm129_vm0, %v113_v16  ;;  %v100_v28 = vmax.f32 %v68_v21, %v84_v24  ;;  %131 = vst.msk [vmem:[%s435_s4 + $0x8] sm:$0xff] %vm129_vm0, %v114_v22  ;;  %v101_v33 = vmax.f32 %v69_v30, %v85_v31  ;;  %v102_v39 = vmax.f32 %v70_v35, %v86_v36  ;;  %v23_v40 = vld [vmem:[%s431_s0 + $0x30] sm:$0xff]  ;;  %v24_v46 = vld [vmem:[%s431_s0 + $0x38] sm:$0xff] }
   0xa   :  { %132 = vst.msk [vmem:[%s435_s4 + $0x10] sm:$0xff] %vm129_vm0, %v115_v27  ;;  %v39_v41 = vld [vmem:[%s432_s1 + $0x30] sm:$0xff]  ;;  %v40_v47 = vld [vmem:[%s432_s1 + $0x38] sm:$0xff]  ;;  %v25_v53 = vld [vmem:[%s431_s0 + $0x40] sm:$0xff] }
   0xb   :  { %v116_v37 = vmax.f32 %v52_v23, %v100_v28  ;;  %v71_v42 = vld [vmem:[%s433_s2 + $0x30] sm:$0xff]  ;;  %v117_v43 = vmax.f32 %v53_v29, %v101_v33  ;;  %v55_v44 = vmax.f32 %v23_v40, %v39_v41  ;;  %v118_v48 = vmax.f32 %v54_v38, %v102_v39  ;;  %v72_v51 = vld [vmem:[%s433_s2 + $0x38] sm:$0xff]  ;;  %v41_v55 = vld [vmem:[%s432_s1 + $0x40] sm:$0xff] }
   0xc   :  { %v87_v45 = vld [vmem:[%s434_s3 + $0x30] sm:$0xff]  ;;  %v56_v50 = vmax.f32 %v24_v46, %v40_v47  ;;  %v88_v52 = vld [vmem:[%s434_s3 + $0x38] sm:$0xff]  ;;  %v73_v56 = vld [vmem:[%s433_s2 + $0x40] sm:$0xff]  ;;  %v57_v59 = vmax.f32 %v25_v53, %v41_v55 }
   0xd   :  { %133 = vst.msk [vmem:[%s435_s4 + $0x18] sm:$0xff] %vm129_vm0, %v116_v37  ;;  %v103_v49 = vmax.f32 %v71_v42, %v87_v45  ;;  %134 = vst.msk [vmem:[%s435_s4 + $0x20] sm:$0xff] %vm129_vm0, %v117_v43  ;;  %v104_v54 = vmax.f32 %v72_v51, %v88_v52  ;;  %v89_v57 = vld [vmem:[%s434_s3 + $0x40] sm:$0xff]  ;;  %v26_v61 = vld [vmem:[%s431_s0 + $0x48] sm:$0xff] }
   0xe   :  { %135 = vst.msk [vmem:[%s435_s4 + $0x28] sm:$0xff] %vm129_vm0, %v118_v48  ;;  %v105_v60 = vmax.f32 %v73_v56, %v89_v57  ;;  %v42_v62 = vld [vmem:[%s432_s1 + $0x48] sm:$0xff]  ;;  %v27_v3 = vld [vmem:[%s431_s0 + $0x50] sm:$0xff]  ;;  %v28_v10 = vld [vmem:[%s431_s0 + $0x58] sm:$0xff] }
   0xf   :  { %v119_v58 = vmax.f32 %v55_v44, %v103_v49  ;;  %v74_v63 = vld [vmem:[%s433_s2 + $0x48] sm:$0xff]  ;;  %v120_v0 = vmax.f32 %v56_v50, %v104_v54  ;;  %v58_v1 = vmax.f32 %v26_v61, %v42_v62  ;;  %v43_v4 = vld [vmem:[%s432_s1 + $0x50] sm:$0xff]  ;;  %v44_v12 = vld [vmem:[%s432_s1 + $0x58] sm:$0xff] }
  0x10   :  { %v90_v2 = vld [vmem:[%s434_s3 + $0x48] sm:$0xff]  ;;  %v121_v5 = vmax.f32 %v57_v59, %v105_v60  ;;  %v59_v7 = vmax.f32 %v27_v3, %v43_v4  ;;  %v75_v8 = vld [vmem:[%s433_s2 + $0x50] sm:$0xff]  ;;  %v76_v13 = vld [vmem:[%s433_s2 + $0x58] sm:$0xff]  ;;  %v60_v16 = vmax.f32 %v28_v10, %v44_v12 }
  0x11   :  { %136 = vst.msk [vmem:[%s435_s4 + $0x30] sm:$0xff] %vm129_vm0, %v119_v58  ;;  %v106_v6 = vmax.f32 %v74_v63, %v90_v2  ;;  %v91_v9 = vld [vmem:[%s434_s3 + $0x50] sm:$0xff]  ;;  %137 = vst.msk [vmem:[%s435_s4 + $0x38] sm:$0xff] %vm129_vm0, %v120_v0  ;;  %v92_v14 = vld [vmem:[%s434_s3 + $0x58] sm:$0xff] }
  0x12   :  { %v107_v11 = vmax.f32 %v75_v8, %v91_v9  ;;  %138 = vst.msk [vmem:[%s435_s4 + $0x40] sm:$0xff] %vm129_vm0, %v121_v5  ;;  %v108_v17 = vmax.f32 %v76_v13, %v92_v14  ;;  %v29_v18 = vld [vmem:[%s431_s0 + $0x60] sm:$0xff]  ;;  %v30_v24 = vld [vmem:[%s431_s0 + $0x68] sm:$0xff]  ;;  %v31_v31 = vld [vmem:[%s431_s0 + $0x70] sm:$0xff] }
  0x13   :  { %v122_v15 = vmax.f32 %v58_v1, %v106_v6  ;;  %v45_v19 = vld [vmem:[%s432_s1 + $0x60] sm:$0xff]  ;;  %v46_v25 = vld [vmem:[%s432_s1 + $0x68] sm:$0xff]  ;;  %v47_v33 = vld [vmem:[%s432_s1 + $0x70] sm:$0xff] }
  0x14   :  { %v77_v20 = vld [vmem:[%s433_s2 + $0x60] sm:$0xff]  ;;  %v123_v21 = vmax.f32 %v59_v7, %v107_v11  ;;  %v61_v22 = vmax.f32 %v29_v18, %v45_v19  ;;  %v124_v26 = vmax.f32 %v60_v16, %v108_v17  ;;  %v62_v28 = vmax.f32 %v30_v24, %v46_v25  ;;  %v78_v29 = vld [vmem:[%s433_s2 + $0x68] sm:$0xff]  ;;  %v79_v34 = vld [vmem:[%s433_s2 + $0x70] sm:$0xff] }
  0x15   :  { %v93_v23 = vld [vmem:[%s434_s3 + $0x60] sm:$0xff]  ;;  %139 = vst.msk [vmem:[%s435_s4 + $0x48] sm:$0xff] %vm129_vm0, %v122_v15  ;;  %v94_v30 = vld [vmem:[%s434_s3 + $0x68] sm:$0xff]  ;;  %v95_v35 = vld [vmem:[%s434_s3 + $0x70] sm:$0xff]  ;;  %v63_v37 = vmax.f32 %v31_v31, %v47_v33 }
  0x16   :  { %v109_v27 = vmax.f32 %v77_v20, %v93_v23  ;;  %140 = vst.msk [vmem:[%s435_s4 + $0x50] sm:$0xff] %vm129_vm0, %v123_v21  ;;  %v110_v32 = vmax.f32 %v78_v29, %v94_v30  ;;  %141 = vst.msk [vmem:[%s435_s4 + $0x58] sm:$0xff] %vm129_vm0, %v124_v26  ;;  %v111_v38 = vmax.f32 %v79_v34, %v95_v35  ;;  %v32_v39 = vld [vmem:[%s431_s0 + $0x78] sm:$0xff] }
  0x17   :  { %v48_v40 = vld [vmem:[%s432_s1 + $0x78] sm:$0xff] }
  0x18   :  { %v125_v36 = vmax.f32 %v61_v22, %v109_v27  ;;  %v80_v41 = vld [vmem:[%s433_s2 + $0x78] sm:$0xff]  ;;  %v126_v42 = vmax.f32 %v62_v28, %v110_v32  ;;  %v64_v43 = vmax.f32 %v32_v39, %v48_v40  ;;  %v127_v45 = vmax.f32 %v63_v37, %v111_v38 }
  0x19   :  { %v96_v44 = vld [vmem:[%s434_s3 + $0x78] sm:$0xff] }
  0x1a   :  { %142 = vst.msk [vmem:[%s435_s4 + $0x60] sm:$0xff] %vm129_vm0, %v125_v36  ;;  %v112_v46 = vmax.f32 %v80_v41, %v96_v44  ;;  %143 = vst.msk [vmem:[%s435_s4 + $0x68] sm:$0xff] %vm129_vm0, %v126_v42 }
  0x1b   :  { %144 = vst.msk [vmem:[%s435_s4 + $0x70] sm:$0xff] %vm129_vm0, %v127_v45 }
  0x1c   :  { %v128_v47 = vmax.f32 %v64_v43, %v112_v46 }
  0x1e   :  { %145 = vst.msk [vmem:[%s435_s4 + $0x78] sm:$0xff] %vm129_vm0, %v128_v47 }

// kernel: unet_forward.30
= control target key start
LH: loop header
LB: loop body
LE: loop exit
PB: predicated region body
PF: predicated region fallthrough
CT: control target
= control target key end

     0   :  { %v411_v0 = vmov 0   ;;  %vm182_vm0 = vcmask 130048   ;;  %vm304_vm1 = vcmask 261120   ;;  %s582_s1 = inlined_call_operand.vmem [shape: bf16[144,32], index: 1, kind: input, shape index: {}]   ;;  %s583_s0 = inlined_call_operand.vmem [shape: bf16[128,144], index: 0, kind: input, shape index: {}]   ;;  %s584_s2 = inlined_call_operand.vmem [shape: f32[1,32], index: 2, kind: input, shape index: {}]   ;;  %s585_s3 = inlined_call_operand.vmem [shape: f32[128,32], index: 3, kind: output, shape index: {}]  }
   0x1   :  { %207 = vmatprep.subr.bf16.mxu0 %v411_v0  ;;  %359 = vmatprep.subr.bf16.mxu1 %v411_v0  ;;  %v378_v1 = vld [vmem:[%s582_s1] sm:$0xff]   ;;  %v379_v2 = vld [vmem:[%s582_s1 + $0x8] sm:$0xff]   ;;  %v380_v3 = vld [vmem:[%s582_s1 + $0x10] sm:$0xff]  }
   0x2   :  { %208 = vmatpush1.bf16.msra.mxu0 %v378_v1  ;;  %368 = vmatpush1.bf16.msra.mxu1 %v378_v1  ;;  %v381_v4 = vld [vmem:[%s582_s1 + $0x18] sm:$0xff]   ;;  %v389_v5 = vld [vmem:[%s583_s0 + $0x4] ss:$8 sps:$4 sm:$0xff]   ;;  %v384_v9 = vld [vmem:[%s582_s1 + $0x30] sm:$0xff]  }
   0x3   :  { %209 = vmatprep.subr.bf16.mxu0 %v411_v0  ;;  %360 = vmatprep.subr.bf16.mxu1 %v411_v0  ;;  %v392_v6 = vld [vmem:[%s583_s0 + $0x44] ss:$8 sps:$4 sm:$0xff]   ;;  %v385_v10 = vld [vmem:[%s582_s1 + $0x38] sm:$0xff]   ;;  %v387_v12 = vld [vmem:[%s583_s0] ss:$8 sps:$4 sm:$0xff]  }
   0x4   :  { %351 = vmatprep.mubr.msk.bf16.mxu0 %vm182_vm0, %v389_v5  ;;  %355 = vmatprep.mubr.msk.bf16.mxu1 %vm182_vm0, %v392_v6  ;;  %v382_v7 = vld [vmem:[%s582_s1 + $0x20] sm:$0xff]   ;;  %v383_v8 = vld [vmem:[%s582_s1 + $0x28] sm:$0xff]   ;;  %v393_v14 = vld [vmem:[%s583_s0 + $0x14] ss:$8 sps:$4 sm:$0xff]  }
   0x5   :  { %v386_v11 = vld [vmem:[%s582_s1 + $0x40] sm:$0xff]   ;;  %v395_v15 = vld [vmem:[%s583_s0 + $0x54] ss:$8 sps:$4 sm:$0xff]   ;;  %v397_v16 = vld [vmem:[%s583_s0 + $0x10] ss:$8 sps:$4 sm:$0xff]  }
   0x6   :  { %210 = vmatpush1.bf16.msra.mxu0 %v379_v2  ;;  %369 = vmatpush1.bf16.msra.mxu1 %v379_v2  ;;  %v390_v13 = vld [vmem:[%s583_s0 + $0x40] ss:$8 sps:$4 sm:$0xff]   ;;  %v398_v17 = vld [vmem:[%s583_s0 + $0x50] ss:$8 sps:$4 sm:$0xff]   ;;  %v399_v18 = vld [vmem:[%s583_s0 + $0x24] ss:$8 sps:$4 sm:$0xff]  }
   0x7   :  { %211 = vmatprep.subr.bf16.mxu0 %v411_v0  ;;  %361 = vmatprep.subr.bf16.mxu1 %v411_v0  ;;  %v401_v19 = vld [vmem:[%s583_s0 + $0x64] ss:$8 sps:$4 sm:$0xff]   ;;  %v403_v20 = vld [vmem:[%s583_s0 + $0x20] ss:$8 sps:$4 sm:$0xff]   ;;  %v405_v22 = vld [vmem:[%s583_s0 + $0x34] ss:$8 sps:$4 sm:$0xff]  }
   0x8   :  { %v404_v21 = vld [vmem:[%s583_s0 + $0x60] ss:$8 sps:$4 sm:$0xff]   ;;  %v407_v23 = vld [vmem:[%s583_s0 + $0x74] ss:$8 sps:$4 sm:$0xff]   ;;  %v409_v24 = vld [vmem:[%s583_s0 + $0x30] ss:$8 sps:$4 sm:$0xff]  }
   0x9   :  { %v410_v25 = vld [vmem:[%s583_s0 + $0x70] ss:$8 sps:$4 sm:$0xff]   ;;  %v325_v26 = vld [vmem:[%s584_s2] ss:$0 sm:$0xff] }
   0xa   :  { %212 = vmatpush1.bf16.msra.mxu0 %v380_v3  ;;  %370 = vmatpush1.bf16.msra.mxu1 %v380_v3 }
   0xb   :  { %213 = vmatprep.subr.bf16.mxu0 %v411_v0  ;;  %362 = vmatprep.subr.bf16.mxu1 %v411_v0 }
   0xe   :  { %214 = vmatpush1.bf16.msra.mxu0 %v381_v4  ;;  %371 = vmatpush1.bf16.msra.mxu1 %v381_v4 }
   0xf   :  { %215 = vmatprep.subr.bf16.mxu0 %v411_v0  ;;  %363 = vmatprep.subr.bf16.mxu1 %v411_v0 }
  0x12   :  { %216 = vmatpush1.bf16.msra.mxu0 %v382_v7  ;;  %372 = vmatpush1.bf16.msra.mxu1 %v382_v7 }
  0x13   :  { %217 = vmatprep.subr.bf16.mxu0 %v411_v0  ;;  %364 = vmatprep.subr.bf16.mxu1 %v411_v0 }
  0x16   :  { %218 = vmatpush1.bf16.msra.mxu0 %v383_v8  ;;  %373 = vmatpush1.bf16.msra.mxu1 %v383_v8 }
  0x17   :  { %219 = vmatprep.subr.bf16.mxu0 %v411_v0  ;;  %365 = vmatprep.subr.bf16.mxu1 %v411_v0 }
  0x1a   :  { %220 = vmatpush1.bf16.msra.mxu0 %v384_v9  ;;  %374 = vmatpush1.bf16.msra.mxu1 %v384_v9 }
  0x1b   :  { %221 = vmatprep.subr.bf16.mxu0 %v411_v0  ;;  %366 = vmatprep.subr.bf16.mxu1 %v411_v0 }
  0x1e   :  { %222 = vmatpush1.bf16.msra.mxu0 %v385_v10  ;;  %375 = vmatpush1.bf16.msra.mxu1 %v385_v10 }
  0x1f   :  { %223 = vmatprep.subr.bf16.mxu0 %v411_v0  ;;  %367 = vmatprep.subr.bf16.mxu1 %v411_v0 }
  0x22   :  { %224 = vmatpush1.bf16.msra.mxu0 %v386_v11  ;;  %376 = vmatpush1.bf16.msra.mxu1 %v386_v11 }
  0x25   :  { %240 = vmatmul.mubr.bf16.vlgmr.msra.gmra.mrb[0].mxu0 %v387_v12  ;;  %272 = vmatmul.mubr.bf16.vlgmr.msra.gmra.mrb[0].mxu1 %v390_v13 }
  0x26   :  { %352 = vmatprep.mubr.msk.bf16.mxu0 %vm182_vm0, %v393_v14  ;;  %356 = vmatprep.mubr.msk.bf16.mxu1 %vm182_vm0, %v395_v15 }
  0x2d   :  { %248 = vmatmul.mubr.bf16.gmra.mrb[4].mxu0 %v397_v16  ;;  %280 = vmatmul.mubr.bf16.gmra.mrb[4].mxu1 %v398_v17 }
  0x2e   :  { %353 = vmatprep.mubr.msk.bf16.mxu0 %vm182_vm0, %v399_v18  ;;  %357 = vmatprep.mubr.msk.bf16.mxu1 %vm182_vm0, %v401_v19 }
  0x35   :  { %256 = vmatmul.mubr.bf16.gmra.mrb[8].mxu0 %v403_v20  ;;  %288 = vmatmul.mubr.bf16.gmra.mrb[8].mxu1 %v404_v21 }
  0x36   :  { %354 = vmatprep.mubr.msk.bf16.mxu0 %vm182_vm0, %v405_v22  ;;  %358 = vmatprep.mubr.msk.bf16.mxu1 %vm182_vm0, %v407_v23 }
  0x3d   :  { %264 = vmatmul.mubr.bf16.gmra.mrb[12].mxu0 %v409_v24  ;;  %296 = vmatmul.mubr.bf16.gmra.mrb[12].mxu1 %v410_v25 }
  0xf8   :  { %v241_v27 = vpop.f32.mrb[0].mxu0  ;;  %v273_v28 = vpop.f32.mrb[0].mxu1 }
  0xf9   :  { %v242_v29 = vadd.f32 %v325_v26, %v241_v27  ;;  %v274_v30 = vadd.f32 %v325_v26, %v273_v28  ;;  %v243_v31 = vpop.f32.mrb[1].mxu0  ;;  %v275_v32 = vpop.f32.mrb[1].mxu1 }
  0xfa   :  { %v244_v33 = vpop.f32.mrb[2].mxu0  ;;  %v276_v34 = vpop.f32.mrb[2].mxu1 }
  0xfb   :  { %305 = vst.msk [vmem:[%s585_s3] sm:$0xff] %vm304_vm1, %v242_v29  ;;  %313 = vst.msk [vmem:[%s585_s3 + $0x40] sm:$0xff] %vm304_vm1, %v274_v30  ;;  %v245_v35 = vadd.f32 %v325_v26, %v244_v33  ;;  %v277_v36 = vadd.f32 %v325_v26, %v276_v34  ;;  %v246_v37 = vpop.f32.mrb[3].mxu0  ;;  %v278_v38 = vpop.f32.mrb[3].mxu1 }
  0xfd   :  { %306 = vst.msk [vmem:[%s585_s3 + $0x8] sm:$0xff] %vm304_vm1, %v245_v35  ;;  %314 = vst.msk [vmem:[%s585_s3 + $0x48] sm:$0xff] %vm304_vm1, %v277_v36 }
 0x100   :  { %v249_v39 = vpop.f32.mrb[4].mxu0  ;;  %v281_v40 = vpop.f32.mrb[4].mxu1 }
 0x101   :  { %v250_v41 = vadd.f32 %v325_v26, %v249_v39  ;;  %v282_v42 = vadd.f32 %v325_v26, %v281_v40  ;;  %v251_v43 = vpop.f32.mrb[5].mxu0  ;;  %v283_v44 = vpop.f32.mrb[5].mxu1 }
 0x102   :  { %v252_v45 = vpop.f32.mrb[6].mxu0  ;;  %v284_v46 = vpop.f32.mrb[6].mxu1 }
 0x103   :  { %307 = vst.msk [vmem:[%s585_s3 + $0x10] sm:$0xff] %vm304_vm1, %v250_v41  ;;  %315 = vst.msk [vmem:[%s585_s3 + $0x50] sm:$0xff] %vm304_vm1, %v282_v42  ;;  %v253_v47 = vadd.f32 %v325_v26, %v252_v45  ;;  %v285_v48 = vadd.f32 %v325_v26, %v284_v46  ;;  %v254_v49 = vpop.f32.mrb[7].mxu0  ;;  %v286_v50 = vpop.f32.mrb[7].mxu1 }
 0x105   :  { %308 = vst.msk [vmem:[%s585_s3 + $0x18] sm:$0xff] %vm304_vm1, %v253_v47  ;;  %316 = vst.msk [vmem:[%s585_s3 + $0x58] sm:$0xff] %vm304_vm1, %v285_v48 }
 0x108   :  { %v257_v51 = vpop.f32.mrb[8].mxu0  ;;  %v289_v52 = vpop.f32.mrb[8].mxu1 }
 0x109   :  { %v258_v53 = vadd.f32 %v325_v26, %v257_v51  ;;  %v290_v54 = vadd.f32 %v325_v26, %v289_v52  ;;  %v259_v55 = vpop.f32.mrb[9].mxu0  ;;  %v291_v56 = vpop.f32.mrb[9].mxu1 }
 0x10a   :  { %v260_v57 = vpop.f32.mrb[10].mxu0  ;;  %v292_v58 = vpop.f32.mrb[10].mxu1 }
 0x10b   :  { %309 = vst.msk [vmem:[%s585_s3 + $0x20] sm:$0xff] %vm304_vm1, %v258_v53  ;;  %317 = vst.msk [vmem:[%s585_s3 + $0x60] sm:$0xff] %vm304_vm1, %v290_v54  ;;  %v261_v59 = vadd.f32 %v325_v26, %v260_v57  ;;  %v293_v60 = vadd.f32 %v325_v26, %v292_v58  ;;  %v262_v61 = vpop.f32.mrb[11].mxu0  ;;  %v294_v62 = vpop.f32.mrb[11].mxu1 }
 0x10d   :  { %310 = vst.msk [vmem:[%s585_s3 + $0x28] sm:$0xff] %vm304_vm1, %v261_v59  ;;  %318 = vst.msk [vmem:[%s585_s3 + $0x68] sm:$0xff] %vm304_vm1, %v293_v60 }
 0x110   :  { %v265_v63 = vpop.f32.mrb[12].mxu0  ;;  %v297_v0 = vpop.f32.mrb[12].mxu1 }
 0x111   :  { %v266_v1 = vadd.f32 %v325_v26, %v265_v63  ;;  %v298_v2 = vadd.f32 %v325_v26, %v297_v0  ;;  %v267_v3 = vpop.f32.mrb[13].mxu0  ;;  %v299_v4 = vpop.f32.mrb[13].mxu1 }
 0x112   :  { %v268_v5 = vpop.f32.mrb[14].mxu0  ;;  %v300_v6 = vpop.f32.mrb[14].mxu1 }
 0x113   :  { %311 = vst.msk [vmem:[%s585_s3 + $0x30] sm:$0xff] %vm304_vm1, %v266_v1  ;;  %319 = vst.msk [vmem:[%s585_s3 + $0x70] sm:$0xff] %vm304_vm1, %v298_v2  ;;  %v269_v7 = vadd.f32 %v325_v26, %v268_v5  ;;  %v301_v8 = vadd.f32 %v325_v26, %v300_v6  ;;  %v270_v9 = vpop.f32.mrb[15].mxu0  ;;  %v302_v10 = vpop.f32.mrb[15].mxu1 }
 0x115   :  { %312 = vst.msk [vmem:[%s585_s3 + $0x38] sm:$0xff] %vm304_vm1, %v269_v7  ;;  %320 = vst.msk [vmem:[%s585_s3 + $0x78] sm:$0xff] %vm304_vm1, %v301_v8 }

// kernel: unet_forward.31
= control target key start
LH: loop header
LB: loop body
LE: loop exit
PB: predicated region body
PF: predicated region fallthrough
CT: control target
= control target key end

     0   :  { %vm318_vm0 = vcmask 261120   ;;  %s1019_s1 = inlined_call_operand.vmem [shape: bf16[288,32], index: 1, kind: input, shape index: {}]   ;;  %s1020_s0 = inlined_call_operand.vmem [shape: bf16[128,288], index: 0, kind: input, shape index: {}]   ;;  %s1021_s2 = inlined_call_operand.vmem [shape: f32[1,32], index: 2, kind: input, shape index: {}]   ;;  %s1022_s3 = inlined_call_operand.vmem [shape: f32[128,32], index: 3, kind: output, shape index: {}]  }
   0x1   :  { %v718_v0 = vld [vmem:[%s1019_s1 + $0x40] sm:$0xff]   ;;  %v720_v2 = vld [vmem:[%s1019_s1 + $0x48] sm:$0xff]   ;;  %v722_v4 = vld [vmem:[%s1019_s1 + $0x50] sm:$0xff]  }
   0x2   :  { %v719_v1 = vld [vmem:[%s1019_s1] sm:$0xff]   ;;  %608 = vmatprep.subr.bf16.mxu0 %v718_v0  ;;  %702 = vmatprep.subr.bf16.mxu1 %v718_v0  ;;  %v721_v3 = vld [vmem:[%s1019_s1 + $0x8] sm:$0xff]   ;;  %v723_v5 = vld [vmem:[%s1019_s1 + $0x10] sm:$0xff]  }
   0x3   :  { %609 = vmatpush3.bf16.msra.mxu0 %v719_v1  ;;  %710 = vmatpush3.bf16.msra.mxu1 %v719_v1  ;;  %v724_v6 = vld [vmem:[%s1019_s1 + $0x58] sm:$0xff]   ;;  %v726_v8 = vld [vmem:[%s1019_s1 + $0x60] sm:$0xff]   ;;  %v728_v10 = vld [vmem:[%s1019_s1 + $0x68] sm:$0xff]  }
   0x4   :  { %610 = vmatprep.subr.bf16.mxu0 %v720_v2  ;;  %703 = vmatprep.subr.bf16.mxu1 %v720_v2  ;;  %v725_v7 = vld [vmem:[%s1019_s1 + $0x18] sm:$0xff]   ;;  %v727_v9 = vld [vmem:[%s1019_s1 + $0x20] sm:$0xff]   ;;  %v729_v13 = vld [vmem:[%s1019_s1 + $0x28] sm:$0xff]  }
   0x5   :  { %v736_v11 = vld [vmem:[%s1020_s0 + $0x4] ss:$12 sps:$4 sm:$0xff]   ;;  %v739_v12 = vld [vmem:[%s1020_s0 + $0x94] ss:$12 sps:$4 sm:$0xff]   ;;  %v732_v16 = vld [vmem:[%s1019_s1 + $0x78] sm:$0xff]  }
   0x6   :  { %v730_v14 = vld [vmem:[%s1019_s1 + $0x70] sm:$0xff]   ;;  %375 = vmatprep.mubr.bf16.mxu0 %v736_v11  ;;  %423 = vmatprep.mubr.bf16.mxu1 %v739_v12  ;;  %v733_v17 = vld [vmem:[%s1019_s1 + $0x38] sm:$0xff]   ;;  %v734_v18 = vld [vmem:[%s1020_s0] ss:$12 sps:$4 sm:$0xff]  }
   0x7   :  { %611 = vmatpush3.bf16.msra.mxu0 %v721_v3  ;;  %711 = vmatpush3.bf16.msra.mxu1 %v721_v3  ;;  %v731_v15 = vld [vmem:[%s1019_s1 + $0x30] sm:$0xff]   ;;  %v740_v19 = vld [vmem:[%s1019_s1 + $0x80] sm:$0xff]   ;;  %v741_v21 = vld [vmem:[%s1020_s0 + $0x1c] ss:$12 sps:$4 sm:$0xff]  }
   0x8   :  { %612 = vmatprep.subr.bf16.mxu0 %v722_v4  ;;  %704 = vmatprep.subr.bf16.mxu1 %v722_v4  ;;  %v737_v20 = vld [vmem:[%s1020_s0 + $0x90] ss:$12 sps:$4 sm:$0xff]   ;;  %v743_v22 = vld [vmem:[%s1020_s0 + $0xac] ss:$12 sps:$4 sm:$0xff]   ;;  %v746_v25 = vld [vmem:[%s1020_s0 + $0xa8] ss:$12 sps:$4 sm:$0xff]  }
   0x9   :  { %v747_v23 = vld [vmem:[%s1019_s1 + $0x88] sm:$0xff]   ;;  %v745_v24 = vld [vmem:[%s1020_s0 + $0x18] ss:$12 sps:$4 sm:$0xff]   ;;  %v748_v26 = vld [vmem:[%s1020_s0 + $0x34] ss:$12 sps:$4 sm:$0xff]  }
   0xa   :  { %v750_v27 = vld [vmem:[%s1020_s0 + $0x8] ss:$12 sps:$4 sm:$0xff]   ;;  %v751_v28 = vld [vmem:[%s1020_s0 + $0x30] ss:$12 sps:$4 sm:$0xff]   ;;  %v752_v29 = vld [vmem:[%s1020_s0 + $0x20] ss:$12 sps:$4 sm:$0xff]  }
   0xb   :  { %613 = vmatpush3.bf16.msra.mxu0 %v723_v5  ;;  %712 = vmatpush3.bf16.msra.mxu1 %v723_v5  ;;  %v753_v30 = vld [vmem:[%s1020_s0 + $0x4c] ss:$12 sps:$4 sm:$0xff]   ;;  %v756_v32 = vld [vmem:[%s1020_s0 + $0x48] ss:$12 sps:$4 sm:$0xff]   ;;  %v757_v33 = vld [vmem:[%s1020_s0 + $0x50] ss:$12 sps:$4 sm:$0xff]  }
   0xc   :  { %614 = vmatprep.subr.bf16.mxu0 %v724_v6  ;;  %705 = vmatprep.subr.bf16.mxu1 %v724_v6  ;;  %v755_v31 = vld [vmem:[%s1020_s0 + $0x38] ss:$12 sps:$4 sm:$0xff]   ;;  %v760_v35 = vld [vmem:[%s1020_s0 + $0x68] ss:$12 sps:$4 sm:$0xff]   ;;  %v761_v36 = vld [vmem:[%s1020_s0 + $0x60] ss:$12 sps:$4 sm:$0xff]  }
   0xd   :  { %v758_v34 = vld [vmem:[%s1020_s0 + $0x64] ss:$12 sps:$4 sm:$0xff]   ;;  %v762_v37 = vld [vmem:[%s1020_s0 + $0x80] ss:$12 sps:$4 sm:$0xff]   ;;  %v763_v38 = vld [vmem:[%s1020_s0 + $0x7c] ss:$12 sps:$4 sm:$0xff]  }
   0xe   :  { %v765_v39 = vld [vmem:[%s1020_s0 + $0x98] ss:$12 sps:$4 sm:$0xff]   ;;  %v767_v41 = vld [vmem:[%s1020_s0 + $0xb0] ss:$12 sps:$4 sm:$0xff]   ;;  %v933_v2 = vld [vmem:[%s1021_s2] ss:$0 sm:$0xff] }
   0xf   :  { %615 = vmatpush3.bf16.msra.mxu0 %v725_v7  ;;  %713 = vmatpush3.bf16.msra.mxu1 %v725_v7  ;;  %v766_v40 = vld [vmem:[%s1020_s0 + $0x78] ss:$12 sps:$4 sm:$0xff]  }
  0x10   :  { %616 = vmatprep.subr.bf16.mxu0 %v726_v8  ;;  %706 = vmatprep.subr.bf16.mxu1 %v726_v8 }
  0x13   :  { %617 = vmatpush3.bf16.msra.mxu0 %v727_v9  ;;  %714 = vmatpush3.bf16.msra.mxu1 %v727_v9 }
  0x14   :  { %618 = vmatprep.subr.bf16.mxu0 %v728_v10  ;;  %707 = vmatprep.subr.bf16.mxu1 %v728_v10 }
  0x17   :  { %619 = vmatpush3.bf16.msra.mxu0 %v729_v13  ;;  %715 = vmatpush3.bf16.msra.mxu1 %v729_v13 }
  0x18   :  { %620 = vmatprep.subr.bf16.mxu0 %v730_v14  ;;  %708 = vmatprep.subr.bf16.mxu1 %v730_v14 }
  0x1b   :  { %621 = vmatpush3.bf16.msra.mxu0 %v731_v15  ;;  %716 = vmatpush3.bf16.msra.mxu1 %v731_v15 }
  0x1c   :  { %622 = vmatprep.subr.bf16.mxu0 %v732_v16  ;;  %709 = vmatprep.subr.bf16.mxu1 %v732_v16 }
  0x1f   :  { %623 = vmatpush3.bf16.msra.mxu0 %v733_v17  ;;  %717 = vmatpush3.bf16.msra.mxu1 %v733_v17 }
  0x20   :  { %682 = vmatprep.subr.bf16.mxu1 %v740_v19 }
  0x22   :  { %376 = vmatmul.mubr.bf16.vlgmr.msra.gmra.mrb[0].mxu0 %v734_v18  ;;  %424 = vmatmul.mubr.bf16.vlgmr.msra.gmra.mrb[0].mxu1 %v737_v20 }
  0x23   :  { %683 = vmatpush3.bf16.msra.mxu1 %v740_v19  ;;  %383 = vmatprep.mubr.bf16.mxu0 %v741_v21 }
  0x24   :  { %431 = vmatprep.mubr.bf16.mxu1 %v743_v22  ;;  %684 = vmatprep.subr.bf16.mxu1 %v747_v23 }
  0x27   :  { %685 = vmatpush3.bf16.msra.mxu1 %v747_v23 }
  0x2a   :  { %384 = vmatmul.mubr.bf16.gmra.mrb[4].mxu0 %v745_v24  ;;  %432 = vmatmul.mubr.bf16.gmra.mrb[4].mxu1 %v746_v25 }
  0x2b   :  { %391 = vmatprep.mubr.bf16.mxu0 %v748_v26  ;;  %686 = vmatprep.mubr.msk.bf16.mxu1 %vm318_vm0, %v750_v27 }
  0x32   :  { %392 = vmatmul.mubr.bf16.gmra.mrb[8].mxu0 %v751_v28  ;;  %687 = vmatmul.mubr.msk.bf16.vlgmr.msra.gmra.mrb[8].mxu1 %vm318_vm0, %v752_v29 }
  0x33   :  { %399 = vmatprep.mubr.bf16.mxu0 %v753_v30  ;;  %690 = vmatprep.mubr.msk.bf16.mxu1 %vm318_vm0, %v755_v31 }
  0x3a   :  { %400 = vmatmul.mubr.bf16.gmra.mrb[12].mxu0 %v756_v32  ;;  %691 = vmatmul.mubr.msk.bf16.gmra.mrb[12].mxu1 %vm318_vm0, %v757_v33 }
  0x3b   :  { %407 = vmatprep.mubr.bf16.mxu0 %v758_v34  ;;  %694 = vmatprep.mubr.msk.bf16.mxu1 %vm318_vm0, %v760_v35 }
  0x42   :  { %408 = vmatmul.mubr.bf16.gmra.mrb[16].mxu0 %v761_v36  ;;  %695 = vmatmul.mubr.msk.bf16.gmra.mrb[16].mxu1 %vm318_vm0, %v762_v37 }
  0x43   :  { %415 = vmatprep.mubr.bf16.mxu0 %v763_v38  ;;  %698 = vmatprep.mubr.msk.bf16.mxu1 %vm318_vm0, %v765_v39 }
  0x4a   :  { %416 = vmatmul.mubr.bf16.gmra.mrb[20].mxu0 %v766_v40  ;;  %699 = vmatmul.mubr.msk.bf16.gmra.mrb[20].mxu1 %vm318_vm0, %v767_v41 }
  0xf5   :  { %v624_v42 = vpop.f32.mrb[0].mxu0  ;;  %v660_v43 = vpop.f32.mrb[0].mxu1 }
  0xf6   :  { %v625_v44 = vpop.f32.mrb[1].mxu0  ;;  %v661_v45 = vpop.f32.mrb[1].mxu1 }
  0xf7   :  { %v626_v46 = vadd.f32 %v625_v44, %v624_v42  ;;  %v627_v47 = vpop.f32.mrb[2].mxu0  ;;  %v922_v48 = vadd.f32 %v661_v45, %v660_v43  ;;  %v663_v49 = vpop.f32.mrb[2].mxu1 }
  0xf8   :  { %v628_v50 = vpop.f32.mrb[3].mxu0  ;;  %v664_v51 = vpop.f32.mrb[3].mxu1 }
  0xf9   :  { %v629_v52 = vadd.f32 %v628_v50, %v627_v47  ;;  %v924_v53 = vadd.f32 %v664_v51, %v663_v49  ;;  %v378_v6 = vadd.f32 %v626_v46, %v933_v2 }
  0xfb   :  { %v381_v15 = vadd.f32 %v629_v52, %v933_v2 }
  0xfd   :  { %v630_v54 = vpop.f32.mrb[4].mxu0  ;;  %v666_v55 = vpop.f32.mrb[4].mxu1 }
  0xfe   :  { %v631_v56 = vpop.f32.mrb[5].mxu0  ;;  %v667_v57 = vpop.f32.mrb[5].mxu1 }
  0xff   :  { %v632_v58 = vadd.f32 %v631_v56, %v630_v54  ;;  %v633_v59 = vpop.f32.mrb[6].mxu0  ;;  %v926_v60 = vadd.f32 %v667_v57, %v666_v55  ;;  %v669_v61 = vpop.f32.mrb[6].mxu1 }
 0x100   :  { %v634_v62 = vpop.f32.mrb[7].mxu0  ;;  %v670_v63 = vpop.f32.mrb[7].mxu1 }
 0x101   :  { %v635_v0 = vadd.f32 %v634_v62, %v633_v59  ;;  %v928_v1 = vadd.f32 %v670_v63, %v669_v61  ;;  %v386_v3 = vadd.f32 %v632_v58, %v933_v2  ;;  %v434_v54 = vadd.f32 %v926_v60, %v933_v2 }
 0x102   :  { %v426_v58 = vadd.f32 %v922_v48, %v933_v2 }
 0x103   :  { %v389_v10 = vadd.f32 %v635_v0, %v933_v2  ;;  %v437_v63 = vadd.f32 %v928_v1, %v933_v2 }
 0x105   :  { %v636_v4 = vpop.f32.mrb[8].mxu0  ;;  %v688_v5 = vpop.f32.mrb[8].mxu1 }
 0x106   :  { %v483_v7 = vadd.f32 %v688_v5, %v386_v3  ;;  %v637_v8 = vpop.f32.mrb[9].mxu0  ;;  %v474_v9 = vpop.f32.mrb[9].mxu1  ;;  %v429_v5 = vadd.f32 %v924_v53, %v933_v2 }
 0x107   :  { %v638_v11 = vadd.f32 %v637_v8, %v636_v4  ;;  %v475_v12 = vadd.f32 %v474_v9, %v378_v6  ;;  %v639_v13 = vpop.f32.mrb[10].mxu0  ;;  %v689_v14 = vpop.f32.mrb[10].mxu1 }
 0x108   :  { %539 = vst.msk [vmem:[%s1022_s3 + $0x10] sm:$0xff] %vm318_vm0, %v483_v7  ;;  %v486_v16 = vadd.f32 %v689_v14, %v389_v10  ;;  %v640_v17 = vpop.f32.mrb[11].mxu0  ;;  %v477_v18 = vpop.f32.mrb[11].mxu1 }
 0x109   :  { %537 = vst.msk [vmem:[%s1022_s3] sm:$0xff] %vm318_vm0, %v475_v12  ;;  %v641_v19 = vadd.f32 %v640_v17, %v639_v13  ;;  %v478_v20 = vadd.f32 %v477_v18, %v381_v15  ;;  %v394_v23 = vadd.f32 %v638_v11, %v933_v2 }
 0x10a   :  { %540 = vst.msk [vmem:[%s1022_s3 + $0x18] sm:$0xff] %vm318_vm0, %v486_v16 }
 0x10b   :  { %538 = vst.msk [vmem:[%s1022_s3 + $0x8] sm:$0xff] %vm318_vm0, %v478_v20  ;;  %v397_v30 = vadd.f32 %v641_v19, %v933_v2 }
 0x10d   :  { %v642_v21 = vpop.f32.mrb[12].mxu0  ;;  %v692_v22 = vpop.f32.mrb[12].mxu1 }
 0x10e   :  { %v643_v24 = vpop.f32.mrb[13].mxu0  ;;  %v490_v25 = vpop.f32.mrb[13].mxu1 }
 0x10f   :  { %v644_v26 = vadd.f32 %v643_v24, %v642_v21  ;;  %v491_v27 = vadd.f32 %v490_v25, %v394_v23  ;;  %v645_v28 = vpop.f32.mrb[14].mxu0  ;;  %v693_v29 = vpop.f32.mrb[14].mxu1 }
 0x110   :  { %v646_v31 = vpop.f32.mrb[15].mxu0  ;;  %v493_v32 = vpop.f32.mrb[15].mxu1 }
 0x111   :  { %v402_v33 = vadd.f32 %v644_v26, %v933_v2  ;;  %541 = vst.msk [vmem:[%s1022_s3 + $0x20] sm:$0xff] %vm318_vm0, %v491_v27  ;;  %v647_v34 = vadd.f32 %v646_v31, %v645_v28  ;;  %v494_v35 = vadd.f32 %v493_v32, %v397_v30 }
 0x113   :  { %v499_v36 = vadd.f32 %v692_v22, %v402_v33  ;;  %v405_v37 = vadd.f32 %v647_v34, %v933_v2  ;;  %542 = vst.msk [vmem:[%s1022_s3 + $0x28] sm:$0xff] %vm318_vm0, %v494_v35 }
 0x115   :  { %543 = vst.msk [vmem:[%s1022_s3 + $0x30] sm:$0xff] %vm318_vm0, %v499_v36  ;;  %v502_v38 = vadd.f32 %v693_v29, %v405_v37  ;;  %v648_v39 = vpop.f32.mrb[16].mxu0  ;;  %v696_v40 = vpop.f32.mrb[16].mxu1 }
 0x116   :  { %v649_v41 = vpop.f32.mrb[17].mxu0  ;;  %v506_v42 = vpop.f32.mrb[17].mxu1 }
 0x117   :  { %544 = vst.msk [vmem:[%s1022_s3 + $0x38] sm:$0xff] %vm318_vm0, %v502_v38  ;;  %v650_v43 = vadd.f32 %v649_v41, %v648_v39  ;;  %v651_v44 = vpop.f32.mrb[18].mxu0  ;;  %v697_v45 = vpop.f32.mrb[18].mxu1 }
 0x118   :  { %v652_v46 = vpop.f32.mrb[19].mxu0  ;;  %v509_v47 = vpop.f32.mrb[19].mxu1 }
 0x119   :  { %v410_v49 = vadd.f32 %v650_v43, %v933_v2  ;;  %v653_v50 = vadd.f32 %v652_v46, %v651_v44 }
 0x11b   :  { %v507_v51 = vadd.f32 %v506_v42, %v410_v49  ;;  %v413_v52 = vadd.f32 %v653_v50, %v933_v2 }
 0x11d   :  { %545 = vst.msk [vmem:[%s1022_s3 + $0x40] sm:$0xff] %vm318_vm0, %v507_v51  ;;  %v510_v55 = vadd.f32 %v509_v47, %v413_v52  ;;  %v654_v56 = vpop.f32.mrb[20].mxu0  ;;  %v700_v57 = vpop.f32.mrb[20].mxu1 }
 0x11e   :  { %v531_v59 = vadd.f32 %v700_v57, %v434_v54  ;;  %v655_v61 = vpop.f32.mrb[21].mxu0  ;;  %v522_v62 = vpop.f32.mrb[21].mxu1 }
 0x11f   :  { %546 = vst.msk [vmem:[%s1022_s3 + $0x48] sm:$0xff] %vm318_vm0, %v510_v55  ;;  %v656_v60 = vadd.f32 %v655_v61, %v654_v56  ;;  %v523_v0 = vadd.f32 %v522_v62, %v426_v58  ;;  %v657_v3 = vpop.f32.mrb[22].mxu0  ;;  %v701_v4 = vpop.f32.mrb[22].mxu1 }
 0x120   :  { %551 = vst.msk [vmem:[%s1022_s3 + $0x70] sm:$0xff] %vm318_vm0, %v531_v59  ;;  %v534_v48 = vadd.f32 %v701_v4, %v437_v63  ;;  %v658_v6 = vpop.f32.mrb[23].mxu0  ;;  %v525_v1 = vpop.f32.mrb[23].mxu1 }
 0x121   :  { %v418_v7 = vadd.f32 %v656_v60, %v933_v2  ;;  %549 = vst.msk [vmem:[%s1022_s3 + $0x60] sm:$0xff] %vm318_vm0, %v523_v0  ;;  %v659_v8 = vadd.f32 %v658_v6, %v657_v3  ;;  %v526_v9 = vadd.f32 %v525_v1, %v429_v5 }
 0x122   :  { %552 = vst.msk [vmem:[%s1022_s3 + $0x78] sm:$0xff] %vm318_vm0, %v534_v48 }
 0x123   :  { %v515_v53 = vadd.f32 %v696_v40, %v418_v7  ;;  %v421_v10 = vadd.f32 %v659_v8, %v933_v2  ;;  %550 = vst.msk [vmem:[%s1022_s3 + $0x68] sm:$0xff] %vm318_vm0, %v526_v9 }
 0x125   :  { %547 = vst.msk [vmem:[%s1022_s3 + $0x50] sm:$0xff] %vm318_vm0, %v515_v53  ;;  %v518_v11 = vadd.f32 %v697_v45, %v421_v10 }
 0x127   :  { %548 = vst.msk [vmem:[%s1022_s3 + $0x58] sm:$0xff] %vm318_vm0, %v518_v11 }

// kernel: unet_forward.32
= control target key start
LH: loop header
LB: loop body
LE: loop exit
PB: predicated region body
PF: predicated region fallthrough
CT: control target
= control target key end

     0   :  { %vm45_vm0 = vcmask 261120   ;;  %s143_s0 = inlined_call_operand.vmem [shape: f32[32,32], index: 0, kind: input, shape index: {}]   ;;  %s144_s1 = inlined_call_operand.vmem [shape: f32[32,32], index: 1, kind: input, shape index: {}]   ;;  %s145_s2 = inlined_call_operand.vmem [shape: f32[32,32], index: 2, kind: input, shape index: {}]   ;;  %s146_s3 = inlined_call_operand.vmem [shape: f32[32,32], index: 3, kind: input, shape index: {}]   ;;  %s147_s4 = inlined_call_operand.vmem [shape: f32[32,32], index: 4, kind: output, shape index: {}]  }
   0x1   :  { %v17_v0 = vld [vmem:[%s143_s0] sm:$0xff]  ;;  %v18_v5 = vld [vmem:[%s143_s0 + $0x8] sm:$0xff]  ;;  %v19_v11 = vld [vmem:[%s143_s0 + $0x10] sm:$0xff] }
   0x2   :  { %v21_v1 = vld [vmem:[%s144_s1] sm:$0xff]  ;;  %v22_v6 = vld [vmem:[%s144_s1 + $0x8] sm:$0xff]  ;;  %v23_v13 = vld [vmem:[%s144_s1 + $0x10] sm:$0xff] }
   0x3   :  { %v29_v2 = vld [vmem:[%s145_s2] sm:$0xff]  ;;  %v25_v3 = vmax.f32 %v17_v0, %v21_v1  ;;  %v26_v8 = vmax.f32 %v18_v5, %v22_v6  ;;  %v30_v9 = vld [vmem:[%s145_s2 + $0x8] sm:$0xff]  ;;  %v31_v14 = vld [vmem:[%s145_s2 + $0x10] sm:$0xff]  ;;  %v27_v17 = vmax.f32 %v19_v11, %v23_v13 }
   0x4   :  { %v33_v4 = vld [vmem:[%s146_s3] sm:$0xff]  ;;  %v34_v10 = vld [vmem:[%s146_s3 + $0x8] sm:$0xff]  ;;  %v35_v15 = vld [vmem:[%s146_s3 + $0x10] sm:$0xff] }
   0x5   :  { %v37_v7 = vmax.f32 %v29_v2, %v33_v4  ;;  %v38_v12 = vmax.f32 %v30_v9, %v34_v10  ;;  %v39_v18 = vmax.f32 %v31_v14, %v35_v15  ;;  %v20_v19 = vld [vmem:[%s143_s0 + $0x18] sm:$0xff] }
   0x6   :  { %v24_v20 = vld [vmem:[%s144_s1 + $0x18] sm:$0xff] }
   0x7   :  { %v41_v16 = vmax.f32 %v25_v3, %v37_v7  ;;  %v32_v21 = vld [vmem:[%s145_s2 + $0x18] sm:$0xff]  ;;  %v42_v22 = vmax.f32 %v26_v8, %v38_v12  ;;  %v28_v23 = vmax.f32 %v20_v19, %v24_v20  ;;  %v43_v25 = vmax.f32 %v27_v17, %v39_v18 }
   0x8   :  { %v36_v24 = vld [vmem:[%s146_s3 + $0x18] sm:$0xff] }
   0x9   :  { %46 = vst.msk [vmem:[%s147_s4] sm:$0xff] %vm45_vm0, %v41_v16  ;;  %v40_v26 = vmax.f32 %v32_v21, %v36_v24  ;;  %47 = vst.msk [vmem:[%s147_s4 + $0x8] sm:$0xff] %vm45_vm0, %v42_v22 }
   0xa   :  { %48 = vst.msk [vmem:[%s147_s4 + $0x10] sm:$0xff] %vm45_vm0, %v43_v25 }
   0xb   :  { %v44_v27 = vmax.f32 %v28_v23, %v40_v26 }
   0xd   :  { %49 = vst.msk [vmem:[%s147_s4 + $0x18] sm:$0xff] %vm45_vm0, %v44_v27 }

// kernel: unet_forward.33
= control target key start
LH: loop header
LB: loop body
LE: loop exit
PB: predicated region body
PF: predicated region fallthrough
CT: control target
= control target key end

     0   :  { %vm204_vm0 = vcmask 261120   ;;  %vm309_vm1 = vcmask 523264   ;;  %s522_s1 = inlined_call_operand.vmem [shape: bf16[288,64], index: 1, kind: input, shape index: {}]   ;;  %s523_s0 = inlined_call_operand.vmem [shape: bf16[32,288], index: 0, kind: input, shape index: {}]   ;;  %s524_s2 = inlined_call_operand.vmem [shape: f32[1,64], index: 2, kind: input, shape index: {}]   ;;  %s525_s3 = inlined_call_operand.vmem [shape: f32[32,64], index: 3, kind: output, shape index: {}]  }
   0x1   :  { %v385_v0 = vld [vmem:[%s522_s1 + $0x40] sm:$0xff]   ;;  %v387_v2 = vld [vmem:[%s522_s1 + $0x48] sm:$0xff]   ;;  %v389_v4 = vld [vmem:[%s522_s1 + $0x50] sm:$0xff]  }
   0x2   :  { %v386_v1 = vld [vmem:[%s522_s1] sm:$0xff]   ;;  %345 = vmatprep.subr.bf16.mxu0 %v385_v0  ;;  %v388_v3 = vld [vmem:[%s522_s1 + $0x8] sm:$0xff]   ;;  %v390_v5 = vld [vmem:[%s522_s1 + $0x10] sm:$0xff]  }
   0x3   :  { %346 = vmatpush3.bf16.msra.mxu0 %v386_v1  ;;  %v391_v6 = vld [vmem:[%s522_s1 + $0x58] sm:$0xff]   ;;  %v393_v8 = vld [vmem:[%s522_s1 + $0x60] sm:$0xff]   ;;  %v395_v11 = vld [vmem:[%s522_s1 + $0x68] sm:$0xff]  }
   0x4   :  { %347 = vmatprep.subr.bf16.mxu0 %v387_v2  ;;  %v392_v7 = vld [vmem:[%s522_s1 + $0x18] sm:$0xff]   ;;  %v394_v9 = vld [vmem:[%s522_s1 + $0x20] sm:$0xff]   ;;  %v396_v12 = vld [vmem:[%s522_s1 + $0x28] sm:$0xff]  }
   0x5   :  { %v400_v10 = vld [vmem:[%s522_s1 + $0x80] sm:$0xff]   ;;  %v397_v13 = vld [vmem:[%s522_s1 + $0x70] sm:$0xff]   ;;  %v405_v15 = vld [vmem:[%s522_s1 + $0x88] sm:$0xff]  }
   0x6   :  { %377 = vmatprep.subr.bf16.mxu1 %v400_v10  ;;  %v404_v14 = vld [vmem:[%s523_s0 + $0x4] ss:$12 sps:$4 sm:$0xff]   ;;  %v406_v16 = vld [vmem:[%s523_s0 + $0x8] ss:$12 sps:$4 sm:$0xff]   ;;  %v407_v17 = vld [vmem:[%s523_s0 + $0x20] ss:$12 sps:$4 sm:$0xff]  }
   0x7   :  { %348 = vmatpush3.bf16.msra.mxu0 %v388_v3  ;;  %378 = vmatpush3.bf16.msra.mxu1 %v400_v10  ;;  %v398_v18 = vld [vmem:[%s522_s1 + $0x30] sm:$0xff]   ;;  %v399_v19 = vld [vmem:[%s522_s1 + $0x78] sm:$0xff]   ;;  %v402_v21 = vld [vmem:[%s523_s0] ss:$12 sps:$4 sm:$0xff]  }
   0x8   :  { %349 = vmatprep.subr.bf16.mxu0 %v389_v4  ;;  %243 = vmatprep.mubr.bf16.mxu0 %v404_v14  ;;  %v401_v20 = vld [vmem:[%s522_s1 + $0x38] sm:$0xff]   ;;  %v318_v30 = vld [vmem:[%s524_s2] ss:$0 sm:$0xff] }
   0x9   :  { %379 = vmatprep.subr.bf16.mxu1 %v405_v15  ;;  %381 = vmatprep.mubr.msk.bf16.mxu1 %vm204_vm0, %v406_v16  ;;  %v408_v22 = vld [vmem:[%s523_s0 + $0x1c] ss:$12 sps:$4 sm:$0xff]   ;;  %v410_v23 = vld [vmem:[%s523_s0 + $0x18] ss:$12 sps:$4 sm:$0xff]  }
   0xb   :  { %350 = vmatpush3.bf16.msra.mxu0 %v390_v5  ;;  %380 = vmatpush3.bf16.msra.mxu1 %v405_v15 }
   0xc   :  { %351 = vmatprep.subr.bf16.mxu0 %v391_v6 }
   0xe   :  { %382 = vmatmul.mubr.msk.bf16.vlgmr.msra.gmra.mrb[0].mxu1 %vm204_vm0, %v407_v17 }
   0xf   :  { %352 = vmatpush3.bf16.msra.mxu0 %v392_v7 }
  0x10   :  { %353 = vmatprep.subr.bf16.mxu0 %v393_v8 }
  0x13   :  { %354 = vmatpush3.bf16.msra.mxu0 %v394_v9 }
  0x14   :  { %355 = vmatprep.subr.bf16.mxu0 %v395_v11 }
  0x17   :  { %356 = vmatpush3.bf16.msra.mxu0 %v396_v12 }
  0x18   :  { %357 = vmatprep.subr.bf16.mxu0 %v397_v13 }
  0x1b   :  { %358 = vmatpush3.bf16.msra.mxu0 %v398_v18 }
  0x1c   :  { %359 = vmatprep.subr.bf16.mxu0 %v399_v19 }
  0x1f   :  { %360 = vmatpush3.bf16.msra.mxu0 %v401_v20 }
  0x22   :  { %244 = vmatmul.mubr.bf16.vlgmr.msra.gmra.mrb[0].mxu0 %v402_v21 }
  0x23   :  { %251 = vmatprep.mubr.bf16.mxu0 %v408_v22 }
  0x2a   :  { %252 = vmatmul.mubr.bf16.gmra.mrb[4].mxu0 %v410_v23 }
  0xe1   :  { %v383_v24 = vpop.f32.mrb[0].mxu1 }
  0xe2   :  { %v294_v25 = vpop.f32.mrb[1].mxu1 }
  0xe3   :  { %v384_v26 = vpop.f32.mrb[2].mxu1 }
  0xe4   :  { %v297_v27 = vpop.f32.mrb[3].mxu1 }
  0xf5   :  { %v361_v28 = vpop.f32.mrb[0].mxu0 }
  0xf6   :  { %v362_v29 = vpop.f32.mrb[1].mxu0 }
  0xf7   :  { %v363_v31 = vadd.f32 %v362_v29, %v361_v28  ;;  %v364_v32 = vpop.f32.mrb[2].mxu0 }
  0xf8   :  { %v365_v33 = vpop.f32.mrb[3].mxu0 }
  0xf9   :  { %v366_v34 = vadd.f32 %v365_v33, %v364_v32  ;;  %v246_v35 = vadd.f32 %v363_v31, %v318_v30 }
  0xfb   :  { %v295_v36 = vadd.f32 %v294_v25, %v246_v35  ;;  %v249_v37 = vadd.f32 %v366_v34, %v318_v30 }
  0xfd   :  { %310 = vst.msk [vmem:[%s525_s3] sm:$0xff] %vm309_vm1, %v295_v36  ;;  %v298_v38 = vadd.f32 %v297_v27, %v249_v37  ;;  %v367_v39 = vpop.f32.mrb[4].mxu0 }
  0xfe   :  { %v368_v40 = vpop.f32.mrb[5].mxu0 }
  0xff   :  { %311 = vst.msk [vmem:[%s525_s3 + $0x8] sm:$0xff] %vm309_vm1, %v298_v38  ;;  %v369_v41 = vadd.f32 %v368_v40, %v367_v39  ;;  %v370_v42 = vpop.f32.mrb[6].mxu0 }
 0x100   :  { %v371_v43 = vpop.f32.mrb[7].mxu0 }
 0x101   :  { %v254_v44 = vadd.f32 %v369_v41, %v318_v30  ;;  %v372_v45 = vadd.f32 %v371_v43, %v370_v42 }
 0x103   :  { %v303_v46 = vadd.f32 %v383_v24, %v254_v44  ;;  %v257_v47 = vadd.f32 %v372_v45, %v318_v30 }
 0x105   :  { %312 = vst.msk [vmem:[%s525_s3 + $0x10] sm:$0xff] %vm309_vm1, %v303_v46  ;;  %v306_v48 = vadd.f32 %v384_v26, %v257_v47 }
 0x107   :  { %313 = vst.msk [vmem:[%s525_s3 + $0x18] sm:$0xff] %vm309_vm1, %v306_v48 }

// kernel: unet_forward.34
= control target key start
LH: loop header
LB: loop body
LE: loop exit
PB: predicated region body
PF: predicated region fallthrough
CT: control target
= control target key end

     0   :  { %vm372_vm0 = vcmask 523264   ;;  %s886_s1 = inlined_call_operand.vmem [shape: bf16[576,64], index: 1, kind: input, shape index: {}]   ;;  %s887_s0 = inlined_call_operand.vmem [shape: bf16[32,576], index: 0, kind: input, shape index: {}]   ;;  %s888_s2 = inlined_call_operand.vmem [shape: f32[1,64], index: 2, kind: input, shape index: {}]   ;;  %s889_s3 = inlined_call_operand.vmem [shape: f32[32,64], index: 3, kind: output, shape index: {}]  }
   0x1   :  { %v657_v0 = vld [vmem:[%s886_s1 + $0x40] sm:$0xff]   ;;  %v661_v4 = vld [vmem:[%s886_s1 + $0x48] sm:$0xff]   ;;  %v665_v8 = vld [vmem:[%s886_s1 + $0x50] sm:$0xff]  }
   0x2   :  { %v658_v1 = vld [vmem:[%s886_s1] sm:$0xff]   ;;  %583 = vmatprep.subr.bf16.mxu0 %v657_v0  ;;  %v662_v5 = vld [vmem:[%s886_s1 + $0x8] sm:$0xff]   ;;  %v666_v9 = vld [vmem:[%s886_s1 + $0x10] sm:$0xff]  }
   0x3   :  { %v659_v2 = vld [vmem:[%s886_s1 + $0xc0] sm:$0xff]   ;;  %584 = vmatpush3.bf16.msra.mxu0 %v658_v1  ;;  %v663_v6 = vld [vmem:[%s886_s1 + $0xc8] sm:$0xff]   ;;  %v667_v10 = vld [vmem:[%s886_s1 + $0xd0] sm:$0xff]  }
   0x4   :  { %v660_v3 = vld [vmem:[%s886_s1 + $0x80] sm:$0xff]   ;;  %611 = vmatprep.subr.bf16.mxu1 %v659_v2  ;;  %585 = vmatprep.subr.bf16.mxu0 %v661_v4  ;;  %v664_v7 = vld [vmem:[%s886_s1 + $0x88] sm:$0xff]   ;;  %v668_v11 = vld [vmem:[%s886_s1 + $0x90] sm:$0xff]  }
   0x5   :  { %612 = vmatpush3.bf16.msra.mxu1 %v660_v3  ;;  %v669_v12 = vld [vmem:[%s886_s1 + $0x58] sm:$0xff]   ;;  %v673_v16 = vld [vmem:[%s886_s1 + $0x60] sm:$0xff]   ;;  %v677_v20 = vld [vmem:[%s886_s1 + $0x68] sm:$0xff]  }
   0x6   :  { %613 = vmatprep.subr.bf16.mxu1 %v663_v6  ;;  %v670_v13 = vld [vmem:[%s886_s1 + $0x18] sm:$0xff]   ;;  %v674_v17 = vld [vmem:[%s886_s1 + $0x20] sm:$0xff]   ;;  %v678_v21 = vld [vmem:[%s886_s1 + $0x28] sm:$0xff]  }
   0x7   :  { %586 = vmatpush3.bf16.msra.mxu0 %v662_v5  ;;  %v671_v14 = vld [vmem:[%s886_s1 + $0xd8] sm:$0xff]   ;;  %v675_v18 = vld [vmem:[%s886_s1 + $0xe0] sm:$0xff]   ;;  %v679_v22 = vld [vmem:[%s886_s1 + $0xe8] sm:$0xff]  }
   0x8   :  { %587 = vmatprep.subr.bf16.mxu0 %v665_v8  ;;  %v672_v15 = vld [vmem:[%s886_s1 + $0x98] sm:$0xff]   ;;  %v676_v19 = vld [vmem:[%s886_s1 + $0xa0] sm:$0xff]   ;;  %v680_v23 = vld [vmem:[%s886_s1 + $0xa8] sm:$0xff]  }
   0x9   :  { %614 = vmatpush3.bf16.msra.mxu1 %v664_v7  ;;  %v681_v24 = vld [vmem:[%s886_s1 + $0x70] sm:$0xff]   ;;  %v685_v28 = vld [vmem:[%s886_s1 + $0x78] sm:$0xff]   ;;  %v692_v34 = vld [vmem:[%s886_s1 + $0x100] sm:$0xff]  }
   0xa   :  { %615 = vmatprep.subr.bf16.mxu1 %v667_v10  ;;  %v682_v25 = vld [vmem:[%s886_s1 + $0x30] sm:$0xff]   ;;  %v686_v29 = vld [vmem:[%s886_s1 + $0x38] sm:$0xff]   ;;  %v695_v36 = vld [vmem:[%s887_s0 + $0xc] ss:$20 sps:$4 sm:$0xff]  }
   0xb   :  { %588 = vmatpush3.bf16.msra.mxu0 %v666_v9  ;;  %v683_v26 = vld [vmem:[%s886_s1 + $0xf0] sm:$0xff]   ;;  %v687_v30 = vld [vmem:[%s886_s1 + $0xf8] sm:$0xff]   ;;  %v696_v37 = vld [vmem:[%s886_s1 + $0x108] sm:$0xff]   ;;  %460 = vmatprep.mubr.bf16.mxu1 %v695_v36 }
   0xc   :  { %589 = vmatprep.subr.bf16.mxu0 %v669_v12  ;;  %v684_v27 = vld [vmem:[%s886_s1 + $0xb0] sm:$0xff]   ;;  %v690_v32 = vld [vmem:[%s887_s0 + $0x4] ss:$20 sps:$4 sm:$0xff]   ;;  %v693_v35 = vld [vmem:[%s887_s0 + $0x8] ss:$20 sps:$4 sm:$0xff]  }
   0xd   :  { %616 = vmatpush3.bf16.msra.mxu1 %v668_v11  ;;  %v688_v31 = vld [vmem:[%s887_s0] ss:$20 sps:$4 sm:$0xff]   ;;  %v691_v33 = vld [vmem:[%s886_s1 + $0xb8] sm:$0xff]   ;;  %411 = vmatprep.mubr.bf16.mxu0 %v690_v32  ;;  %v703_v42 = vld [vmem:[%s887_s0 + $0x30] ss:$20 sps:$4 sm:$0xff]  }
   0xe   :  { %617 = vmatprep.subr.bf16.mxu1 %v671_v14  ;;  %v697_v38 = vld [vmem:[%s887_s0 + $0x2c] ss:$20 sps:$4 sm:$0xff]   ;;  %v699_v39 = vld [vmem:[%s887_s0 + $0x28] ss:$20 sps:$4 sm:$0xff]   ;;  %v700_v40 = vld [vmem:[%s886_s1 + $0x110] sm:$0xff]  }
   0xf   :  { %590 = vmatpush3.bf16.msra.mxu0 %v670_v13  ;;  %v701_v41 = vld [vmem:[%s887_s0 + $0x34] ss:$20 sps:$4 sm:$0xff]   ;;  %v704_v43 = vld [vmem:[%s886_s1 + $0x118] sm:$0xff]   ;;  %v705_v44 = vld [vmem:[%s887_s0 + $0x10] ss:$20 sps:$4 sm:$0xff]  }
  0x10   :  { %591 = vmatprep.subr.bf16.mxu0 %v673_v16  ;;  %v706_v45 = vld [vmem:[%s887_s0 + $0x38] ss:$20 sps:$4 sm:$0xff]   ;;  %v534_v47 = vld [vmem:[%s888_s2] ss:$0 sm:$0xff] }
  0x11   :  { %618 = vmatpush3.bf16.msra.mxu1 %v672_v15 }
  0x12   :  { %619 = vmatprep.subr.bf16.mxu1 %v675_v18 }
  0x13   :  { %592 = vmatpush3.bf16.msra.mxu0 %v674_v17 }
  0x14   :  { %593 = vmatprep.subr.bf16.mxu0 %v677_v20 }
  0x15   :  { %620 = vmatpush3.bf16.msra.mxu1 %v676_v19 }
  0x16   :  { %621 = vmatprep.subr.bf16.mxu1 %v679_v22 }
  0x17   :  { %594 = vmatpush3.bf16.msra.mxu0 %v678_v21 }
  0x18   :  { %595 = vmatprep.subr.bf16.mxu0 %v681_v24 }
  0x19   :  { %622 = vmatpush3.bf16.msra.mxu1 %v680_v23 }
  0x1a   :  { %623 = vmatprep.subr.bf16.mxu1 %v683_v26 }
  0x1b   :  { %596 = vmatpush3.bf16.msra.mxu0 %v682_v25 }
  0x1c   :  { %597 = vmatprep.subr.bf16.mxu0 %v685_v28 }
  0x1d   :  { %624 = vmatpush3.bf16.msra.mxu1 %v684_v27 }
  0x1e   :  { %625 = vmatprep.subr.bf16.mxu1 %v687_v30 }
  0x1f   :  { %598 = vmatpush3.bf16.msra.mxu0 %v686_v29 }
  0x20   :  { %645 = vmatprep.subr.bf16.mxu0 %v692_v34 }
  0x21   :  { %626 = vmatpush3.bf16.msra.mxu1 %v691_v33 }
  0x22   :  { %412 = vmatmul.mubr.bf16.vlgmr.msra.gmra.mrb[0].mxu0 %v688_v31 }
  0x23   :  { %646 = vmatpush3.bf16.msra.mxu0 %v692_v34  ;;  %419 = vmatprep.mubr.bf16.mxu0 %v697_v38 }
  0x24   :  { %461 = vmatmul.mubr.bf16.vlgmr.msra.gmra.mrb[0].mxu1 %v693_v35  ;;  %647 = vmatprep.subr.bf16.mxu0 %v696_v37 }
  0x25   :  { %468 = vmatprep.mubr.bf16.mxu1 %v701_v41 }
  0x27   :  { %648 = vmatpush3.bf16.msra.mxu0 %v696_v37 }
  0x28   :  { %649 = vmatprep.subr.bf16.mxu0 %v700_v40 }
  0x2a   :  { %420 = vmatmul.mubr.bf16.gmra.mrb[4].mxu0 %v699_v39 }
  0x2b   :  { %653 = vmatprep.mubr.msk.bf16.mxu0 %vm372_vm0, %v705_v44  ;;  %650 = vmatpush3.bf16.msra.mxu0 %v700_v40 }
  0x2c   :  { %469 = vmatmul.mubr.bf16.gmra.mrb[4].mxu1 %v703_v42  ;;  %651 = vmatprep.subr.bf16.mxu0 %v704_v43 }
  0x2f   :  { %652 = vmatpush3.bf16.msra.mxu0 %v704_v43 }
  0x32   :  { %654 = vmatmul.mubr.msk.bf16.vlgmr.msra.gmra.mrb[8].mxu0 %vm372_vm0, %v706_v45 }
  0xf5   :  { %v599_v46 = vpop.f32.mrb[0].mxu0 }
  0xf6   :  { %v600_v48 = vpop.f32.mrb[1].mxu0 }
  0xf7   :  { %v601_v49 = vadd.f32 %v600_v48, %v599_v46  ;;  %v602_v50 = vpop.f32.mrb[2].mxu0  ;;  %v627_v51 = vpop.f32.mrb[0].mxu1 }
  0xf8   :  { %v603_v52 = vpop.f32.mrb[3].mxu0  ;;  %v628_v55 = vpop.f32.mrb[1].mxu1 }
  0xf9   :  { %v414_v53 = vadd.f32 %v601_v49, %v534_v47  ;;  %v604_v54 = vadd.f32 %v603_v52, %v602_v50  ;;  %v629_v56 = vadd.f32 %v628_v55, %v627_v51  ;;  %v630_v57 = vpop.f32.mrb[2].mxu1 }
  0xfa   :  { %v631_v59 = vpop.f32.mrb[3].mxu1 }
  0xfb   :  { %v417_v58 = vadd.f32 %v604_v54, %v534_v47  ;;  %v632_v60 = vadd.f32 %v631_v59, %v630_v57  ;;  %v463_v61 = vadd.f32 %v629_v56, %v414_v53 }
  0xfd   :  { %v605_v62 = vpop.f32.mrb[4].mxu0  ;;  %v466_v0 = vadd.f32 %v632_v60, %v417_v58 }
  0xfe   :  { %v606_v63 = vpop.f32.mrb[5].mxu0 }
  0xff   :  { %v607_v1 = vadd.f32 %v606_v63, %v605_v62  ;;  %v608_v2 = vpop.f32.mrb[6].mxu0  ;;  %v633_v3 = vpop.f32.mrb[4].mxu1 }
 0x100   :  { %v609_v4 = vpop.f32.mrb[7].mxu0  ;;  %v634_v7 = vpop.f32.mrb[5].mxu1 }
 0x101   :  { %v422_v5 = vadd.f32 %v607_v1, %v534_v47  ;;  %v610_v6 = vadd.f32 %v609_v4, %v608_v2  ;;  %v635_v8 = vadd.f32 %v634_v7, %v633_v3  ;;  %v636_v9 = vpop.f32.mrb[6].mxu1 }
 0x102   :  { %v637_v11 = vpop.f32.mrb[7].mxu1 }
 0x103   :  { %v425_v10 = vadd.f32 %v610_v6, %v534_v47  ;;  %v638_v12 = vadd.f32 %v637_v11, %v636_v9  ;;  %v471_v13 = vadd.f32 %v635_v8, %v422_v5 }
 0x105   :  { %v655_v14 = vpop.f32.mrb[8].mxu0  ;;  %v474_v15 = vadd.f32 %v638_v12, %v425_v10 }
 0x106   :  { %v520_v16 = vadd.f32 %v655_v14, %v471_v13  ;;  %v511_v17 = vpop.f32.mrb[9].mxu0 }
 0x107   :  { %v512_v18 = vadd.f32 %v511_v17, %v463_v61  ;;  %v656_v19 = vpop.f32.mrb[10].mxu0 }
 0x108   :  { %528 = vst.msk [vmem:[%s889_s3 + $0x10] sm:$0xff] %vm372_vm0, %v520_v16  ;;  %v523_v20 = vadd.f32 %v656_v19, %v474_v15  ;;  %v514_v21 = vpop.f32.mrb[11].mxu0 }
 0x109   :  { %526 = vst.msk [vmem:[%s889_s3] sm:$0xff] %vm372_vm0, %v512_v18  ;;  %v515_v22 = vadd.f32 %v514_v21, %v466_v0 }
 0x10a   :  { %529 = vst.msk [vmem:[%s889_s3 + $0x18] sm:$0xff] %vm372_vm0, %v523_v20 }
 0x10b   :  { %527 = vst.msk [vmem:[%s889_s3 + $0x8] sm:$0xff] %vm372_vm0, %v515_v22 }

// kernel: unet_forward.35
= control target key start
LH: loop header
LB: loop body
LE: loop exit
PB: predicated region body
PF: predicated region fallthrough
CT: control target
= control target key end

     0   :  { %vm24_vm0 = vcmask 523264   ;;  %s70_s0 = inlined_call_operand.vmem [shape: f32[8,64], index: 0, kind: input, shape index: {}]   ;;  %s71_s1 = inlined_call_operand.vmem [shape: f32[8,64], index: 1, kind: input, shape index: {}]   ;;  %s72_s2 = inlined_call_operand.vmem [shape: f32[8,64], index: 2, kind: input, shape index: {}]   ;;  %s73_s3 = inlined_call_operand.vmem [shape: f32[8,64], index: 3, kind: input, shape index: {}]   ;;  %s74_s4 = inlined_call_operand.vmem [shape: f32[8,64], index: 4, kind: output, shape index: {}]  }
   0x1   :  { %v17_v0 = vld [vmem:[%s70_s0] sm:$0xff] }
   0x2   :  { %v18_v1 = vld [vmem:[%s71_s1] sm:$0xff] }
   0x3   :  { %v20_v2 = vld [vmem:[%s72_s2] sm:$0xff]  ;;  %v19_v3 = vmax.f32 %v17_v0, %v18_v1 }
   0x4   :  { %v21_v4 = vld [vmem:[%s73_s3] sm:$0xff] }
   0x5   :  { %v22_v5 = vmax.f32 %v20_v2, %v21_v4 }
   0x7   :  { %v23_v6 = vmax.f32 %v19_v3, %v22_v5 }
   0x9   :  { %25 = vst.msk [vmem:[%s74_s4] sm:$0xff] %vm24_vm0, %v23_v6 }

// kernel: unet_forward.36
= control target key start
LH: loop header
LB: loop body
LE: loop exit
PB: predicated region body
PF: predicated region fallthrough
CT: control target
= control target key end

     0   :  { %v606_v35 = vmov 0.0   ;;  %vm607_vm0 = vmmov 0   ;;  %vm330_vm1 = vcmask 523264   ;;  %s751_s1 = inlined_call_operand.vmem [shape: bf16[576,128], index: 1, kind: input, shape index: {}]   ;;  %s752_s0 = inlined_call_operand.vmem [shape: bf16[8,576], index: 0, kind: input, shape index: {}]   ;;  %s753_s2 = inlined_call_operand.vmem [shape: f32[1,128], index: 2, kind: input, shape index: {}]   ;;  %s754_s3 = inlined_call_operand.vmem [shape: f32[8,128], index: 3, kind: output, shape index: {}]  }
   0x1   :  { %v565_v0 = vld [vmem:[%s751_s1 + $0x40] sm:$0xff]   ;;  %v569_v4 = vld [vmem:[%s751_s1 + $0x48] sm:$0xff]   ;;  %v573_v8 = vld [vmem:[%s751_s1 + $0x50] sm:$0xff]  }
   0x2   :  { %v566_v1 = vld [vmem:[%s751_s1] sm:$0xff]   ;;  %502 = vmatprep.subr.bf16.mxu0 %v565_v0  ;;  %v570_v5 = vld [vmem:[%s751_s1 + $0x8] sm:$0xff]   ;;  %v574_v9 = vld [vmem:[%s751_s1 + $0x10] sm:$0xff]  }
   0x3   :  { %v567_v2 = vld [vmem:[%s751_s1 + $0xc0] sm:$0xff]   ;;  %503 = vmatpush3.bf16.msra.mxu0 %v566_v1  ;;  %v571_v6 = vld [vmem:[%s751_s1 + $0xc8] sm:$0xff]   ;;  %v575_v10 = vld [vmem:[%s751_s1 + $0xd0] sm:$0xff]  }
   0x4   :  { %v568_v3 = vld [vmem:[%s751_s1 + $0x80] sm:$0xff]   ;;  %524 = vmatprep.subr.bf16.mxu1 %v567_v2  ;;  %504 = vmatprep.subr.bf16.mxu0 %v569_v4  ;;  %v572_v7 = vld [vmem:[%s751_s1 + $0x88] sm:$0xff]   ;;  %v576_v11 = vld [vmem:[%s751_s1 + $0x90] sm:$0xff]  }
   0x5   :  { %525 = vmatpush3.bf16.msra.mxu1 %v568_v3  ;;  %v577_v12 = vld [vmem:[%s751_s1 + $0x58] sm:$0xff]   ;;  %v581_v16 = vld [vmem:[%s751_s1 + $0x60] sm:$0xff]   ;;  %v585_v20 = vld [vmem:[%s751_s1 + $0x68] sm:$0xff]  }
   0x6   :  { %526 = vmatprep.subr.bf16.mxu1 %v571_v6  ;;  %v578_v13 = vld [vmem:[%s751_s1 + $0x18] sm:$0xff]   ;;  %v582_v17 = vld [vmem:[%s751_s1 + $0x20] sm:$0xff]   ;;  %v586_v21 = vld [vmem:[%s751_s1 + $0x28] sm:$0xff]  }
   0x7   :  { %505 = vmatpush3.bf16.msra.mxu0 %v570_v5  ;;  %v579_v14 = vld [vmem:[%s751_s1 + $0xd8] sm:$0xff]   ;;  %v583_v18 = vld [vmem:[%s751_s1 + $0xe0] sm:$0xff]   ;;  %v587_v22 = vld [vmem:[%s751_s1 + $0xe8] sm:$0xff]  }
   0x8   :  { %506 = vmatprep.subr.bf16.mxu0 %v573_v8  ;;  %v580_v15 = vld [vmem:[%s751_s1 + $0x98] sm:$0xff]   ;;  %v584_v19 = vld [vmem:[%s751_s1 + $0xa0] sm:$0xff]   ;;  %v588_v23 = vld [vmem:[%s751_s1 + $0xa8] sm:$0xff]  }
   0x9   :  { %527 = vmatpush3.bf16.msra.mxu1 %v572_v7  ;;  %v589_v24 = vld [vmem:[%s751_s1 + $0x70] sm:$0xff]   ;;  %v593_v28 = vld [vmem:[%s751_s1 + $0x78] sm:$0xff]   ;;  %v15_v31 = vld [vmem:[%s752_s0] sm:$0xff] }
   0xa   :  { %528 = vmatprep.subr.bf16.mxu1 %v575_v10  ;;  %v590_v25 = vld [vmem:[%s751_s1 + $0x30] sm:$0xff]   ;;  %v594_v29 = vld [vmem:[%s751_s1 + $0x38] sm:$0xff]   ;;  %v460_v32 = vcombine.low %v15_v31, %v15_v31  ;;  %v461_v33 = vcombine.high %v15_v31, %v15_v31  ;;  %v16_v36 = vld [vmem:[%s752_s0 + $0x8] sm:$0xff] }
   0xb   :  { %507 = vmatpush3.bf16.msra.mxu0 %v574_v9  ;;  %v591_v26 = vld [vmem:[%s751_s1 + $0xf0] sm:$0xff]   ;;  %v595_v30 = vld [vmem:[%s751_s1 + $0xf8] sm:$0xff]   ;;  %v462_v37 = vcombine.low %v16_v36, %v16_v36  ;;  %v463_v38 = vcombine.high %v16_v36, %v16_v36  ;;  %v602_v39 = vld [vmem:[%s751_s1 + $0x100] sm:$0xff]  }
   0xc   :  { %508 = vmatprep.subr.bf16.mxu0 %v577_v12  ;;  %v592_v27 = vld [vmem:[%s751_s1 + $0xb0] sm:$0xff]   ;;  %v599_v34 = vld [vmem:[%s751_s1 + $0xb8] sm:$0xff]   ;;  %366 = vmatprep.mubr.bf16.mxu0 %v461_v33  ;;  %v603_v40 = vld [vmem:[%s751_s1 + $0x108] sm:$0xff]  }
   0xd   :  { %529 = vmatpush3.bf16.msra.mxu1 %v576_v11  ;;  %406 = vmatprep.mubr.bf16.mxu1 %v463_v38  ;;  %v604_v41 = vld [vmem:[%s751_s1 + $0x110] sm:$0xff]   ;;  %v605_v42 = vld [vmem:[%s751_s1 + $0x118] sm:$0xff]   ;;  %v459_v45 = vld [vmem:[%s753_s2] ss:$0 sm:$0xff] }
   0xe   :  { %530 = vmatprep.subr.bf16.mxu1 %v579_v14  ;;  %v598_v43 = vld [vmem:[%s752_s0 + $0x10] ss:$0 sps:$4 sm:$0xff]  }
   0xf   :  { %509 = vmatpush3.bf16.msra.mxu0 %v578_v13 }
  0x10   :  { %510 = vmatprep.subr.bf16.mxu0 %v581_v16 }
  0x11   :  { %531 = vmatpush3.bf16.msra.mxu1 %v580_v15 }
  0x12   :  { %532 = vmatprep.subr.bf16.mxu1 %v583_v18 }
  0x13   :  { %511 = vmatpush3.bf16.msra.mxu0 %v582_v17 }
  0x14   :  { %512 = vmatprep.subr.bf16.mxu0 %v585_v20 }
  0x15   :  { %533 = vmatpush3.bf16.msra.mxu1 %v584_v19 }
  0x16   :  { %534 = vmatprep.subr.bf16.mxu1 %v587_v22 }
  0x17   :  { %513 = vmatpush3.bf16.msra.mxu0 %v586_v21 }
  0x18   :  { %514 = vmatprep.subr.bf16.mxu0 %v589_v24 }
  0x19   :  { %535 = vmatpush3.bf16.msra.mxu1 %v588_v23 }
  0x1a   :  { %536 = vmatprep.subr.bf16.mxu1 %v591_v26 }
  0x1b   :  { %515 = vmatpush3.bf16.msra.mxu0 %v590_v25 }
  0x1c   :  { %516 = vmatprep.subr.bf16.mxu0 %v593_v28 }
  0x1d   :  { %537 = vmatpush3.bf16.msra.mxu1 %v592_v27 }
  0x1e   :  { %538 = vmatprep.subr.bf16.mxu1 %v595_v30 }
  0x1f   :  { %517 = vmatpush3.bf16.msra.mxu0 %v594_v29 }
  0x20   :  { %551 = vmatprep.subr.bf16.mxu0 %v606_v35 }
  0x21   :  { %539 = vmatpush3.bf16.msra.mxu1 %v599_v34 }
  0x22   :  { %367 = vmatmul.mubr.bf16.vlgmr.msra.gmra.mrb[0].mxu0 %v460_v32 }
  0x23   :  { %552 = vmatpush3.bf16.msra.mxu0 %v602_v39  ;;  %559 = vmatprep.mubr.msk.bf16.mxu0 %vm607_vm0, %v606_v35 }
  0x24   :  { %407 = vmatmul.mubr.bf16.vlgmr.msra.gmra.mrb[0].mxu1 %v462_v37  ;;  %553 = vmatprep.subr.bf16.mxu0 %v606_v35 }
  0x27   :  { %554 = vmatpush3.bf16.msra.mxu0 %v603_v40 }
  0x28   :  { %555 = vmatprep.subr.bf16.mxu0 %v606_v35 }
  0x2b   :  { %556 = vmatpush3.bf16.msra.mxu0 %v604_v41 }
  0x2c   :  { %557 = vmatprep.subr.bf16.mxu0 %v606_v35 }
  0x2f   :  { %558 = vmatpush3.bf16.msra.mxu0 %v605_v42 }
  0x32   :  { %560 = vmatmul.mubr.msk.bf16.vlgmr.msra.gmra.mrb[4].mxu0 %vm330_vm1, %v598_v43 }
  0xf5   :  { %v518_v44 = vpop.f32.mrb[0].mxu0 }
  0xf6   :  { %v519_v46 = vpop.f32.mrb[1].mxu0 }
  0xf7   :  { %v520_v47 = vadd.f32 %v519_v46, %v518_v44  ;;  %v521_v48 = vpop.f32.mrb[2].mxu0  ;;  %v540_v49 = vpop.f32.mrb[0].mxu1 }
  0xf8   :  { %v522_v50 = vpop.f32.mrb[3].mxu0  ;;  %v541_v51 = vpop.f32.mrb[1].mxu1 }
  0xf9   :  { %v369_v52 = vadd.f32 %v520_v47, %v459_v45  ;;  %v542_v53 = vadd.f32 %v541_v51, %v540_v49  ;;  %v543_v54 = vpop.f32.mrb[2].mxu1 }
  0xfa   :  { %v544_v55 = vpop.f32.mrb[3].mxu1 }
  0xfb   :  { %v409_v56 = vadd.f32 %v542_v53, %v369_v52 }
 0x105   :  { %v448_v57 = vpop.f32.mrb[4].mxu0 }
 0x106   :  { %v449_v58 = vadd.f32 %v448_v57, %v409_v56  ;;  %v561_v59 = vpop.f32.mrb[5].mxu0 }
 0x107   :  { %v451_v60 = vpop.f32.mrb[6].mxu0 }
 0x108   :  { %454 = vst [vmem:[%s754_s3] sm:$0xff] %v449_v58  ;;  %v562_v61 = vpop.f32.mrb[7].mxu0 }

// kernel: unet_forward.38
= control target key start
LH: loop header
LB: loop body
LE: loop exit
PB: predicated region body
PF: predicated region fallthrough
CT: control target
= control target key end

     0   :  { %s69_s0 = inlined_call_operand.vmem [shape: f32[2,128], index: 0, kind: input, shape index: {}]   ;;  %s70_s1 = inlined_call_operand.vmem [shape: f32[2,128], index: 1, kind: input, shape index: {}]   ;;  %s71_s2 = inlined_call_operand.vmem [shape: f32[2,128], index: 2, kind: input, shape index: {}]   ;;  %s72_s3 = inlined_call_operand.vmem [shape: f32[2,128], index: 3, kind: input, shape index: {}]   ;;  %s73_s4 = inlined_call_operand.vmem [shape: f32[2,128], index: 4, kind: output, shape index: {}]  }
   0x1   :  { %v17_v0 = vld [vmem:[%s69_s0] sm:$0x3] }
   0x2   :  { %v18_v1 = vld [vmem:[%s70_s1] sm:$0x3] }
   0x3   :  { %v20_v2 = vld [vmem:[%s71_s2] sm:$0x3]  ;;  %v19_v3 = vmax.f32 %v17_v0, %v18_v1 }
   0x4   :  { %v21_v4 = vld [vmem:[%s72_s3] sm:$0x3] }
   0x5   :  { %v22_v5 = vmax.f32 %v20_v2, %v21_v4 }
   0x7   :  { %v23_v6 = vmax.f32 %v19_v3, %v22_v5 }
   0x9   :  { %24 = vst [vmem:[%s73_s4] sm:$0x3] %v23_v6 }

// kernel: unet_forward.37
= control target key start
LH: loop header
LB: loop body
LE: loop exit
PB: predicated region body
PF: predicated region fallthrough
CT: control target
= control target key end

     0   :  { %vm1123_vm0 = vmmov 0   ;;  %s1381_s1 = inlined_call_operand.vmem [shape: bf16[1152,128], index: 1, kind: input, shape index: {}]   ;;  %s1382_s0 = inlined_call_operand.vmem [shape: bf16[8,1152], index: 0, kind: input, shape index: {}]   ;;  %s1383_s2 = inlined_call_operand.vmem [shape: f32[1,128], index: 2, kind: input, shape index: {}]   ;;  %s1384_s3 = inlined_call_operand.vmem [shape: f32[8,128], index: 3, kind: output, shape index: {}]  }
   0x1   :  { %v1041_v0 = vld [vmem:[%s1381_s1 + $0x40] sm:$0xff]   ;;  %v1045_v4 = vld [vmem:[%s1381_s1 + $0x48] sm:$0xff]   ;;  %v1049_v8 = vld [vmem:[%s1381_s1 + $0x50] sm:$0xff]  }
   0x2   :  { %v1042_v1 = vld [vmem:[%s1381_s1] sm:$0xff]   ;;  %922 = vmatprep.subr.bf16.mxu0 %v1041_v0  ;;  %v1046_v5 = vld [vmem:[%s1381_s1 + $0x8] sm:$0xff]   ;;  %v1050_v9 = vld [vmem:[%s1381_s1 + $0x10] sm:$0xff]  }
   0x3   :  { %v1043_v2 = vld [vmem:[%s1381_s1 + $0xc0] sm:$0xff]   ;;  %923 = vmatpush3.bf16.msra.mxu0 %v1042_v1  ;;  %v1047_v6 = vld [vmem:[%s1381_s1 + $0xc8] sm:$0xff]   ;;  %v1051_v10 = vld [vmem:[%s1381_s1 + $0xd0] sm:$0xff]  }
   0x4   :  { %v1044_v3 = vld [vmem:[%s1381_s1 + $0x80] sm:$0xff]   ;;  %944 = vmatprep.subr.bf16.mxu1 %v1043_v2  ;;  %924 = vmatprep.subr.bf16.mxu0 %v1045_v4  ;;  %v1048_v7 = vld [vmem:[%s1381_s1 + $0x88] sm:$0xff]   ;;  %v1052_v11 = vld [vmem:[%s1381_s1 + $0x90] sm:$0xff]  }
   0x5   :  { %945 = vmatpush3.bf16.msra.mxu1 %v1044_v3  ;;  %v1053_v12 = vld [vmem:[%s1381_s1 + $0x58] sm:$0xff]   ;;  %v1057_v16 = vld [vmem:[%s1381_s1 + $0x60] sm:$0xff]   ;;  %v1061_v20 = vld [vmem:[%s1381_s1 + $0x68] sm:$0xff]  }
   0x6   :  { %946 = vmatprep.subr.bf16.mxu1 %v1047_v6  ;;  %v1054_v13 = vld [vmem:[%s1381_s1 + $0x18] sm:$0xff]   ;;  %v1058_v17 = vld [vmem:[%s1381_s1 + $0x20] sm:$0xff]   ;;  %v1062_v21 = vld [vmem:[%s1381_s1 + $0x28] sm:$0xff]  }
   0x7   :  { %925 = vmatpush3.bf16.msra.mxu0 %v1046_v5  ;;  %v1055_v14 = vld [vmem:[%s1381_s1 + $0xd8] sm:$0xff]   ;;  %v1059_v18 = vld [vmem:[%s1381_s1 + $0xe0] sm:$0xff]   ;;  %v1063_v22 = vld [vmem:[%s1381_s1 + $0xe8] sm:$0xff]  }
   0x8   :  { %926 = vmatprep.subr.bf16.mxu0 %v1049_v8  ;;  %v1056_v15 = vld [vmem:[%s1381_s1 + $0x98] sm:$0xff]   ;;  %v1060_v19 = vld [vmem:[%s1381_s1 + $0xa0] sm:$0xff]   ;;  %v1064_v23 = vld [vmem:[%s1381_s1 + $0xa8] sm:$0xff]  }
   0x9   :  { %947 = vmatpush3.bf16.msra.mxu1 %v1048_v7  ;;  %v1065_v24 = vld [vmem:[%s1381_s1 + $0x70] sm:$0xff]   ;;  %v1069_v28 = vld [vmem:[%s1381_s1 + $0x78] sm:$0xff]   ;;  %v15_v31 = vld [vmem:[%s1382_s0] sm:$0xff] }
   0xa   :  { %948 = vmatprep.subr.bf16.mxu1 %v1051_v10  ;;  %v1066_v25 = vld [vmem:[%s1381_s1 + $0x30] sm:$0xff]   ;;  %v1070_v29 = vld [vmem:[%s1381_s1 + $0x38] sm:$0xff]   ;;  %v841_v32 = vcombine.low %v15_v31, %v15_v31  ;;  %v842_v33 = vcombine.high %v15_v31, %v15_v31  ;;  %v1075_v35 = vld [vmem:[%s1381_s1 + $0x140] sm:$0xff]  }
   0xb   :  { %927 = vmatpush3.bf16.msra.mxu0 %v1050_v9  ;;  %v1067_v26 = vld [vmem:[%s1381_s1 + $0xf0] sm:$0xff]   ;;  %v1071_v30 = vld [vmem:[%s1381_s1 + $0xf8] sm:$0xff]   ;;  %v16_v36 = vld [vmem:[%s1382_s0 + $0x8] sm:$0xff]  ;;  %v1122_v9 = vmov 0.0  }
   0xc   :  { %928 = vmatprep.subr.bf16.mxu0 %v1053_v12  ;;  %v1068_v27 = vld [vmem:[%s1381_s1 + $0xb0] sm:$0xff]   ;;  %v1074_v34 = vld [vmem:[%s1381_s1 + $0xb8] sm:$0xff]   ;;  %667 = vmatprep.mubr.bf16.mxu0 %v842_v33  ;;  %v843_v37 = vcombine.low %v16_v36, %v16_v36  ;;  %v844_v38 = vcombine.high %v16_v36, %v16_v36  ;;  %v1078_v39 = vld [vmem:[%s1381_s1 + $0x100] sm:$0xff]  }
   0xd   :  { %949 = vmatpush3.bf16.msra.mxu1 %v1052_v11  ;;  %v1079_v40 = vld [vmem:[%s1381_s1 + $0x1c0] sm:$0xff]   ;;  %v1081_v42 = vld [vmem:[%s1381_s1 + $0x148] sm:$0xff]   ;;  %v1085_v46 = vld [vmem:[%s1381_s1 + $0x150] sm:$0xff]  }
   0xe   :  { %950 = vmatprep.subr.bf16.mxu1 %v1055_v14  ;;  %707 = vmatprep.mubr.bf16.mxu1 %v844_v38  ;;  %v1080_v41 = vld [vmem:[%s1381_s1 + $0x180] sm:$0xff]   ;;  %v1082_v43 = vld [vmem:[%s1381_s1 + $0x108] sm:$0xff]   ;;  %v1086_v47 = vld [vmem:[%s1381_s1 + $0x110] sm:$0xff]  }
   0xf   :  { %929 = vmatpush3.bf16.msra.mxu0 %v1054_v13  ;;  %v1083_v44 = vld [vmem:[%s1381_s1 + $0x1c8] sm:$0xff]   ;;  %v1087_v48 = vld [vmem:[%s1381_s1 + $0x1d0] sm:$0xff]   ;;  %v1089_v50 = vld [vmem:[%s1381_s1 + $0x158] sm:$0xff]  }
  0x10   :  { %930 = vmatprep.subr.bf16.mxu0 %v1057_v16  ;;  %v1084_v45 = vld [vmem:[%s1381_s1 + $0x188] sm:$0xff]   ;;  %v1088_v49 = vld [vmem:[%s1381_s1 + $0x190] sm:$0xff]   ;;  %v1090_v51 = vld [vmem:[%s1381_s1 + $0x118] sm:$0xff]  }
  0x11   :  { %951 = vmatpush3.bf16.msra.mxu1 %v1056_v15  ;;  %v1091_v52 = vld [vmem:[%s1381_s1 + $0x1d8] sm:$0xff]   ;;  %v1093_v54 = vld [vmem:[%s1381_s1 + $0x160] sm:$0xff]   ;;  %v1097_v58 = vld [vmem:[%s1381_s1 + $0x168] sm:$0xff]  }
  0x12   :  { %952 = vmatprep.subr.bf16.mxu1 %v1059_v18  ;;  %v1092_v53 = vld [vmem:[%s1381_s1 + $0x198] sm:$0xff]   ;;  %v1094_v55 = vld [vmem:[%s1381_s1 + $0x120] sm:$0xff]   ;;  %v1098_v59 = vld [vmem:[%s1381_s1 + $0x128] sm:$0xff]  }
  0x13   :  { %931 = vmatpush3.bf16.msra.mxu0 %v1058_v17  ;;  %v1095_v56 = vld [vmem:[%s1381_s1 + $0x1e0] sm:$0xff]   ;;  %v1099_v60 = vld [vmem:[%s1381_s1 + $0x1e8] sm:$0xff]   ;;  %v1101_v62 = vld [vmem:[%s1381_s1 + $0x170] sm:$0xff]  }
  0x14   :  { %932 = vmatprep.subr.bf16.mxu0 %v1061_v20  ;;  %v1096_v57 = vld [vmem:[%s1381_s1 + $0x1a0] sm:$0xff]   ;;  %v1100_v61 = vld [vmem:[%s1381_s1 + $0x1a8] sm:$0xff]   ;;  %v1102_v63 = vld [vmem:[%s1381_s1 + $0x130] sm:$0xff]  }
  0x15   :  { %953 = vmatpush3.bf16.msra.mxu1 %v1060_v19  ;;  %v1103_v0 = vld [vmem:[%s1381_s1 + $0x1f0] sm:$0xff]   ;;  %v1105_v2 = vld [vmem:[%s1381_s1 + $0x178] sm:$0xff]   ;;  %v1113_v13 = vld [vmem:[%s1381_s1 + $0x200] sm:$0xff]  }
  0x16   :  { %954 = vmatprep.subr.bf16.mxu1 %v1063_v22  ;;  %v1104_v1 = vld [vmem:[%s1381_s1 + $0x1b0] sm:$0xff]   ;;  %v1106_v3 = vld [vmem:[%s1381_s1 + $0x138] sm:$0xff]   ;;  %v1114_v14 = vld [vmem:[%s1381_s1 + $0x208] sm:$0xff]  }
  0x17   :  { %933 = vmatpush3.bf16.msra.mxu0 %v1062_v21  ;;  %v1107_v4 = vld [vmem:[%s1381_s1 + $0x1f8] sm:$0xff]   ;;  %v17_v5 = vld [vmem:[%s1382_s0 + $0x10] sm:$0xff]  ;;  %v1117_v17 = vld [vmem:[%s1381_s1 + $0x220] sm:$0xff]  }
  0x18   :  { %934 = vmatprep.subr.bf16.mxu0 %v1065_v24  ;;  %v845_v6 = vcombine.low %v17_v5, %v17_v5  ;;  %v846_v7 = vcombine.high %v17_v5, %v17_v5  ;;  %v1110_v8 = vld [vmem:[%s1381_s1 + $0x1b8] sm:$0xff]   ;;  %v1115_v15 = vld [vmem:[%s1381_s1 + $0x210] sm:$0xff]   ;;  %v1118_v18 = vld [vmem:[%s1381_s1 + $0x228] sm:$0xff]  }
  0x19   :  { %955 = vmatpush3.bf16.msra.mxu1 %v1064_v23  ;;  %v18_v10 = vld [vmem:[%s1382_s0 + $0x18] sm:$0xff]  ;;  %v1119_v19 = vld [vmem:[%s1381_s1 + $0x230] sm:$0xff]   ;;  %v1121_v21 = vld [vmem:[%s1382_s0 + $0x20] ss:$0 sps:$4 sm:$0xff]  }
  0x1a   :  { %956 = vmatprep.subr.bf16.mxu1 %v1067_v26  ;;  %v847_v11 = vcombine.low %v18_v10, %v18_v10  ;;  %v848_v12 = vcombine.high %v18_v10, %v18_v10  ;;  %v1116_v16 = vld [vmem:[%s1381_s1 + $0x218] sm:$0xff]   ;;  %v840_v23 = vld [vmem:[%s1383_s2] ss:$0 sm:$0xff] }
  0x1b   :  { %935 = vmatpush3.bf16.msra.mxu0 %v1066_v25  ;;  %v1120_v20 = vld [vmem:[%s1381_s1 + $0x238] sm:$0xff]  }
  0x1c   :  { %936 = vmatprep.subr.bf16.mxu0 %v1069_v28 }
  0x1d   :  { %957 = vmatpush3.bf16.msra.mxu1 %v1068_v27 }
  0x1e   :  { %958 = vmatprep.subr.bf16.mxu1 %v1071_v30 }
  0x1f   :  { %937 = vmatpush3.bf16.msra.mxu0 %v1070_v29 }
  0x20   :  { %966 = vmatprep.subr.bf16.mxu0 %v1075_v35 }
  0x21   :  { %959 = vmatpush3.bf16.msra.mxu1 %v1074_v34 }
  0x22   :  { %668 = vmatmul.mubr.bf16.vlgmr.msra.gmra.mrb[0].mxu0 %v841_v32  ;;  %988 = vmatprep.subr.bf16.mxu1 %v1079_v40 }
  0x23   :  { %967 = vmatpush3.bf16.msra.mxu0 %v1078_v39  ;;  %747 = vmatprep.mubr.bf16.mxu0 %v846_v7 }
  0x24   :  { %708 = vmatmul.mubr.bf16.vlgmr.msra.gmra.mrb[0].mxu1 %v843_v37  ;;  %968 = vmatprep.subr.bf16.mxu0 %v1081_v42 }
  0x25   :  { %989 = vmatpush3.bf16.msra.mxu1 %v1080_v41  ;;  %787 = vmatprep.mubr.bf16.mxu1 %v848_v12 }
  0x26   :  { %990 = vmatprep.subr.bf16.mxu1 %v1083_v44 }
  0x27   :  { %969 = vmatpush3.bf16.msra.mxu0 %v1082_v43 }
  0x28   :  { %970 = vmatprep.subr.bf16.mxu0 %v1085_v46 }
  0x29   :  { %991 = vmatpush3.bf16.msra.mxu1 %v1084_v45 }
  0x2a   :  { %992 = vmatprep.subr.bf16.mxu1 %v1087_v48 }
  0x2b   :  { %971 = vmatpush3.bf16.msra.mxu0 %v1086_v47 }
  0x2c   :  { %972 = vmatprep.subr.bf16.mxu0 %v1089_v50 }
  0x2d   :  { %993 = vmatpush3.bf16.msra.mxu1 %v1088_v49 }
  0x2e   :  { %994 = vmatprep.subr.bf16.mxu1 %v1091_v52 }
  0x2f   :  { %973 = vmatpush3.bf16.msra.mxu0 %v1090_v51 }
  0x30   :  { %974 = vmatprep.subr.bf16.mxu0 %v1093_v54 }
  0x31   :  { %995 = vmatpush3.bf16.msra.mxu1 %v1092_v53 }
  0x32   :  { %996 = vmatprep.subr.bf16.mxu1 %v1095_v56 }
  0x33   :  { %975 = vmatpush3.bf16.msra.mxu0 %v1094_v55 }
  0x34   :  { %976 = vmatprep.subr.bf16.mxu0 %v1097_v58 }
  0x35   :  { %997 = vmatpush3.bf16.msra.mxu1 %v1096_v57 }
  0x36   :  { %998 = vmatprep.subr.bf16.mxu1 %v1099_v60 }
  0x37   :  { %977 = vmatpush3.bf16.msra.mxu0 %v1098_v59 }
  0x38   :  { %978 = vmatprep.subr.bf16.mxu0 %v1101_v62 }
  0x39   :  { %999 = vmatpush3.bf16.msra.mxu1 %v1100_v61 }
  0x3a   :  { %1000 = vmatprep.subr.bf16.mxu1 %v1103_v0 }
  0x3b   :  { %979 = vmatpush3.bf16.msra.mxu0 %v1102_v63 }
  0x3c   :  { %980 = vmatprep.subr.bf16.mxu0 %v1105_v2 }
  0x3d   :  { %1001 = vmatpush3.bf16.msra.mxu1 %v1104_v1 }
  0x3e   :  { %1002 = vmatprep.subr.bf16.mxu1 %v1107_v4 }
  0x3f   :  { %981 = vmatpush3.bf16.msra.mxu0 %v1106_v3 }
  0x40   :  { %1019 = vmatprep.subr.bf16.mxu0 %v1122_v9 }
  0x41   :  { %1003 = vmatpush3.bf16.msra.mxu1 %v1110_v8 }
  0x42   :  { %748 = vmatmul.mubr.bf16.vlgmr.msra.gmra.mrb[4].mxu0 %v845_v6 }
  0x43   :  { %1020 = vmatpush3.bf16.msra.mxu0 %v1113_v13  ;;  %1035 = vmatprep.mubr.msk.bf16.mxu0 %vm1123_vm0, %v1122_v9 }
  0x44   :  { %788 = vmatmul.mubr.bf16.vlgmr.msra.gmra.mrb[4].mxu1 %v847_v11  ;;  %1021 = vmatprep.subr.bf16.mxu0 %v1122_v9 }
  0x47   :  { %1022 = vmatpush3.bf16.msra.mxu0 %v1114_v14 }
  0x48   :  { %1023 = vmatprep.subr.bf16.mxu0 %v1122_v9 }
  0x4b   :  { %1024 = vmatpush3.bf16.msra.mxu0 %v1115_v15 }
  0x4c   :  { %1025 = vmatprep.subr.bf16.mxu0 %v1122_v9 }
  0x4f   :  { %1026 = vmatpush3.bf16.msra.mxu0 %v1116_v16 }
  0x50   :  { %1027 = vmatprep.subr.bf16.mxu0 %v1122_v9 }
  0x53   :  { %1028 = vmatpush3.bf16.msra.mxu0 %v1117_v17 }
  0x54   :  { %1029 = vmatprep.subr.bf16.mxu0 %v1122_v9 }
  0x57   :  { %1030 = vmatpush3.bf16.msra.mxu0 %v1118_v18 }
  0x58   :  { %1031 = vmatprep.subr.bf16.mxu0 %v1122_v9 }
  0x5b   :  { %1032 = vmatpush3.bf16.msra.mxu0 %v1119_v19 }
  0x5c   :  { %1033 = vmatprep.subr.bf16.mxu0 %v1122_v9 }
  0x5f   :  { %1034 = vmatpush3.bf16.msra.mxu0 %v1120_v20 }
  0x62   :  { %1036 = vmatmul.mubr.bf16.vlgmr.msra.gmra.mrb[8].mxu0 %v1121_v21 }
  0xf5   :  { %v938_v22 = vpop.f32.mrb[0].mxu0 }
  0xf6   :  { %v939_v24 = vpop.f32.mrb[1].mxu0 }
  0xf7   :  { %v940_v25 = vadd.f32 %v939_v24, %v938_v22  ;;  %v941_v26 = vpop.f32.mrb[2].mxu0  ;;  %v960_v27 = vpop.f32.mrb[0].mxu1 }
  0xf8   :  { %v942_v28 = vpop.f32.mrb[3].mxu0  ;;  %v961_v29 = vpop.f32.mrb[1].mxu1 }
  0xf9   :  { %v670_v30 = vadd.f32 %v940_v25, %v840_v23  ;;  %v962_v31 = vadd.f32 %v961_v29, %v960_v27  ;;  %v963_v32 = vpop.f32.mrb[2].mxu1 }
  0xfa   :  { %v964_v33 = vpop.f32.mrb[3].mxu1 }
  0xfb   :  { %v710_v34 = vadd.f32 %v962_v31, %v670_v30 }
 0x115   :  { %v982_v35 = vpop.f32.mrb[4].mxu0 }
 0x116   :  { %v983_v36 = vpop.f32.mrb[5].mxu0 }
 0x117   :  { %v984_v37 = vadd.f32 %v983_v36, %v982_v35  ;;  %v985_v38 = vpop.f32.mrb[6].mxu0  ;;  %v1004_v39 = vpop.f32.mrb[4].mxu1 }
 0x118   :  { %v986_v40 = vpop.f32.mrb[7].mxu0  ;;  %v1005_v41 = vpop.f32.mrb[5].mxu1 }
 0x119   :  { %v750_v42 = vadd.f32 %v984_v37, %v710_v34  ;;  %v1006_v43 = vadd.f32 %v1005_v41, %v1004_v39  ;;  %v1007_v44 = vpop.f32.mrb[6].mxu1 }
 0x11a   :  { %v1008_v45 = vpop.f32.mrb[7].mxu1 }
 0x11b   :  { %v790_v46 = vadd.f32 %v1006_v43, %v750_v42 }
 0x135   :  { %v829_v47 = vpop.f32.mrb[8].mxu0 }
 0x136   :  { %v830_v48 = vadd.f32 %v829_v47, %v790_v46  ;;  %v1037_v49 = vpop.f32.mrb[9].mxu0 }
 0x137   :  { %v832_v50 = vpop.f32.mrb[10].mxu0 }
 0x138   :  { %835 = vst [vmem:[%s1384_s3] sm:$0xff] %v830_v48  ;;  %v1038_v51 = vpop.f32.mrb[11].mxu0 }

// kernel: unet_forward.39
= control target key start
LH: loop header
LB: loop body
LE: loop exit
PB: predicated region body
PF: predicated region fallthrough
CT: control target
= control target key end

     0   :  { %v163_v36 = vlaneseq  ;;  %v1569_v37 = vmov 1966171168   ;;  %s2065_s1 = inlined_call_operand.vmem [shape: bf16[1152,256], index: 1, kind: input, shape index: {}]   ;;  %s2066_s0 = inlined_call_operand.vmem [shape: bf16[2,1152], index: 0, kind: input, shape index: {}]   ;;  %s2067_s2 = inlined_call_operand.vmem [shape: f32[1,256], index: 2, kind: input, shape index: {}]   ;;  %s2068_s3 = inlined_call_operand.vmem [shape: f32[2,256], index: 3, kind: output, shape index: {}]  }
   0x1   :  { %v1352_v0 = vld [vmem:[%s2065_s1 + $0x4] ss:$8 sps:$4 sm:$0xff]   ;;  %v1356_v2 = vld [vmem:[%s2065_s1] ss:$8 sps:$4 sm:$0xff]   ;;  %v1358_v4 = vld [vmem:[%s2065_s1 + $0x14] ss:$8 sps:$4 sm:$0xff]   ;;  %v177_v38 = vunpack.c.l.s4 %v1569_v37 }
   0x2   :  { %v1354_v1 = vld [vmem:[%s2065_s1 + $0x204] ss:$8 sps:$4 sm:$0xff]   ;;  %967 = vmatprep.subr.bf16.mxu1 %v1352_v0  ;;  %v1357_v3 = vld [vmem:[%s2065_s1 + $0x200] ss:$8 sps:$4 sm:$0xff]   ;;  %v1360_v5 = vld [vmem:[%s2065_s1 + $0x214] ss:$8 sps:$4 sm:$0xff]  }
   0x3   :  { %1049 = vmatprep.subr.bf16.mxu0 %v1354_v1  ;;  %968 = vmatpush1.bf16.msra.mxu1 %v1356_v2  ;;  %v1362_v6 = vld [vmem:[%s2065_s1 + $0x10] ss:$8 sps:$4 sm:$0xff]   ;;  %v1364_v8 = vld [vmem:[%s2065_s1 + $0x24] ss:$8 sps:$4 sm:$0xff]   ;;  %v1368_v10 = vld [vmem:[%s2065_s1 + $0x20] ss:$8 sps:$4 sm:$0xff]   ;;  %v178_v43 = vunpack.c.0.s8 %v177_v38 }
   0x4   :  { %1050 = vmatpush1.bf16.msra.mxu0 %v1357_v3  ;;  %969 = vmatprep.subr.bf16.mxu1 %v1358_v4  ;;  %v1363_v7 = vld [vmem:[%s2065_s1 + $0x210] ss:$8 sps:$4 sm:$0xff]   ;;  %v1366_v9 = vld [vmem:[%s2065_s1 + $0x224] ss:$8 sps:$4 sm:$0xff]   ;;  %v1369_v11 = vld [vmem:[%s2065_s1 + $0x220] ss:$8 sps:$4 sm:$0xff]  }
   0x5   :  { %1051 = vmatprep.subr.bf16.mxu0 %v1360_v5  ;;  %v1370_v12 = vld [vmem:[%s2065_s1 + $0x34] ss:$8 sps:$4 sm:$0xff]   ;;  %v1374_v14 = vld [vmem:[%s2065_s1 + $0x30] ss:$8 sps:$4 sm:$0xff]   ;;  %v1376_v16 = vld [vmem:[%s2065_s1 + $0x44] ss:$8 sps:$4 sm:$0xff]  }
   0x6   :  { %v1372_v13 = vld [vmem:[%s2065_s1 + $0x234] ss:$8 sps:$4 sm:$0xff]   ;;  %v1375_v15 = vld [vmem:[%s2065_s1 + $0x230] ss:$8 sps:$4 sm:$0xff]   ;;  %v1378_v17 = vld [vmem:[%s2065_s1 + $0x244] ss:$8 sps:$4 sm:$0xff]  }
   0x7   :  { %970 = vmatpush1.bf16.msra.mxu1 %v1362_v6  ;;  %v1380_v18 = vld [vmem:[%s2065_s1 + $0x40] ss:$8 sps:$4 sm:$0xff]   ;;  %v1382_v20 = vld [vmem:[%s2065_s1 + $0x54] ss:$8 sps:$4 sm:$0xff]   ;;  %v1386_v22 = vld [vmem:[%s2065_s1 + $0x50] ss:$8 sps:$4 sm:$0xff]  }
   0x8   :  { %1052 = vmatpush1.bf16.msra.mxu0 %v1363_v7  ;;  %971 = vmatprep.subr.bf16.mxu1 %v1364_v8  ;;  %v1381_v19 = vld [vmem:[%s2065_s1 + $0x240] ss:$8 sps:$4 sm:$0xff]   ;;  %v1384_v21 = vld [vmem:[%s2065_s1 + $0x254] ss:$8 sps:$4 sm:$0xff]   ;;  %v1387_v23 = vld [vmem:[%s2065_s1 + $0x250] ss:$8 sps:$4 sm:$0xff]  }
   0x9   :  { %1053 = vmatprep.subr.bf16.mxu0 %v1366_v9  ;;  %v1388_v24 = vld [vmem:[%s2065_s1 + $0x64] ss:$8 sps:$4 sm:$0xff]   ;;  %v1392_v26 = vld [vmem:[%s2065_s1 + $0x60] ss:$8 sps:$4 sm:$0xff]   ;;  %v1394_v28 = vld [vmem:[%s2065_s1 + $0x74] ss:$8 sps:$4 sm:$0xff]  }
   0xa   :  { %v1390_v25 = vld [vmem:[%s2065_s1 + $0x264] ss:$8 sps:$4 sm:$0xff]   ;;  %v1393_v27 = vld [vmem:[%s2065_s1 + $0x260] ss:$8 sps:$4 sm:$0xff]   ;;  %v1396_v29 = vld [vmem:[%s2065_s1 + $0x274] ss:$8 sps:$4 sm:$0xff]  }
   0xb   :  { %972 = vmatpush1.bf16.msra.mxu1 %v1368_v10  ;;  %v1398_v30 = vld [vmem:[%s2065_s1 + $0x70] ss:$8 sps:$4 sm:$0xff]   ;;  %v1400_v32 = vld [vmem:[%s2065_s1 + $0x84] ss:$8 sps:$4 sm:$0xff]   ;;  %v1404_v34 = vld [vmem:[%s2065_s1 + $0x80] ss:$8 sps:$4 sm:$0xff]  }
   0xc   :  { %1054 = vmatpush1.bf16.msra.mxu0 %v1369_v11  ;;  %973 = vmatprep.subr.bf16.mxu1 %v1370_v12  ;;  %v1399_v31 = vld [vmem:[%s2065_s1 + $0x270] ss:$8 sps:$4 sm:$0xff]   ;;  %v1402_v33 = vld [vmem:[%s2065_s1 + $0x284] ss:$8 sps:$4 sm:$0xff]   ;;  %v1405_v35 = vld [vmem:[%s2065_s1 + $0x280] ss:$8 sps:$4 sm:$0xff]  }
   0xd   :  { %1055 = vmatprep.subr.bf16.mxu0 %v1372_v13  ;;  %v1406_v39 = vld [vmem:[%s2065_s1 + $0x94] ss:$8 sps:$4 sm:$0xff]   ;;  %v1410_v41 = vld [vmem:[%s2065_s1 + $0x90] ss:$8 sps:$4 sm:$0xff]   ;;  %v1708_v42 = vshrl.u32 %v163_v36, 7  ;;  %v15_v52 = vld [vmem:[%s2066_s0] sm:$0xff] }
   0xe   :  { %v1408_v40 = vld [vmem:[%s2065_s1 + $0x294] ss:$8 sps:$4 sm:$0xff]   ;;  %v1411_v44 = vld [vmem:[%s2065_s1 + $0x290] ss:$8 sps:$4 sm:$0xff]   ;;  %v1412_v45 = vld [vmem:[%s2065_s1 + $0xa4] ss:$8 sps:$4 sm:$0xff]   ;;  %v175_v55 = vcombine.high %v15_v52, %v15_v52 }
   0xf   :  { %974 = vmatpush1.bf16.msra.mxu1 %v1374_v14  ;;  %v1414_v46 = vld [vmem:[%s2065_s1 + $0x2a4] ss:$8 sps:$4 sm:$0xff]   ;;  %v1416_v47 = vld [vmem:[%s2065_s1 + $0xa0] ss:$8 sps:$4 sm:$0xff]   ;;  %v1726_v49 = vsub.s32 %v178_v43, %v1708_v42  ;;  %v1418_v50 = vld [vmem:[%s2065_s1 + $0xb4] ss:$8 sps:$4 sm:$0xff]  }
  0x10   :  { %1056 = vmatpush1.bf16.msra.mxu0 %v1375_v15  ;;  %975 = vmatprep.subr.bf16.mxu1 %v1376_v16  ;;  %v1417_v48 = vld [vmem:[%s2065_s1 + $0x2a0] ss:$8 sps:$4 sm:$0xff]   ;;  %v1420_v51 = vld [vmem:[%s2065_s1 + $0x2b4] ss:$8 sps:$4 sm:$0xff]   ;;  %v1422_v53 = vld [vmem:[%s2065_s1 + $0xb0] ss:$8 sps:$4 sm:$0xff]  }
  0x11   :  { %1057 = vmatprep.subr.bf16.mxu0 %v1378_v17  ;;  %v182_v54 = vrot.slane %v15_v52, %v1726_v49  ;;  %v1423_v56 = vld [vmem:[%s2065_s1 + $0x2b0] ss:$8 sps:$4 sm:$0xff]   ;;  %v1424_v57 = vld [vmem:[%s2065_s1 + $0xc4] ss:$8 sps:$4 sm:$0xff]   ;;  %v189_v60 = vrot.slane %v175_v55, %v1726_v49  ;;  %v1428_v61 = vld [vmem:[%s2065_s1 + $0xc0] ss:$8 sps:$4 sm:$0xff]  }
  0x12   :  { %v1426_v58 = vld [vmem:[%s2065_s1 + $0x2c4] ss:$8 sps:$4 sm:$0xff]   ;;  %v1429_v0 = vld [vmem:[%s2065_s1 + $0x2c0] ss:$8 sps:$4 sm:$0xff]   ;;  %v1430_v1 = vld [vmem:[%s2065_s1 + $0xd4] ss:$8 sps:$4 sm:$0xff]  }
  0x13   :  { %976 = vmatpush1.bf16.msra.mxu1 %v1380_v18  ;;  %v190_v59 = vcombine.high %v182_v54, %v182_v54  ;;  %v191_v63 = vcombine.high %v189_v60, %v189_v60  ;;  %v1432_v2 = vld [vmem:[%s2065_s1 + $0x2d4] ss:$8 sps:$4 sm:$0xff]   ;;  %v1434_v4 = vld [vmem:[%s2065_s1 + $0xd0] ss:$8 sps:$4 sm:$0xff]   ;;  %v1436_v6 = vld [vmem:[%s2065_s1 + $0xe4] ss:$8 sps:$4 sm:$0xff]   ;;  %v1805_v17 = vrot.slane %v182_v54, %v1726_v49  ;;  %v1808_v18 = vrot.slane %v189_v60, %v1726_v49 }
  0x14   :  { %1058 = vmatpush1.bf16.msra.mxu0 %v1381_v19  ;;  %977 = vmatprep.subr.bf16.mxu1 %v1382_v20  ;;  %v1435_v5 = vld [vmem:[%s2065_s1 + $0x2d0] ss:$8 sps:$4 sm:$0xff]   ;;  %v1438_v7 = vld [vmem:[%s2065_s1 + $0x2e4] ss:$8 sps:$4 sm:$0xff]   ;;  %v1440_v8 = vld [vmem:[%s2065_s1 + $0xe0] ss:$8 sps:$4 sm:$0xff]  }
  0x15   :  { %1059 = vmatprep.subr.bf16.mxu0 %v1384_v21  ;;  %v212_v62 = vrot.slane %v190_v59, %v1726_v49  ;;  %v219_v3 = vrot.slane %v191_v63, %v1726_v49  ;;  %v1441_v9 = vld [vmem:[%s2065_s1 + $0x2e0] ss:$8 sps:$4 sm:$0xff]   ;;  %v1442_v10 = vld [vmem:[%s2065_s1 + $0xf4] ss:$8 sps:$4 sm:$0xff]   ;;  %v1446_v12 = vld [vmem:[%s2065_s1 + $0xf0] ss:$8 sps:$4 sm:$0xff]  }
  0x16   :  { %v1444_v11 = vld [vmem:[%s2065_s1 + $0x2f4] ss:$8 sps:$4 sm:$0xff]   ;;  %v1447_v13 = vld [vmem:[%s2065_s1 + $0x2f0] ss:$8 sps:$4 sm:$0xff]   ;;  %v1450_v14 = vld [vmem:[%s2065_s1 + $0x104] ss:$8 sps:$4 sm:$0xff]  }
  0x17   :  { %978 = vmatpush1.bf16.msra.mxu1 %v1386_v22  ;;  %999 = vmatprep.mubr.bf16.mxu1 %v212_v62  ;;  %v1454_v15 = vld [vmem:[%s2065_s1 + $0x304] ss:$8 sps:$4 sm:$0xff]   ;;  %v1448_v16 = vld [vmem:[%s2065_s1 + $0x100] ss:$8 sps:$4 sm:$0xff]   ;;  %v1457_v20 = vld [vmem:[%s2065_s1 + $0x114] ss:$8 sps:$4 sm:$0xff]   ;;  %v222_v22 = vcombine.high %v212_v62, %v212_v62 }
  0x18   :  { %1060 = vmatpush1.bf16.msra.mxu0 %v1387_v23  ;;  %979 = vmatprep.subr.bf16.mxu1 %v1388_v24  ;;  %v1452_v19 = vld [vmem:[%s2065_s1 + $0x300] ss:$8 sps:$4 sm:$0xff]   ;;  %v1460_v21 = vld [vmem:[%s2065_s1 + $0x314] ss:$8 sps:$4 sm:$0xff]   ;;  %v223_v23 = vcombine.high %v219_v3, %v219_v3  ;;  %v1455_v24 = vld [vmem:[%s2065_s1 + $0x110] ss:$8 sps:$4 sm:$0xff]  }
  0x19   :  { %1061 = vmatprep.subr.bf16.mxu0 %v1390_v25  ;;  %1081 = vmatprep.mubr.bf16.mxu0 %v219_v3  ;;  %v1458_v25 = vld [vmem:[%s2065_s1 + $0x310] ss:$8 sps:$4 sm:$0xff]   ;;  %v1473_v36 = vld [vmem:[%s2065_s1 + $0x140] ss:$8 sps:$4 sm:$0xff]   ;;  %v1481_v38 = vld [vmem:[%s2065_s1 + $0x154] ss:$8 sps:$4 sm:$0xff]  }
  0x1a   :  { %v1476_v37 = vld [vmem:[%s2065_s1 + $0x340] ss:$8 sps:$4 sm:$0xff]   ;;  %v1487_v43 = vld [vmem:[%s2065_s1 + $0x164] ss:$8 sps:$4 sm:$0xff]   ;;  %v1503_v60 = vld [vmem:[%s2065_s1 + $0x190] ss:$8 sps:$4 sm:$0xff]  }
  0x1b   :  { %980 = vmatpush1.bf16.msra.mxu1 %v1392_v26  ;;  %v1463_v26 = vld [vmem:[%s2065_s1 + $0x124] ss:$8 sps:$4 sm:$0xff]   ;;  %v1497_v54 = vld [vmem:[%s2065_s1 + $0x180] ss:$8 sps:$4 sm:$0xff]   ;;  %v1520_v3 = vld [vmem:[%s2065_s1 + $0x3b4] ss:$8 sps:$4 sm:$0xff]  }
  0x1c   :  { %1062 = vmatpush1.bf16.msra.mxu0 %v1393_v27  ;;  %981 = vmatprep.subr.bf16.mxu1 %v1394_v28  ;;  %v1466_v27 = vld [vmem:[%s2065_s1 + $0x324] ss:$8 sps:$4 sm:$0xff]   ;;  %v1461_v28 = vld [vmem:[%s2065_s1 + $0x120] ss:$8 sps:$4 sm:$0xff]  }
  0x1d   :  { %1063 = vmatprep.subr.bf16.mxu0 %v1396_v29  ;;  %v1464_v29 = vld [vmem:[%s2065_s1 + $0x320] ss:$8 sps:$4 sm:$0xff]   ;;  %v1499_v52 = vld [vmem:[%s2065_s1 + $0x184] ss:$8 sps:$4 sm:$0xff]  }
  0x1e   :  { %v1500_v55 = vld [vmem:[%s2065_s1 + $0x380] ss:$8 sps:$4 sm:$0xff]   ;;  %v1511_v62 = vld [vmem:[%s2065_s1 + $0x1a4] ss:$8 sps:$4 sm:$0xff]  }
  0x1f   :  { %982 = vmatpush1.bf16.msra.mxu1 %v1398_v30  ;;  %v1469_v30 = vld [vmem:[%s2065_s1 + $0x134] ss:$8 sps:$4 sm:$0xff]   ;;  %v1514_v63 = vld [vmem:[%s2065_s1 + $0x3a4] ss:$8 sps:$4 sm:$0xff]  }
  0x20   :  { %1064 = vmatpush1.bf16.msra.mxu0 %v1399_v31  ;;  %983 = vmatprep.subr.bf16.mxu1 %v1400_v32  ;;  %v1472_v31 = vld [vmem:[%s2065_s1 + $0x334] ss:$8 sps:$4 sm:$0xff]   ;;  %v1467_v32 = vld [vmem:[%s2065_s1 + $0x130] ss:$8 sps:$4 sm:$0xff]  }
  0x21   :  { %1065 = vmatprep.subr.bf16.mxu0 %v1402_v33  ;;  %v1470_v33 = vld [vmem:[%s2065_s1 + $0x330] ss:$8 sps:$4 sm:$0xff]  }
  0x23   :  { %984 = vmatpush1.bf16.msra.mxu1 %v1404_v34  ;;  %v1475_v34 = vld [vmem:[%s2065_s1 + $0x144] ss:$8 sps:$4 sm:$0xff]  }
  0x24   :  { %1066 = vmatpush1.bf16.msra.mxu0 %v1405_v35  ;;  %985 = vmatprep.subr.bf16.mxu1 %v1406_v39  ;;  %v1478_v35 = vld [vmem:[%s2065_s1 + $0x344] ss:$8 sps:$4 sm:$0xff]   ;;  %v1484_v39 = vld [vmem:[%s2065_s1 + $0x354] ss:$8 sps:$4 sm:$0xff]  }
  0x25   :  { %1067 = vmatprep.subr.bf16.mxu0 %v1408_v40  ;;  %v1479_v40 = vld [vmem:[%s2065_s1 + $0x150] ss:$8 sps:$4 sm:$0xff]  }
  0x27   :  { %986 = vmatpush1.bf16.msra.mxu1 %v1410_v41  ;;  %v1482_v41 = vld [vmem:[%s2065_s1 + $0x350] ss:$8 sps:$4 sm:$0xff]  }
  0x28   :  { %1068 = vmatpush1.bf16.msra.mxu0 %v1411_v44  ;;  %987 = vmatprep.subr.bf16.mxu1 %v1412_v45  ;;  %v1490_v44 = vld [vmem:[%s2065_s1 + $0x364] ss:$8 sps:$4 sm:$0xff]   ;;  %v1485_v45 = vld [vmem:[%s2065_s1 + $0x160] ss:$8 sps:$4 sm:$0xff]  }
  0x29   :  { %1069 = vmatprep.subr.bf16.mxu0 %v1414_v46  ;;  %v1488_v46 = vld [vmem:[%s2065_s1 + $0x360] ss:$8 sps:$4 sm:$0xff]  }
  0x2b   :  { %988 = vmatpush1.bf16.msra.mxu1 %v1416_v47  ;;  %v1493_v47 = vld [vmem:[%s2065_s1 + $0x174] ss:$8 sps:$4 sm:$0xff]  }
  0x2c   :  { %1070 = vmatpush1.bf16.msra.mxu0 %v1417_v48  ;;  %989 = vmatprep.subr.bf16.mxu1 %v1418_v50  ;;  %v1496_v48 = vld [vmem:[%s2065_s1 + $0x374] ss:$8 sps:$4 sm:$0xff]   ;;  %v1491_v50 = vld [vmem:[%s2065_s1 + $0x170] ss:$8 sps:$4 sm:$0xff]  }
  0x2d   :  { %1071 = vmatprep.subr.bf16.mxu0 %v1420_v51  ;;  %v1494_v51 = vld [vmem:[%s2065_s1 + $0x370] ss:$8 sps:$4 sm:$0xff]  }
  0x2f   :  { %990 = vmatpush1.bf16.msra.mxu1 %v1422_v53  ;;  %v1502_v53 = vld [vmem:[%s2065_s1 + $0x384] ss:$8 sps:$4 sm:$0xff]  }
  0x30   :  { %1072 = vmatpush1.bf16.msra.mxu0 %v1423_v56  ;;  %991 = vmatprep.subr.bf16.mxu1 %v1424_v57  ;;  %v1914_v56 = vld.sshfl [vmem:[%s2066_s0 + $0x8] sm:$0x1 pattern:$0x75316420]  ;;  %v1505_v57 = vld [vmem:[%s2065_s1 + $0x194] ss:$8 sps:$4 sm:$0xff]  }
  0x31   :  { %1073 = vmatprep.subr.bf16.mxu0 %v1426_v58  ;;  %v1508_v58 = vld [vmem:[%s2065_s1 + $0x394] ss:$8 sps:$4 sm:$0xff]   ;;  %v237_v59 = vrot.slane %v1914_v56, %v1726_v49 }
  0x33   :  { %992 = vmatpush1.bf16.msra.mxu1 %v1428_v61  ;;  %v1506_v61 = vld [vmem:[%s2065_s1 + $0x390] ss:$8 sps:$4 sm:$0xff]  }
  0x34   :  { %1074 = vmatpush1.bf16.msra.mxu0 %v1429_v0  ;;  %993 = vmatprep.subr.bf16.mxu1 %v1430_v1  ;;  %v1509_v0 = vld [vmem:[%s2065_s1 + $0x1a0] ss:$8 sps:$4 sm:$0xff]  }
  0x35   :  { %1075 = vmatprep.subr.bf16.mxu0 %v1432_v2  ;;  %v1512_v1 = vld [vmem:[%s2065_s1 + $0x3a0] ss:$8 sps:$4 sm:$0xff]   ;;  %v1517_v2 = vld [vmem:[%s2065_s1 + $0x1b4] ss:$8 sps:$4 sm:$0xff]  }
  0x37   :  { %994 = vmatpush1.bf16.msra.mxu1 %v1434_v4  ;;  %v1515_v4 = vld [vmem:[%s2065_s1 + $0x1b0] ss:$8 sps:$4 sm:$0xff]  }
  0x38   :  { %1076 = vmatpush1.bf16.msra.mxu0 %v1435_v5  ;;  %995 = vmatprep.subr.bf16.mxu1 %v1436_v6  ;;  %v1518_v5 = vld [vmem:[%s2065_s1 + $0x3b0] ss:$8 sps:$4 sm:$0xff]   ;;  %v1523_v6 = vld [vmem:[%s2065_s1 + $0x1c4] ss:$8 sps:$4 sm:$0xff]  }
  0x39   :  { %1077 = vmatprep.subr.bf16.mxu0 %v1438_v7  ;;  %v1526_v7 = vld [vmem:[%s2065_s1 + $0x3c4] ss:$8 sps:$4 sm:$0xff]  }
  0x3b   :  { %996 = vmatpush1.bf16.msra.mxu1 %v1440_v8  ;;  %v1521_v8 = vld [vmem:[%s2065_s1 + $0x1c0] ss:$8 sps:$4 sm:$0xff]  }
  0x3c   :  { %1078 = vmatpush1.bf16.msra.mxu0 %v1441_v9  ;;  %997 = vmatprep.subr.bf16.mxu1 %v1442_v10  ;;  %v1524_v9 = vld [vmem:[%s2065_s1 + $0x3c0] ss:$8 sps:$4 sm:$0xff]   ;;  %v1529_v10 = vld [vmem:[%s2065_s1 + $0x1d4] ss:$8 sps:$4 sm:$0xff]  }
  0x3d   :  { %1079 = vmatprep.subr.bf16.mxu0 %v1444_v11  ;;  %v1532_v11 = vld [vmem:[%s2065_s1 + $0x3d4] ss:$8 sps:$4 sm:$0xff]  }
  0x3f   :  { %998 = vmatpush1.bf16.msra.mxu1 %v1446_v12  ;;  %v1527_v12 = vld [vmem:[%s2065_s1 + $0x1d0] ss:$8 sps:$4 sm:$0xff]  }
  0x40   :  { %1080 = vmatpush1.bf16.msra.mxu0 %v1447_v13  ;;  %1008 = vmatprep.subr.bf16.mxu1 %v1450_v14  ;;  %v1530_v13 = vld [vmem:[%s2065_s1 + $0x3d0] ss:$8 sps:$4 sm:$0xff]   ;;  %v1535_v14 = vld [vmem:[%s2065_s1 + $0x1e4] ss:$8 sps:$4 sm:$0xff]  }
  0x41   :  { %1090 = vmatprep.subr.bf16.mxu0 %v1454_v15  ;;  %v1538_v15 = vld [vmem:[%s2065_s1 + $0x3e4] ss:$8 sps:$4 sm:$0xff]  }
  0x42   :  { %1000 = vmatmul.mubr.bf16.vlgmr.msra.gmra.mrb[0].mxu1 %v1805_v17 }
  0x43   :  { %1082 = vmatmul.mubr.bf16.vlgmr.msra.gmra.mrb[0].mxu0 %v1808_v18  ;;  %1009 = vmatpush1.bf16.msra.mxu1 %v1448_v16  ;;  %v1533_v16 = vld [vmem:[%s2065_s1 + $0x1e0] ss:$8 sps:$4 sm:$0xff]  }
  0x44   :  { %1091 = vmatpush1.bf16.msra.mxu0 %v1452_v19  ;;  %1010 = vmatprep.subr.bf16.mxu1 %v1457_v20  ;;  %v1536_v19 = vld [vmem:[%s2065_s1 + $0x3e0] ss:$8 sps:$4 sm:$0xff]   ;;  %v1541_v20 = vld [vmem:[%s2065_s1 + $0x1f4] ss:$8 sps:$4 sm:$0xff]  }
  0x45   :  { %1092 = vmatprep.subr.bf16.mxu0 %v1460_v21  ;;  %1040 = vmatprep.mubr.bf16.mxu1 %v222_v22  ;;  %v1544_v21 = vld [vmem:[%s2065_s1 + $0x3f4] ss:$8 sps:$4 sm:$0xff]   ;;  %v1539_v22 = vld [vmem:[%s2065_s1 + $0x1f0] ss:$8 sps:$4 sm:$0xff]  }
  0x46   :  { %1122 = vmatprep.mubr.bf16.mxu0 %v223_v23  ;;  %v1542_v23 = vld [vmem:[%s2065_s1 + $0x3f0] ss:$8 sps:$4 sm:$0xff]  }
  0x47   :  { %1011 = vmatpush1.bf16.msra.mxu1 %v1455_v24  ;;  %v1547_v24 = vld [vmem:[%s2065_s1 + $0x404] ss:$8 sps:$4 sm:$0xff]  }
  0x48   :  { %1093 = vmatpush1.bf16.msra.mxu0 %v1458_v25  ;;  %1012 = vmatprep.subr.bf16.mxu1 %v1463_v26  ;;  %v220_v25 = vcombine.high %v1805_v17, %v1805_v17  ;;  %v221_v26 = vcombine.high %v1808_v18, %v1808_v18  ;;  %v1548_v17 = vld [vmem:[%s2065_s1 + $0x410] ss:$8 sps:$4 sm:$0xff]   ;;  %v1553_v18 = vld [vmem:[%s2065_s1 + $0x424] ss:$8 sps:$4 sm:$0xff]  }
  0x49   :  { %1094 = vmatprep.subr.bf16.mxu0 %v1466_v27  ;;  %v1545_v27 = vld [vmem:[%s2065_s1 + $0x400] ss:$8 sps:$4 sm:$0xff]  }
  0x4b   :  { %1013 = vmatpush1.bf16.msra.mxu1 %v1461_v28  ;;  %v1550_v28 = vld [vmem:[%s2065_s1 + $0x414] ss:$8 sps:$4 sm:$0xff]  }
  0x4c   :  { %1095 = vmatpush1.bf16.msra.mxu0 %v1464_v29  ;;  %1014 = vmatprep.subr.bf16.mxu1 %v1469_v30  ;;  %v1570_v29 = vmov 0   ;;  %v1551_v30 = vld [vmem:[%s2065_s1 + $0x420] ss:$8 sps:$4 sm:$0xff]  }
  0x4d   :  { %1096 = vmatprep.subr.bf16.mxu0 %v1472_v31  ;;  %v1556_v31 = vld [vmem:[%s2065_s1 + $0x434] ss:$8 sps:$4 sm:$0xff]  }
  0x4f   :  { %1015 = vmatpush1.bf16.msra.mxu1 %v1467_v32  ;;  %v1554_v32 = vld [vmem:[%s2065_s1 + $0x430] ss:$8 sps:$4 sm:$0xff]  }
  0x50   :  { %1097 = vmatpush1.bf16.msra.mxu0 %v1470_v33  ;;  %1016 = vmatprep.subr.bf16.mxu1 %v1475_v34  ;;  %v1559_v33 = vld [vmem:[%s2065_s1 + $0x444] ss:$8 sps:$4 sm:$0xff]   ;;  %v1557_v34 = vld [vmem:[%s2065_s1 + $0x440] ss:$8 sps:$4 sm:$0xff]  }
  0x51   :  { %1098 = vmatprep.subr.bf16.mxu0 %v1478_v35  ;;  %v1562_v35 = vld [vmem:[%s2065_s1 + $0x454] ss:$8 sps:$4 sm:$0xff]  }
  0x53   :  { %1017 = vmatpush1.bf16.msra.mxu1 %v1473_v36  ;;  %v1560_v36 = vld [vmem:[%s2065_s1 + $0x450] ss:$8 sps:$4 sm:$0xff]  }
  0x54   :  { %1099 = vmatpush1.bf16.msra.mxu0 %v1476_v37  ;;  %1018 = vmatprep.subr.bf16.mxu1 %v1481_v38  ;;  %v1565_v37 = vld [vmem:[%s2065_s1 + $0x464] ss:$8 sps:$4 sm:$0xff]   ;;  %v1563_v38 = vld [vmem:[%s2065_s1 + $0x460] ss:$8 sps:$4 sm:$0xff]  }
  0x55   :  { %1100 = vmatprep.subr.bf16.mxu0 %v1484_v39  ;;  %v1568_v39 = vld [vmem:[%s2065_s1 + $0x474] ss:$8 sps:$4 sm:$0xff]  }
  0x57   :  { %1019 = vmatpush1.bf16.msra.mxu1 %v1479_v40  ;;  %v1566_v40 = vld [vmem:[%s2065_s1 + $0x470] ss:$8 sps:$4 sm:$0xff]  }
  0x58   :  { %1101 = vmatpush1.bf16.msra.mxu0 %v1482_v41  ;;  %1020 = vmatprep.subr.bf16.mxu1 %v1487_v43 }
  0x59   :  { %1102 = vmatprep.subr.bf16.mxu0 %v1490_v44 }
  0x5b   :  { %1021 = vmatpush1.bf16.msra.mxu1 %v1485_v45 }
  0x5c   :  { %1103 = vmatpush1.bf16.msra.mxu0 %v1488_v46  ;;  %1022 = vmatprep.subr.bf16.mxu1 %v1493_v47  ;;  %v165_v46 = vsub.s32 0, %v1708_v42  ;;  %v161_v47 = vld [vmem:[%s2067_s2] sm:$0x3] }
  0x5d   :  { %1104 = vmatprep.subr.bf16.mxu0 %v1496_v48  ;;  %v169_v48 = vsub.s32 1, %v1708_v42 }
  0x5f   :  { %1023 = vmatpush1.bf16.msra.mxu1 %v1491_v50  ;;  %v166_v50 = vrot.slane %v161_v47, %v165_v46 }
  0x60   :  { %1105 = vmatpush1.bf16.msra.mxu0 %v1494_v51  ;;  %1024 = vmatprep.subr.bf16.mxu1 %v1499_v52  ;;  %v170_v51 = vrot.slane %v161_v47, %v169_v48 }
  0x61   :  { %1106 = vmatprep.subr.bf16.mxu0 %v1502_v53 }
  0x63   :  { %1025 = vmatpush1.bf16.msra.mxu1 %v1497_v54 }
  0x64   :  { %1107 = vmatpush1.bf16.msra.mxu0 %v1500_v55  ;;  %1026 = vmatprep.subr.bf16.mxu1 %v1505_v57 }
  0x65   :  { %1108 = vmatprep.subr.bf16.mxu0 %v1508_v58 }
  0x67   :  { %1027 = vmatpush1.bf16.msra.mxu1 %v1503_v60 }
  0x68   :  { %1109 = vmatpush1.bf16.msra.mxu0 %v1506_v61  ;;  %1028 = vmatprep.subr.bf16.mxu1 %v1511_v62 }
  0x69   :  { %1110 = vmatprep.subr.bf16.mxu0 %v1514_v63 }
  0x6b   :  { %1029 = vmatpush1.bf16.msra.mxu1 %v1509_v0 }
  0x6c   :  { %1111 = vmatpush1.bf16.msra.mxu0 %v1512_v1  ;;  %1030 = vmatprep.subr.bf16.mxu1 %v1517_v2 }
  0x6d   :  { %1112 = vmatprep.subr.bf16.mxu0 %v1520_v3 }
  0x6f   :  { %1031 = vmatpush1.bf16.msra.mxu1 %v1515_v4 }
  0x70   :  { %1113 = vmatpush1.bf16.msra.mxu0 %v1518_v5  ;;  %1032 = vmatprep.subr.bf16.mxu1 %v1523_v6 }
  0x71   :  { %1114 = vmatprep.subr.bf16.mxu0 %v1526_v7 }
  0x73   :  { %1033 = vmatpush1.bf16.msra.mxu1 %v1521_v8 }
  0x74   :  { %1115 = vmatpush1.bf16.msra.mxu0 %v1524_v9  ;;  %1034 = vmatprep.subr.bf16.mxu1 %v1529_v10 }
  0x75   :  { %1116 = vmatprep.subr.bf16.mxu0 %v1532_v11 }
  0x77   :  { %1035 = vmatpush1.bf16.msra.mxu1 %v1527_v12 }
  0x78   :  { %1117 = vmatpush1.bf16.msra.mxu0 %v1530_v13  ;;  %1036 = vmatprep.subr.bf16.mxu1 %v1535_v14 }
  0x79   :  { %1118 = vmatprep.subr.bf16.mxu0 %v1538_v15 }
  0x7b   :  { %1037 = vmatpush1.bf16.msra.mxu1 %v1533_v16 }
  0x7c   :  { %1119 = vmatpush1.bf16.msra.mxu0 %v1536_v19  ;;  %1038 = vmatprep.subr.bf16.mxu1 %v1541_v20 }
  0x7d   :  { %1120 = vmatprep.subr.bf16.mxu0 %v1544_v21 }
  0x7f   :  { %1039 = vmatpush1.bf16.msra.mxu1 %v1539_v22 }
  0x80   :  { %1121 = vmatpush1.bf16.msra.mxu0 %v1542_v23 }
  0x81   :  { %1131 = vmatprep.subr.bf16.mxu0 %v1547_v24 }
  0x82   :  { %1041 = vmatmul.mubr.bf16.vlgmr.msra.gmra.mrb[0].mxu1 %v220_v25 }
  0x83   :  { %1123 = vmatmul.mubr.bf16.vlgmr.msra.gmra.mrb[0].mxu0 %v221_v26 }
  0x84   :  { %1132 = vmatpush1.bf16.msra.mxu0 %v1545_v27  ;;  %1163 = vmatprep.mubr.bf16.mxu0 %v1570_v29 }
  0x85   :  { %1133 = vmatprep.subr.bf16.mxu0 %v1550_v28 }
  0x88   :  { %1134 = vmatpush1.bf16.msra.mxu0 %v1548_v17 }
  0x89   :  { %1135 = vmatprep.subr.bf16.mxu0 %v1553_v18 }
  0x8c   :  { %1136 = vmatpush1.bf16.msra.mxu0 %v1551_v30 }
  0x8d   :  { %1137 = vmatprep.subr.bf16.mxu0 %v1556_v31 }
  0x90   :  { %1138 = vmatpush1.bf16.msra.mxu0 %v1554_v32 }
  0x91   :  { %1139 = vmatprep.subr.bf16.mxu0 %v1559_v33 }
  0x94   :  { %1140 = vmatpush1.bf16.msra.mxu0 %v1557_v34 }
  0x95   :  { %1141 = vmatprep.subr.bf16.mxu0 %v1562_v35 }
  0x98   :  { %1142 = vmatpush1.bf16.msra.mxu0 %v1560_v36 }
  0x99   :  { %1143 = vmatprep.subr.bf16.mxu0 %v1565_v37 }
  0x9c   :  { %1144 = vmatpush1.bf16.msra.mxu0 %v1563_v38 }
  0x9d   :  { %1145 = vmatprep.subr.bf16.mxu0 %v1568_v39 }
  0xa0   :  { %1146 = vmatpush1.bf16.msra.mxu0 %v1566_v40 }
  0xa3   :  { %1164 = vmatmul.mubr.bf16.vlgmr.msra.gmra.mrb[0].mxu0 %v237_v59 }
 0x155   :  { %v1042_v41 = vpop.f32.mrb[0].mxu1 }
 0x156   :  { %v1044_v43 = vpop.f32.mrb[1].mxu1  ;;  %v1334_v52 = vadd.f32 %v1042_v41, %v166_v50 }
 0x157   :  { %v1046_v44 = vpop.f32.mrb[2].mxu1  ;;  %v1336_v53 = vadd.f32 %v1044_v43, %v170_v51 }
 0x158   :  { %v1047_v45 = vpop.f32.mrb[3].mxu1 }
 0x176   :  { %v1165_v54 = vpop.f32.mrb[0].mxu0 }
 0x177   :  { %v1335_v55 = vadd.f32 %v1334_v52, %v1165_v54  ;;  %v1167_v49 = vpop.f32.mrb[1].mxu0 }
 0x178   :  { %v1337_v56 = vadd.f32 %v1336_v53, %v1167_v49  ;;  %v1169_v57 = vpop.f32.mrb[2].mxu0 }
 0x179   :  { %v1170_v58 = vpop.f32.mrb[3].mxu0 }
 0x17a   :  { %v1174_v59 = vcombine.low %v1335_v55, %v1337_v56 }
 0x17c   :  { %1333 = vst.sshfl [vmem:[%s2068_s3] sm:$0x33 pattern:$0x76325410] %v1174_v59 }

// kernel: unet_forward.41
= control target key start
LH: loop header
LB: loop body
LE: loop exit
PB: predicated region body
PF: predicated region fallthrough
CT: control target
= control target key end

     0   :  { %v81_v38 = vlaneseq  ;;  %v718_v39 = vmov 1966171168   ;;  %s949_s1 = inlined_call_operand.vmem [shape: bf16[256,512], index: 1, kind: input, shape index: {}]   ;;  %s950_s0 = inlined_call_operand.vmem [shape: bf16[2,256], index: 0, kind: input, shape index: {}]   ;;  %s951_s2 = inlined_call_operand.vmem [shape: f32[1,512], index: 2, kind: input, shape index: {}]   ;;  %s952_s3 = inlined_call_operand.vmem [shape: f32[2,512], index: 3, kind: output, shape index: {}]  }
   0x1   :  { %v622_v0 = vld [vmem:[%s949_s1 + $0x4] ss:$16 sps:$4 sm:$0xff]   ;;  %v624_v1 = vld [vmem:[%s949_s1 + $0xc] ss:$16 sps:$4 sm:$0xff]   ;;  %v626_v2 = vld [vmem:[%s949_s1] ss:$16 sps:$4 sm:$0xff]   ;;  %v111_v40 = vunpack.c.l.s4 %v718_v39 }
   0x2   :  { %446 = vmatprep.subr.bf16.mxu0 %v622_v0  ;;  %v627_v3 = vld [vmem:[%s949_s1 + $0x8] ss:$16 sps:$4 sm:$0xff]   ;;  %487 = vmatprep.subr.bf16.mxu1 %v624_v1  ;;  %v628_v4 = vld [vmem:[%s949_s1 + $0x24] ss:$16 sps:$4 sm:$0xff]   ;;  %v630_v5 = vld [vmem:[%s949_s1 + $0x2c] ss:$16 sps:$4 sm:$0xff]  }
   0x3   :  { %447 = vmatpush1.bf16.msra.mxu0 %v626_v2  ;;  %488 = vmatpush1.bf16.msra.mxu1 %v627_v3  ;;  %v632_v6 = vld [vmem:[%s949_s1 + $0x20] ss:$16 sps:$4 sm:$0xff]   ;;  %v633_v7 = vld [vmem:[%s949_s1 + $0x28] ss:$16 sps:$4 sm:$0xff]   ;;  %v634_v8 = vld [vmem:[%s949_s1 + $0x44] ss:$16 sps:$4 sm:$0xff]   ;;  %v112_v46 = vunpack.c.0.s8 %v111_v40 }
   0x4   :  { %448 = vmatprep.subr.bf16.mxu0 %v628_v4  ;;  %489 = vmatprep.subr.bf16.mxu1 %v630_v5  ;;  %v636_v9 = vld [vmem:[%s949_s1 + $0x4c] ss:$16 sps:$4 sm:$0xff]   ;;  %v638_v10 = vld [vmem:[%s949_s1 + $0x40] ss:$16 sps:$4 sm:$0xff]   ;;  %v639_v11 = vld [vmem:[%s949_s1 + $0x48] ss:$16 sps:$4 sm:$0xff]  }
   0x5   :  { %v640_v12 = vld [vmem:[%s949_s1 + $0x64] ss:$16 sps:$4 sm:$0xff]   ;;  %v642_v13 = vld [vmem:[%s949_s1 + $0x6c] ss:$16 sps:$4 sm:$0xff]   ;;  %v644_v14 = vld [vmem:[%s949_s1 + $0x60] ss:$16 sps:$4 sm:$0xff]  }
   0x6   :  { %v645_v15 = vld [vmem:[%s949_s1 + $0x68] ss:$16 sps:$4 sm:$0xff]   ;;  %v646_v16 = vld [vmem:[%s949_s1 + $0x84] ss:$16 sps:$4 sm:$0xff]   ;;  %v648_v17 = vld [vmem:[%s949_s1 + $0x8c] ss:$16 sps:$4 sm:$0xff]  }
   0x7   :  { %449 = vmatpush1.bf16.msra.mxu0 %v632_v6  ;;  %490 = vmatpush1.bf16.msra.mxu1 %v633_v7  ;;  %v650_v18 = vld [vmem:[%s949_s1 + $0x80] ss:$16 sps:$4 sm:$0xff]   ;;  %v651_v19 = vld [vmem:[%s949_s1 + $0x88] ss:$16 sps:$4 sm:$0xff]   ;;  %v652_v20 = vld [vmem:[%s949_s1 + $0xa4] ss:$16 sps:$4 sm:$0xff]  }
   0x8   :  { %450 = vmatprep.subr.bf16.mxu0 %v634_v8  ;;  %491 = vmatprep.subr.bf16.mxu1 %v636_v9  ;;  %v654_v21 = vld [vmem:[%s949_s1 + $0xac] ss:$16 sps:$4 sm:$0xff]   ;;  %v656_v22 = vld [vmem:[%s949_s1 + $0xa0] ss:$16 sps:$4 sm:$0xff]   ;;  %v657_v23 = vld [vmem:[%s949_s1 + $0xa8] ss:$16 sps:$4 sm:$0xff]  }
   0x9   :  { %v658_v24 = vld [vmem:[%s949_s1 + $0xc4] ss:$16 sps:$4 sm:$0xff]   ;;  %v660_v25 = vld [vmem:[%s949_s1 + $0xcc] ss:$16 sps:$4 sm:$0xff]   ;;  %v662_v26 = vld [vmem:[%s949_s1 + $0xc0] ss:$16 sps:$4 sm:$0xff]  }
   0xa   :  { %v663_v27 = vld [vmem:[%s949_s1 + $0xc8] ss:$16 sps:$4 sm:$0xff]   ;;  %v664_v28 = vld [vmem:[%s949_s1 + $0xe4] ss:$16 sps:$4 sm:$0xff]   ;;  %v666_v29 = vld [vmem:[%s949_s1 + $0xec] ss:$16 sps:$4 sm:$0xff]  }
   0xb   :  { %451 = vmatpush1.bf16.msra.mxu0 %v638_v10  ;;  %492 = vmatpush1.bf16.msra.mxu1 %v639_v11  ;;  %v668_v30 = vld [vmem:[%s949_s1 + $0xe0] ss:$16 sps:$4 sm:$0xff]   ;;  %v669_v31 = vld [vmem:[%s949_s1 + $0xe8] ss:$16 sps:$4 sm:$0xff]   ;;  %v670_v32 = vld [vmem:[%s949_s1 + $0x104] ss:$16 sps:$4 sm:$0xff]  }
   0xc   :  { %452 = vmatprep.subr.bf16.mxu0 %v640_v12  ;;  %493 = vmatprep.subr.bf16.mxu1 %v642_v13  ;;  %v672_v33 = vld [vmem:[%s949_s1 + $0x10c] ss:$16 sps:$4 sm:$0xff]   ;;  %v674_v34 = vld [vmem:[%s949_s1 + $0x100] ss:$16 sps:$4 sm:$0xff]   ;;  %v675_v35 = vld [vmem:[%s949_s1 + $0x108] ss:$16 sps:$4 sm:$0xff]  }
   0xd   :  { %v676_v36 = vld [vmem:[%s949_s1 + $0x124] ss:$16 sps:$4 sm:$0xff]   ;;  %v678_v37 = vld [vmem:[%s949_s1 + $0x12c] ss:$16 sps:$4 sm:$0xff]   ;;  %v680_v41 = vld [vmem:[%s949_s1 + $0x120] ss:$16 sps:$4 sm:$0xff]  }
   0xe   :  { %v681_v42 = vld [vmem:[%s949_s1 + $0x128] ss:$16 sps:$4 sm:$0xff]   ;;  %v682_v43 = vld [vmem:[%s949_s1 + $0x144] ss:$16 sps:$4 sm:$0xff]   ;;  %v684_v44 = vld [vmem:[%s949_s1 + $0x14c] ss:$16 sps:$4 sm:$0xff]  }
   0xf   :  { %453 = vmatpush1.bf16.msra.mxu0 %v644_v14  ;;  %494 = vmatpush1.bf16.msra.mxu1 %v645_v15  ;;  %v866_v45 = vshrl.u32 %v81_v38, 7  ;;  %v686_v47 = vld [vmem:[%s949_s1 + $0x140] ss:$16 sps:$4 sm:$0xff]   ;;  %v687_v48 = vld [vmem:[%s949_s1 + $0x148] ss:$16 sps:$4 sm:$0xff]  }
  0x10   :  { %454 = vmatprep.subr.bf16.mxu0 %v646_v16  ;;  %495 = vmatprep.subr.bf16.mxu1 %v648_v17  ;;  %v688_v49 = vld [vmem:[%s949_s1 + $0x164] ss:$16 sps:$4 sm:$0xff]   ;;  %v690_v50 = vld [vmem:[%s949_s1 + $0x16c] ss:$16 sps:$4 sm:$0xff]   ;;  %v692_v53 = vld [vmem:[%s949_s1 + $0x160] ss:$16 sps:$4 sm:$0xff]  }
  0x11   :  { %v115_v51 = vsub.s32 %v112_v46, %v866_v45  ;;  %v555_v52 = vld.sshfl [vmem:[%s950_s0] sm:$0x11 pattern:$0x75316420]  ;;  %v693_v54 = vld [vmem:[%s949_s1 + $0x168] ss:$16 sps:$4 sm:$0xff]  }
  0x12   :  { %v109_v55 = vcombine.high %v555_v52, %v555_v52  ;;  %v694_v56 = vld [vmem:[%s949_s1 + $0x184] ss:$16 sps:$4 sm:$0xff]   ;;  %v696_v57 = vld [vmem:[%s949_s1 + $0x18c] ss:$16 sps:$4 sm:$0xff]   ;;  %v698_v59 = vld [vmem:[%s949_s1 + $0x180] ss:$16 sps:$4 sm:$0xff]  }
  0x13   :  { %455 = vmatpush1.bf16.msra.mxu0 %v650_v18  ;;  %496 = vmatpush1.bf16.msra.mxu1 %v651_v19  ;;  %v699_v60 = vld [vmem:[%s949_s1 + $0x188] ss:$16 sps:$4 sm:$0xff]   ;;  %v700_v61 = vld [vmem:[%s949_s1 + $0x1a4] ss:$16 sps:$4 sm:$0xff]   ;;  %v702_v62 = vld [vmem:[%s949_s1 + $0x1ac] ss:$16 sps:$4 sm:$0xff]   ;;  %v116_v9 = vrot.slane %v555_v52, %v115_v51 }
  0x14   :  { %456 = vmatprep.subr.bf16.mxu0 %v652_v20  ;;  %497 = vmatprep.subr.bf16.mxu1 %v654_v21  ;;  %v123_v58 = vrot.slane %v109_v55, %v115_v51  ;;  %v704_v63 = vld [vmem:[%s949_s1 + $0x1a0] ss:$16 sps:$4 sm:$0xff]   ;;  %v705_v0 = vld [vmem:[%s949_s1 + $0x1a8] ss:$16 sps:$4 sm:$0xff]   ;;  %v706_v1 = vld [vmem:[%s949_s1 + $0x1c4] ss:$16 sps:$4 sm:$0xff]  }
  0x15   :  { %v708_v2 = vld [vmem:[%s949_s1 + $0x1cc] ss:$16 sps:$4 sm:$0xff]   ;;  %v710_v3 = vld [vmem:[%s949_s1 + $0x1c0] ss:$16 sps:$4 sm:$0xff]   ;;  %v711_v4 = vld [vmem:[%s949_s1 + $0x1c8] ss:$16 sps:$4 sm:$0xff]  }
  0x16   :  { %478 = vmatprep.mubr.bf16.mxu0 %v123_v58  ;;  %519 = vmatprep.mubr.bf16.mxu1 %v123_v58  ;;  %v712_v5 = vld [vmem:[%s949_s1 + $0x1e4] ss:$16 sps:$4 sm:$0xff]   ;;  %v714_v6 = vld [vmem:[%s949_s1 + $0x1ec] ss:$16 sps:$4 sm:$0xff]   ;;  %v716_v7 = vld [vmem:[%s949_s1 + $0x1e0] ss:$16 sps:$4 sm:$0xff]  }
  0x17   :  { %457 = vmatpush1.bf16.msra.mxu0 %v656_v22  ;;  %498 = vmatpush1.bf16.msra.mxu1 %v657_v23  ;;  %v717_v8 = vld [vmem:[%s949_s1 + $0x1e8] ss:$16 sps:$4 sm:$0xff]   ;;  %v83_v10 = vsub.s32 0, %v866_v45  ;;  %v91_v11 = vsub.s32 2, %v866_v45  ;;  %v79_v12 = vld [vmem:[%s951_s2] sm:$0xf] }
  0x18   :  { %458 = vmatprep.subr.bf16.mxu0 %v658_v24  ;;  %499 = vmatprep.subr.bf16.mxu1 %v660_v25  ;;  %v87_v13 = vsub.s32 1, %v866_v45  ;;  %v719_v14 = vmov 1983009808   ;;  %v95_v16 = vsub.s32 3, %v866_v45 }
  0x19   :  { %v535_v15 = vunpack.c.l.s4 %v719_v14  ;;  %v84_v17 = vrot.slane %v79_v12, %v83_v10  ;;  %v92_v18 = vrot.slane %v79_v12, %v91_v11 }
  0x1a   :  { %v88_v19 = vrot.slane %v79_v12, %v87_v13  ;;  %v96_v21 = vrot.slane %v79_v12, %v95_v16 }
  0x1b   :  { %459 = vmatpush1.bf16.msra.mxu0 %v662_v26  ;;  %500 = vmatpush1.bf16.msra.mxu1 %v663_v27  ;;  %v536_v20 = vunpack.c.0.s8 %v535_v15 }
  0x1c   :  { %460 = vmatprep.subr.bf16.mxu0 %v664_v28  ;;  %501 = vmatprep.subr.bf16.mxu1 %v666_v29 }
  0x1d   :  { %v539_v29 = vsub.s32 %v536_v20, %v866_v45 }
  0x1f   :  { %461 = vmatpush1.bf16.msra.mxu0 %v668_v30  ;;  %502 = vmatpush1.bf16.msra.mxu1 %v669_v31 }
  0x20   :  { %462 = vmatprep.subr.bf16.mxu0 %v670_v32  ;;  %503 = vmatprep.subr.bf16.mxu1 %v672_v33 }
  0x23   :  { %463 = vmatpush1.bf16.msra.mxu0 %v674_v34  ;;  %504 = vmatpush1.bf16.msra.mxu1 %v675_v35 }
  0x24   :  { %464 = vmatprep.subr.bf16.mxu0 %v676_v36  ;;  %505 = vmatprep.subr.bf16.mxu1 %v678_v37 }
  0x27   :  { %465 = vmatpush1.bf16.msra.mxu0 %v680_v41  ;;  %506 = vmatpush1.bf16.msra.mxu1 %v681_v42 }
  0x28   :  { %466 = vmatprep.subr.bf16.mxu0 %v682_v43  ;;  %507 = vmatprep.subr.bf16.mxu1 %v684_v44 }
  0x2b   :  { %467 = vmatpush1.bf16.msra.mxu0 %v686_v47  ;;  %508 = vmatpush1.bf16.msra.mxu1 %v687_v48 }
  0x2c   :  { %468 = vmatprep.subr.bf16.mxu0 %v688_v49  ;;  %509 = vmatprep.subr.bf16.mxu1 %v690_v50 }
  0x2f   :  { %469 = vmatpush1.bf16.msra.mxu0 %v692_v53  ;;  %510 = vmatpush1.bf16.msra.mxu1 %v693_v54 }
  0x30   :  { %470 = vmatprep.subr.bf16.mxu0 %v694_v56  ;;  %511 = vmatprep.subr.bf16.mxu1 %v696_v57 }
  0x33   :  { %471 = vmatpush1.bf16.msra.mxu0 %v698_v59  ;;  %512 = vmatpush1.bf16.msra.mxu1 %v699_v60 }
  0x34   :  { %472 = vmatprep.subr.bf16.mxu0 %v700_v61  ;;  %513 = vmatprep.subr.bf16.mxu1 %v702_v62 }
  0x37   :  { %473 = vmatpush1.bf16.msra.mxu0 %v704_v63  ;;  %514 = vmatpush1.bf16.msra.mxu1 %v705_v0 }
  0x38   :  { %474 = vmatprep.subr.bf16.mxu0 %v706_v1  ;;  %515 = vmatprep.subr.bf16.mxu1 %v708_v2 }
  0x3b   :  { %475 = vmatpush1.bf16.msra.mxu0 %v710_v3  ;;  %516 = vmatpush1.bf16.msra.mxu1 %v711_v4 }
  0x3c   :  { %476 = vmatprep.subr.bf16.mxu0 %v712_v5  ;;  %517 = vmatprep.subr.bf16.mxu1 %v714_v6 }
  0x3f   :  { %477 = vmatpush1.bf16.msra.mxu0 %v716_v7  ;;  %518 = vmatpush1.bf16.msra.mxu1 %v717_v8 }
  0x42   :  { %479 = vmatmul.mubr.bf16.vlgmr.msra.gmra.mrb[0].mxu0 %v116_v9  ;;  %520 = vmatmul.mubr.bf16.vlgmr.msra.gmra.mrb[0].mxu1 %v116_v9 }
 0x115   :  { %v480_v22 = vpop.f32.mrb[0].mxu0  ;;  %v521_v23 = vpop.f32.mrb[0].mxu1 }
 0x116   :  { %v481_v24 = vadd.f32 %v480_v22, %v84_v17  ;;  %v522_v25 = vadd.f32 %v521_v23, %v92_v18  ;;  %v482_v26 = vpop.f32.mrb[1].mxu0  ;;  %v523_v27 = vpop.f32.mrb[1].mxu1 }
 0x117   :  { %v483_v28 = vadd.f32 %v482_v26, %v88_v19  ;;  %v524_v30 = vadd.f32 %v523_v27, %v96_v21  ;;  %v484_v31 = vpop.f32.mrb[2].mxu0  ;;  %v525_v32 = vpop.f32.mrb[2].mxu1 }
 0x118   :  { %v485_v33 = vpop.f32.mrb[3].mxu0  ;;  %v526_v34 = vpop.f32.mrb[3].mxu1 }
 0x119   :  { %v532_v35 = vcombine.low %v481_v24, %v483_v28  ;;  %v533_v36 = vcombine.low %v522_v25, %v524_v30 }
 0x11b   :  { %v540_v37 = vrot.slane %v532_v35, %v539_v29  ;;  %v547_v38 = vrot.slane %v533_v36, %v539_v29 }
 0x11d   :  { %v548_v39 = vcombine.low %v540_v37, %v547_v38 }
 0x11f   :  { %550 = vst [vmem:[%s952_s3] sm:$0xff] %v548_v39 }

// kernel: unet_forward.40
= control target key start
LH: loop header
LB: loop body
LE: loop exit
PB: predicated region body
PF: predicated region fallthrough
CT: control target
= control target key end

     0   :  { %v307_v36 = vlaneseq  ;;  %v3040_v37 = vmov 1966171168   ;;  %s4016_s1 = inlined_call_operand.vmem [shape: bf16[2304,256], index: 1, kind: input, shape index: {}]   ;;  %s4017_s0 = inlined_call_operand.vmem [shape: bf16[2,2304], index: 0, kind: input, shape index: {}]   ;;  %s4018_s2 = inlined_call_operand.vmem [shape: f32[1,256], index: 2, kind: input, shape index: {}]   ;;  %s4019_s3 = inlined_call_operand.vmem [shape: f32[2,256], index: 3, kind: output, shape index: {}]  }
   0x1   :  { %v2606_v0 = vld [vmem:[%s4016_s1 + $0x4] ss:$8 sps:$4 sm:$0xff]   ;;  %v2610_v2 = vld [vmem:[%s4016_s1] ss:$8 sps:$4 sm:$0xff]   ;;  %v2612_v4 = vld [vmem:[%s4016_s1 + $0x14] ss:$8 sps:$4 sm:$0xff]   ;;  %v322_v38 = vunpack.c.l.s4 %v3040_v37 }
   0x2   :  { %v2608_v1 = vld [vmem:[%s4016_s1 + $0x404] ss:$8 sps:$4 sm:$0xff]   ;;  %1898 = vmatprep.subr.bf16.mxu1 %v2606_v0  ;;  %v2611_v3 = vld [vmem:[%s4016_s1 + $0x400] ss:$8 sps:$4 sm:$0xff]   ;;  %v2614_v5 = vld [vmem:[%s4016_s1 + $0x414] ss:$8 sps:$4 sm:$0xff]  }
   0x3   :  { %2062 = vmatprep.subr.bf16.mxu0 %v2608_v1  ;;  %1899 = vmatpush1.bf16.msra.mxu1 %v2610_v2  ;;  %v2616_v6 = vld [vmem:[%s4016_s1 + $0x10] ss:$8 sps:$4 sm:$0xff]   ;;  %v2618_v8 = vld [vmem:[%s4016_s1 + $0x24] ss:$8 sps:$4 sm:$0xff]   ;;  %v2622_v10 = vld [vmem:[%s4016_s1 + $0x20] ss:$8 sps:$4 sm:$0xff]   ;;  %v323_v43 = vunpack.c.0.s8 %v322_v38 }
   0x4   :  { %2063 = vmatpush1.bf16.msra.mxu0 %v2611_v3  ;;  %1900 = vmatprep.subr.bf16.mxu1 %v2612_v4  ;;  %v2617_v7 = vld [vmem:[%s4016_s1 + $0x410] ss:$8 sps:$4 sm:$0xff]   ;;  %v2620_v9 = vld [vmem:[%s4016_s1 + $0x424] ss:$8 sps:$4 sm:$0xff]   ;;  %v2623_v11 = vld [vmem:[%s4016_s1 + $0x420] ss:$8 sps:$4 sm:$0xff]  }
   0x5   :  { %2064 = vmatprep.subr.bf16.mxu0 %v2614_v5  ;;  %v2624_v12 = vld [vmem:[%s4016_s1 + $0x34] ss:$8 sps:$4 sm:$0xff]   ;;  %v2628_v14 = vld [vmem:[%s4016_s1 + $0x30] ss:$8 sps:$4 sm:$0xff]   ;;  %v2630_v16 = vld [vmem:[%s4016_s1 + $0x44] ss:$8 sps:$4 sm:$0xff]  }
   0x6   :  { %v2626_v13 = vld [vmem:[%s4016_s1 + $0x434] ss:$8 sps:$4 sm:$0xff]   ;;  %v2629_v15 = vld [vmem:[%s4016_s1 + $0x430] ss:$8 sps:$4 sm:$0xff]   ;;  %v2632_v17 = vld [vmem:[%s4016_s1 + $0x444] ss:$8 sps:$4 sm:$0xff]  }
   0x7   :  { %1901 = vmatpush1.bf16.msra.mxu1 %v2616_v6  ;;  %v2634_v18 = vld [vmem:[%s4016_s1 + $0x40] ss:$8 sps:$4 sm:$0xff]   ;;  %v2636_v20 = vld [vmem:[%s4016_s1 + $0x54] ss:$8 sps:$4 sm:$0xff]   ;;  %v2640_v22 = vld [vmem:[%s4016_s1 + $0x50] ss:$8 sps:$4 sm:$0xff]  }
   0x8   :  { %2065 = vmatpush1.bf16.msra.mxu0 %v2617_v7  ;;  %1902 = vmatprep.subr.bf16.mxu1 %v2618_v8  ;;  %v2635_v19 = vld [vmem:[%s4016_s1 + $0x440] ss:$8 sps:$4 sm:$0xff]   ;;  %v2638_v21 = vld [vmem:[%s4016_s1 + $0x454] ss:$8 sps:$4 sm:$0xff]   ;;  %v2641_v23 = vld [vmem:[%s4016_s1 + $0x450] ss:$8 sps:$4 sm:$0xff]  }
   0x9   :  { %2066 = vmatprep.subr.bf16.mxu0 %v2620_v9  ;;  %v2642_v24 = vld [vmem:[%s4016_s1 + $0x64] ss:$8 sps:$4 sm:$0xff]   ;;  %v2646_v26 = vld [vmem:[%s4016_s1 + $0x60] ss:$8 sps:$4 sm:$0xff]   ;;  %v2648_v28 = vld [vmem:[%s4016_s1 + $0x74] ss:$8 sps:$4 sm:$0xff]  }
   0xa   :  { %v2644_v25 = vld [vmem:[%s4016_s1 + $0x464] ss:$8 sps:$4 sm:$0xff]   ;;  %v2647_v27 = vld [vmem:[%s4016_s1 + $0x460] ss:$8 sps:$4 sm:$0xff]   ;;  %v2650_v29 = vld [vmem:[%s4016_s1 + $0x474] ss:$8 sps:$4 sm:$0xff]  }
   0xb   :  { %1903 = vmatpush1.bf16.msra.mxu1 %v2622_v10  ;;  %v2652_v30 = vld [vmem:[%s4016_s1 + $0x70] ss:$8 sps:$4 sm:$0xff]   ;;  %v2654_v32 = vld [vmem:[%s4016_s1 + $0x84] ss:$8 sps:$4 sm:$0xff]   ;;  %v2658_v34 = vld [vmem:[%s4016_s1 + $0x80] ss:$8 sps:$4 sm:$0xff]  }
   0xc   :  { %2067 = vmatpush1.bf16.msra.mxu0 %v2623_v11  ;;  %1904 = vmatprep.subr.bf16.mxu1 %v2624_v12  ;;  %v2653_v31 = vld [vmem:[%s4016_s1 + $0x470] ss:$8 sps:$4 sm:$0xff]   ;;  %v2656_v33 = vld [vmem:[%s4016_s1 + $0x484] ss:$8 sps:$4 sm:$0xff]   ;;  %v2659_v35 = vld [vmem:[%s4016_s1 + $0x480] ss:$8 sps:$4 sm:$0xff]  }
   0xd   :  { %2068 = vmatprep.subr.bf16.mxu0 %v2626_v13  ;;  %v2660_v39 = vld [vmem:[%s4016_s1 + $0x94] ss:$8 sps:$4 sm:$0xff]   ;;  %v2664_v41 = vld [vmem:[%s4016_s1 + $0x90] ss:$8 sps:$4 sm:$0xff]   ;;  %v3178_v42 = vshrl.u32 %v307_v36, 7  ;;  %v3207_v52 = vld [vmem:[%s4017_s0] sm:$0xff] }
   0xe   :  { %v2662_v40 = vld [vmem:[%s4016_s1 + $0x494] ss:$8 sps:$4 sm:$0xff]   ;;  %v2665_v44 = vld [vmem:[%s4016_s1 + $0x490] ss:$8 sps:$4 sm:$0xff]   ;;  %v2666_v45 = vld [vmem:[%s4016_s1 + $0xa4] ss:$8 sps:$4 sm:$0xff]  }
   0xf   :  { %1905 = vmatpush1.bf16.msra.mxu1 %v2628_v14  ;;  %v2668_v46 = vld [vmem:[%s4016_s1 + $0x4a4] ss:$8 sps:$4 sm:$0xff]   ;;  %v2670_v47 = vld [vmem:[%s4016_s1 + $0xa0] ss:$8 sps:$4 sm:$0xff]   ;;  %v3196_v49 = vsub.s32 %v323_v43, %v3178_v42  ;;  %v2672_v50 = vld [vmem:[%s4016_s1 + $0xb4] ss:$8 sps:$4 sm:$0xff]  }
  0x10   :  { %2069 = vmatpush1.bf16.msra.mxu0 %v2629_v15  ;;  %1906 = vmatprep.subr.bf16.mxu1 %v2630_v16  ;;  %v2671_v48 = vld [vmem:[%s4016_s1 + $0x4a0] ss:$8 sps:$4 sm:$0xff]   ;;  %v2674_v51 = vld [vmem:[%s4016_s1 + $0x4b4] ss:$8 sps:$4 sm:$0xff]   ;;  %v2676_v53 = vld [vmem:[%s4016_s1 + $0xb0] ss:$8 sps:$4 sm:$0xff]  }
  0x11   :  { %2070 = vmatprep.subr.bf16.mxu0 %v2632_v17  ;;  %v327_v54 = vrot.slane %v3207_v52, %v3196_v49  ;;  %v2677_v55 = vld [vmem:[%s4016_s1 + $0x4b0] ss:$8 sps:$4 sm:$0xff]   ;;  %v3220_v56 = vld [vmem:[%s4017_s0 + $0x8] sm:$0xff]  ;;  %v2684_v1 = vld [vmem:[%s4016_s1 + $0xd4] ss:$8 sps:$4 sm:$0xff]  }
  0x12   :  { %v2678_v57 = vld [vmem:[%s4016_s1 + $0xc4] ss:$8 sps:$4 sm:$0xff]   ;;  %v376_v60 = vrot.slane %v3220_v56, %v3196_v49  ;;  %v2682_v63 = vld [vmem:[%s4016_s1 + $0xc0] ss:$8 sps:$4 sm:$0xff]   ;;  %v2686_v2 = vld [vmem:[%s4016_s1 + $0x4d4] ss:$8 sps:$4 sm:$0xff]  }
  0x13   :  { %1907 = vmatpush1.bf16.msra.mxu1 %v2634_v18  ;;  %v2680_v58 = vld [vmem:[%s4016_s1 + $0x4c4] ss:$8 sps:$4 sm:$0xff]   ;;  %v335_v59 = vcombine.high %v327_v54, %v327_v54  ;;  %v2683_v0 = vld [vmem:[%s4016_s1 + $0x4c0] ss:$8 sps:$4 sm:$0xff]   ;;  %v2688_v4 = vld [vmem:[%s4016_s1 + $0xd0] ss:$8 sps:$4 sm:$0xff]   ;;  %v3281_v16 = vrot.slane %v327_v54, %v3196_v49 }
  0x14   :  { %2071 = vmatpush1.bf16.msra.mxu0 %v2635_v19  ;;  %1908 = vmatprep.subr.bf16.mxu1 %v2636_v20  ;;  %v384_v62 = vcombine.high %v376_v60, %v376_v60  ;;  %v2689_v5 = vld [vmem:[%s4016_s1 + $0x4d0] ss:$8 sps:$4 sm:$0xff]   ;;  %v2690_v6 = vld [vmem:[%s4016_s1 + $0xe4] ss:$8 sps:$4 sm:$0xff]   ;;  %v2694_v8 = vld [vmem:[%s4016_s1 + $0xe0] ss:$8 sps:$4 sm:$0xff]   ;;  %v3284_v17 = vrot.slane %v376_v60, %v3196_v49 }
  0x15   :  { %2072 = vmatprep.subr.bf16.mxu0 %v2638_v21  ;;  %v357_v61 = vrot.slane %v335_v59, %v3196_v49  ;;  %v2692_v7 = vld [vmem:[%s4016_s1 + $0x4e4] ss:$8 sps:$4 sm:$0xff]   ;;  %v2695_v9 = vld [vmem:[%s4016_s1 + $0x4e0] ss:$8 sps:$4 sm:$0xff]   ;;  %v2696_v10 = vld [vmem:[%s4016_s1 + $0xf4] ss:$8 sps:$4 sm:$0xff]  }
  0x16   :  { %v406_v3 = vrot.slane %v384_v62, %v3196_v49  ;;  %v2698_v11 = vld [vmem:[%s4016_s1 + $0x4f4] ss:$8 sps:$4 sm:$0xff]   ;;  %v2700_v12 = vld [vmem:[%s4016_s1 + $0xf0] ss:$8 sps:$4 sm:$0xff]   ;;  %v2705_v14 = vld [vmem:[%s4016_s1 + $0x104] ss:$8 sps:$4 sm:$0xff]  }
  0x17   :  { %1909 = vmatpush1.bf16.msra.mxu1 %v2640_v22  ;;  %1930 = vmatprep.mubr.bf16.mxu1 %v357_v61  ;;  %v2701_v13 = vld [vmem:[%s4016_s1 + $0x4f0] ss:$8 sps:$4 sm:$0xff]   ;;  %v2709_v15 = vld [vmem:[%s4016_s1 + $0x504] ss:$8 sps:$4 sm:$0xff]   ;;  %v2703_v18 = vld [vmem:[%s4016_s1 + $0x100] ss:$8 sps:$4 sm:$0xff]   ;;  %v367_v22 = vcombine.high %v357_v61, %v357_v61 }
  0x18   :  { %2073 = vmatpush1.bf16.msra.mxu0 %v2641_v23  ;;  %1910 = vmatprep.subr.bf16.mxu1 %v2642_v24  ;;  %v2707_v19 = vld [vmem:[%s4016_s1 + $0x500] ss:$8 sps:$4 sm:$0xff]   ;;  %v2712_v20 = vld [vmem:[%s4016_s1 + $0x114] ss:$8 sps:$4 sm:$0xff]   ;;  %v416_v23 = vcombine.high %v406_v3, %v406_v3  ;;  %v2710_v24 = vld [vmem:[%s4016_s1 + $0x110] ss:$8 sps:$4 sm:$0xff]  }
  0x19   :  { %2074 = vmatprep.subr.bf16.mxu0 %v2644_v25  ;;  %2094 = vmatprep.mubr.bf16.mxu0 %v406_v3  ;;  %v2715_v21 = vld [vmem:[%s4016_s1 + $0x514] ss:$8 sps:$4 sm:$0xff]   ;;  %v2713_v25 = vld [vmem:[%s4016_s1 + $0x510] ss:$8 sps:$4 sm:$0xff]   ;;  %v2728_v36 = vld [vmem:[%s4016_s1 + $0x140] ss:$8 sps:$4 sm:$0xff]  }
  0x1a   :  { %v2731_v37 = vld [vmem:[%s4016_s1 + $0x540] ss:$8 sps:$4 sm:$0xff]   ;;  %v2736_v38 = vld [vmem:[%s4016_s1 + $0x154] ss:$8 sps:$4 sm:$0xff]   ;;  %v2742_v43 = vld [vmem:[%s4016_s1 + $0x164] ss:$8 sps:$4 sm:$0xff]  }
  0x1b   :  { %1911 = vmatpush1.bf16.msra.mxu1 %v2646_v26  ;;  %v2718_v26 = vld [vmem:[%s4016_s1 + $0x124] ss:$8 sps:$4 sm:$0xff]   ;;  %v2763_v59 = vld [vmem:[%s4016_s1 + $0x594] ss:$8 sps:$4 sm:$0xff]   ;;  %v2758_v60 = vld [vmem:[%s4016_s1 + $0x190] ss:$8 sps:$4 sm:$0xff]  }
  0x1c   :  { %2075 = vmatpush1.bf16.msra.mxu0 %v2647_v27  ;;  %1912 = vmatprep.subr.bf16.mxu1 %v2648_v28  ;;  %v2721_v27 = vld [vmem:[%s4016_s1 + $0x524] ss:$8 sps:$4 sm:$0xff]   ;;  %v2716_v28 = vld [vmem:[%s4016_s1 + $0x120] ss:$8 sps:$4 sm:$0xff]   ;;  %v2761_v61 = vld [vmem:[%s4016_s1 + $0x590] ss:$8 sps:$4 sm:$0xff]  }
  0x1d   :  { %2076 = vmatprep.subr.bf16.mxu0 %v2650_v29  ;;  %v2719_v29 = vld [vmem:[%s4016_s1 + $0x520] ss:$8 sps:$4 sm:$0xff]   ;;  %v2757_v54 = vld [vmem:[%s4016_s1 + $0x584] ss:$8 sps:$4 sm:$0xff]   ;;  %v2775_v3 = vld [vmem:[%s4016_s1 + $0x5b4] ss:$8 sps:$4 sm:$0xff]  }
  0x1e   :  { %v2766_v62 = vld [vmem:[%s4016_s1 + $0x1a4] ss:$8 sps:$4 sm:$0xff]  }
  0x1f   :  { %1913 = vmatpush1.bf16.msra.mxu1 %v2652_v30  ;;  %v2724_v30 = vld [vmem:[%s4016_s1 + $0x134] ss:$8 sps:$4 sm:$0xff]  }
  0x20   :  { %2077 = vmatpush1.bf16.msra.mxu0 %v2653_v31  ;;  %1914 = vmatprep.subr.bf16.mxu1 %v2654_v32  ;;  %v2727_v31 = vld [vmem:[%s4016_s1 + $0x534] ss:$8 sps:$4 sm:$0xff]   ;;  %v2722_v32 = vld [vmem:[%s4016_s1 + $0x130] ss:$8 sps:$4 sm:$0xff]  }
  0x21   :  { %2078 = vmatprep.subr.bf16.mxu0 %v2656_v33  ;;  %v2725_v33 = vld [vmem:[%s4016_s1 + $0x530] ss:$8 sps:$4 sm:$0xff]  }
  0x23   :  { %1915 = vmatpush1.bf16.msra.mxu1 %v2658_v34  ;;  %v2730_v34 = vld [vmem:[%s4016_s1 + $0x144] ss:$8 sps:$4 sm:$0xff]  }
  0x24   :  { %2079 = vmatpush1.bf16.msra.mxu0 %v2659_v35  ;;  %1916 = vmatprep.subr.bf16.mxu1 %v2660_v39  ;;  %v2733_v35 = vld [vmem:[%s4016_s1 + $0x544] ss:$8 sps:$4 sm:$0xff]   ;;  %v2739_v39 = vld [vmem:[%s4016_s1 + $0x554] ss:$8 sps:$4 sm:$0xff]  }
  0x25   :  { %2080 = vmatprep.subr.bf16.mxu0 %v2662_v40  ;;  %v2734_v40 = vld [vmem:[%s4016_s1 + $0x150] ss:$8 sps:$4 sm:$0xff]  }
  0x27   :  { %1917 = vmatpush1.bf16.msra.mxu1 %v2664_v41  ;;  %v2737_v41 = vld [vmem:[%s4016_s1 + $0x550] ss:$8 sps:$4 sm:$0xff]  }
  0x28   :  { %2081 = vmatpush1.bf16.msra.mxu0 %v2665_v44  ;;  %1918 = vmatprep.subr.bf16.mxu1 %v2666_v45  ;;  %v2745_v44 = vld [vmem:[%s4016_s1 + $0x564] ss:$8 sps:$4 sm:$0xff]   ;;  %v2740_v45 = vld [vmem:[%s4016_s1 + $0x160] ss:$8 sps:$4 sm:$0xff]  }
  0x29   :  { %2082 = vmatprep.subr.bf16.mxu0 %v2668_v46  ;;  %v2743_v46 = vld [vmem:[%s4016_s1 + $0x560] ss:$8 sps:$4 sm:$0xff]  }
  0x2b   :  { %1919 = vmatpush1.bf16.msra.mxu1 %v2670_v47  ;;  %v2748_v47 = vld [vmem:[%s4016_s1 + $0x174] ss:$8 sps:$4 sm:$0xff]  }
  0x2c   :  { %2083 = vmatpush1.bf16.msra.mxu0 %v2671_v48  ;;  %1920 = vmatprep.subr.bf16.mxu1 %v2672_v50  ;;  %v2751_v48 = vld [vmem:[%s4016_s1 + $0x574] ss:$8 sps:$4 sm:$0xff]   ;;  %v2746_v50 = vld [vmem:[%s4016_s1 + $0x170] ss:$8 sps:$4 sm:$0xff]  }
  0x2d   :  { %2084 = vmatprep.subr.bf16.mxu0 %v2674_v51  ;;  %v2749_v51 = vld [vmem:[%s4016_s1 + $0x570] ss:$8 sps:$4 sm:$0xff]  }
  0x2f   :  { %1921 = vmatpush1.bf16.msra.mxu1 %v2676_v53  ;;  %v2754_v53 = vld [vmem:[%s4016_s1 + $0x184] ss:$8 sps:$4 sm:$0xff]  }
  0x30   :  { %2085 = vmatpush1.bf16.msra.mxu0 %v2677_v55  ;;  %1922 = vmatprep.subr.bf16.mxu1 %v2678_v57  ;;  %v2752_v55 = vld [vmem:[%s4016_s1 + $0x180] ss:$8 sps:$4 sm:$0xff]  }
  0x31   :  { %2086 = vmatprep.subr.bf16.mxu0 %v2680_v58  ;;  %v2755_v57 = vld [vmem:[%s4016_s1 + $0x580] ss:$8 sps:$4 sm:$0xff]   ;;  %v2760_v58 = vld [vmem:[%s4016_s1 + $0x194] ss:$8 sps:$4 sm:$0xff]  }
  0x33   :  { %1923 = vmatpush1.bf16.msra.mxu1 %v2682_v63  ;;  %v2769_v63 = vld [vmem:[%s4016_s1 + $0x5a4] ss:$8 sps:$4 sm:$0xff]  }
  0x34   :  { %2087 = vmatpush1.bf16.msra.mxu0 %v2683_v0  ;;  %1924 = vmatprep.subr.bf16.mxu1 %v2684_v1  ;;  %v2764_v0 = vld [vmem:[%s4016_s1 + $0x1a0] ss:$8 sps:$4 sm:$0xff]  }
  0x35   :  { %2088 = vmatprep.subr.bf16.mxu0 %v2686_v2  ;;  %v2767_v1 = vld [vmem:[%s4016_s1 + $0x5a0] ss:$8 sps:$4 sm:$0xff]   ;;  %v2772_v2 = vld [vmem:[%s4016_s1 + $0x1b4] ss:$8 sps:$4 sm:$0xff]  }
  0x37   :  { %1925 = vmatpush1.bf16.msra.mxu1 %v2688_v4  ;;  %v2770_v4 = vld [vmem:[%s4016_s1 + $0x1b0] ss:$8 sps:$4 sm:$0xff]  }
  0x38   :  { %2089 = vmatpush1.bf16.msra.mxu0 %v2689_v5  ;;  %1926 = vmatprep.subr.bf16.mxu1 %v2690_v6  ;;  %v2773_v5 = vld [vmem:[%s4016_s1 + $0x5b0] ss:$8 sps:$4 sm:$0xff]   ;;  %v2778_v6 = vld [vmem:[%s4016_s1 + $0x1c4] ss:$8 sps:$4 sm:$0xff]  }
  0x39   :  { %2090 = vmatprep.subr.bf16.mxu0 %v2692_v7  ;;  %v2781_v7 = vld [vmem:[%s4016_s1 + $0x5c4] ss:$8 sps:$4 sm:$0xff]  }
  0x3b   :  { %1927 = vmatpush1.bf16.msra.mxu1 %v2694_v8  ;;  %v2776_v8 = vld [vmem:[%s4016_s1 + $0x1c0] ss:$8 sps:$4 sm:$0xff]  }
  0x3c   :  { %2091 = vmatpush1.bf16.msra.mxu0 %v2695_v9  ;;  %1928 = vmatprep.subr.bf16.mxu1 %v2696_v10  ;;  %v2779_v9 = vld [vmem:[%s4016_s1 + $0x5c0] ss:$8 sps:$4 sm:$0xff]   ;;  %v2784_v10 = vld [vmem:[%s4016_s1 + $0x1d4] ss:$8 sps:$4 sm:$0xff]  }
  0x3d   :  { %2092 = vmatprep.subr.bf16.mxu0 %v2698_v11  ;;  %v2787_v11 = vld [vmem:[%s4016_s1 + $0x5d4] ss:$8 sps:$4 sm:$0xff]  }
  0x3f   :  { %1929 = vmatpush1.bf16.msra.mxu1 %v2700_v12  ;;  %v2782_v12 = vld [vmem:[%s4016_s1 + $0x1d0] ss:$8 sps:$4 sm:$0xff]  }
  0x40   :  { %2093 = vmatpush1.bf16.msra.mxu0 %v2701_v13  ;;  %1939 = vmatprep.subr.bf16.mxu1 %v2705_v14  ;;  %v2785_v13 = vld [vmem:[%s4016_s1 + $0x5d0] ss:$8 sps:$4 sm:$0xff]   ;;  %v2790_v14 = vld [vmem:[%s4016_s1 + $0x1e4] ss:$8 sps:$4 sm:$0xff]  }
  0x41   :  { %2103 = vmatprep.subr.bf16.mxu0 %v2709_v15  ;;  %v2793_v15 = vld [vmem:[%s4016_s1 + $0x5e4] ss:$8 sps:$4 sm:$0xff]  }
  0x42   :  { %1931 = vmatmul.mubr.bf16.vlgmr.msra.gmra.mrb[0].mxu1 %v3281_v16 }
  0x43   :  { %2095 = vmatmul.mubr.bf16.vlgmr.msra.gmra.mrb[0].mxu0 %v3284_v17  ;;  %1940 = vmatpush1.bf16.msra.mxu1 %v2703_v18  ;;  %v320_v18 = vcombine.high %v3207_v52, %v3207_v52  ;;  %v2799_v52 = vld [vmem:[%s4016_s1 + $0x5f4] ss:$8 sps:$4 sm:$0xff]  }
  0x44   :  { %2104 = vmatpush1.bf16.msra.mxu0 %v2707_v19  ;;  %1941 = vmatprep.subr.bf16.mxu1 %v2712_v20  ;;  %v369_v19 = vcombine.high %v3220_v56, %v3220_v56  ;;  %v2788_v20 = vld [vmem:[%s4016_s1 + $0x1e0] ss:$8 sps:$4 sm:$0xff]  }
  0x45   :  { %2105 = vmatprep.subr.bf16.mxu0 %v2715_v21  ;;  %1971 = vmatprep.mubr.bf16.mxu1 %v367_v22  ;;  %v2791_v21 = vld [vmem:[%s4016_s1 + $0x5e0] ss:$8 sps:$4 sm:$0xff]   ;;  %v2796_v22 = vld [vmem:[%s4016_s1 + $0x1f4] ss:$8 sps:$4 sm:$0xff]   ;;  %v3473_v56 = vrot.slane %v320_v18, %v3196_v49  ;;  %v2866_v18 = vld [vmem:[%s4016_s1 + $0x2b0] ss:$8 sps:$4 sm:$0xff]  }
  0x46   :  { %2135 = vmatprep.mubr.bf16.mxu0 %v416_v23  ;;  %v3476_v23 = vrot.slane %v369_v19, %v3196_v49  ;;  %v2869_v19 = vld [vmem:[%s4016_s1 + $0x6b0] ss:$8 sps:$4 sm:$0xff]  }
  0x47   :  { %1942 = vmatpush1.bf16.msra.mxu1 %v2710_v24  ;;  %v2794_v24 = vld [vmem:[%s4016_s1 + $0x1f0] ss:$8 sps:$4 sm:$0xff]  }
  0x48   :  { %2106 = vmatpush1.bf16.msra.mxu0 %v2713_v25  ;;  %1943 = vmatprep.subr.bf16.mxu1 %v2718_v26  ;;  %v2797_v25 = vld [vmem:[%s4016_s1 + $0x5f0] ss:$8 sps:$4 sm:$0xff]   ;;  %v2802_v26 = vld [vmem:[%s4016_s1 + $0x204] ss:$8 sps:$4 sm:$0xff]  }
  0x49   :  { %2107 = vmatprep.subr.bf16.mxu0 %v2721_v27  ;;  %v2805_v27 = vld [vmem:[%s4016_s1 + $0x604] ss:$8 sps:$4 sm:$0xff]  }
  0x4b   :  { %1944 = vmatpush1.bf16.msra.mxu1 %v2716_v28  ;;  %v336_v28 = vcombine.high %v3473_v56, %v3473_v56 }
  0x4c   :  { %2108 = vmatpush1.bf16.msra.mxu0 %v2719_v29  ;;  %1945 = vmatprep.subr.bf16.mxu1 %v2724_v30  ;;  %v385_v29 = vcombine.high %v3476_v23, %v3476_v23  ;;  %v365_v30 = vcombine.high %v3281_v16, %v3281_v16  ;;  %v2811_v16 = vld [vmem:[%s4016_s1 + $0x614] ss:$8 sps:$4 sm:$0xff]  }
  0x4d   :  { %2109 = vmatprep.subr.bf16.mxu0 %v2727_v31  ;;  %v414_v31 = vcombine.high %v3284_v17, %v3284_v17  ;;  %v3511_v17 = vrot.slane %v336_v28, %v3196_v49  ;;  %v2886_v28 = vld [vmem:[%s4016_s1 + $0x2e4] ss:$8 sps:$4 sm:$0xff]  }
  0x4f   :  { %1946 = vmatpush1.bf16.msra.mxu1 %v2722_v32  ;;  %v2800_v32 = vld [vmem:[%s4016_s1 + $0x200] ss:$8 sps:$4 sm:$0xff]  }
  0x50   :  { %2110 = vmatpush1.bf16.msra.mxu0 %v2725_v33  ;;  %1947 = vmatprep.subr.bf16.mxu1 %v2730_v34  ;;  %v2803_v33 = vld [vmem:[%s4016_s1 + $0x600] ss:$8 sps:$4 sm:$0xff]   ;;  %v2808_v34 = vld [vmem:[%s4016_s1 + $0x214] ss:$8 sps:$4 sm:$0xff]  }
  0x51   :  { %2111 = vmatprep.subr.bf16.mxu0 %v2733_v35  ;;  %v3514_v35 = vrot.slane %v385_v29, %v3196_v49  ;;  %v2889_v29 = vld [vmem:[%s4016_s1 + $0x6e4] ss:$8 sps:$4 sm:$0xff]  }
  0x53   :  { %1948 = vmatpush1.bf16.msra.mxu1 %v2728_v36  ;;  %v2806_v36 = vld [vmem:[%s4016_s1 + $0x210] ss:$8 sps:$4 sm:$0xff]  }
  0x54   :  { %2112 = vmatpush1.bf16.msra.mxu0 %v2731_v37  ;;  %1949 = vmatprep.subr.bf16.mxu1 %v2736_v38  ;;  %v2809_v37 = vld [vmem:[%s4016_s1 + $0x610] ss:$8 sps:$4 sm:$0xff]   ;;  %v2814_v38 = vld [vmem:[%s4016_s1 + $0x224] ss:$8 sps:$4 sm:$0xff]  }
  0x55   :  { %2113 = vmatprep.subr.bf16.mxu0 %v2739_v39  ;;  %v2817_v39 = vld [vmem:[%s4016_s1 + $0x624] ss:$8 sps:$4 sm:$0xff]  }
  0x57   :  { %1950 = vmatpush1.bf16.msra.mxu1 %v2734_v40  ;;  %v2812_v40 = vld [vmem:[%s4016_s1 + $0x220] ss:$8 sps:$4 sm:$0xff]  }
  0x58   :  { %2114 = vmatpush1.bf16.msra.mxu0 %v2737_v41  ;;  %1951 = vmatprep.subr.bf16.mxu1 %v2742_v43  ;;  %v2815_v41 = vld [vmem:[%s4016_s1 + $0x620] ss:$8 sps:$4 sm:$0xff]   ;;  %v2820_v43 = vld [vmem:[%s4016_s1 + $0x234] ss:$8 sps:$4 sm:$0xff]  }
  0x59   :  { %2115 = vmatprep.subr.bf16.mxu0 %v2745_v44  ;;  %v2823_v44 = vld [vmem:[%s4016_s1 + $0x634] ss:$8 sps:$4 sm:$0xff]  }
  0x5b   :  { %1952 = vmatpush1.bf16.msra.mxu1 %v2740_v45  ;;  %v2818_v45 = vld [vmem:[%s4016_s1 + $0x230] ss:$8 sps:$4 sm:$0xff]  }
  0x5c   :  { %2116 = vmatpush1.bf16.msra.mxu0 %v2743_v46  ;;  %1953 = vmatprep.subr.bf16.mxu1 %v2748_v47  ;;  %v2821_v46 = vld [vmem:[%s4016_s1 + $0x630] ss:$8 sps:$4 sm:$0xff]   ;;  %v2826_v47 = vld [vmem:[%s4016_s1 + $0x244] ss:$8 sps:$4 sm:$0xff]  }
  0x5d   :  { %2117 = vmatprep.subr.bf16.mxu0 %v2751_v48  ;;  %v2829_v48 = vld [vmem:[%s4016_s1 + $0x644] ss:$8 sps:$4 sm:$0xff]  }
  0x5f   :  { %1954 = vmatpush1.bf16.msra.mxu1 %v2746_v50  ;;  %v2824_v50 = vld [vmem:[%s4016_s1 + $0x240] ss:$8 sps:$4 sm:$0xff]  }
  0x60   :  { %2118 = vmatpush1.bf16.msra.mxu0 %v2749_v51  ;;  %1955 = vmatprep.subr.bf16.mxu1 %v2754_v53  ;;  %v2827_v51 = vld [vmem:[%s4016_s1 + $0x640] ss:$8 sps:$4 sm:$0xff]   ;;  %v2832_v53 = vld [vmem:[%s4016_s1 + $0x254] ss:$8 sps:$4 sm:$0xff]  }
  0x61   :  { %2119 = vmatprep.subr.bf16.mxu0 %v2757_v54  ;;  %v2835_v54 = vld [vmem:[%s4016_s1 + $0x654] ss:$8 sps:$4 sm:$0xff]  }
  0x63   :  { %1956 = vmatpush1.bf16.msra.mxu1 %v2752_v55  ;;  %v2830_v55 = vld [vmem:[%s4016_s1 + $0x250] ss:$8 sps:$4 sm:$0xff]  }
  0x64   :  { %2120 = vmatpush1.bf16.msra.mxu0 %v2755_v57  ;;  %1957 = vmatprep.subr.bf16.mxu1 %v2760_v58  ;;  %v2833_v57 = vld [vmem:[%s4016_s1 + $0x650] ss:$8 sps:$4 sm:$0xff]   ;;  %v2838_v58 = vld [vmem:[%s4016_s1 + $0x264] ss:$8 sps:$4 sm:$0xff]  }
  0x65   :  { %2121 = vmatprep.subr.bf16.mxu0 %v2763_v59  ;;  %v2841_v59 = vld [vmem:[%s4016_s1 + $0x664] ss:$8 sps:$4 sm:$0xff]  }
  0x67   :  { %1958 = vmatpush1.bf16.msra.mxu1 %v2758_v60  ;;  %v2836_v60 = vld [vmem:[%s4016_s1 + $0x260] ss:$8 sps:$4 sm:$0xff]  }
  0x68   :  { %2122 = vmatpush1.bf16.msra.mxu0 %v2761_v61  ;;  %1959 = vmatprep.subr.bf16.mxu1 %v2766_v62  ;;  %v2839_v61 = vld [vmem:[%s4016_s1 + $0x660] ss:$8 sps:$4 sm:$0xff]   ;;  %v2844_v62 = vld [vmem:[%s4016_s1 + $0x274] ss:$8 sps:$4 sm:$0xff]  }
  0x69   :  { %2123 = vmatprep.subr.bf16.mxu0 %v2769_v63  ;;  %v2847_v63 = vld [vmem:[%s4016_s1 + $0x674] ss:$8 sps:$4 sm:$0xff]  }
  0x6b   :  { %1960 = vmatpush1.bf16.msra.mxu1 %v2764_v0  ;;  %v2842_v0 = vld [vmem:[%s4016_s1 + $0x270] ss:$8 sps:$4 sm:$0xff]  }
  0x6c   :  { %2124 = vmatpush1.bf16.msra.mxu0 %v2767_v1  ;;  %1961 = vmatprep.subr.bf16.mxu1 %v2772_v2  ;;  %v2845_v1 = vld [vmem:[%s4016_s1 + $0x670] ss:$8 sps:$4 sm:$0xff]   ;;  %v2850_v2 = vld [vmem:[%s4016_s1 + $0x284] ss:$8 sps:$4 sm:$0xff]  }
  0x6d   :  { %2125 = vmatprep.subr.bf16.mxu0 %v2775_v3  ;;  %v2853_v3 = vld [vmem:[%s4016_s1 + $0x684] ss:$8 sps:$4 sm:$0xff]  }
  0x6f   :  { %1962 = vmatpush1.bf16.msra.mxu1 %v2770_v4  ;;  %v2848_v4 = vld [vmem:[%s4016_s1 + $0x280] ss:$8 sps:$4 sm:$0xff]  }
  0x70   :  { %2126 = vmatpush1.bf16.msra.mxu0 %v2773_v5  ;;  %1963 = vmatprep.subr.bf16.mxu1 %v2778_v6  ;;  %v2851_v5 = vld [vmem:[%s4016_s1 + $0x680] ss:$8 sps:$4 sm:$0xff]   ;;  %v2856_v6 = vld [vmem:[%s4016_s1 + $0x294] ss:$8 sps:$4 sm:$0xff]  }
  0x71   :  { %2127 = vmatprep.subr.bf16.mxu0 %v2781_v7  ;;  %v2859_v7 = vld [vmem:[%s4016_s1 + $0x694] ss:$8 sps:$4 sm:$0xff]  }
  0x73   :  { %1964 = vmatpush1.bf16.msra.mxu1 %v2776_v8  ;;  %v2854_v8 = vld [vmem:[%s4016_s1 + $0x290] ss:$8 sps:$4 sm:$0xff]  }
  0x74   :  { %2128 = vmatpush1.bf16.msra.mxu0 %v2779_v9  ;;  %1965 = vmatprep.subr.bf16.mxu1 %v2784_v10  ;;  %v2857_v9 = vld [vmem:[%s4016_s1 + $0x690] ss:$8 sps:$4 sm:$0xff]   ;;  %v2862_v10 = vld [vmem:[%s4016_s1 + $0x2a4] ss:$8 sps:$4 sm:$0xff]  }
  0x75   :  { %2129 = vmatprep.subr.bf16.mxu0 %v2787_v11  ;;  %v2865_v11 = vld [vmem:[%s4016_s1 + $0x6a4] ss:$8 sps:$4 sm:$0xff]  }
  0x77   :  { %1966 = vmatpush1.bf16.msra.mxu1 %v2782_v12  ;;  %v2860_v12 = vld [vmem:[%s4016_s1 + $0x2a0] ss:$8 sps:$4 sm:$0xff]  }
  0x78   :  { %2130 = vmatpush1.bf16.msra.mxu0 %v2785_v13  ;;  %1967 = vmatprep.subr.bf16.mxu1 %v2790_v14  ;;  %v2863_v13 = vld [vmem:[%s4016_s1 + $0x6a0] ss:$8 sps:$4 sm:$0xff]   ;;  %v2868_v14 = vld [vmem:[%s4016_s1 + $0x2b4] ss:$8 sps:$4 sm:$0xff]  }
  0x79   :  { %2131 = vmatprep.subr.bf16.mxu0 %v2793_v15  ;;  %v2871_v15 = vld [vmem:[%s4016_s1 + $0x6b4] ss:$8 sps:$4 sm:$0xff]  }
  0x7b   :  { %1968 = vmatpush1.bf16.msra.mxu1 %v2788_v20  ;;  %v2874_v20 = vld [vmem:[%s4016_s1 + $0x2c4] ss:$8 sps:$4 sm:$0xff]  }
  0x7c   :  { %2132 = vmatpush1.bf16.msra.mxu0 %v2791_v21  ;;  %1969 = vmatprep.subr.bf16.mxu1 %v2796_v22  ;;  %v2877_v21 = vld [vmem:[%s4016_s1 + $0x6c4] ss:$8 sps:$4 sm:$0xff]   ;;  %v2872_v22 = vld [vmem:[%s4016_s1 + $0x2c0] ss:$8 sps:$4 sm:$0xff]  }
  0x7d   :  { %2133 = vmatprep.subr.bf16.mxu0 %v2799_v52  ;;  %v2875_v52 = vld [vmem:[%s4016_s1 + $0x6c0] ss:$8 sps:$4 sm:$0xff]  }
  0x7f   :  { %1970 = vmatpush1.bf16.msra.mxu1 %v2794_v24  ;;  %v2880_v24 = vld [vmem:[%s4016_s1 + $0x2d4] ss:$8 sps:$4 sm:$0xff]  }
  0x80   :  { %2134 = vmatpush1.bf16.msra.mxu0 %v2797_v25  ;;  %1980 = vmatprep.subr.bf16.mxu1 %v2802_v26  ;;  %v2883_v25 = vld [vmem:[%s4016_s1 + $0x6d4] ss:$8 sps:$4 sm:$0xff]   ;;  %v2878_v26 = vld [vmem:[%s4016_s1 + $0x2d0] ss:$8 sps:$4 sm:$0xff]  }
  0x81   :  { %2144 = vmatprep.subr.bf16.mxu0 %v2805_v27  ;;  %v2881_v27 = vld [vmem:[%s4016_s1 + $0x6d0] ss:$8 sps:$4 sm:$0xff]  }
  0x82   :  { %1972 = vmatmul.mubr.bf16.vlgmr.msra.gmra.mrb[0].mxu1 %v365_v30  ;;  %v2884_v30 = vld [vmem:[%s4016_s1 + $0x2e0] ss:$8 sps:$4 sm:$0xff]  }
  0x83   :  { %2136 = vmatmul.mubr.bf16.vlgmr.msra.gmra.mrb[0].mxu0 %v414_v31  ;;  %1981 = vmatpush1.bf16.msra.mxu1 %v2800_v32  ;;  %v2887_v31 = vld [vmem:[%s4016_s1 + $0x6e0] ss:$8 sps:$4 sm:$0xff]   ;;  %v2892_v32 = vld [vmem:[%s4016_s1 + $0x2f4] ss:$8 sps:$4 sm:$0xff]  }
  0x84   :  { %2145 = vmatpush1.bf16.msra.mxu0 %v2803_v33  ;;  %1982 = vmatprep.subr.bf16.mxu1 %v2808_v34  ;;  %v2895_v33 = vld [vmem:[%s4016_s1 + $0x6f4] ss:$8 sps:$4 sm:$0xff]   ;;  %v2890_v34 = vld [vmem:[%s4016_s1 + $0x2f0] ss:$8 sps:$4 sm:$0xff]  }
  0x85   :  { %2146 = vmatprep.subr.bf16.mxu0 %v2811_v16  ;;  %2012 = vmatprep.mubr.bf16.mxu1 %v3511_v17  ;;  %v2893_v16 = vld [vmem:[%s4016_s1 + $0x6f0] ss:$8 sps:$4 sm:$0xff]  }
  0x86   :  { %2176 = vmatprep.mubr.bf16.mxu0 %v3514_v35 }
  0x87   :  { %1983 = vmatpush1.bf16.msra.mxu1 %v2806_v36  ;;  %v2898_v36 = vld [vmem:[%s4016_s1 + $0x304] ss:$8 sps:$4 sm:$0xff]  }
  0x88   :  { %2147 = vmatpush1.bf16.msra.mxu0 %v2809_v37  ;;  %1984 = vmatprep.subr.bf16.mxu1 %v2814_v38  ;;  %v2901_v37 = vld [vmem:[%s4016_s1 + $0x704] ss:$8 sps:$4 sm:$0xff]   ;;  %v3700_v38 = vrot.slane %v3473_v56, %v3196_v49  ;;  %v2904_v56 = vld [vmem:[%s4016_s1 + $0x314] ss:$8 sps:$4 sm:$0xff]  }
  0x89   :  { %2148 = vmatprep.subr.bf16.mxu0 %v2817_v39  ;;  %v3704_v39 = vrot.slane %v3476_v23, %v3196_v49  ;;  %v2907_v23 = vld [vmem:[%s4016_s1 + $0x714] ss:$8 sps:$4 sm:$0xff]  }
  0x8b   :  { %1985 = vmatpush1.bf16.msra.mxu1 %v2812_v40  ;;  %v2896_v40 = vld [vmem:[%s4016_s1 + $0x300] ss:$8 sps:$4 sm:$0xff]  }
  0x8c   :  { %2149 = vmatpush1.bf16.msra.mxu0 %v2815_v41  ;;  %1986 = vmatprep.subr.bf16.mxu1 %v2820_v43  ;;  %v2899_v41 = vld [vmem:[%s4016_s1 + $0x700] ss:$8 sps:$4 sm:$0xff]   ;;  %v368_v43 = vcombine.high %v3511_v17, %v3511_v17  ;;  %v2910_v17 = vld [vmem:[%s4016_s1 + $0x324] ss:$8 sps:$4 sm:$0xff]  }
  0x8d   :  { %2150 = vmatprep.subr.bf16.mxu0 %v2823_v44  ;;  %v417_v44 = vcombine.high %v3514_v35, %v3514_v35  ;;  %v2913_v35 = vld [vmem:[%s4016_s1 + $0x724] ss:$8 sps:$4 sm:$0xff]  }
  0x8f   :  { %1987 = vmatpush1.bf16.msra.mxu1 %v2818_v45  ;;  %v2902_v45 = vld [vmem:[%s4016_s1 + $0x310] ss:$8 sps:$4 sm:$0xff]  }
  0x90   :  { %2151 = vmatpush1.bf16.msra.mxu0 %v2821_v46  ;;  %1988 = vmatprep.subr.bf16.mxu1 %v2826_v47  ;;  %v2905_v46 = vld [vmem:[%s4016_s1 + $0x710] ss:$8 sps:$4 sm:$0xff]   ;;  %v2908_v47 = vld [vmem:[%s4016_s1 + $0x320] ss:$8 sps:$4 sm:$0xff]  }
  0x91   :  { %2152 = vmatprep.subr.bf16.mxu0 %v2829_v48  ;;  %v2911_v48 = vld [vmem:[%s4016_s1 + $0x720] ss:$8 sps:$4 sm:$0xff]  }
  0x93   :  { %1989 = vmatpush1.bf16.msra.mxu1 %v2824_v50  ;;  %v2916_v50 = vld [vmem:[%s4016_s1 + $0x334] ss:$8 sps:$4 sm:$0xff]  }
  0x94   :  { %2153 = vmatpush1.bf16.msra.mxu0 %v2827_v51  ;;  %1990 = vmatprep.subr.bf16.mxu1 %v2832_v53  ;;  %v2919_v51 = vld [vmem:[%s4016_s1 + $0x734] ss:$8 sps:$4 sm:$0xff]   ;;  %v2914_v53 = vld [vmem:[%s4016_s1 + $0x330] ss:$8 sps:$4 sm:$0xff]  }
  0x95   :  { %2154 = vmatprep.subr.bf16.mxu0 %v2835_v54  ;;  %v2917_v54 = vld [vmem:[%s4016_s1 + $0x730] ss:$8 sps:$4 sm:$0xff]  }
  0x97   :  { %1991 = vmatpush1.bf16.msra.mxu1 %v2830_v55  ;;  %v2922_v55 = vld [vmem:[%s4016_s1 + $0x344] ss:$8 sps:$4 sm:$0xff]  }
  0x98   :  { %2155 = vmatpush1.bf16.msra.mxu0 %v2833_v57  ;;  %1992 = vmatprep.subr.bf16.mxu1 %v2838_v58  ;;  %v2925_v57 = vld [vmem:[%s4016_s1 + $0x744] ss:$8 sps:$4 sm:$0xff]   ;;  %v2920_v58 = vld [vmem:[%s4016_s1 + $0x340] ss:$8 sps:$4 sm:$0xff]  }
  0x99   :  { %2156 = vmatprep.subr.bf16.mxu0 %v2841_v59  ;;  %v2923_v59 = vld [vmem:[%s4016_s1 + $0x740] ss:$8 sps:$4 sm:$0xff]  }
  0x9b   :  { %1993 = vmatpush1.bf16.msra.mxu1 %v2836_v60  ;;  %v2928_v60 = vld [vmem:[%s4016_s1 + $0x354] ss:$8 sps:$4 sm:$0xff]  }
  0x9c   :  { %2157 = vmatpush1.bf16.msra.mxu0 %v2839_v61  ;;  %1994 = vmatprep.subr.bf16.mxu1 %v2844_v62  ;;  %v2931_v61 = vld [vmem:[%s4016_s1 + $0x754] ss:$8 sps:$4 sm:$0xff]   ;;  %v2926_v62 = vld [vmem:[%s4016_s1 + $0x350] ss:$8 sps:$4 sm:$0xff]  }
  0x9d   :  { %2158 = vmatprep.subr.bf16.mxu0 %v2847_v63  ;;  %v2929_v63 = vld [vmem:[%s4016_s1 + $0x750] ss:$8 sps:$4 sm:$0xff]  }
  0x9f   :  { %1995 = vmatpush1.bf16.msra.mxu1 %v2842_v0  ;;  %v2934_v0 = vld [vmem:[%s4016_s1 + $0x364] ss:$8 sps:$4 sm:$0xff]  }
  0xa0   :  { %2159 = vmatpush1.bf16.msra.mxu0 %v2845_v1  ;;  %1996 = vmatprep.subr.bf16.mxu1 %v2850_v2  ;;  %v2937_v1 = vld [vmem:[%s4016_s1 + $0x764] ss:$8 sps:$4 sm:$0xff]   ;;  %v2932_v2 = vld [vmem:[%s4016_s1 + $0x360] ss:$8 sps:$4 sm:$0xff]  }
  0xa1   :  { %2160 = vmatprep.subr.bf16.mxu0 %v2853_v3  ;;  %v2935_v3 = vld [vmem:[%s4016_s1 + $0x760] ss:$8 sps:$4 sm:$0xff]  }
  0xa3   :  { %1997 = vmatpush1.bf16.msra.mxu1 %v2848_v4  ;;  %v2940_v4 = vld [vmem:[%s4016_s1 + $0x374] ss:$8 sps:$4 sm:$0xff]  }
  0xa4   :  { %2161 = vmatpush1.bf16.msra.mxu0 %v2851_v5  ;;  %1998 = vmatprep.subr.bf16.mxu1 %v2856_v6  ;;  %v2943_v5 = vld [vmem:[%s4016_s1 + $0x774] ss:$8 sps:$4 sm:$0xff]   ;;  %v2938_v6 = vld [vmem:[%s4016_s1 + $0x370] ss:$8 sps:$4 sm:$0xff]  }
  0xa5   :  { %2162 = vmatprep.subr.bf16.mxu0 %v2859_v7  ;;  %v2941_v7 = vld [vmem:[%s4016_s1 + $0x770] ss:$8 sps:$4 sm:$0xff]  }
  0xa7   :  { %1999 = vmatpush1.bf16.msra.mxu1 %v2854_v8  ;;  %v2946_v8 = vld [vmem:[%s4016_s1 + $0x384] ss:$8 sps:$4 sm:$0xff]  }
  0xa8   :  { %2163 = vmatpush1.bf16.msra.mxu0 %v2857_v9  ;;  %2000 = vmatprep.subr.bf16.mxu1 %v2862_v10  ;;  %v2949_v9 = vld [vmem:[%s4016_s1 + $0x784] ss:$8 sps:$4 sm:$0xff]   ;;  %v2944_v10 = vld [vmem:[%s4016_s1 + $0x380] ss:$8 sps:$4 sm:$0xff]  }
  0xa9   :  { %2164 = vmatprep.subr.bf16.mxu0 %v2865_v11  ;;  %v2947_v11 = vld [vmem:[%s4016_s1 + $0x780] ss:$8 sps:$4 sm:$0xff]  }
  0xab   :  { %2001 = vmatpush1.bf16.msra.mxu1 %v2860_v12  ;;  %v2952_v12 = vld [vmem:[%s4016_s1 + $0x394] ss:$8 sps:$4 sm:$0xff]  }
  0xac   :  { %2165 = vmatpush1.bf16.msra.mxu0 %v2863_v13  ;;  %2002 = vmatprep.subr.bf16.mxu1 %v2868_v14  ;;  %v2955_v13 = vld [vmem:[%s4016_s1 + $0x794] ss:$8 sps:$4 sm:$0xff]   ;;  %v2950_v14 = vld [vmem:[%s4016_s1 + $0x390] ss:$8 sps:$4 sm:$0xff]  }
  0xad   :  { %2166 = vmatprep.subr.bf16.mxu0 %v2871_v15  ;;  %v2953_v15 = vld [vmem:[%s4016_s1 + $0x790] ss:$8 sps:$4 sm:$0xff]  }
  0xaf   :  { %2003 = vmatpush1.bf16.msra.mxu1 %v2866_v18  ;;  %v2958_v18 = vld [vmem:[%s4016_s1 + $0x3a4] ss:$8 sps:$4 sm:$0xff]  }
  0xb0   :  { %2167 = vmatpush1.bf16.msra.mxu0 %v2869_v19  ;;  %2004 = vmatprep.subr.bf16.mxu1 %v2874_v20  ;;  %v2961_v19 = vld [vmem:[%s4016_s1 + $0x7a4] ss:$8 sps:$4 sm:$0xff]   ;;  %v2956_v20 = vld [vmem:[%s4016_s1 + $0x3a0] ss:$8 sps:$4 sm:$0xff]  }
  0xb1   :  { %2168 = vmatprep.subr.bf16.mxu0 %v2877_v21  ;;  %v2959_v21 = vld [vmem:[%s4016_s1 + $0x7a0] ss:$8 sps:$4 sm:$0xff]  }
  0xb3   :  { %2005 = vmatpush1.bf16.msra.mxu1 %v2872_v22  ;;  %v2964_v22 = vld [vmem:[%s4016_s1 + $0x3b4] ss:$8 sps:$4 sm:$0xff]  }
  0xb4   :  { %2169 = vmatpush1.bf16.msra.mxu0 %v2875_v52  ;;  %2006 = vmatprep.subr.bf16.mxu1 %v2880_v24  ;;  %v2967_v52 = vld [vmem:[%s4016_s1 + $0x7b4] ss:$8 sps:$4 sm:$0xff]   ;;  %v2962_v24 = vld [vmem:[%s4016_s1 + $0x3b0] ss:$8 sps:$4 sm:$0xff]  }
  0xb5   :  { %2170 = vmatprep.subr.bf16.mxu0 %v2883_v25  ;;  %v2965_v25 = vld [vmem:[%s4016_s1 + $0x7b0] ss:$8 sps:$4 sm:$0xff]  }
  0xb7   :  { %2007 = vmatpush1.bf16.msra.mxu1 %v2878_v26  ;;  %v2970_v26 = vld [vmem:[%s4016_s1 + $0x3c4] ss:$8 sps:$4 sm:$0xff]  }
  0xb8   :  { %2171 = vmatpush1.bf16.msra.mxu0 %v2881_v27  ;;  %2008 = vmatprep.subr.bf16.mxu1 %v2886_v28  ;;  %v2973_v27 = vld [vmem:[%s4016_s1 + $0x7c4] ss:$8 sps:$4 sm:$0xff]   ;;  %v2968_v28 = vld [vmem:[%s4016_s1 + $0x3c0] ss:$8 sps:$4 sm:$0xff]  }
  0xb9   :  { %2172 = vmatprep.subr.bf16.mxu0 %v2889_v29  ;;  %v2971_v29 = vld [vmem:[%s4016_s1 + $0x7c0] ss:$8 sps:$4 sm:$0xff]  }
  0xbb   :  { %2009 = vmatpush1.bf16.msra.mxu1 %v2884_v30  ;;  %v2976_v30 = vld [vmem:[%s4016_s1 + $0x3d4] ss:$8 sps:$4 sm:$0xff]  }
  0xbc   :  { %2173 = vmatpush1.bf16.msra.mxu0 %v2887_v31  ;;  %2010 = vmatprep.subr.bf16.mxu1 %v2892_v32  ;;  %v2979_v31 = vld [vmem:[%s4016_s1 + $0x7d4] ss:$8 sps:$4 sm:$0xff]   ;;  %v2974_v32 = vld [vmem:[%s4016_s1 + $0x3d0] ss:$8 sps:$4 sm:$0xff]  }
  0xbd   :  { %2174 = vmatprep.subr.bf16.mxu0 %v2895_v33  ;;  %v2977_v33 = vld [vmem:[%s4016_s1 + $0x7d0] ss:$8 sps:$4 sm:$0xff]  }
  0xbf   :  { %2011 = vmatpush1.bf16.msra.mxu1 %v2890_v34  ;;  %v2982_v34 = vld [vmem:[%s4016_s1 + $0x3e4] ss:$8 sps:$4 sm:$0xff]  }
  0xc0   :  { %2175 = vmatpush1.bf16.msra.mxu0 %v2893_v16  ;;  %2021 = vmatprep.subr.bf16.mxu1 %v2898_v36  ;;  %v2985_v16 = vld [vmem:[%s4016_s1 + $0x7e4] ss:$8 sps:$4 sm:$0xff]   ;;  %v2980_v36 = vld [vmem:[%s4016_s1 + $0x3e0] ss:$8 sps:$4 sm:$0xff]  }
  0xc1   :  { %2185 = vmatprep.subr.bf16.mxu0 %v2901_v37  ;;  %v2983_v37 = vld [vmem:[%s4016_s1 + $0x7e0] ss:$8 sps:$4 sm:$0xff]  }
  0xc2   :  { %2013 = vmatmul.mubr.bf16.vlgmr.msra.gmra.mrb[0].mxu1 %v3700_v38 }
  0xc3   :  { %2177 = vmatmul.mubr.bf16.vlgmr.msra.gmra.mrb[0].mxu0 %v3704_v39  ;;  %2022 = vmatpush1.bf16.msra.mxu1 %v2896_v40  ;;  %v2988_v40 = vld [vmem:[%s4016_s1 + $0x3f4] ss:$8 sps:$4 sm:$0xff]  }
  0xc4   :  { %2186 = vmatpush1.bf16.msra.mxu0 %v2899_v41  ;;  %2023 = vmatprep.subr.bf16.mxu1 %v2904_v56  ;;  %v2991_v41 = vld [vmem:[%s4016_s1 + $0x7f4] ss:$8 sps:$4 sm:$0xff]   ;;  %v3895_v56 = vld.sshfl [vmem:[%s4017_s0 + $0x10] sm:$0x11 pattern:$0x75316420] }
  0xc5   :  { %2187 = vmatprep.subr.bf16.mxu0 %v2907_v23  ;;  %2053 = vmatprep.mubr.bf16.mxu1 %v368_v43  ;;  %v2986_v23 = vld [vmem:[%s4016_s1 + $0x3f0] ss:$8 sps:$4 sm:$0xff]  }
  0xc6   :  { %2217 = vmatprep.mubr.bf16.mxu0 %v417_v44  ;;  %v2989_v43 = vld [vmem:[%s4016_s1 + $0x7f0] ss:$8 sps:$4 sm:$0xff]   ;;  %v425_v44 = vcombine.high %v3895_v56, %v3895_v56 }
  0xc7   :  { %2024 = vmatpush1.bf16.msra.mxu1 %v2902_v45  ;;  %v2994_v45 = vld [vmem:[%s4016_s1 + $0x804] ss:$8 sps:$4 sm:$0xff]  }
  0xc8   :  { %2188 = vmatpush1.bf16.msra.mxu0 %v2905_v46  ;;  %2025 = vmatprep.subr.bf16.mxu1 %v2910_v17  ;;  %v366_v46 = vcombine.high %v3700_v38, %v3700_v38  ;;  %v415_v17 = vcombine.high %v3704_v39, %v3704_v39  ;;  %v2995_v38 = vld [vmem:[%s4016_s1 + $0x810] ss:$8 sps:$4 sm:$0xff]   ;;  %v3000_v39 = vld [vmem:[%s4016_s1 + $0x824] ss:$8 sps:$4 sm:$0xff]  }
  0xc9   :  { %2189 = vmatprep.subr.bf16.mxu0 %v2913_v35  ;;  %v2992_v35 = vld [vmem:[%s4016_s1 + $0x800] ss:$8 sps:$4 sm:$0xff]  }
  0xcb   :  { %2026 = vmatpush1.bf16.msra.mxu1 %v2908_v47  ;;  %v439_v47 = vrot.slane %v425_v44, %v3196_v49 }
  0xcc   :  { %2190 = vmatpush1.bf16.msra.mxu0 %v2911_v48  ;;  %2027 = vmatprep.subr.bf16.mxu1 %v2916_v50  ;;  %v2997_v48 = vld [vmem:[%s4016_s1 + $0x814] ss:$8 sps:$4 sm:$0xff]   ;;  %v2998_v50 = vld [vmem:[%s4016_s1 + $0x820] ss:$8 sps:$4 sm:$0xff]  }
  0xcd   :  { %2191 = vmatprep.subr.bf16.mxu0 %v2919_v51  ;;  %v3003_v51 = vld [vmem:[%s4016_s1 + $0x834] ss:$8 sps:$4 sm:$0xff]  }
  0xcf   :  { %2028 = vmatpush1.bf16.msra.mxu1 %v2914_v53  ;;  %v3001_v53 = vld [vmem:[%s4016_s1 + $0x830] ss:$8 sps:$4 sm:$0xff]  }
  0xd0   :  { %2192 = vmatpush1.bf16.msra.mxu0 %v2917_v54  ;;  %2029 = vmatprep.subr.bf16.mxu1 %v2922_v55  ;;  %v3006_v54 = vld [vmem:[%s4016_s1 + $0x844] ss:$8 sps:$4 sm:$0xff]   ;;  %v3004_v55 = vld [vmem:[%s4016_s1 + $0x840] ss:$8 sps:$4 sm:$0xff]  }
  0xd1   :  { %2193 = vmatprep.subr.bf16.mxu0 %v2925_v57  ;;  %v3009_v57 = vld [vmem:[%s4016_s1 + $0x854] ss:$8 sps:$4 sm:$0xff]  }
  0xd3   :  { %2030 = vmatpush1.bf16.msra.mxu1 %v2920_v58  ;;  %v3007_v58 = vld [vmem:[%s4016_s1 + $0x850] ss:$8 sps:$4 sm:$0xff]  }
  0xd4   :  { %2194 = vmatpush1.bf16.msra.mxu0 %v2923_v59  ;;  %2031 = vmatprep.subr.bf16.mxu1 %v2928_v60  ;;  %v3012_v59 = vld [vmem:[%s4016_s1 + $0x864] ss:$8 sps:$4 sm:$0xff]   ;;  %v3010_v60 = vld [vmem:[%s4016_s1 + $0x860] ss:$8 sps:$4 sm:$0xff]  }
  0xd5   :  { %2195 = vmatprep.subr.bf16.mxu0 %v2931_v61  ;;  %v3015_v61 = vld [vmem:[%s4016_s1 + $0x874] ss:$8 sps:$4 sm:$0xff]  }
  0xd7   :  { %2032 = vmatpush1.bf16.msra.mxu1 %v2926_v62  ;;  %v3013_v62 = vld [vmem:[%s4016_s1 + $0x870] ss:$8 sps:$4 sm:$0xff]  }
  0xd8   :  { %2196 = vmatpush1.bf16.msra.mxu0 %v2929_v63  ;;  %2033 = vmatprep.subr.bf16.mxu1 %v2934_v0  ;;  %v3018_v63 = vld [vmem:[%s4016_s1 + $0x884] ss:$8 sps:$4 sm:$0xff]   ;;  %v3016_v0 = vld [vmem:[%s4016_s1 + $0x880] ss:$8 sps:$4 sm:$0xff]  }
  0xd9   :  { %2197 = vmatprep.subr.bf16.mxu0 %v2937_v1  ;;  %v3021_v1 = vld [vmem:[%s4016_s1 + $0x894] ss:$8 sps:$4 sm:$0xff]  }
  0xdb   :  { %2034 = vmatpush1.bf16.msra.mxu1 %v2932_v2  ;;  %v3019_v2 = vld [vmem:[%s4016_s1 + $0x890] ss:$8 sps:$4 sm:$0xff]  }
  0xdc   :  { %2198 = vmatpush1.bf16.msra.mxu0 %v2935_v3  ;;  %2035 = vmatprep.subr.bf16.mxu1 %v2940_v4  ;;  %v3024_v3 = vld [vmem:[%s4016_s1 + $0x8a4] ss:$8 sps:$4 sm:$0xff]   ;;  %v3022_v4 = vld [vmem:[%s4016_s1 + $0x8a0] ss:$8 sps:$4 sm:$0xff]  }
  0xdd   :  { %2199 = vmatprep.subr.bf16.mxu0 %v2943_v5  ;;  %v3027_v5 = vld [vmem:[%s4016_s1 + $0x8b4] ss:$8 sps:$4 sm:$0xff]  }
  0xdf   :  { %2036 = vmatpush1.bf16.msra.mxu1 %v2938_v6  ;;  %v3025_v6 = vld [vmem:[%s4016_s1 + $0x8b0] ss:$8 sps:$4 sm:$0xff]  }
  0xe0   :  { %2200 = vmatpush1.bf16.msra.mxu0 %v2941_v7  ;;  %2037 = vmatprep.subr.bf16.mxu1 %v2946_v8  ;;  %v3030_v7 = vld [vmem:[%s4016_s1 + $0x8c4] ss:$8 sps:$4 sm:$0xff]   ;;  %v3028_v8 = vld [vmem:[%s4016_s1 + $0x8c0] ss:$8 sps:$4 sm:$0xff]  }
  0xe1   :  { %2201 = vmatprep.subr.bf16.mxu0 %v2949_v9  ;;  %v3033_v9 = vld [vmem:[%s4016_s1 + $0x8d4] ss:$8 sps:$4 sm:$0xff]  }
  0xe3   :  { %2038 = vmatpush1.bf16.msra.mxu1 %v2944_v10  ;;  %v3031_v10 = vld [vmem:[%s4016_s1 + $0x8d0] ss:$8 sps:$4 sm:$0xff]  }
  0xe4   :  { %2202 = vmatpush1.bf16.msra.mxu0 %v2947_v11  ;;  %2039 = vmatprep.subr.bf16.mxu1 %v2952_v12  ;;  %v3036_v11 = vld [vmem:[%s4016_s1 + $0x8e4] ss:$8 sps:$4 sm:$0xff]   ;;  %v3034_v12 = vld [vmem:[%s4016_s1 + $0x8e0] ss:$8 sps:$4 sm:$0xff]  }
  0xe5   :  { %2203 = vmatprep.subr.bf16.mxu0 %v2955_v13  ;;  %v3039_v13 = vld [vmem:[%s4016_s1 + $0x8f4] ss:$8 sps:$4 sm:$0xff]  }
  0xe7   :  { %2040 = vmatpush1.bf16.msra.mxu1 %v2950_v14  ;;  %v3037_v14 = vld [vmem:[%s4016_s1 + $0x8f0] ss:$8 sps:$4 sm:$0xff]  }
  0xe8   :  { %2204 = vmatpush1.bf16.msra.mxu0 %v2953_v15  ;;  %2041 = vmatprep.subr.bf16.mxu1 %v2958_v18  ;;  %v432_v15 = vrot.slane %v3895_v56, %v3196_v49 }
  0xe9   :  { %2205 = vmatprep.subr.bf16.mxu0 %v2961_v19 }
  0xeb   :  { %2042 = vmatpush1.bf16.msra.mxu1 %v2956_v20 }
  0xec   :  { %2206 = vmatpush1.bf16.msra.mxu0 %v2959_v21  ;;  %2043 = vmatprep.subr.bf16.mxu1 %v2964_v22  ;;  %v309_v22 = vsub.s32 0, %v3178_v42 }
  0xed   :  { %2207 = vmatprep.subr.bf16.mxu0 %v2967_v52  ;;  %v305_v52 = vld [vmem:[%s4018_s2] sm:$0x3] }
  0xef   :  { %2044 = vmatpush1.bf16.msra.mxu1 %v2962_v24  ;;  %v313_v24 = vsub.s32 1, %v3178_v42 }
  0xf0   :  { %2208 = vmatpush1.bf16.msra.mxu0 %v2965_v25  ;;  %2045 = vmatprep.subr.bf16.mxu1 %v2970_v26  ;;  %v310_v25 = vrot.slane %v305_v52, %v309_v22 }
  0xf1   :  { %2209 = vmatprep.subr.bf16.mxu0 %v2973_v27  ;;  %v314_v26 = vrot.slane %v305_v52, %v313_v24 }
  0xf3   :  { %2046 = vmatpush1.bf16.msra.mxu1 %v2968_v28 }
  0xf4   :  { %2210 = vmatpush1.bf16.msra.mxu0 %v2971_v29  ;;  %2047 = vmatprep.subr.bf16.mxu1 %v2976_v30 }
  0xf5   :  { %2211 = vmatprep.subr.bf16.mxu0 %v2979_v31 }
  0xf7   :  { %2048 = vmatpush1.bf16.msra.mxu1 %v2974_v32 }
  0xf8   :  { %2212 = vmatpush1.bf16.msra.mxu0 %v2977_v33  ;;  %2049 = vmatprep.subr.bf16.mxu1 %v2982_v34 }
  0xf9   :  { %2213 = vmatprep.subr.bf16.mxu0 %v2985_v16 }
  0xfb   :  { %2050 = vmatpush1.bf16.msra.mxu1 %v2980_v36 }
  0xfc   :  { %2214 = vmatpush1.bf16.msra.mxu0 %v2983_v37  ;;  %2051 = vmatprep.subr.bf16.mxu1 %v2988_v40 }
  0xfd   :  { %2215 = vmatprep.subr.bf16.mxu0 %v2991_v41 }
  0xff   :  { %2052 = vmatpush1.bf16.msra.mxu1 %v2986_v23 }
 0x100   :  { %2216 = vmatpush1.bf16.msra.mxu0 %v2989_v43 }
 0x101   :  { %2226 = vmatprep.subr.bf16.mxu0 %v2994_v45 }
 0x102   :  { %2054 = vmatmul.mubr.bf16.vlgmr.msra.gmra.mrb[0].mxu1 %v366_v46 }
 0x103   :  { %2218 = vmatmul.mubr.bf16.vlgmr.msra.gmra.mrb[0].mxu0 %v415_v17 }
 0x104   :  { %2227 = vmatpush1.bf16.msra.mxu0 %v2992_v35  ;;  %2258 = vmatprep.mubr.bf16.mxu0 %v439_v47 }
 0x105   :  { %2228 = vmatprep.subr.bf16.mxu0 %v2997_v48 }
 0x108   :  { %2229 = vmatpush1.bf16.msra.mxu0 %v2995_v38 }
 0x109   :  { %2230 = vmatprep.subr.bf16.mxu0 %v3000_v39 }
 0x10c   :  { %2231 = vmatpush1.bf16.msra.mxu0 %v2998_v50 }
 0x10d   :  { %2232 = vmatprep.subr.bf16.mxu0 %v3003_v51 }
 0x110   :  { %2233 = vmatpush1.bf16.msra.mxu0 %v3001_v53 }
 0x111   :  { %2234 = vmatprep.subr.bf16.mxu0 %v3006_v54 }
 0x114   :  { %2235 = vmatpush1.bf16.msra.mxu0 %v3004_v55 }
 0x115   :  { %2236 = vmatprep.subr.bf16.mxu0 %v3009_v57 }
 0x118   :  { %2237 = vmatpush1.bf16.msra.mxu0 %v3007_v58 }
 0x119   :  { %2238 = vmatprep.subr.bf16.mxu0 %v3012_v59 }
 0x11c   :  { %2239 = vmatpush1.bf16.msra.mxu0 %v3010_v60 }
 0x11d   :  { %2240 = vmatprep.subr.bf16.mxu0 %v3015_v61 }
 0x120   :  { %2241 = vmatpush1.bf16.msra.mxu0 %v3013_v62 }
 0x121   :  { %2242 = vmatprep.subr.bf16.mxu0 %v3018_v63 }
 0x124   :  { %2243 = vmatpush1.bf16.msra.mxu0 %v3016_v0 }
 0x125   :  { %2244 = vmatprep.subr.bf16.mxu0 %v3021_v1 }
 0x128   :  { %2245 = vmatpush1.bf16.msra.mxu0 %v3019_v2 }
 0x129   :  { %2246 = vmatprep.subr.bf16.mxu0 %v3024_v3 }
 0x12c   :  { %2247 = vmatpush1.bf16.msra.mxu0 %v3022_v4 }
 0x12d   :  { %2248 = vmatprep.subr.bf16.mxu0 %v3027_v5 }
 0x130   :  { %2249 = vmatpush1.bf16.msra.mxu0 %v3025_v6 }
 0x131   :  { %2250 = vmatprep.subr.bf16.mxu0 %v3030_v7 }
 0x134   :  { %2251 = vmatpush1.bf16.msra.mxu0 %v3028_v8 }
 0x135   :  { %2252 = vmatprep.subr.bf16.mxu0 %v3033_v9 }
 0x138   :  { %2253 = vmatpush1.bf16.msra.mxu0 %v3031_v10 }
 0x139   :  { %2254 = vmatprep.subr.bf16.mxu0 %v3036_v11 }
 0x13c   :  { %2255 = vmatpush1.bf16.msra.mxu0 %v3034_v12 }
 0x13d   :  { %2256 = vmatprep.subr.bf16.mxu0 %v3039_v13 }
 0x140   :  { %2257 = vmatpush1.bf16.msra.mxu0 %v3037_v14 }
 0x143   :  { %2259 = vmatmul.mubr.bf16.vlgmr.msra.gmra.mrb[0].mxu0 %v432_v15 }
 0x1d5   :  { %v2055_v18 = vpop.f32.mrb[0].mxu1 }
 0x1d6   :  { %v2057_v19 = vpop.f32.mrb[1].mxu1  ;;  %v2573_v27 = vadd.f32 %v2055_v18, %v310_v25 }
 0x1d7   :  { %v2059_v20 = vpop.f32.mrb[2].mxu1  ;;  %v2575_v28 = vadd.f32 %v2057_v19, %v314_v26 }
 0x1d8   :  { %v2060_v21 = vpop.f32.mrb[3].mxu1 }
 0x216   :  { %v2260_v29 = vpop.f32.mrb[0].mxu0 }
 0x217   :  { %v2574_v49 = vadd.f32 %v2573_v27, %v2260_v29  ;;  %v2262_v30 = vpop.f32.mrb[1].mxu0 }
 0x218   :  { %v2576_v31 = vadd.f32 %v2575_v28, %v2262_v30  ;;  %v2264_v32 = vpop.f32.mrb[2].mxu0 }
 0x219   :  { %v2265_v33 = vpop.f32.mrb[3].mxu0 }
 0x21a   :  { %v2269_v34 = vcombine.low %v2574_v49, %v2576_v31 }
 0x21c   :  { %2572 = vst.sshfl [vmem:[%s4019_s3] sm:$0x33 pattern:$0x76325410] %v2269_v34 }

// kernel: unet_forward.44
= control target key start
LH: loop header
LB: loop body
LE: loop exit
PB: predicated region body
PF: predicated region fallthrough
CT: control target
= control target key end

     0   :  { %v212_v1 = vmov 0   ;;  %v34_v18 = vlaneseq  ;;  %s293_s1 = inlined_call_operand.vmem [shape: bf16[128,256], index: 1, kind: input, shape index: {}]   ;;  %s294_s0 = inlined_call_operand.vmem [shape: bf16[8,128], index: 0, kind: input, shape index: {}]   ;;  %s295_s2 = inlined_call_operand.vmem [shape: f32[1,256], index: 2, kind: input, shape index: {}]   ;;  %s296_s3 = inlined_call_operand.vmem [shape: f32[8,256], index: 3, kind: output, shape index: {}]  }
   0x1   :  { %v188_v0 = vld [vmem:[%s293_s1 + $0x4] ss:$8 sps:$4 sm:$0xff]   ;;  %156 = vmatprep.mubr.bf16.mxu0 %v212_v1  ;;  %v190_v2 = vld [vmem:[%s293_s1] ss:$8 sps:$4 sm:$0xff]   ;;  %v191_v3 = vld [vmem:[%s293_s1 + $0x14] ss:$8 sps:$4 sm:$0xff]  }
   0x2   :  { %124 = vmatprep.subr.bf16.mxu0 %v188_v0  ;;  %v193_v4 = vld [vmem:[%s293_s1 + $0x10] ss:$8 sps:$4 sm:$0xff]   ;;  %v194_v5 = vld [vmem:[%s293_s1 + $0x24] ss:$8 sps:$4 sm:$0xff]   ;;  %v196_v6 = vld [vmem:[%s293_s1 + $0x20] ss:$8 sps:$4 sm:$0xff]  }
   0x3   :  { %125 = vmatpush1.bf16.msra.mxu0 %v190_v2  ;;  %v197_v7 = vld [vmem:[%s293_s1 + $0x34] ss:$8 sps:$4 sm:$0xff]   ;;  %v199_v8 = vld [vmem:[%s293_s1 + $0x30] ss:$8 sps:$4 sm:$0xff]   ;;  %v200_v9 = vld [vmem:[%s293_s1 + $0x44] ss:$8 sps:$4 sm:$0xff]  }
   0x4   :  { %126 = vmatprep.subr.bf16.mxu0 %v191_v3  ;;  %v202_v10 = vld [vmem:[%s293_s1 + $0x40] ss:$8 sps:$4 sm:$0xff]   ;;  %v203_v11 = vld [vmem:[%s293_s1 + $0x54] ss:$8 sps:$4 sm:$0xff]   ;;  %v205_v12 = vld [vmem:[%s293_s1 + $0x50] ss:$8 sps:$4 sm:$0xff]  }
   0x5   :  { %v206_v13 = vld [vmem:[%s293_s1 + $0x64] ss:$8 sps:$4 sm:$0xff]   ;;  %v208_v14 = vld [vmem:[%s293_s1 + $0x60] ss:$8 sps:$4 sm:$0xff]   ;;  %v209_v15 = vld [vmem:[%s293_s1 + $0x74] ss:$8 sps:$4 sm:$0xff]  }
   0x6   :  { %v211_v16 = vld [vmem:[%s293_s1 + $0x70] ss:$8 sps:$4 sm:$0xff]   ;;  %v15_v17 = vld [vmem:[%s294_s0] sm:$0xf]  ;;  %v35_v19 = vshrl.u32 %v34_v18, 7 }
   0x7   :  { %127 = vmatpush1.bf16.msra.mxu0 %v193_v4  ;;  %v32_v21 = vld [vmem:[%s295_s2] sm:$0x3] }
   0x8   :  { %128 = vmatprep.subr.bf16.mxu0 %v194_v5  ;;  %v36_v20 = vsub.s32 0, %v35_v19  ;;  %v40_v22 = vsub.s32 1, %v35_v19 }
   0xa   :  { %v37_v23 = vrot.slane %v32_v21, %v36_v20  ;;  %v41_v24 = vrot.slane %v32_v21, %v40_v22 }
   0xb   :  { %129 = vmatpush1.bf16.msra.mxu0 %v196_v6 }
   0xc   :  { %130 = vmatprep.subr.bf16.mxu0 %v197_v7 }
   0xf   :  { %131 = vmatpush1.bf16.msra.mxu0 %v199_v8 }
  0x10   :  { %132 = vmatprep.subr.bf16.mxu0 %v200_v9 }
  0x13   :  { %133 = vmatpush1.bf16.msra.mxu0 %v202_v10 }
  0x14   :  { %134 = vmatprep.subr.bf16.mxu0 %v203_v11 }
  0x17   :  { %135 = vmatpush1.bf16.msra.mxu0 %v205_v12 }
  0x18   :  { %136 = vmatprep.subr.bf16.mxu0 %v206_v13 }
  0x1b   :  { %137 = vmatpush1.bf16.msra.mxu0 %v208_v14 }
  0x1c   :  { %138 = vmatprep.subr.bf16.mxu0 %v209_v15 }
  0x1f   :  { %139 = vmatpush1.bf16.msra.mxu0 %v211_v16 }
  0x22   :  { %157 = vmatmul.mubr.bf16.vlgmr.msra.gmra.mrb[0].mxu0 %v15_v17 }
  0xf5   :  { %v158_v25 = vpop.f32.mrb[0].mxu0 }
  0xf6   :  { %v159_v26 = vadd.f32 %v158_v25, %v37_v23  ;;  %v160_v27 = vpop.f32.mrb[1].mxu0 }
  0xf7   :  { %v161_v28 = vadd.f32 %v160_v27, %v41_v24  ;;  %v162_v29 = vpop.f32.mrb[2].mxu0 }
  0xf8   :  { %165 = vst [vmem:[%s296_s3] sm:$0xff] %v159_v26  ;;  %v163_v30 = vpop.f32.mrb[3].mxu0 }
  0xf9   :  { %166 = vst [vmem:[%s296_s3 + $0x8] sm:$0xff] %v161_v28 }

// kernel: unet_forward.42
= control target key start
LH: loop header
LB: loop body
LE: loop exit
PB: predicated region body
PF: predicated region fallthrough
CT: control target
= control target key end

     0   :  { %vm2222_vm0 = vmmov 0   ;;  %s2741_s3 = inlined_call_operand.vmem [shape: bf16[1152,128], index: 3, kind: input, shape index: {}]   ;;  %s2742_s1 = inlined_call_operand.vmem [shape: bf16[8,1152], index: 1, kind: input, shape index: {}]   ;;  %s2743_s2 = inlined_call_operand.vmem [shape: bf16[1152,128], index: 2, kind: input, shape index: {}]   ;;  %s2744_s0 = inlined_call_operand.vmem [shape: bf16[8,1152], index: 0, kind: input, shape index: {}]   ;;  %s2745_s4 = inlined_call_operand.vmem [shape: f32[1,128], index: 4, kind: input, shape index: {}]   ;;  %s2746_s5 = inlined_call_operand.vmem [shape: f32[8,128], index: 5, kind: output, shape index: {}]  }
   0x1   :  { %v2059_v0 = vld [vmem:[%s2741_s3 + $0x40] sm:$0xff]   ;;  %v2063_v4 = vld [vmem:[%s2741_s3 + $0x48] sm:$0xff]   ;;  %v2067_v8 = vld [vmem:[%s2741_s3 + $0x50] sm:$0xff]  }
   0x2   :  { %v2060_v1 = vld [vmem:[%s2741_s3 + $0xc0] sm:$0xff]   ;;  %1823 = vmatprep.subr.bf16.mxu0 %v2059_v0  ;;  %v2064_v5 = vld [vmem:[%s2741_s3 + $0xc8] sm:$0xff]   ;;  %v2068_v9 = vld [vmem:[%s2741_s3 + $0xd0] sm:$0xff]  }
   0x3   :  { %v2061_v2 = vld [vmem:[%s2741_s3] sm:$0xff]   ;;  %1845 = vmatprep.subr.bf16.mxu1 %v2060_v1  ;;  %v2065_v6 = vld [vmem:[%s2741_s3 + $0x8] sm:$0xff]   ;;  %v2069_v10 = vld [vmem:[%s2741_s3 + $0x10] sm:$0xff]  }
   0x4   :  { %v2062_v3 = vld [vmem:[%s2741_s3 + $0x80] sm:$0xff]   ;;  %1824 = vmatpush3.bf16.msra.mxu0 %v2061_v2  ;;  %v2066_v7 = vld [vmem:[%s2741_s3 + $0x88] sm:$0xff]   ;;  %v2070_v11 = vld [vmem:[%s2741_s3 + $0x90] sm:$0xff]  }
   0x5   :  { %1846 = vmatpush3.bf16.msra.mxu1 %v2062_v3  ;;  %1825 = vmatprep.subr.bf16.mxu0 %v2063_v4  ;;  %v2071_v12 = vld [vmem:[%s2741_s3 + $0x58] sm:$0xff]   ;;  %v2075_v16 = vld [vmem:[%s2741_s3 + $0x60] sm:$0xff]   ;;  %v2079_v20 = vld [vmem:[%s2741_s3 + $0x68] sm:$0xff]  }
   0x6   :  { %1847 = vmatprep.subr.bf16.mxu1 %v2064_v5  ;;  %v2072_v13 = vld [vmem:[%s2741_s3 + $0xd8] sm:$0xff]   ;;  %v2076_v17 = vld [vmem:[%s2741_s3 + $0xe0] sm:$0xff]   ;;  %v2080_v21 = vld [vmem:[%s2741_s3 + $0xe8] sm:$0xff]  }
   0x7   :  { %v2073_v14 = vld [vmem:[%s2741_s3 + $0x18] sm:$0xff]   ;;  %v2077_v18 = vld [vmem:[%s2741_s3 + $0x20] sm:$0xff]   ;;  %v2081_v22 = vld [vmem:[%s2741_s3 + $0x28] sm:$0xff]  }
   0x8   :  { %1826 = vmatpush3.bf16.msra.mxu0 %v2065_v6  ;;  %v2074_v15 = vld [vmem:[%s2741_s3 + $0x98] sm:$0xff]   ;;  %v2078_v19 = vld [vmem:[%s2741_s3 + $0xa0] sm:$0xff]   ;;  %v2082_v23 = vld [vmem:[%s2741_s3 + $0xa8] sm:$0xff]  }
   0x9   :  { %1848 = vmatpush3.bf16.msra.mxu1 %v2066_v7  ;;  %1827 = vmatprep.subr.bf16.mxu0 %v2067_v8  ;;  %v2083_v24 = vld [vmem:[%s2741_s3 + $0x70] sm:$0xff]   ;;  %v2087_v28 = vld [vmem:[%s2741_s3 + $0x78] sm:$0xff]   ;;  %v170_v32 = vld [vmem:[%s2742_s1] sm:$0xff] }
   0xa   :  { %1849 = vmatprep.subr.bf16.mxu1 %v2068_v9  ;;  %v2084_v25 = vld [vmem:[%s2741_s3 + $0xf0] sm:$0xff]   ;;  %v2088_v29 = vld [vmem:[%s2741_s3 + $0xf8] sm:$0xff]   ;;  %v171_v33 = vld [vmem:[%s2742_s1 + $0x8] sm:$0xff]  ;;  %v1660_v34 = vcombine.low %v170_v32, %v170_v32  ;;  %v1661_v35 = vcombine.high %v170_v32, %v170_v32 }
   0xb   :  { %v2085_v26 = vld [vmem:[%s2741_s3 + $0x30] sm:$0xff]   ;;  %v2089_v30 = vld [vmem:[%s2741_s3 + $0x38] sm:$0xff]   ;;  %v1662_v36 = vcombine.low %v171_v33, %v171_v33  ;;  %v1663_v37 = vcombine.high %v171_v33, %v171_v33  ;;  %v2095_v38 = vld [vmem:[%s2741_s3 + $0x140] sm:$0xff]  }
   0xc   :  { %1828 = vmatpush3.bf16.msra.mxu0 %v2069_v10  ;;  %v2086_v27 = vld [vmem:[%s2741_s3 + $0xb0] sm:$0xff]   ;;  %v2090_v31 = vld [vmem:[%s2741_s3 + $0xb8] sm:$0xff]   ;;  %v2096_v39 = vld [vmem:[%s2741_s3 + $0x1c0] sm:$0xff]   ;;  %815 = vmatprep.mubr.bf16.mxu0 %v1661_v35 }
   0xd   :  { %1850 = vmatpush3.bf16.msra.mxu1 %v2070_v11  ;;  %1829 = vmatprep.subr.bf16.mxu0 %v2071_v12  ;;  %v2097_v40 = vld [vmem:[%s2741_s3 + $0x100] sm:$0xff]   ;;  %v2099_v42 = vld [vmem:[%s2741_s3 + $0x148] sm:$0xff]   ;;  %v2103_v46 = vld [vmem:[%s2741_s3 + $0x150] sm:$0xff]  }
   0xe   :  { %1851 = vmatprep.subr.bf16.mxu1 %v2072_v13  ;;  %855 = vmatprep.mubr.bf16.mxu1 %v1663_v37  ;;  %v2098_v41 = vld [vmem:[%s2741_s3 + $0x180] sm:$0xff]   ;;  %v2100_v43 = vld [vmem:[%s2741_s3 + $0x1c8] sm:$0xff]   ;;  %v2104_v47 = vld [vmem:[%s2741_s3 + $0x1d0] sm:$0xff]   ;;  %v2221_v13 = vmov 0.0  }
   0xf   :  { %v2101_v44 = vld [vmem:[%s2741_s3 + $0x108] sm:$0xff]   ;;  %v2105_v48 = vld [vmem:[%s2741_s3 + $0x110] sm:$0xff]   ;;  %v2107_v50 = vld [vmem:[%s2741_s3 + $0x158] sm:$0xff]  }
  0x10   :  { %1830 = vmatpush3.bf16.msra.mxu0 %v2073_v14  ;;  %v2102_v45 = vld [vmem:[%s2741_s3 + $0x188] sm:$0xff]   ;;  %v2106_v49 = vld [vmem:[%s2741_s3 + $0x190] sm:$0xff]   ;;  %v2108_v51 = vld [vmem:[%s2741_s3 + $0x1d8] sm:$0xff]  }
  0x11   :  { %1852 = vmatpush3.bf16.msra.mxu1 %v2074_v15  ;;  %1831 = vmatprep.subr.bf16.mxu0 %v2075_v16  ;;  %v2109_v52 = vld [vmem:[%s2741_s3 + $0x118] sm:$0xff]   ;;  %v2111_v54 = vld [vmem:[%s2741_s3 + $0x160] sm:$0xff]   ;;  %v2115_v58 = vld [vmem:[%s2741_s3 + $0x168] sm:$0xff]  }
  0x12   :  { %1853 = vmatprep.subr.bf16.mxu1 %v2076_v17  ;;  %v2110_v53 = vld [vmem:[%s2741_s3 + $0x198] sm:$0xff]   ;;  %v2112_v55 = vld [vmem:[%s2741_s3 + $0x1e0] sm:$0xff]   ;;  %v2116_v59 = vld [vmem:[%s2741_s3 + $0x1e8] sm:$0xff]  }
  0x13   :  { %v2113_v56 = vld [vmem:[%s2741_s3 + $0x120] sm:$0xff]   ;;  %v2117_v60 = vld [vmem:[%s2741_s3 + $0x128] sm:$0xff]   ;;  %v2119_v62 = vld [vmem:[%s2741_s3 + $0x170] sm:$0xff]  }
  0x14   :  { %1832 = vmatpush3.bf16.msra.mxu0 %v2077_v18  ;;  %v2114_v57 = vld [vmem:[%s2741_s3 + $0x1a0] sm:$0xff]   ;;  %v2118_v61 = vld [vmem:[%s2741_s3 + $0x1a8] sm:$0xff]   ;;  %v2120_v63 = vld [vmem:[%s2741_s3 + $0x1f0] sm:$0xff]  }
  0x15   :  { %1854 = vmatpush3.bf16.msra.mxu1 %v2078_v19  ;;  %1833 = vmatprep.subr.bf16.mxu0 %v2079_v20  ;;  %v2121_v0 = vld [vmem:[%s2741_s3 + $0x130] sm:$0xff]   ;;  %v2123_v2 = vld [vmem:[%s2741_s3 + $0x178] sm:$0xff]   ;;  %v2131_v12 = vld [vmem:[%s2743_s2 + $0x40] sm:$0xff]  }
  0x16   :  { %1855 = vmatprep.subr.bf16.mxu1 %v2080_v21  ;;  %v2122_v1 = vld [vmem:[%s2741_s3 + $0x1b0] sm:$0xff]   ;;  %v2124_v3 = vld [vmem:[%s2741_s3 + $0x1f8] sm:$0xff]   ;;  %v2132_v14 = vld [vmem:[%s2741_s3 + $0x200] sm:$0xff]  }
  0x17   :  { %v2125_v4 = vld [vmem:[%s2741_s3 + $0x138] sm:$0xff]   ;;  %v172_v6 = vld [vmem:[%s2742_s1 + $0x10] sm:$0xff]  ;;  %v2133_v15 = vld [vmem:[%s2743_s2] sm:$0xff]  }
  0x18   :  { %1834 = vmatpush3.bf16.msra.mxu0 %v2081_v22  ;;  %v2126_v5 = vld [vmem:[%s2741_s3 + $0x1b8] sm:$0xff]   ;;  %v1664_v7 = vcombine.low %v172_v6, %v172_v6  ;;  %v1665_v8 = vcombine.high %v172_v6, %v172_v6  ;;  %v2134_v16 = vld [vmem:[%s2743_s2 + $0x48] sm:$0xff]   ;;  %v2137_v19 = vld [vmem:[%s2743_s2 + $0x50] sm:$0xff]  }
  0x19   :  { %1856 = vmatpush3.bf16.msra.mxu1 %v2082_v23  ;;  %1835 = vmatprep.subr.bf16.mxu0 %v2083_v24  ;;  %v173_v9 = vld [vmem:[%s2742_s1 + $0x18] sm:$0xff]  ;;  %v2135_v17 = vld [vmem:[%s2741_s3 + $0x208] sm:$0xff]   ;;  %v2138_v20 = vld [vmem:[%s2741_s3 + $0x210] sm:$0xff]  }
  0x1a   :  { %1857 = vmatprep.subr.bf16.mxu1 %v2084_v25  ;;  %v1666_v10 = vcombine.low %v173_v9, %v173_v9  ;;  %v1667_v11 = vcombine.high %v173_v9, %v173_v9  ;;  %v2136_v18 = vld [vmem:[%s2743_s2 + $0x8] sm:$0xff]   ;;  %v2139_v21 = vld [vmem:[%s2743_s2 + $0x10] sm:$0xff]   ;;  %v2140_v22 = vld [vmem:[%s2743_s2 + $0x58] sm:$0xff]  }
  0x1b   :  { %v2141_v23 = vld [vmem:[%s2741_s3 + $0x218] sm:$0xff]   ;;  %v2143_v25 = vld [vmem:[%s2743_s2 + $0x60] sm:$0xff]   ;;  %v2150_v32 = vld [vmem:[%s2741_s3 + $0x230] sm:$0xff]  }
  0x1c   :  { %1836 = vmatpush3.bf16.msra.mxu0 %v2085_v26  ;;  %v2142_v24 = vld [vmem:[%s2743_s2 + $0x18] sm:$0xff]   ;;  %v2144_v26 = vld [vmem:[%s2741_s3 + $0x220] sm:$0xff]   ;;  %v23_v9 = vld [vmem:[%s2744_s0 + $0x10] sm:$0xff] }
  0x1d   :  { %1858 = vmatpush3.bf16.msra.mxu1 %v2086_v27  ;;  %1837 = vmatprep.subr.bf16.mxu0 %v2087_v28  ;;  %v2145_v27 = vld [vmem:[%s2743_s2 + $0x20] sm:$0xff]   ;;  %v2146_v28 = vld [vmem:[%s2743_s2 + $0x68] sm:$0xff]   ;;  %v2153_v37 = vld [vmem:[%s2741_s3 + $0x238] sm:$0xff]  }
  0x1e   :  { %1859 = vmatprep.subr.bf16.mxu1 %v2088_v29  ;;  %v2147_v29 = vld [vmem:[%s2741_s3 + $0x228] sm:$0xff]   ;;  %v21_v33 = vld [vmem:[%s2744_s0] sm:$0xff]  ;;  %v2186_v6 = vld [vmem:[%s2743_s2 + $0xf8] sm:$0xff]  }
  0x1f   :  { %v1742_v35 = vcombine.high %v21_v33, %v21_v33 }
  0x20   :  { %1838 = vmatpush3.bf16.msra.mxu0 %v2089_v30  ;;  %v2148_v30 = vld [vmem:[%s2743_s2 + $0x28] sm:$0xff]  }
  0x21   :  { %1860 = vmatpush3.bf16.msra.mxu1 %v2090_v31  ;;  %1867 = vmatprep.subr.bf16.mxu0 %v2095_v38  ;;  %v2149_v31 = vld [vmem:[%s2743_s2 + $0x70] sm:$0xff]   ;;  %v2154_v38 = vld [vmem:[%s2743_s2 + $0x38] sm:$0xff]  }
  0x22   :  { %1889 = vmatprep.subr.bf16.mxu1 %v2096_v39  ;;  %v2158_v39 = vld [vmem:[%s2743_s2 + $0xc0] sm:$0xff]  }
  0x23   :  { %816 = vmatmul.mubr.bf16.vlgmr.msra.gmra.mrb[0].mxu0 %v1660_v34  ;;  %v2151_v34 = vld [vmem:[%s2743_s2 + $0x30] sm:$0xff]  }
  0x24   :  { %856 = vmatmul.mubr.bf16.vlgmr.msra.gmra.mrb[0].mxu1 %v1662_v36  ;;  %1868 = vmatpush3.bf16.msra.mxu0 %v2097_v40  ;;  %v2152_v36 = vld [vmem:[%s2743_s2 + $0x78] sm:$0xff]   ;;  %v2157_v40 = vld [vmem:[%s2742_s1 + $0x20] ss:$0 sps:$4 sm:$0xff]  }
  0x25   :  { %1890 = vmatpush3.bf16.msra.mxu1 %v2098_v41  ;;  %1869 = vmatprep.subr.bf16.mxu0 %v2099_v42  ;;  %v2160_v41 = vld [vmem:[%s2743_s2 + $0x140] sm:$0xff]  }
  0x26   :  { %1891 = vmatprep.subr.bf16.mxu1 %v2100_v43  ;;  %895 = vmatprep.mubr.bf16.mxu0 %v1665_v8  ;;  %v2159_v42 = vld [vmem:[%s2743_s2 + $0x80] sm:$0xff]   ;;  %v1741_v43 = vcombine.low %v21_v33, %v21_v33  ;;  %v2188_v8 = vld [vmem:[%s2743_s2 + $0x178] sm:$0xff]  }
  0x27   :  { %935 = vmatprep.mubr.bf16.mxu1 %v1667_v11  ;;  %v2187_v11 = vld [vmem:[%s2743_s2 + $0xb8] sm:$0xff]  }
  0x28   :  { %1870 = vmatpush3.bf16.msra.mxu0 %v2101_v44  ;;  %v2161_v44 = vld [vmem:[%s2743_s2 + $0x100] sm:$0xff]  }
  0x29   :  { %1892 = vmatpush3.bf16.msra.mxu1 %v2102_v45  ;;  %1871 = vmatprep.subr.bf16.mxu0 %v2103_v46  ;;  %v2162_v45 = vld [vmem:[%s2743_s2 + $0xc8] sm:$0xff]  }
  0x2a   :  { %1893 = vmatprep.subr.bf16.mxu1 %v2104_v47  ;;  %v2164_v46 = vld [vmem:[%s2743_s2 + $0x148] sm:$0xff]  }
  0x2b   :  { %v2163_v47 = vld [vmem:[%s2743_s2 + $0x88] sm:$0xff]  }
  0x2c   :  { %1872 = vmatpush3.bf16.msra.mxu0 %v2105_v48  ;;  %v2165_v48 = vld [vmem:[%s2743_s2 + $0x108] sm:$0xff]  }
  0x2d   :  { %1894 = vmatpush3.bf16.msra.mxu1 %v2106_v49  ;;  %1873 = vmatprep.subr.bf16.mxu0 %v2107_v50  ;;  %v2166_v49 = vld [vmem:[%s2743_s2 + $0xd0] sm:$0xff]  }
  0x2e   :  { %1895 = vmatprep.subr.bf16.mxu1 %v2108_v51  ;;  %v2168_v50 = vld [vmem:[%s2743_s2 + $0x150] sm:$0xff]  }
  0x2f   :  { %v2167_v51 = vld [vmem:[%s2743_s2 + $0x90] sm:$0xff]  }
  0x30   :  { %1874 = vmatpush3.bf16.msra.mxu0 %v2109_v52  ;;  %v2169_v52 = vld [vmem:[%s2743_s2 + $0x110] sm:$0xff]  }
  0x31   :  { %1896 = vmatpush3.bf16.msra.mxu1 %v2110_v53  ;;  %1875 = vmatprep.subr.bf16.mxu0 %v2111_v54  ;;  %v2170_v53 = vld [vmem:[%s2743_s2 + $0xd8] sm:$0xff]  }
  0x32   :  { %1897 = vmatprep.subr.bf16.mxu1 %v2112_v55  ;;  %v2172_v54 = vld [vmem:[%s2743_s2 + $0x158] sm:$0xff]  }
  0x33   :  { %v2171_v55 = vld [vmem:[%s2743_s2 + $0x98] sm:$0xff]  }
  0x34   :  { %1876 = vmatpush3.bf16.msra.mxu0 %v2113_v56  ;;  %v2173_v56 = vld [vmem:[%s2743_s2 + $0x118] sm:$0xff]  }
  0x35   :  { %1898 = vmatpush3.bf16.msra.mxu1 %v2114_v57  ;;  %1877 = vmatprep.subr.bf16.mxu0 %v2115_v58  ;;  %v2174_v57 = vld [vmem:[%s2743_s2 + $0xe0] sm:$0xff]  }
  0x36   :  { %1899 = vmatprep.subr.bf16.mxu1 %v2116_v59  ;;  %v2176_v58 = vld [vmem:[%s2743_s2 + $0x160] sm:$0xff]  }
  0x37   :  { %v2175_v59 = vld [vmem:[%s2743_s2 + $0xa0] sm:$0xff]  }
  0x38   :  { %1878 = vmatpush3.bf16.msra.mxu0 %v2117_v60  ;;  %v2177_v60 = vld [vmem:[%s2743_s2 + $0x120] sm:$0xff]  }
  0x39   :  { %1900 = vmatpush3.bf16.msra.mxu1 %v2118_v61  ;;  %1879 = vmatprep.subr.bf16.mxu0 %v2119_v62  ;;  %v2178_v61 = vld [vmem:[%s2743_s2 + $0xe8] sm:$0xff]  }
  0x3a   :  { %1901 = vmatprep.subr.bf16.mxu1 %v2120_v63  ;;  %v2180_v62 = vld [vmem:[%s2743_s2 + $0x168] sm:$0xff]  }
  0x3b   :  { %v2179_v63 = vld [vmem:[%s2743_s2 + $0xa8] sm:$0xff]  }
  0x3c   :  { %1880 = vmatpush3.bf16.msra.mxu0 %v2121_v0  ;;  %v2181_v0 = vld [vmem:[%s2743_s2 + $0x128] sm:$0xff]  }
  0x3d   :  { %1902 = vmatpush3.bf16.msra.mxu1 %v2122_v1  ;;  %1881 = vmatprep.subr.bf16.mxu0 %v2123_v2  ;;  %v2182_v1 = vld [vmem:[%s2743_s2 + $0xf0] sm:$0xff]  }
  0x3e   :  { %1903 = vmatprep.subr.bf16.mxu1 %v2124_v3  ;;  %v2184_v2 = vld [vmem:[%s2743_s2 + $0x170] sm:$0xff]  }
  0x3f   :  { %v2183_v3 = vld [vmem:[%s2743_s2 + $0xb0] sm:$0xff]  }
  0x40   :  { %1882 = vmatpush3.bf16.msra.mxu0 %v2125_v4  ;;  %v2185_v4 = vld [vmem:[%s2743_s2 + $0x130] sm:$0xff]  }
  0x41   :  { %1904 = vmatpush3.bf16.msra.mxu1 %v2126_v5  ;;  %2017 = vmatprep.subr.bf16.mxu0 %v2221_v13  ;;  %v22_v5 = vld [vmem:[%s2744_s0 + $0x8] sm:$0xff] }
  0x42   :  { %1920 = vmatprep.subr.bf16.mxu1 %v2131_v12  ;;  %v2191_v12 = vld [vmem:[%s2743_s2 + $0x138] sm:$0xff]  }
  0x43   :  { %896 = vmatmul.mubr.bf16.vlgmr.msra.gmra.mrb[4].mxu0 %v1664_v7  ;;  %v1744_v7 = vcombine.high %v22_v5, %v22_v5 }
  0x44   :  { %936 = vmatmul.mubr.bf16.vlgmr.msra.gmra.mrb[4].mxu1 %v1666_v10  ;;  %2018 = vmatpush3.bf16.msra.mxu0 %v2132_v14  ;;  %v1746_v10 = vcombine.high %v23_v9, %v23_v9  ;;  %v2192_v14 = vld [vmem:[%s2743_s2 + $0x1c0] sm:$0xff]  }
  0x45   :  { %1921 = vmatpush3.bf16.msra.mxu1 %v2133_v15  ;;  %2019 = vmatprep.subr.bf16.mxu0 %v2221_v13  ;;  %v1743_v15 = vcombine.low %v22_v5, %v22_v5 }
  0x46   :  { %1922 = vmatprep.subr.bf16.mxu1 %v2134_v16  ;;  %2033 = vmatprep.mubr.msk.bf16.mxu0 %vm2222_vm0, %v2221_v13  ;;  %v1745_v16 = vcombine.low %v23_v9, %v23_v9 }
  0x47   :  { %1479 = vmatprep.mubr.bf16.mxu1 %v1742_v35  ;;  %v2211_v35 = vld [vmem:[%s2743_s2 + $0x228] sm:$0xff]  }
  0x48   :  { %2020 = vmatpush3.bf16.msra.mxu0 %v2135_v17  ;;  %v2195_v17 = vld [vmem:[%s2743_s2 + $0x180] sm:$0xff]  }
  0x49   :  { %1923 = vmatpush3.bf16.msra.mxu1 %v2136_v18  ;;  %2021 = vmatprep.subr.bf16.mxu0 %v2221_v13  ;;  %v2196_v18 = vld [vmem:[%s2743_s2 + $0x200] sm:$0xff]  }
  0x4a   :  { %1924 = vmatprep.subr.bf16.mxu1 %v2137_v19  ;;  %v2197_v19 = vld [vmem:[%s2743_s2 + $0x1c8] sm:$0xff]  }
  0x4c   :  { %2022 = vmatpush3.bf16.msra.mxu0 %v2138_v20  ;;  %v2198_v20 = vld [vmem:[%s2743_s2 + $0x188] sm:$0xff]  }
  0x4d   :  { %1925 = vmatpush3.bf16.msra.mxu1 %v2139_v21  ;;  %2023 = vmatprep.subr.bf16.mxu0 %v2221_v13  ;;  %v2199_v21 = vld [vmem:[%s2743_s2 + $0x208] sm:$0xff]  }
  0x4e   :  { %1926 = vmatprep.subr.bf16.mxu1 %v2140_v22  ;;  %v2200_v22 = vld [vmem:[%s2743_s2 + $0x1d0] sm:$0xff]  }
  0x50   :  { %2024 = vmatpush3.bf16.msra.mxu0 %v2141_v23  ;;  %v2201_v23 = vld [vmem:[%s2743_s2 + $0x190] sm:$0xff]  }
  0x51   :  { %1927 = vmatpush3.bf16.msra.mxu1 %v2142_v24  ;;  %2025 = vmatprep.subr.bf16.mxu0 %v2221_v13  ;;  %v2202_v24 = vld [vmem:[%s2743_s2 + $0x210] sm:$0xff]  }
  0x52   :  { %1928 = vmatprep.subr.bf16.mxu1 %v2143_v25  ;;  %v2203_v25 = vld [vmem:[%s2743_s2 + $0x1d8] sm:$0xff]  }
  0x54   :  { %2026 = vmatpush3.bf16.msra.mxu0 %v2144_v26  ;;  %v2204_v26 = vld [vmem:[%s2743_s2 + $0x198] sm:$0xff]  }
  0x55   :  { %1929 = vmatpush3.bf16.msra.mxu1 %v2145_v27  ;;  %2027 = vmatprep.subr.bf16.mxu0 %v2221_v13  ;;  %v2205_v27 = vld [vmem:[%s2743_s2 + $0x218] sm:$0xff]  }
  0x56   :  { %1930 = vmatprep.subr.bf16.mxu1 %v2146_v28  ;;  %v2206_v28 = vld [vmem:[%s2743_s2 + $0x1e0] sm:$0xff]  }
  0x58   :  { %2028 = vmatpush3.bf16.msra.mxu0 %v2147_v29  ;;  %v2207_v29 = vld [vmem:[%s2743_s2 + $0x1a0] sm:$0xff]  }
  0x59   :  { %1931 = vmatpush3.bf16.msra.mxu1 %v2148_v30  ;;  %2029 = vmatprep.subr.bf16.mxu0 %v2221_v13  ;;  %v2208_v30 = vld [vmem:[%s2743_s2 + $0x220] sm:$0xff]  }
  0x5a   :  { %1932 = vmatprep.subr.bf16.mxu1 %v2149_v31  ;;  %v24_v31 = vld [vmem:[%s2744_s0 + $0x18] sm:$0xff] }
  0x5b   :  { %v1748_v33 = vcombine.high %v24_v31, %v24_v31 }
  0x5c   :  { %2030 = vmatpush3.bf16.msra.mxu0 %v2150_v32  ;;  %v2209_v32 = vld [vmem:[%s2743_s2 + $0x1e8] sm:$0xff]  }
  0x5d   :  { %1933 = vmatpush3.bf16.msra.mxu1 %v2151_v34  ;;  %2031 = vmatprep.subr.bf16.mxu0 %v2221_v13  ;;  %v2210_v34 = vld [vmem:[%s2743_s2 + $0x1a8] sm:$0xff]  }
  0x5e   :  { %1934 = vmatprep.subr.bf16.mxu1 %v2152_v36  ;;  %v2212_v36 = vld [vmem:[%s2743_s2 + $0x1f0] sm:$0xff]  }
  0x60   :  { %2032 = vmatpush3.bf16.msra.mxu0 %v2153_v37  ;;  %v2213_v37 = vld [vmem:[%s2743_s2 + $0x1b0] sm:$0xff]  }
  0x61   :  { %1935 = vmatpush3.bf16.msra.mxu1 %v2154_v38  ;;  %1942 = vmatprep.subr.bf16.mxu0 %v2158_v39  ;;  %v2214_v38 = vld [vmem:[%s2743_s2 + $0x230] sm:$0xff]   ;;  %v2215_v39 = vld [vmem:[%s2743_s2 + $0x1f8] sm:$0xff]  }
  0x62   :  { %1964 = vmatprep.subr.bf16.mxu1 %v2160_v41  ;;  %v2219_v41 = vld [vmem:[%s2743_s2 + $0x238] sm:$0xff]  }
  0x63   :  { %2034 = vmatmul.mubr.bf16.vlgmr.msra.gmra.mrb[8].mxu0 %v2157_v40  ;;  %v2216_v40 = vld [vmem:[%s2743_s2 + $0x1b8] sm:$0xff]  }
  0x64   :  { %1480 = vmatmul.mubr.bf16.vlgmr.msra.gmra.mrb[8].mxu1 %v1741_v43  ;;  %1943 = vmatpush3.bf16.msra.mxu0 %v2159_v42  ;;  %v1747_v42 = vcombine.low %v24_v31, %v24_v31  ;;  %v2220_v43 = vld [vmem:[%s2744_s0 + $0x20] ss:$0 sps:$4 sm:$0xff]  }
  0x65   :  { %1965 = vmatpush3.bf16.msra.mxu1 %v2161_v44  ;;  %1944 = vmatprep.subr.bf16.mxu0 %v2162_v45 }
  0x66   :  { %1966 = vmatprep.subr.bf16.mxu1 %v2164_v46  ;;  %1519 = vmatprep.mubr.bf16.mxu0 %v1744_v7 }
  0x67   :  { %1559 = vmatprep.mubr.bf16.mxu1 %v1746_v10 }
  0x68   :  { %1945 = vmatpush3.bf16.msra.mxu0 %v2163_v47 }
  0x69   :  { %1967 = vmatpush3.bf16.msra.mxu1 %v2165_v48  ;;  %1946 = vmatprep.subr.bf16.mxu0 %v2166_v49 }
  0x6a   :  { %1968 = vmatprep.subr.bf16.mxu1 %v2168_v50 }
  0x6c   :  { %1947 = vmatpush3.bf16.msra.mxu0 %v2167_v51 }
  0x6d   :  { %1969 = vmatpush3.bf16.msra.mxu1 %v2169_v52  ;;  %1948 = vmatprep.subr.bf16.mxu0 %v2170_v53 }
  0x6e   :  { %1970 = vmatprep.subr.bf16.mxu1 %v2172_v54 }
  0x70   :  { %1949 = vmatpush3.bf16.msra.mxu0 %v2171_v55 }
  0x71   :  { %1971 = vmatpush3.bf16.msra.mxu1 %v2173_v56  ;;  %1950 = vmatprep.subr.bf16.mxu0 %v2174_v57 }
  0x72   :  { %1972 = vmatprep.subr.bf16.mxu1 %v2176_v58 }
  0x74   :  { %1951 = vmatpush3.bf16.msra.mxu0 %v2175_v59 }
  0x75   :  { %1973 = vmatpush3.bf16.msra.mxu1 %v2177_v60  ;;  %1952 = vmatprep.subr.bf16.mxu0 %v2178_v61 }
  0x76   :  { %1974 = vmatprep.subr.bf16.mxu1 %v2180_v62 }
  0x78   :  { %1953 = vmatpush3.bf16.msra.mxu0 %v2179_v63 }
  0x79   :  { %1975 = vmatpush3.bf16.msra.mxu1 %v2181_v0  ;;  %1954 = vmatprep.subr.bf16.mxu0 %v2182_v1 }
  0x7a   :  { %1976 = vmatprep.subr.bf16.mxu1 %v2184_v2 }
  0x7c   :  { %1955 = vmatpush3.bf16.msra.mxu0 %v2183_v3 }
  0x7d   :  { %1977 = vmatpush3.bf16.msra.mxu1 %v2185_v4  ;;  %1956 = vmatprep.subr.bf16.mxu0 %v2186_v6 }
  0x7e   :  { %1978 = vmatprep.subr.bf16.mxu1 %v2188_v8 }
  0x80   :  { %1957 = vmatpush3.bf16.msra.mxu0 %v2187_v11 }
  0x81   :  { %1979 = vmatpush3.bf16.msra.mxu1 %v2191_v12  ;;  %1986 = vmatprep.subr.bf16.mxu0 %v2192_v14 }
  0x82   :  { %2037 = vmatprep.subr.bf16.mxu1 %v2221_v13 }
  0x83   :  { %1520 = vmatmul.mubr.bf16.vlgmr.msra.gmra.mrb[12].mxu0 %v1743_v15 }
  0x84   :  { %1560 = vmatmul.mubr.bf16.vlgmr.msra.gmra.mrb[12].mxu1 %v1745_v16  ;;  %1987 = vmatpush3.bf16.msra.mxu0 %v2195_v17 }
  0x85   :  { %2038 = vmatpush3.bf16.msra.mxu1 %v2196_v18  ;;  %1988 = vmatprep.subr.bf16.mxu0 %v2197_v19 }
  0x86   :  { %2039 = vmatprep.subr.bf16.mxu1 %v2221_v13  ;;  %2053 = vmatprep.mubr.msk.bf16.mxu1 %vm2222_vm0, %v2221_v13 }
  0x87   :  { %1599 = vmatprep.mubr.bf16.mxu0 %v1748_v33 }
  0x88   :  { %1989 = vmatpush3.bf16.msra.mxu0 %v2198_v20 }
  0x89   :  { %2040 = vmatpush3.bf16.msra.mxu1 %v2199_v21  ;;  %1990 = vmatprep.subr.bf16.mxu0 %v2200_v22 }
  0x8a   :  { %2041 = vmatprep.subr.bf16.mxu1 %v2221_v13 }
  0x8c   :  { %1991 = vmatpush3.bf16.msra.mxu0 %v2201_v23 }
  0x8d   :  { %2042 = vmatpush3.bf16.msra.mxu1 %v2202_v24  ;;  %1992 = vmatprep.subr.bf16.mxu0 %v2203_v25 }
  0x8e   :  { %2043 = vmatprep.subr.bf16.mxu1 %v2221_v13 }
  0x90   :  { %1993 = vmatpush3.bf16.msra.mxu0 %v2204_v26 }
  0x91   :  { %2044 = vmatpush3.bf16.msra.mxu1 %v2205_v27  ;;  %1994 = vmatprep.subr.bf16.mxu0 %v2206_v28 }
  0x92   :  { %2045 = vmatprep.subr.bf16.mxu1 %v2221_v13 }
  0x94   :  { %1995 = vmatpush3.bf16.msra.mxu0 %v2207_v29 }
  0x95   :  { %2046 = vmatpush3.bf16.msra.mxu1 %v2208_v30  ;;  %1996 = vmatprep.subr.bf16.mxu0 %v2209_v32 }
  0x96   :  { %2047 = vmatprep.subr.bf16.mxu1 %v2221_v13 }
  0x98   :  { %1997 = vmatpush3.bf16.msra.mxu0 %v2210_v34 }
  0x99   :  { %2048 = vmatpush3.bf16.msra.mxu1 %v2211_v35  ;;  %1998 = vmatprep.subr.bf16.mxu0 %v2212_v36  ;;  %v1822_v36 = vld [vmem:[%s2745_s4] ss:$0 sm:$0xff] }
  0x9a   :  { %2049 = vmatprep.subr.bf16.mxu1 %v2221_v13 }
  0x9c   :  { %1999 = vmatpush3.bf16.msra.mxu0 %v2213_v37 }
  0x9d   :  { %2050 = vmatpush3.bf16.msra.mxu1 %v2214_v38  ;;  %2000 = vmatprep.subr.bf16.mxu0 %v2215_v39 }
  0x9e   :  { %2051 = vmatprep.subr.bf16.mxu1 %v2221_v13 }
  0xa0   :  { %2001 = vmatpush3.bf16.msra.mxu0 %v2216_v40 }
  0xa1   :  { %2052 = vmatpush3.bf16.msra.mxu1 %v2219_v41 }
  0xa3   :  { %1600 = vmatmul.mubr.bf16.vlgmr.msra.gmra.mrb[16].mxu0 %v1747_v42 }
  0xa4   :  { %2054 = vmatmul.mubr.bf16.vlgmr.msra.gmra.mrb[16].mxu1 %v2220_v43 }
  0xf6   :  { %v1839_v44 = vpop.f32.mrb[0].mxu0 }
  0xf7   :  { %v1861_v45 = vpop.f32.mrb[0].mxu1  ;;  %v1840_v46 = vpop.f32.mrb[1].mxu0 }
  0xf8   :  { %v1862_v47 = vpop.f32.mrb[1].mxu1  ;;  %v1841_v48 = vadd.f32 %v1840_v46, %v1839_v44  ;;  %v1842_v50 = vpop.f32.mrb[2].mxu0 }
  0xf9   :  { %v1863_v49 = vadd.f32 %v1862_v47, %v1861_v45  ;;  %v1864_v51 = vpop.f32.mrb[2].mxu1  ;;  %v1843_v52 = vpop.f32.mrb[3].mxu0 }
  0xfa   :  { %v1865_v53 = vpop.f32.mrb[3].mxu1 }
  0xfb   :  { %v858_v13 = vadd.f32 %v1863_v49, %v1841_v48 }
 0x116   :  { %v1883_v54 = vpop.f32.mrb[4].mxu0 }
 0x117   :  { %v1905_v55 = vpop.f32.mrb[4].mxu1  ;;  %v1884_v56 = vpop.f32.mrb[5].mxu0 }
 0x118   :  { %v1906_v57 = vpop.f32.mrb[5].mxu1  ;;  %v1885_v58 = vadd.f32 %v1884_v56, %v1883_v54  ;;  %v1886_v59 = vpop.f32.mrb[6].mxu0 }
 0x119   :  { %v1907_v60 = vadd.f32 %v1906_v57, %v1905_v55  ;;  %v1908_v61 = vpop.f32.mrb[6].mxu1  ;;  %v1887_v62 = vpop.f32.mrb[7].mxu0 }
 0x11a   :  { %v1909_v63 = vpop.f32.mrb[7].mxu1  ;;  %v898_v0 = vadd.f32 %v1885_v58, %v858_v13 }
 0x11c   :  { %v938_v1 = vadd.f32 %v1907_v60, %v898_v0 }
 0x136   :  { %v977_v2 = vpop.f32.mrb[8].mxu0 }
 0x137   :  { %v1936_v3 = vpop.f32.mrb[8].mxu1  ;;  %v978_v4 = vadd.f32 %v977_v2, %v938_v1  ;;  %v2035_v5 = vpop.f32.mrb[9].mxu0 }
 0x138   :  { %v1937_v6 = vpop.f32.mrb[9].mxu1  ;;  %v980_v8 = vpop.f32.mrb[10].mxu0 }
 0x139   :  { %v1938_v7 = vadd.f32 %v1937_v6, %v1936_v3  ;;  %v1939_v9 = vpop.f32.mrb[10].mxu1  ;;  %v2036_v10 = vpop.f32.mrb[11].mxu0 }
 0x13a   :  { %v1940_v11 = vpop.f32.mrb[11].mxu1 }
 0x13b   :  { %v1482_v12 = vadd.f32 %v1938_v7, %v978_v4 }
 0x156   :  { %v1958_v14 = vpop.f32.mrb[12].mxu0 }
 0x157   :  { %v1980_v15 = vpop.f32.mrb[12].mxu1  ;;  %v1959_v16 = vpop.f32.mrb[13].mxu0 }
 0x158   :  { %v1981_v17 = vpop.f32.mrb[13].mxu1  ;;  %v1960_v18 = vadd.f32 %v1959_v16, %v1958_v14  ;;  %v1961_v19 = vpop.f32.mrb[14].mxu0 }
 0x159   :  { %v1982_v20 = vadd.f32 %v1981_v17, %v1980_v15  ;;  %v1983_v21 = vpop.f32.mrb[14].mxu1  ;;  %v1962_v22 = vpop.f32.mrb[15].mxu0 }
 0x15a   :  { %v1984_v23 = vpop.f32.mrb[15].mxu1  ;;  %v1522_v24 = vadd.f32 %v1960_v18, %v1482_v12 }
 0x15c   :  { %v1562_v25 = vadd.f32 %v1982_v20, %v1522_v24 }
 0x176   :  { %v2002_v26 = vpop.f32.mrb[16].mxu0 }
 0x177   :  { %v1641_v27 = vpop.f32.mrb[16].mxu1  ;;  %v2003_v28 = vpop.f32.mrb[17].mxu0 }
 0x178   :  { %v2055_v29 = vpop.f32.mrb[17].mxu1  ;;  %v2004_v30 = vadd.f32 %v2003_v28, %v2002_v26  ;;  %v2005_v31 = vpop.f32.mrb[18].mxu0 }
 0x179   :  { %v1644_v32 = vpop.f32.mrb[18].mxu1  ;;  %v2006_v33 = vpop.f32.mrb[19].mxu0 }
 0x17a   :  { %v2056_v34 = vpop.f32.mrb[19].mxu1  ;;  %v1602_v35 = vadd.f32 %v2004_v30, %v1562_v25 }
 0x17c   :  { %v1642_v37 = vadd.f32 %v1641_v27, %v1602_v35 }
 0x17e   :  { %v1654_v38 = vadd.f32 %v1822_v36, %v1642_v37 }
 0x180   :  { %1655 = vst [vmem:[%s2746_s5] sm:$0xff] %v1654_v38 }

// kernel: unet_forward.47
= control target key start
LH: loop header
LB: loop body
LE: loop exit
PB: predicated region body
PF: predicated region fallthrough
CT: control target
= control target key end

     0   :  { %vm68_vm0 = vcmask 523264   ;;  %s218_s1 = inlined_call_operand.vmem [shape: bf16[64,128], index: 1, kind: input, shape index: {}]   ;;  %s219_s0 = inlined_call_operand.vmem [shape: bf16[32,64], index: 0, kind: input, shape index: {}]   ;;  %s220_s2 = inlined_call_operand.vmem [shape: f32[1,128], index: 2, kind: input, shape index: {}]   ;;  %s221_s3 = inlined_call_operand.vmem [shape: f32[32,128], index: 3, kind: output, shape index: {}]  }
   0x1   :  { %v159_v0 = vld [vmem:[%s218_s1] sm:$0xff]   ;;  %v160_v1 = vld [vmem:[%s218_s1 + $0x8] sm:$0xff]   ;;  %v161_v2 = vld [vmem:[%s218_s1 + $0x10] sm:$0xff]  }
   0x2   :  { %147 = vmatprep.subr.bf16.mxu0 %v159_v0  ;;  %v163_v3 = vld [vmem:[%s219_s0] sm:$0xff]   ;;  %v162_v4 = vld [vmem:[%s218_s1 + $0x18] sm:$0xff]   ;;  %v164_v5 = vld [vmem:[%s219_s0 + $0x8] sm:$0xff]  }
   0x3   :  { %148 = vmatpush3.bf16.msra.mxu0 %v159_v0  ;;  %155 = vmatprep.mubr.msk.bf16.mxu0 %vm68_vm0, %v163_v3  ;;  %v132_v6 = vld [vmem:[%s220_s2] ss:$0 sm:$0xff] }
   0x4   :  { %149 = vmatprep.subr.bf16.mxu0 %v160_v1 }
   0x7   :  { %150 = vmatpush3.bf16.msra.mxu0 %v160_v1 }
   0x8   :  { %151 = vmatprep.subr.bf16.mxu0 %v161_v2 }
   0xb   :  { %152 = vmatpush3.bf16.msra.mxu0 %v161_v2 }
   0xc   :  { %153 = vmatprep.subr.bf16.mxu0 %v162_v4 }
   0xf   :  { %154 = vmatpush3.bf16.msra.mxu0 %v162_v4 }
  0x12   :  { %156 = vmatmul.mubr.msk.bf16.vlgmr.msra.gmra.mrb[0].mxu0 %vm68_vm0, %v164_v5 }
  0xe5   :  { %v157_v7 = vpop.f32.mrb[0].mxu0 }
  0xe6   :  { %v118_v8 = vadd.f32 %v157_v7, %v132_v6  ;;  %v109_v9 = vpop.f32.mrb[1].mxu0 }
  0xe7   :  { %v110_v10 = vadd.f32 %v132_v6, %v109_v9  ;;  %v158_v11 = vpop.f32.mrb[2].mxu0 }
  0xe8   :  { %126 = vst [vmem:[%s221_s3 + $0x10] sm:$0xff] %v118_v8  ;;  %v121_v12 = vadd.f32 %v158_v11, %v132_v6  ;;  %v112_v13 = vpop.f32.mrb[3].mxu0 }
  0xe9   :  { %124 = vst [vmem:[%s221_s3] sm:$0xff] %v110_v10  ;;  %v113_v14 = vadd.f32 %v132_v6, %v112_v13 }
  0xea   :  { %127 = vst [vmem:[%s221_s3 + $0x18] sm:$0xff] %v121_v12 }
  0xeb   :  { %125 = vst [vmem:[%s221_s3 + $0x8] sm:$0xff] %v113_v14 }

// kernel: unet_forward.45
= control target key start
LH: loop header
LB: loop body
LE: loop exit
PB: predicated region body
PF: predicated region fallthrough
CT: control target
= control target key end

     0   :  { %vm455_vm0 = vcmask 523264   ;;  %s1737_s3 = inlined_call_operand.vmem [shape: bf16[576,64], index: 3, kind: input, shape index: {}]   ;;  %s1738_s1 = inlined_call_operand.vmem [shape: bf16[32,576], index: 1, kind: input, shape index: {}]   ;;  %s1739_s2 = inlined_call_operand.vmem [shape: bf16[576,64], index: 2, kind: input, shape index: {}]   ;;  %s1740_s0 = inlined_call_operand.vmem [shape: bf16[32,576], index: 0, kind: input, shape index: {}]   ;;  %s1741_s4 = inlined_call_operand.vmem [shape: f32[1,64], index: 4, kind: input, shape index: {}]   ;;  %s1742_s5 = inlined_call_operand.vmem [shape: f32[32,64], index: 5, kind: output, shape index: {}]  }
   0x1   :  { %v1308_v0 = vld [vmem:[%s1737_s3 + $0x40] sm:$0xff]   ;;  %v1312_v4 = vld [vmem:[%s1737_s3 + $0x48] sm:$0xff]   ;;  %v1316_v8 = vld [vmem:[%s1737_s3 + $0x50] sm:$0xff]  }
   0x2   :  { %v1309_v1 = vld [vmem:[%s1737_s3 + $0xc0] sm:$0xff]   ;;  %1144 = vmatprep.subr.bf16.mxu0 %v1308_v0  ;;  %v1313_v5 = vld [vmem:[%s1737_s3 + $0xc8] sm:$0xff]   ;;  %v1317_v9 = vld [vmem:[%s1737_s3 + $0xd0] sm:$0xff]  }
   0x3   :  { %v1310_v2 = vld [vmem:[%s1737_s3] sm:$0xff]   ;;  %1172 = vmatprep.subr.bf16.mxu1 %v1309_v1  ;;  %v1314_v6 = vld [vmem:[%s1737_s3 + $0x8] sm:$0xff]   ;;  %v1318_v10 = vld [vmem:[%s1737_s3 + $0x10] sm:$0xff]  }
   0x4   :  { %v1311_v3 = vld [vmem:[%s1737_s3 + $0x80] sm:$0xff]   ;;  %1145 = vmatpush3.bf16.msra.mxu0 %v1310_v2  ;;  %v1315_v7 = vld [vmem:[%s1737_s3 + $0x88] sm:$0xff]   ;;  %v1319_v11 = vld [vmem:[%s1737_s3 + $0x90] sm:$0xff]  }
   0x5   :  { %1173 = vmatpush3.bf16.msra.mxu1 %v1311_v3  ;;  %1146 = vmatprep.subr.bf16.mxu0 %v1312_v4  ;;  %v1320_v12 = vld [vmem:[%s1737_s3 + $0x58] sm:$0xff]   ;;  %v1324_v16 = vld [vmem:[%s1737_s3 + $0x60] sm:$0xff]   ;;  %v1328_v20 = vld [vmem:[%s1737_s3 + $0x68] sm:$0xff]  }
   0x6   :  { %1174 = vmatprep.subr.bf16.mxu1 %v1313_v5  ;;  %v1321_v13 = vld [vmem:[%s1737_s3 + $0xd8] sm:$0xff]   ;;  %v1325_v17 = vld [vmem:[%s1737_s3 + $0xe0] sm:$0xff]   ;;  %v1329_v21 = vld [vmem:[%s1737_s3 + $0xe8] sm:$0xff]  }
   0x7   :  { %v1322_v14 = vld [vmem:[%s1737_s3 + $0x18] sm:$0xff]   ;;  %v1326_v18 = vld [vmem:[%s1737_s3 + $0x20] sm:$0xff]   ;;  %v1330_v22 = vld [vmem:[%s1737_s3 + $0x28] sm:$0xff]  }
   0x8   :  { %1147 = vmatpush3.bf16.msra.mxu0 %v1314_v6  ;;  %v1323_v15 = vld [vmem:[%s1737_s3 + $0x98] sm:$0xff]   ;;  %v1327_v19 = vld [vmem:[%s1737_s3 + $0xa0] sm:$0xff]   ;;  %v1331_v23 = vld [vmem:[%s1737_s3 + $0xa8] sm:$0xff]  }
   0x9   :  { %1175 = vmatpush3.bf16.msra.mxu1 %v1315_v7  ;;  %1148 = vmatprep.subr.bf16.mxu0 %v1316_v8  ;;  %v1332_v24 = vld [vmem:[%s1737_s3 + $0x70] sm:$0xff]   ;;  %v1336_v28 = vld [vmem:[%s1737_s3 + $0x78] sm:$0xff]   ;;  %v1345_v35 = vld [vmem:[%s1738_s1 + $0xc] ss:$20 sps:$4 sm:$0xff]  }
   0xa   :  { %1176 = vmatprep.subr.bf16.mxu1 %v1317_v9  ;;  %v1333_v25 = vld [vmem:[%s1737_s3 + $0xf0] sm:$0xff]   ;;  %v1337_v29 = vld [vmem:[%s1737_s3 + $0xf8] sm:$0xff]   ;;  %v1346_v36 = vld [vmem:[%s1737_s3 + $0x100] sm:$0xff]   ;;  %543 = vmatprep.mubr.bf16.mxu1 %v1345_v35 }
   0xb   :  { %v1334_v26 = vld [vmem:[%s1737_s3 + $0x30] sm:$0xff]   ;;  %v1338_v30 = vld [vmem:[%s1737_s3 + $0x38] sm:$0xff]   ;;  %v1347_v37 = vld [vmem:[%s1737_s3 + $0x108] sm:$0xff]  }
   0xc   :  { %1149 = vmatpush3.bf16.msra.mxu0 %v1318_v10  ;;  %v1335_v27 = vld [vmem:[%s1737_s3 + $0xb0] sm:$0xff]   ;;  %v1339_v31 = vld [vmem:[%s1737_s3 + $0xb8] sm:$0xff]   ;;  %v1348_v38 = vld [vmem:[%s1739_s2 + $0xc0] sm:$0xff]  }
   0xd   :  { %1177 = vmatpush3.bf16.msra.mxu1 %v1319_v11  ;;  %1150 = vmatprep.subr.bf16.mxu0 %v1320_v12  ;;  %v1340_v32 = vld [vmem:[%s1738_s1] ss:$20 sps:$4 sm:$0xff]   ;;  %v1342_v33 = vld [vmem:[%s1738_s1 + $0x4] ss:$20 sps:$4 sm:$0xff]   ;;  %v1343_v34 = vld [vmem:[%s1738_s1 + $0x8] ss:$20 sps:$4 sm:$0xff]  }
   0xe   :  { %1178 = vmatprep.subr.bf16.mxu1 %v1321_v13  ;;  %494 = vmatprep.mubr.bf16.mxu0 %v1342_v33  ;;  %v1349_v39 = vld [vmem:[%s1738_s1 + $0x2c] ss:$20 sps:$4 sm:$0xff]   ;;  %v1351_v40 = vld [vmem:[%s1738_s1 + $0x34] ss:$20 sps:$4 sm:$0xff]   ;;  %v1355_v43 = vld [vmem:[%s1738_s1 + $0x30] ss:$20 sps:$4 sm:$0xff]  }
   0xf   :  { %v1353_v41 = vld [vmem:[%s1739_s2 + $0x80] sm:$0xff]   ;;  %v1354_v42 = vld [vmem:[%s1738_s1 + $0x28] ss:$20 sps:$4 sm:$0xff]   ;;  %v1356_v44 = vld [vmem:[%s1737_s3 + $0x110] sm:$0xff]  }
  0x10   :  { %1151 = vmatpush3.bf16.msra.mxu0 %v1322_v14  ;;  %v1357_v45 = vld [vmem:[%s1739_s2 + $0xc8] sm:$0xff]   ;;  %v1359_v47 = vld [vmem:[%s1737_s3 + $0x118] sm:$0xff]   ;;  %v1360_v48 = vld [vmem:[%s1739_s2 + $0xd0] sm:$0xff]  }
  0x11   :  { %1179 = vmatpush3.bf16.msra.mxu1 %v1323_v15  ;;  %1152 = vmatprep.subr.bf16.mxu0 %v1324_v16  ;;  %v1358_v46 = vld [vmem:[%s1739_s2 + $0x88] sm:$0xff]   ;;  %v1361_v49 = vld [vmem:[%s1738_s1 + $0x10] ss:$20 sps:$4 sm:$0xff]   ;;  %v1366_v54 = vld [vmem:[%s1739_s2 + $0xd8] sm:$0xff]  }
  0x12   :  { %1180 = vmatprep.subr.bf16.mxu1 %v1325_v17  ;;  %v1362_v50 = vld [vmem:[%s1739_s2 + $0x90] sm:$0xff]   ;;  %v1363_v51 = vld [vmem:[%s1738_s1 + $0x38] ss:$20 sps:$4 sm:$0xff]   ;;  %v1364_v52 = vld [vmem:[%s1739_s2 + $0x40] sm:$0xff]  }
  0x13   :  { %v1365_v53 = vld [vmem:[%s1739_s2] sm:$0xff]   ;;  %v1367_v55 = vld [vmem:[%s1739_s2 + $0x98] sm:$0xff]   ;;  %v1368_v56 = vld [vmem:[%s1739_s2 + $0x48] sm:$0xff]  }
  0x14   :  { %1153 = vmatpush3.bf16.msra.mxu0 %v1326_v18  ;;  %v1369_v57 = vld [vmem:[%s1739_s2 + $0x8] sm:$0xff]   ;;  %v1370_v58 = vld [vmem:[%s1739_s2 + $0xe0] sm:$0xff]   ;;  %v1372_v60 = vld [vmem:[%s1739_s2 + $0x50] sm:$0xff]  }
  0x15   :  { %1181 = vmatpush3.bf16.msra.mxu1 %v1327_v19  ;;  %1154 = vmatprep.subr.bf16.mxu0 %v1328_v20  ;;  %v1371_v59 = vld [vmem:[%s1739_s2 + $0xa0] sm:$0xff]   ;;  %v1373_v61 = vld [vmem:[%s1739_s2 + $0x10] sm:$0xff]   ;;  %v1374_v62 = vld [vmem:[%s1739_s2 + $0xe8] sm:$0xff]  }
  0x16   :  { %1182 = vmatprep.subr.bf16.mxu1 %v1329_v21  ;;  %v1375_v63 = vld [vmem:[%s1739_s2 + $0xa8] sm:$0xff]   ;;  %v1376_v0 = vld [vmem:[%s1739_s2 + $0x58] sm:$0xff]   ;;  %v1378_v2 = vld [vmem:[%s1739_s2 + $0xf0] sm:$0xff]  }
  0x17   :  { %v1377_v1 = vld [vmem:[%s1739_s2 + $0x18] sm:$0xff]   ;;  %v1379_v3 = vld [vmem:[%s1739_s2 + $0xb0] sm:$0xff]   ;;  %v1380_v4 = vld [vmem:[%s1739_s2 + $0x60] sm:$0xff]  }
  0x18   :  { %1155 = vmatpush3.bf16.msra.mxu0 %v1330_v22  ;;  %v1381_v5 = vld [vmem:[%s1739_s2 + $0x20] sm:$0xff]   ;;  %v1382_v6 = vld [vmem:[%s1739_s2 + $0xf8] sm:$0xff]   ;;  %v1384_v8 = vld [vmem:[%s1739_s2 + $0x68] sm:$0xff]  }
  0x19   :  { %1183 = vmatpush3.bf16.msra.mxu1 %v1331_v23  ;;  %1156 = vmatprep.subr.bf16.mxu0 %v1332_v24  ;;  %v1383_v7 = vld [vmem:[%s1739_s2 + $0xb8] sm:$0xff]   ;;  %v1385_v9 = vld [vmem:[%s1739_s2 + $0x28] sm:$0xff]   ;;  %v1389_v12 = vld [vmem:[%s1739_s2 + $0x100] sm:$0xff]  }
  0x1a   :  { %1184 = vmatprep.subr.bf16.mxu1 %v1333_v25  ;;  %v1386_v10 = vld [vmem:[%s1740_s0 + $0x8] ss:$20 sps:$4 sm:$0xff]   ;;  %v1388_v11 = vld [vmem:[%s1740_s0 + $0xc] ss:$20 sps:$4 sm:$0xff]   ;;  %v1390_v13 = vld [vmem:[%s1739_s2 + $0x70] sm:$0xff]  }
  0x1b   :  { %v1391_v14 = vld [vmem:[%s1739_s2 + $0x30] sm:$0xff]   ;;  %v1392_v15 = vld [vmem:[%s1739_s2 + $0x108] sm:$0xff]   ;;  %v1393_v16 = vld [vmem:[%s1739_s2 + $0x78] sm:$0xff]  }
  0x1c   :  { %1157 = vmatpush3.bf16.msra.mxu0 %v1334_v26  ;;  %v1394_v17 = vld [vmem:[%s1739_s2 + $0x38] sm:$0xff]   ;;  %v1395_v18 = vld [vmem:[%s1740_s0 + $0x34] ss:$20 sps:$4 sm:$0xff]   ;;  %v1397_v19 = vld [vmem:[%s1740_s0 + $0x30] ss:$20 sps:$4 sm:$0xff]  }
  0x1d   :  { %1185 = vmatpush3.bf16.msra.mxu1 %v1335_v27  ;;  %1158 = vmatprep.subr.bf16.mxu0 %v1336_v28  ;;  %v1398_v20 = vld [vmem:[%s1739_s2 + $0x110] sm:$0xff]   ;;  %v1401_v22 = vld [vmem:[%s1740_s0 + $0x4] ss:$20 sps:$4 sm:$0xff]   ;;  %v1405_v25 = vld [vmem:[%s1740_s0 + $0x2c] ss:$20 sps:$4 sm:$0xff]  }
  0x1e   :  { %1186 = vmatprep.subr.bf16.mxu1 %v1337_v29  ;;  %v1399_v21 = vld [vmem:[%s1740_s0] ss:$20 sps:$4 sm:$0xff]   ;;  %v1402_v23 = vld [vmem:[%s1739_s2 + $0x118] sm:$0xff]   ;;  %v1403_v24 = vld [vmem:[%s1740_s0 + $0x10] ss:$20 sps:$4 sm:$0xff]  }
  0x1f   :  { %v1404_v26 = vld [vmem:[%s1740_s0 + $0x38] ss:$20 sps:$4 sm:$0xff]   ;;  %v1407_v27 = vld [vmem:[%s1740_s0 + $0x28] ss:$20 sps:$4 sm:$0xff]  }
  0x20   :  { %1159 = vmatpush3.bf16.msra.mxu0 %v1338_v30 }
  0x21   :  { %1187 = vmatpush3.bf16.msra.mxu1 %v1339_v31  ;;  %1234 = vmatprep.subr.bf16.mxu0 %v1348_v38 }
  0x22   :  { %1268 = vmatprep.subr.bf16.mxu1 %v1346_v36 }
  0x23   :  { %495 = vmatmul.mubr.bf16.vlgmr.msra.gmra.mrb[0].mxu0 %v1340_v32 }
  0x24   :  { %544 = vmatmul.mubr.bf16.vlgmr.msra.gmra.mrb[0].mxu1 %v1343_v34  ;;  %502 = vmatprep.mubr.bf16.mxu0 %v1349_v39 }
  0x25   :  { %1269 = vmatpush3.bf16.msra.mxu1 %v1346_v36  ;;  %551 = vmatprep.mubr.bf16.mxu1 %v1351_v40 }
  0x26   :  { %1270 = vmatprep.subr.bf16.mxu1 %v1347_v37  ;;  %1235 = vmatpush3.bf16.msra.mxu0 %v1353_v41 }
  0x27   :  { %1236 = vmatprep.subr.bf16.mxu0 %v1357_v45 }
  0x29   :  { %1271 = vmatpush3.bf16.msra.mxu1 %v1347_v37 }
  0x2a   :  { %1272 = vmatprep.subr.bf16.mxu1 %v1356_v44  ;;  %1237 = vmatpush3.bf16.msra.mxu0 %v1358_v46 }
  0x2b   :  { %503 = vmatmul.mubr.bf16.gmra.mrb[4].mxu0 %v1354_v42  ;;  %1238 = vmatprep.subr.bf16.mxu0 %v1360_v48 }
  0x2c   :  { %552 = vmatmul.mubr.bf16.gmra.mrb[4].mxu1 %v1355_v43  ;;  %962 = vmatprep.mubr.bf16.mxu0 %v1388_v11 }
  0x2d   :  { %1273 = vmatpush3.bf16.msra.mxu1 %v1356_v44  ;;  %1276 = vmatprep.mubr.msk.bf16.mxu1 %vm455_vm0, %v1361_v49 }
  0x2e   :  { %1274 = vmatprep.subr.bf16.mxu1 %v1359_v47  ;;  %1239 = vmatpush3.bf16.msra.mxu0 %v1362_v50 }
  0x2f   :  { %1240 = vmatprep.subr.bf16.mxu0 %v1366_v54 }
  0x31   :  { %1275 = vmatpush3.bf16.msra.mxu1 %v1359_v47 }
  0x32   :  { %1206 = vmatprep.subr.bf16.mxu1 %v1364_v52  ;;  %1241 = vmatpush3.bf16.msra.mxu0 %v1367_v55 }
  0x33   :  { %1242 = vmatprep.subr.bf16.mxu0 %v1370_v58 }
  0x34   :  { %1277 = vmatmul.mubr.msk.bf16.vlgmr.msra.gmra.mrb[8].mxu1 %vm455_vm0, %v1363_v51 }
  0x35   :  { %1207 = vmatpush3.bf16.msra.mxu1 %v1365_v53  ;;  %913 = vmatprep.mubr.bf16.mxu1 %v1401_v22 }
  0x36   :  { %1208 = vmatprep.subr.bf16.mxu1 %v1368_v56  ;;  %1243 = vmatpush3.bf16.msra.mxu0 %v1371_v59 }
  0x37   :  { %1244 = vmatprep.subr.bf16.mxu0 %v1374_v62 }
  0x39   :  { %1209 = vmatpush3.bf16.msra.mxu1 %v1369_v57 }
  0x3a   :  { %1210 = vmatprep.subr.bf16.mxu1 %v1372_v60  ;;  %1245 = vmatpush3.bf16.msra.mxu0 %v1375_v63 }
  0x3b   :  { %1246 = vmatprep.subr.bf16.mxu0 %v1378_v2 }
  0x3d   :  { %1211 = vmatpush3.bf16.msra.mxu1 %v1373_v61 }
  0x3e   :  { %1212 = vmatprep.subr.bf16.mxu1 %v1376_v0  ;;  %1247 = vmatpush3.bf16.msra.mxu0 %v1379_v3 }
  0x3f   :  { %1248 = vmatprep.subr.bf16.mxu0 %v1382_v6 }
  0x41   :  { %1213 = vmatpush3.bf16.msra.mxu1 %v1377_v1 }
  0x42   :  { %1214 = vmatprep.subr.bf16.mxu1 %v1380_v4  ;;  %1249 = vmatpush3.bf16.msra.mxu0 %v1383_v7 }
  0x43   :  { %1280 = vmatprep.subr.bf16.mxu0 %v1389_v12 }
  0x45   :  { %1215 = vmatpush3.bf16.msra.mxu1 %v1381_v5  ;;  %963 = vmatmul.mubr.bf16.vlgmr.msra.gmra.mrb[8].mxu0 %v1386_v10 }
  0x46   :  { %1216 = vmatprep.subr.bf16.mxu1 %v1384_v8  ;;  %1281 = vmatpush3.bf16.msra.mxu0 %v1389_v12 }
  0x47   :  { %1282 = vmatprep.subr.bf16.mxu0 %v1392_v15  ;;  %970 = vmatprep.mubr.bf16.mxu0 %v1395_v18 }
  0x49   :  { %1217 = vmatpush3.bf16.msra.mxu1 %v1385_v9 }
  0x4a   :  { %1218 = vmatprep.subr.bf16.mxu1 %v1390_v13  ;;  %1283 = vmatpush3.bf16.msra.mxu0 %v1392_v15 }
  0x4b   :  { %1284 = vmatprep.subr.bf16.mxu0 %v1398_v20 }
  0x4d   :  { %1219 = vmatpush3.bf16.msra.mxu1 %v1391_v14  ;;  %971 = vmatmul.mubr.bf16.gmra.mrb[12].mxu0 %v1397_v19 }
  0x4e   :  { %1220 = vmatprep.subr.bf16.mxu1 %v1393_v16  ;;  %1285 = vmatpush3.bf16.msra.mxu0 %v1398_v20 }
  0x4f   :  { %1286 = vmatprep.subr.bf16.mxu0 %v1402_v23  ;;  %1288 = vmatprep.mubr.msk.bf16.mxu0 %vm455_vm0, %v1403_v24 }
  0x51   :  { %1221 = vmatpush3.bf16.msra.mxu1 %v1394_v17 }
  0x52   :  { %1287 = vmatpush3.bf16.msra.mxu0 %v1402_v23  ;;  %v1143_v23 = vld [vmem:[%s1741_s4] ss:$0 sm:$0xff] }
  0x54   :  { %914 = vmatmul.mubr.bf16.vlgmr.msra.gmra.mrb[12].mxu1 %v1399_v21 }
  0x55   :  { %921 = vmatprep.mubr.bf16.mxu1 %v1405_v25  ;;  %1289 = vmatmul.mubr.msk.bf16.vlgmr.msra.gmra.mrb[16].mxu0 %vm455_vm0, %v1404_v26 }
  0x5c   :  { %922 = vmatmul.mubr.bf16.gmra.mrb[16].mxu1 %v1407_v27 }
  0xf6   :  { %v1160_v28 = vpop.f32.mrb[0].mxu0 }
  0xf7   :  { %v1188_v29 = vpop.f32.mrb[0].mxu1  ;;  %v1161_v30 = vpop.f32.mrb[1].mxu0 }
  0xf8   :  { %v1162_v31 = vadd.f32 %v1161_v30, %v1160_v28  ;;  %v1189_v32 = vpop.f32.mrb[1].mxu1  ;;  %v1163_v33 = vpop.f32.mrb[2].mxu0 }
  0xf9   :  { %v1190_v34 = vadd.f32 %v1189_v32, %v1188_v29  ;;  %v1191_v35 = vpop.f32.mrb[2].mxu1  ;;  %v1164_v36 = vpop.f32.mrb[3].mxu0 }
  0xfa   :  { %v1165_v37 = vadd.f32 %v1164_v36, %v1163_v33  ;;  %v1192_v38 = vpop.f32.mrb[3].mxu1 }
  0xfb   :  { %v1193_v39 = vadd.f32 %v1192_v38, %v1191_v35  ;;  %v546_v40 = vadd.f32 %v1190_v34, %v1162_v31 }
  0xfd   :  { %v549_v41 = vadd.f32 %v1193_v39, %v1165_v37 }
  0xfe   :  { %v1166_v42 = vpop.f32.mrb[4].mxu0 }
  0xff   :  { %v1194_v43 = vpop.f32.mrb[4].mxu1  ;;  %v1167_v44 = vpop.f32.mrb[5].mxu0 }
 0x100   :  { %v1168_v45 = vadd.f32 %v1167_v44, %v1166_v42  ;;  %v1195_v46 = vpop.f32.mrb[5].mxu1  ;;  %v1169_v47 = vpop.f32.mrb[6].mxu0 }
 0x101   :  { %v1196_v48 = vadd.f32 %v1195_v46, %v1194_v43  ;;  %v1197_v49 = vpop.f32.mrb[6].mxu1  ;;  %v1170_v50 = vpop.f32.mrb[7].mxu0 }
 0x102   :  { %v1171_v51 = vadd.f32 %v1170_v50, %v1169_v47  ;;  %v1198_v52 = vpop.f32.mrb[7].mxu1 }
 0x103   :  { %v1199_v53 = vadd.f32 %v1198_v52, %v1197_v49  ;;  %v554_v54 = vadd.f32 %v1196_v48, %v1168_v45 }
 0x105   :  { %v557_v55 = vadd.f32 %v1199_v53, %v1171_v51 }
 0x107   :  { %v1278_v56 = vpop.f32.mrb[8].mxu1 }
 0x108   :  { %v603_v57 = vadd.f32 %v1278_v56, %v554_v54  ;;  %v594_v58 = vpop.f32.mrb[9].mxu1 }
 0x109   :  { %v595_v59 = vadd.f32 %v594_v58, %v546_v40  ;;  %v1279_v60 = vpop.f32.mrb[10].mxu1 }
 0x10a   :  { %v606_v61 = vadd.f32 %v1279_v60, %v557_v55  ;;  %v597_v62 = vpop.f32.mrb[11].mxu1 }
 0x10b   :  { %v598_v63 = vadd.f32 %v597_v62, %v549_v41 }
 0x118   :  { %v1250_v0 = vpop.f32.mrb[8].mxu0 }
 0x119   :  { %v1251_v1 = vpop.f32.mrb[9].mxu0 }
 0x11a   :  { %v1252_v2 = vadd.f32 %v1251_v1, %v1250_v0  ;;  %v1253_v3 = vpop.f32.mrb[10].mxu0 }
 0x11b   :  { %v1254_v4 = vpop.f32.mrb[11].mxu0 }
 0x11c   :  { %v1255_v5 = vadd.f32 %v1254_v4, %v1253_v3 }
 0x120   :  { %v1256_v6 = vpop.f32.mrb[12].mxu0 }
 0x121   :  { %v1257_v7 = vpop.f32.mrb[13].mxu0 }
 0x122   :  { %v1258_v9 = vadd.f32 %v1257_v7, %v1256_v6  ;;  %v1259_v10 = vpop.f32.mrb[14].mxu0 }
 0x123   :  { %v1260_v12 = vpop.f32.mrb[15].mxu0 }
 0x124   :  { %v1261_v15 = vadd.f32 %v1260_v12, %v1259_v10 }
 0x127   :  { %v1222_v8 = vpop.f32.mrb[12].mxu1 }
 0x128   :  { %v1223_v11 = vpop.f32.mrb[13].mxu1  ;;  %v1290_v20 = vpop.f32.mrb[16].mxu0 }
 0x129   :  { %v1224_v13 = vadd.f32 %v1223_v11, %v1222_v8  ;;  %v1225_v14 = vpop.f32.mrb[14].mxu1  ;;  %v1013_v22 = vpop.f32.mrb[17].mxu0 }
 0x12a   :  { %v1226_v16 = vpop.f32.mrb[15].mxu1  ;;  %v1291_v26 = vpop.f32.mrb[18].mxu0 }
 0x12b   :  { %v916_v17 = vadd.f32 %v1224_v13, %v595_v59  ;;  %v1227_v18 = vadd.f32 %v1226_v16, %v1225_v14  ;;  %v1016_v29 = vpop.f32.mrb[19].mxu0 }
 0x12d   :  { %v919_v19 = vadd.f32 %v1227_v18, %v598_v63  ;;  %v965_v21 = vadd.f32 %v1252_v2, %v916_v17 }
 0x12f   :  { %v1014_v24 = vadd.f32 %v1013_v22, %v965_v21  ;;  %v1228_v25 = vpop.f32.mrb[16].mxu1  ;;  %v968_v27 = vadd.f32 %v1255_v5, %v919_v19 }
 0x130   :  { %v1229_v28 = vpop.f32.mrb[17].mxu1 }
 0x131   :  { %v1035_v30 = vadd.f32 %v1143_v23, %v1014_v24  ;;  %v1230_v31 = vadd.f32 %v1229_v28, %v1228_v25  ;;  %v1017_v32 = vadd.f32 %v1016_v29, %v968_v27  ;;  %v1231_v33 = vpop.f32.mrb[18].mxu1 }
 0x132   :  { %v1232_v34 = vpop.f32.mrb[19].mxu1 }
 0x133   :  { %1039 = vst.msk [vmem:[%s1742_s5] sm:$0xff] %vm455_vm0, %v1035_v30  ;;  %v924_v35 = vadd.f32 %v1230_v31, %v603_v57  ;;  %v1036_v36 = vadd.f32 %v1143_v23, %v1017_v32  ;;  %v1233_v37 = vadd.f32 %v1232_v34, %v1231_v33 }
 0x135   :  { %v973_v38 = vadd.f32 %v1258_v9, %v924_v35  ;;  %1040 = vst.msk [vmem:[%s1742_s5 + $0x8] sm:$0xff] %vm455_vm0, %v1036_v36  ;;  %v927_v39 = vadd.f32 %v1233_v37, %v606_v61 }
 0x137   :  { %v1022_v40 = vadd.f32 %v1290_v20, %v973_v38  ;;  %v976_v41 = vadd.f32 %v1261_v15, %v927_v39 }
 0x139   :  { %v1037_v42 = vadd.f32 %v1143_v23, %v1022_v40  ;;  %v1025_v43 = vadd.f32 %v1291_v26, %v976_v41 }
 0x13b   :  { %1041 = vst.msk [vmem:[%s1742_s5 + $0x10] sm:$0xff] %vm455_vm0, %v1037_v42  ;;  %v1038_v44 = vadd.f32 %v1143_v23, %v1025_v43 }
 0x13d   :  { %1042 = vst.msk [vmem:[%s1742_s5 + $0x18] sm:$0xff] %vm455_vm0, %v1038_v44 }

// kernel: unet_forward.50
= control target key start
LH: loop header
LB: loop body
LE: loop exit
PB: predicated region body
PF: predicated region fallthrough
CT: control target
= control target key end

     0   :  { %vm94_vm0 = vcmask 261120   ;;  %vm216_vm1 = vcmask 523264   ;;  %s425_s1 = inlined_call_operand.vmem [shape: bf16[32,64], index: 1, kind: input, shape index: {}]   ;;  %s426_s0 = inlined_call_operand.vmem [shape: bf16[128,32], index: 0, kind: input, shape index: {}]   ;;  %s427_s2 = inlined_call_operand.vmem [shape: f32[1,64], index: 2, kind: input, shape index: {}]   ;;  %s428_s3 = inlined_call_operand.vmem [shape: f32[128,64], index: 3, kind: output, shape index: {}]  }
   0x1   :  { %v290_v0 = vld [vmem:[%s425_s1] sm:$0xff]   ;;  %v291_v1 = vld [vmem:[%s425_s1 + $0x8] sm:$0xff]   ;;  %v296_v6 = vld [vmem:[%s426_s0 + $0x10] sm:$0xff]  }
   0x2   :  { %266 = vmatprep.subr.bf16.mxu0 %v290_v0  ;;  %286 = vmatprep.subr.bf16.mxu1 %v290_v0  ;;  %v292_v2 = vld [vmem:[%s426_s0] sm:$0xff]   ;;  %v294_v4 = vld [vmem:[%s426_s0 + $0x8] sm:$0xff]   ;;  %v297_v7 = vld [vmem:[%s426_s0 + $0x30] sm:$0xff]  }
   0x3   :  { %267 = vmatpush3.bf16.msra.mxu0 %v290_v0  ;;  %288 = vmatpush3.bf16.msra.mxu1 %v290_v0  ;;  %v293_v3 = vld [vmem:[%s426_s0 + $0x20] sm:$0xff]   ;;  %v295_v5 = vld [vmem:[%s426_s0 + $0x28] sm:$0xff]   ;;  %v298_v8 = vld [vmem:[%s426_s0 + $0x18] sm:$0xff]  }
   0x4   :  { %268 = vmatprep.subr.bf16.mxu0 %v291_v1  ;;  %287 = vmatprep.subr.bf16.mxu1 %v291_v1  ;;  %v299_v9 = vld [vmem:[%s426_s0 + $0x38] sm:$0xff]   ;;  %v237_v10 = vld [vmem:[%s427_s2] ss:$0 sm:$0xff] }
   0x5   :  { %270 = vmatprep.mubr.msk.bf16.mxu0 %vm94_vm0, %v292_v2  ;;  %278 = vmatprep.mubr.msk.bf16.mxu1 %vm94_vm0, %v293_v3 }
   0x7   :  { %269 = vmatpush3.bf16.msra.mxu0 %v291_v1  ;;  %289 = vmatpush3.bf16.msra.mxu1 %v291_v1 }
   0xa   :  { %271 = vmatmul.mubr.msk.bf16.vlgmr.msra.gmra.mrb[0].mxu0 %vm94_vm0, %v294_v4  ;;  %279 = vmatmul.mubr.msk.bf16.vlgmr.msra.gmra.mrb[0].mxu1 %vm94_vm0, %v295_v5 }
   0xb   :  { %274 = vmatprep.mubr.msk.bf16.mxu0 %vm94_vm0, %v296_v6  ;;  %282 = vmatprep.mubr.msk.bf16.mxu1 %vm94_vm0, %v297_v7 }
  0x12   :  { %275 = vmatmul.mubr.msk.bf16.gmra.mrb[4].mxu0 %vm94_vm0, %v298_v8  ;;  %283 = vmatmul.mubr.msk.bf16.gmra.mrb[4].mxu1 %vm94_vm0, %v299_v9 }
  0xdd   :  { %v272_v11 = vpop.f32.mrb[0].mxu0  ;;  %v280_v12 = vpop.f32.mrb[0].mxu1 }
  0xde   :  { %v162_v13 = vadd.f32 %v272_v11, %v237_v10  ;;  %v194_v14 = vadd.f32 %v280_v12, %v237_v10  ;;  %v153_v15 = vpop.f32.mrb[1].mxu0  ;;  %v185_v16 = vpop.f32.mrb[1].mxu1 }
  0xdf   :  { %v154_v17 = vadd.f32 %v237_v10, %v153_v15  ;;  %v186_v18 = vadd.f32 %v237_v10, %v185_v16  ;;  %v273_v19 = vpop.f32.mrb[2].mxu0  ;;  %v281_v20 = vpop.f32.mrb[2].mxu1 }
  0xe0   :  { %219 = vst.msk [vmem:[%s428_s3 + $0x10] sm:$0xff] %vm216_vm1, %v162_v13  ;;  %227 = vst.msk [vmem:[%s428_s3 + $0x50] sm:$0xff] %vm216_vm1, %v194_v14  ;;  %v165_v21 = vadd.f32 %v273_v19, %v237_v10  ;;  %v197_v22 = vadd.f32 %v281_v20, %v237_v10  ;;  %v156_v23 = vpop.f32.mrb[3].mxu0  ;;  %v188_v24 = vpop.f32.mrb[3].mxu1 }
  0xe1   :  { %217 = vst.msk [vmem:[%s428_s3] sm:$0xff] %vm216_vm1, %v154_v17  ;;  %225 = vst.msk [vmem:[%s428_s3 + $0x40] sm:$0xff] %vm216_vm1, %v186_v18  ;;  %v157_v25 = vadd.f32 %v237_v10, %v156_v23  ;;  %v189_v26 = vadd.f32 %v237_v10, %v188_v24 }
  0xe2   :  { %220 = vst.msk [vmem:[%s428_s3 + $0x18] sm:$0xff] %vm216_vm1, %v165_v21  ;;  %228 = vst.msk [vmem:[%s428_s3 + $0x58] sm:$0xff] %vm216_vm1, %v197_v22 }
  0xe3   :  { %218 = vst.msk [vmem:[%s428_s3 + $0x8] sm:$0xff] %vm216_vm1, %v157_v25  ;;  %226 = vst.msk [vmem:[%s428_s3 + $0x48] sm:$0xff] %vm216_vm1, %v189_v26 }
  0xe5   :  { %v276_v27 = vpop.f32.mrb[4].mxu0  ;;  %v284_v28 = vpop.f32.mrb[4].mxu1 }
  0xe6   :  { %v178_v29 = vadd.f32 %v276_v27, %v237_v10  ;;  %v210_v30 = vadd.f32 %v284_v28, %v237_v10  ;;  %v169_v31 = vpop.f32.mrb[5].mxu0  ;;  %v201_v32 = vpop.f32.mrb[5].mxu1 }
  0xe7   :  { %v170_v33 = vadd.f32 %v237_v10, %v169_v31  ;;  %v202_v34 = vadd.f32 %v237_v10, %v201_v32  ;;  %v277_v35 = vpop.f32.mrb[6].mxu0  ;;  %v285_v36 = vpop.f32.mrb[6].mxu1 }
  0xe8   :  { %223 = vst.msk [vmem:[%s428_s3 + $0x30] sm:$0xff] %vm216_vm1, %v178_v29  ;;  %231 = vst.msk [vmem:[%s428_s3 + $0x70] sm:$0xff] %vm216_vm1, %v210_v30  ;;  %v181_v37 = vadd.f32 %v277_v35, %v237_v10  ;;  %v213_v38 = vadd.f32 %v285_v36, %v237_v10  ;;  %v172_v39 = vpop.f32.mrb[7].mxu0  ;;  %v204_v40 = vpop.f32.mrb[7].mxu1 }
  0xe9   :  { %221 = vst.msk [vmem:[%s428_s3 + $0x20] sm:$0xff] %vm216_vm1, %v170_v33  ;;  %229 = vst.msk [vmem:[%s428_s3 + $0x60] sm:$0xff] %vm216_vm1, %v202_v34  ;;  %v173_v41 = vadd.f32 %v237_v10, %v172_v39  ;;  %v205_v42 = vadd.f32 %v237_v10, %v204_v40 }
  0xea   :  { %224 = vst.msk [vmem:[%s428_s3 + $0x38] sm:$0xff] %vm216_vm1, %v181_v37  ;;  %232 = vst.msk [vmem:[%s428_s3 + $0x78] sm:$0xff] %vm216_vm1, %v213_v38 }
  0xeb   :  { %222 = vst.msk [vmem:[%s428_s3 + $0x28] sm:$0xff] %vm216_vm1, %v173_v41  ;;  %230 = vst.msk [vmem:[%s428_s3 + $0x68] sm:$0xff] %vm216_vm1, %v205_v42 }

// kernel: unet_forward.48
= control target key start
LH: loop header
LB: loop body
LE: loop exit
PB: predicated region body
PF: predicated region fallthrough
CT: control target
= control target key end

     0   :  { %vm385_vm0 = vcmask 261120   ;;  %s1989_s3 = inlined_call_operand.vmem [shape: bf16[288,32], index: 3, kind: input, shape index: {}]   ;;  %s1990_s1 = inlined_call_operand.vmem [shape: bf16[128,288], index: 1, kind: input, shape index: {}]   ;;  %s1991_s2 = inlined_call_operand.vmem [shape: bf16[288,32], index: 2, kind: input, shape index: {}]   ;;  %s1992_s0 = inlined_call_operand.vmem [shape: bf16[128,288], index: 0, kind: input, shape index: {}]   ;;  %s1993_s4 = inlined_call_operand.vmem [shape: f32[1,32], index: 4, kind: input, shape index: {}]   ;;  %s1994_s5 = inlined_call_operand.vmem [shape: f32[128,32], index: 5, kind: output, shape index: {}]  }
   0x1   :  { %v1446_v0 = vld [vmem:[%s1989_s3 + $0x40] sm:$0xff]   ;;  %v1449_v3 = vld [vmem:[%s1989_s3 + $0x48] sm:$0xff]   ;;  %v1453_v7 = vld [vmem:[%s1989_s3 + $0x50] sm:$0xff]  }
   0x2   :  { %v1447_v1 = vld [vmem:[%s1989_s3 + $0x80] sm:$0xff]   ;;  %1194 = vmatprep.subr.bf16.mxu0 %v1446_v0  ;;  %v1450_v4 = vld [vmem:[%s1989_s3 + $0x88] sm:$0xff]   ;;  %v1456_v10 = vld [vmem:[%s1989_s3 + $0x10] sm:$0xff]  }
   0x3   :  { %v1448_v2 = vld [vmem:[%s1989_s3] sm:$0xff]   ;;  %1342 = vmatprep.subr.bf16.mxu1 %v1447_v1  ;;  %v1451_v5 = vld [vmem:[%s1989_s3 + $0x8] sm:$0xff]   ;;  %v1458_v12 = vld [vmem:[%s1989_s3 + $0x58] sm:$0xff]  }
   0x4   :  { %1195 = vmatpush3.bf16.msra.mxu0 %v1448_v2  ;;  %1343 = vmatpush3.bf16.msra.mxu1 %v1447_v1  ;;  %v1452_v6 = vld [vmem:[%s1990_s1 + $0x8] ss:$12 sps:$4 sm:$0xff]   ;;  %v1454_v8 = vld [vmem:[%s1990_s1 + $0x20] ss:$12 sps:$4 sm:$0xff]   ;;  %v1460_v14 = vld [vmem:[%s1989_s3 + $0x18] sm:$0xff]  }
   0x5   :  { %1196 = vmatprep.subr.bf16.mxu0 %v1449_v3  ;;  %1344 = vmatprep.subr.bf16.mxu1 %v1450_v4  ;;  %v1455_v9 = vld [vmem:[%s1991_s2 + $0x40] sm:$0xff]   ;;  %v1459_v13 = vld [vmem:[%s1991_s2 + $0x48] sm:$0xff]   ;;  %v1464_v18 = vld [vmem:[%s1990_s1 + $0x50] ss:$12 sps:$4 sm:$0xff]  }
   0x6   :  { %1346 = vmatprep.mubr.msk.bf16.mxu1 %vm385_vm0, %v1452_v6  ;;  %v1457_v11 = vld [vmem:[%s1991_s2] sm:$0xff]   ;;  %v1626_v15 = vld [vmem:[%s1991_s2 + $0x8] sm:$0xff]   ;;  %v1465_v19 = vld [vmem:[%s1991_s2 + $0x50] sm:$0xff]  }
   0x7   :  { %v1462_v16 = vld [vmem:[%s1990_s1 + $0x38] ss:$12 sps:$4 sm:$0xff]   ;;  %v1649_v21 = vld [vmem:[%s1991_s2 + $0x10] sm:$0xff]   ;;  %v1468_v22 = vld [vmem:[%s1989_s3 + $0x68] sm:$0xff]  }
   0x8   :  { %1197 = vmatpush3.bf16.msra.mxu0 %v1451_v5  ;;  %1345 = vmatpush3.bf16.msra.mxu1 %v1450_v4  ;;  %v1463_v17 = vld [vmem:[%s1989_s3 + $0x60] sm:$0xff]   ;;  %v1469_v23 = vld [vmem:[%s1991_s2 + $0x58] sm:$0xff]   ;;  %v1470_v24 = vld [vmem:[%s1989_s3 + $0x28] sm:$0xff]  }
   0x9   :  { %1198 = vmatprep.subr.bf16.mxu0 %v1453_v7  ;;  %1382 = vmatprep.subr.bf16.mxu1 %v1455_v9  ;;  %v1466_v20 = vld [vmem:[%s1989_s3 + $0x20] sm:$0xff]   ;;  %v1664_v25 = vld [vmem:[%s1991_s2 + $0x18] sm:$0xff]   ;;  %v1472_v26 = vld [vmem:[%s1990_s1 + $0x68] ss:$12 sps:$4 sm:$0xff]  }
   0xa   :  { %v1473_v27 = vld [vmem:[%s1989_s3 + $0x70] sm:$0xff]   ;;  %v1474_v28 = vld [vmem:[%s1990_s1 + $0x80] ss:$12 sps:$4 sm:$0xff]   ;;  %v1478_v32 = vld [vmem:[%s1989_s3 + $0x78] sm:$0xff]  }
   0xb   :  { %1347 = vmatmul.mubr.msk.bf16.vlgmr.msra.gmra.mrb[0].mxu1 %vm385_vm0, %v1454_v8  ;;  %v1475_v29 = vld [vmem:[%s1991_s2 + $0x60] sm:$0xff]   ;;  %v1476_v30 = vld [vmem:[%s1989_s3 + $0x30] sm:$0xff]   ;;  %v1479_v33 = vld [vmem:[%s1991_s2 + $0x68] sm:$0xff]  }
   0xc   :  { %1199 = vmatpush3.bf16.msra.mxu0 %v1456_v10  ;;  %1390 = vmatpush3.bf16.msra.mxu1 %v1457_v11  ;;  %v1477_v31 = vld [vmem:[%s1991_s2 + $0x20] sm:$0xff]   ;;  %v1480_v34 = vld [vmem:[%s1989_s3 + $0x38] sm:$0xff]   ;;  %v1481_v35 = vld [vmem:[%s1991_s2 + $0x28] sm:$0xff]  }
   0xd   :  { %1200 = vmatprep.subr.bf16.mxu0 %v1458_v12  ;;  %1383 = vmatprep.subr.bf16.mxu1 %v1459_v13  ;;  %v1482_v36 = vld [vmem:[%s1990_s1] ss:$12 sps:$4 sm:$0xff]   ;;  %v1484_v37 = vld [vmem:[%s1990_s1 + $0x4] ss:$12 sps:$4 sm:$0xff]   ;;  %v1489_v42 = vld [vmem:[%s1991_s2 + $0x78] sm:$0xff]  }
   0xe   :  { %1350 = vmatprep.mubr.msk.bf16.mxu1 %vm385_vm0, %v1462_v16  ;;  %v1485_v38 = vld [vmem:[%s1990_s1 + $0x98] ss:$12 sps:$4 sm:$0xff]   ;;  %442 = vmatprep.mubr.bf16.mxu0 %v1484_v37  ;;  %v1486_v39 = vld [vmem:[%s1990_s1 + $0xb0] ss:$12 sps:$4 sm:$0xff]   ;;  %v1495_v46 = vld [vmem:[%s1992_s0 + $0x34] ss:$12 sps:$4 sm:$0xff]  }
   0xf   :  { %v1487_v40 = vld [vmem:[%s1991_s2 + $0x70] sm:$0xff]   ;;  %v1490_v43 = vld [vmem:[%s1991_s2 + $0x38] sm:$0xff]   ;;  %v1497_v48 = vld [vmem:[%s1991_s2 + $0x80] sm:$0xff]  }
  0x10   :  { %1201 = vmatpush3.bf16.msra.mxu0 %v1460_v14  ;;  %1391 = vmatpush3.bf16.msra.mxu1 %v1626_v15  ;;  %v1488_v41 = vld [vmem:[%s1991_s2 + $0x30] sm:$0xff]   ;;  %v1491_v44 = vld [vmem:[%s1990_s1 + $0x1c] ss:$12 sps:$4 sm:$0xff]   ;;  %v1496_v47 = vld [vmem:[%s1990_s1 + $0x18] ss:$12 sps:$4 sm:$0xff]  }
  0x11   :  { %1202 = vmatprep.subr.bf16.mxu0 %v1463_v17  ;;  %1384 = vmatprep.subr.bf16.mxu1 %v1465_v19  ;;  %v1493_v45 = vld [vmem:[%s1992_s0 + $0x30] ss:$12 sps:$4 sm:$0xff]   ;;  %v1498_v49 = vld [vmem:[%s1990_s1 + $0x34] ss:$12 sps:$4 sm:$0xff]   ;;  %v1500_v50 = vld [vmem:[%s1992_s0 + $0x4c] ss:$12 sps:$4 sm:$0xff]  }
  0x12   :  { %v1502_v51 = vld [vmem:[%s1990_s1 + $0x30] ss:$12 sps:$4 sm:$0xff]   ;;  %v1504_v52 = vld [vmem:[%s1990_s1 + $0x4c] ss:$12 sps:$4 sm:$0xff]   ;;  %v1503_v53 = vld [vmem:[%s1992_s0 + $0x48] ss:$12 sps:$4 sm:$0xff]  }
  0x13   :  { %1351 = vmatmul.mubr.msk.bf16.gmra.mrb[4].mxu1 %vm385_vm0, %v1464_v18  ;;  %v1506_v54 = vld [vmem:[%s1992_s0 + $0x64] ss:$12 sps:$4 sm:$0xff]   ;;  %v1516_v55 = vld [vmem:[%s1991_s2 + $0x88] sm:$0xff]   ;;  %v1519_v63 = vld [vmem:[%s1992_s0 + $0x94] ss:$12 sps:$4 sm:$0xff]  }
  0x14   :  { %1203 = vmatpush3.bf16.msra.mxu0 %v1466_v20  ;;  %1392 = vmatpush3.bf16.msra.mxu1 %v1649_v21  ;;  %v1508_v56 = vld [vmem:[%s1990_s1 + $0x48] ss:$12 sps:$4 sm:$0xff]   ;;  %v1510_v57 = vld [vmem:[%s1990_s1 + $0x64] ss:$12 sps:$4 sm:$0xff]   ;;  %v1509_v58 = vld [vmem:[%s1992_s0 + $0x60] ss:$12 sps:$4 sm:$0xff]  }
  0x15   :  { %1204 = vmatprep.subr.bf16.mxu0 %v1468_v22  ;;  %1385 = vmatprep.subr.bf16.mxu1 %v1469_v23  ;;  %v1512_v59 = vld [vmem:[%s1992_s0 + $0x7c] ss:$12 sps:$4 sm:$0xff]   ;;  %v1514_v60 = vld [vmem:[%s1990_s1 + $0x60] ss:$12 sps:$4 sm:$0xff]   ;;  %v1515_v62 = vld [vmem:[%s1992_s0 + $0x78] ss:$12 sps:$4 sm:$0xff]  }
  0x16   :  { %1354 = vmatprep.mubr.msk.bf16.mxu1 %vm385_vm0, %v1472_v26  ;;  %v1517_v61 = vld [vmem:[%s1990_s1 + $0x7c] ss:$12 sps:$4 sm:$0xff]   ;;  %v1521_v0 = vld [vmem:[%s1990_s1 + $0x78] ss:$12 sps:$4 sm:$0xff]   ;;  %v1523_v1 = vld [vmem:[%s1990_s1 + $0x94] ss:$12 sps:$4 sm:$0xff]  }
  0x17   :  { %v1522_v2 = vld [vmem:[%s1992_s0 + $0x90] ss:$12 sps:$4 sm:$0xff]   ;;  %v1525_v3 = vld [vmem:[%s1992_s0 + $0xac] ss:$12 sps:$4 sm:$0xff]   ;;  %v1528_v6 = vld [vmem:[%s1992_s0 + $0xa8] ss:$12 sps:$4 sm:$0xff]  }
  0x18   :  { %1205 = vmatpush3.bf16.msra.mxu0 %v1470_v24  ;;  %1393 = vmatpush3.bf16.msra.mxu1 %v1664_v25  ;;  %v1527_v4 = vld [vmem:[%s1990_s1 + $0x90] ss:$12 sps:$4 sm:$0xff]   ;;  %v1529_v5 = vld [vmem:[%s1990_s1 + $0xac] ss:$12 sps:$4 sm:$0xff]   ;;  %v1531_v7 = vld [vmem:[%s1992_s0 + $0x8] ss:$12 sps:$4 sm:$0xff]  }
  0x19   :  { %1206 = vmatprep.subr.bf16.mxu0 %v1473_v27  ;;  %1386 = vmatprep.subr.bf16.mxu1 %v1475_v29  ;;  %v1532_v8 = vld [vmem:[%s1990_s1 + $0xa8] ss:$12 sps:$4 sm:$0xff]   ;;  %v1533_v10 = vld [vmem:[%s1992_s0 + $0x20] ss:$12 sps:$4 sm:$0xff]   ;;  %v1538_v14 = vld [vmem:[%s1992_s0 + $0x50] ss:$12 sps:$4 sm:$0xff]  }
  0x1a   :  { %v1534_v12 = vld [vmem:[%s1992_s0] ss:$12 sps:$4 sm:$0xff]   ;;  %v1542_v16 = vld [vmem:[%s1992_s0 + $0x18] ss:$12 sps:$4 sm:$0xff]  }
  0x1b   :  { %1355 = vmatmul.mubr.msk.bf16.gmra.mrb[8].mxu1 %vm385_vm0, %v1474_v28  ;;  %v1543_v17 = vld [vmem:[%s1992_s0 + $0x80] ss:$12 sps:$4 sm:$0xff]   ;;  %v1544_v18 = vld [vmem:[%s1992_s0 + $0x98] ss:$12 sps:$4 sm:$0xff]  }
  0x1c   :  { %1207 = vmatpush3.bf16.msra.mxu0 %v1476_v30  ;;  %1394 = vmatpush3.bf16.msra.mxu1 %v1477_v31 }
  0x1d   :  { %1208 = vmatprep.subr.bf16.mxu0 %v1478_v32  ;;  %1387 = vmatprep.subr.bf16.mxu1 %v1479_v33 }
  0x1e   :  { %1358 = vmatprep.mubr.msk.bf16.mxu1 %vm385_vm0, %v1485_v38 }
  0x20   :  { %1209 = vmatpush3.bf16.msra.mxu0 %v1480_v34  ;;  %1395 = vmatpush3.bf16.msra.mxu1 %v1481_v35 }
  0x21   :  { %1268 = vmatprep.subr.bf16.mxu0 %v1455_v9  ;;  %1388 = vmatprep.subr.bf16.mxu1 %v1487_v40  ;;  %v1536_v9 = vld [vmem:[%s1992_s0 + $0x4] ss:$12 sps:$4 sm:$0xff]  }
  0x23   :  { %443 = vmatmul.mubr.bf16.vlgmr.msra.gmra.mrb[0].mxu0 %v1482_v36  ;;  %1359 = vmatmul.mubr.msk.bf16.gmra.mrb[12].mxu1 %vm385_vm0, %v1486_v39 }
  0x24   :  { %1269 = vmatpush3.bf16.msra.mxu0 %v1457_v11  ;;  %1396 = vmatpush3.bf16.msra.mxu1 %v1488_v41  ;;  %v1537_v11 = vld [vmem:[%s1992_s0 + $0x38] ss:$12 sps:$4 sm:$0xff]  }
  0x25   :  { %1270 = vmatprep.subr.bf16.mxu0 %v1459_v13  ;;  %1389 = vmatprep.subr.bf16.mxu1 %v1489_v42  ;;  %v1539_v13 = vld [vmem:[%s1992_s0 + $0x1c] ss:$12 sps:$4 sm:$0xff]  }
  0x26   :  { %450 = vmatprep.mubr.bf16.mxu0 %v1491_v44  ;;  %904 = vmatprep.mubr.bf16.mxu1 %v1495_v46 }
  0x28   :  { %1271 = vmatpush3.bf16.msra.mxu0 %v1626_v15  ;;  %1397 = vmatpush3.bf16.msra.mxu1 %v1490_v43  ;;  %v1541_v15 = vld [vmem:[%s1992_s0 + $0x68] ss:$12 sps:$4 sm:$0xff]  }
  0x29   :  { %1272 = vmatprep.subr.bf16.mxu0 %v1465_v19  ;;  %1362 = vmatprep.subr.bf16.mxu1 %v1497_v48  ;;  %v1545_v19 = vld [vmem:[%s1992_s0 + $0xb0] ss:$12 sps:$4 sm:$0xff]  }
  0x2b   :  { %451 = vmatmul.mubr.bf16.gmra.mrb[4].mxu0 %v1496_v47  ;;  %905 = vmatmul.mubr.bf16.vlgmr.msra.gmra.mrb[16].mxu1 %v1493_v45 }
  0x2c   :  { %458 = vmatprep.mubr.bf16.mxu0 %v1498_v49  ;;  %1273 = vmatpush3.bf16.msra.mxu0 %v1649_v21 }
  0x2d   :  { %1274 = vmatprep.subr.bf16.mxu0 %v1469_v23  ;;  %1363 = vmatpush3.bf16.msra.mxu1 %v1497_v48 }
  0x2e   :  { %912 = vmatprep.mubr.bf16.mxu1 %v1500_v50  ;;  %1364 = vmatprep.subr.bf16.mxu1 %v1516_v55 }
  0x30   :  { %1275 = vmatpush3.bf16.msra.mxu0 %v1664_v25 }
  0x31   :  { %1276 = vmatprep.subr.bf16.mxu0 %v1475_v29  ;;  %1365 = vmatpush3.bf16.msra.mxu1 %v1516_v55 }
  0x33   :  { %459 = vmatmul.mubr.bf16.gmra.mrb[8].mxu0 %v1502_v51  ;;  %913 = vmatmul.mubr.bf16.gmra.mrb[20].mxu1 %v1503_v53 }
  0x34   :  { %466 = vmatprep.mubr.bf16.mxu0 %v1504_v52  ;;  %1277 = vmatpush3.bf16.msra.mxu0 %v1477_v31 }
  0x35   :  { %920 = vmatprep.mubr.bf16.mxu1 %v1506_v54  ;;  %1278 = vmatprep.subr.bf16.mxu0 %v1479_v33 }
  0x38   :  { %1279 = vmatpush3.bf16.msra.mxu0 %v1481_v35 }
  0x39   :  { %1280 = vmatprep.subr.bf16.mxu0 %v1487_v40 }
  0x3b   :  { %467 = vmatmul.mubr.bf16.gmra.mrb[12].mxu0 %v1508_v56  ;;  %921 = vmatmul.mubr.bf16.gmra.mrb[24].mxu1 %v1509_v58 }
  0x3c   :  { %474 = vmatprep.mubr.bf16.mxu0 %v1510_v57  ;;  %1281 = vmatpush3.bf16.msra.mxu0 %v1488_v41 }
  0x3d   :  { %928 = vmatprep.mubr.bf16.mxu1 %v1512_v59  ;;  %1282 = vmatprep.subr.bf16.mxu0 %v1489_v42 }
  0x40   :  { %1283 = vmatpush3.bf16.msra.mxu0 %v1490_v43 }
  0x43   :  { %475 = vmatmul.mubr.bf16.gmra.mrb[16].mxu0 %v1514_v60  ;;  %929 = vmatmul.mubr.bf16.gmra.mrb[28].mxu1 %v1515_v62 }
  0x44   :  { %482 = vmatprep.mubr.bf16.mxu0 %v1517_v61  ;;  %936 = vmatprep.mubr.bf16.mxu1 %v1519_v63 }
  0x4b   :  { %483 = vmatmul.mubr.bf16.gmra.mrb[20].mxu0 %v1521_v0  ;;  %937 = vmatmul.mubr.bf16.gmra.mrb[32].mxu1 %v1522_v2 }
  0x4c   :  { %490 = vmatprep.mubr.bf16.mxu0 %v1523_v1  ;;  %944 = vmatprep.mubr.bf16.mxu1 %v1525_v3 }
  0x53   :  { %491 = vmatmul.mubr.bf16.gmra.mrb[24].mxu0 %v1527_v4  ;;  %945 = vmatmul.mubr.bf16.gmra.mrb[36].mxu1 %v1528_v6 }
  0x54   :  { %498 = vmatprep.mubr.bf16.mxu0 %v1529_v5  ;;  %1366 = vmatprep.mubr.msk.bf16.mxu1 %vm385_vm0, %v1531_v7 }
  0x5b   :  { %499 = vmatmul.mubr.bf16.gmra.mrb[28].mxu0 %v1532_v8  ;;  %1367 = vmatmul.mubr.msk.bf16.vlgmr.msra.gmra.mrb[0].mxu1 %vm385_vm0, %v1533_v10 }
  0x5c   :  { %888 = vmatprep.mubr.bf16.mxu0 %v1536_v9  ;;  %1370 = vmatprep.mubr.msk.bf16.mxu1 %vm385_vm0, %v1537_v11 }
  0x63   :  { %889 = vmatmul.mubr.bf16.vlgmr.msra.gmra.mrb[32].mxu0 %v1534_v12  ;;  %1371 = vmatmul.mubr.msk.bf16.gmra.mrb[4].mxu1 %vm385_vm0, %v1538_v14 }
  0x64   :  { %896 = vmatprep.mubr.bf16.mxu0 %v1539_v13  ;;  %1374 = vmatprep.mubr.msk.bf16.mxu1 %vm385_vm0, %v1541_v15 }
  0x6b   :  { %897 = vmatmul.mubr.bf16.gmra.mrb[36].mxu0 %v1542_v16  ;;  %1375 = vmatmul.mubr.msk.bf16.gmra.mrb[8].mxu1 %vm385_vm0, %v1543_v17 }
  0x6c   :  { %1378 = vmatprep.mubr.msk.bf16.mxu1 %vm385_vm0, %v1544_v18 }
  0x73   :  { %1379 = vmatmul.mubr.msk.bf16.gmra.mrb[12].mxu1 %vm385_vm0, %v1545_v19 }
  0xf6   :  { %v1210_v20 = vpop.f32.mrb[0].mxu0 }
  0xf7   :  { %v1211_v21 = vpop.f32.mrb[1].mxu0 }
  0xf8   :  { %v1856_v22 = vadd.f32 %v1211_v21, %v1210_v20  ;;  %v1213_v23 = vpop.f32.mrb[2].mxu0 }
  0xf9   :  { %v1214_v24 = vpop.f32.mrb[3].mxu0 }
  0xfa   :  { %v1858_v25 = vadd.f32 %v1214_v24, %v1213_v23 }
  0xfe   :  { %v1216_v26 = vpop.f32.mrb[4].mxu0  ;;  %v1296_v28 = vpop.f32.mrb[16].mxu1 }
  0xff   :  { %v1217_v27 = vpop.f32.mrb[5].mxu0  ;;  %v1297_v31 = vpop.f32.mrb[17].mxu1 }
 0x100   :  { %v1860_v29 = vadd.f32 %v1217_v27, %v1216_v26  ;;  %v1219_v30 = vpop.f32.mrb[6].mxu0  ;;  %v1298_v33 = vadd.f32 %v1297_v31, %v1296_v28  ;;  %v1299_v34 = vpop.f32.mrb[18].mxu1 }
 0x101   :  { %v1220_v32 = vpop.f32.mrb[7].mxu0  ;;  %v1300_v36 = vpop.f32.mrb[19].mxu1 }
 0x102   :  { %v1862_v35 = vadd.f32 %v1220_v32, %v1219_v30  ;;  %v1301_v37 = vadd.f32 %v1300_v36, %v1299_v34 }
 0x106   :  { %v1222_v38 = vpop.f32.mrb[8].mxu0  ;;  %v1302_v40 = vpop.f32.mrb[20].mxu1 }
 0x107   :  { %v1223_v39 = vpop.f32.mrb[9].mxu0  ;;  %v1303_v43 = vpop.f32.mrb[21].mxu1 }
 0x108   :  { %v1224_v41 = vadd.f32 %v1223_v39, %v1222_v38  ;;  %v1225_v42 = vpop.f32.mrb[10].mxu0  ;;  %v1304_v45 = vadd.f32 %v1303_v43, %v1302_v40  ;;  %v1305_v46 = vpop.f32.mrb[22].mxu1 }
 0x109   :  { %v1226_v44 = vpop.f32.mrb[11].mxu0  ;;  %v1306_v49 = vpop.f32.mrb[23].mxu1 }
 0x10a   :  { %v1227_v47 = vadd.f32 %v1226_v44, %v1225_v42  ;;  %v1864_v48 = vadd.f32 %v1298_v33, %v1224_v41  ;;  %v1307_v50 = vadd.f32 %v1306_v49, %v1305_v46 }
 0x10c   :  { %v1866_v51 = vadd.f32 %v1301_v37, %v1227_v47 }
 0x10e   :  { %v1228_v52 = vpop.f32.mrb[12].mxu0  ;;  %v1308_v54 = vpop.f32.mrb[24].mxu1 }
 0x10f   :  { %v1229_v53 = vpop.f32.mrb[13].mxu0  ;;  %v1309_v57 = vpop.f32.mrb[25].mxu1 }
 0x110   :  { %v1230_v55 = vadd.f32 %v1229_v53, %v1228_v52  ;;  %v1231_v56 = vpop.f32.mrb[14].mxu0  ;;  %v1310_v59 = vadd.f32 %v1309_v57, %v1308_v54  ;;  %v1311_v60 = vpop.f32.mrb[26].mxu1 }
 0x111   :  { %v1232_v58 = vpop.f32.mrb[15].mxu0  ;;  %v1312_v63 = vpop.f32.mrb[27].mxu1 }
 0x112   :  { %v1233_v61 = vadd.f32 %v1232_v58, %v1231_v56  ;;  %v1868_v62 = vadd.f32 %v1304_v45, %v1230_v55  ;;  %v1313_v0 = vadd.f32 %v1312_v63, %v1311_v60 }
 0x114   :  { %v1870_v1 = vadd.f32 %v1307_v50, %v1233_v61 }
 0x116   :  { %v1234_v2 = vpop.f32.mrb[16].mxu0  ;;  %v1314_v4 = vpop.f32.mrb[28].mxu1 }
 0x117   :  { %v1235_v3 = vpop.f32.mrb[17].mxu0  ;;  %v1315_v7 = vpop.f32.mrb[29].mxu1 }
 0x118   :  { %v1236_v5 = vadd.f32 %v1235_v3, %v1234_v2  ;;  %v1237_v6 = vpop.f32.mrb[18].mxu0  ;;  %v1316_v9 = vadd.f32 %v1315_v7, %v1314_v4  ;;  %v1317_v10 = vpop.f32.mrb[30].mxu1  ;;  %v1891_v3 = vld [vmem:[%s1993_s4] ss:$0 sm:$0xff] }
 0x119   :  { %v1238_v8 = vpop.f32.mrb[19].mxu0  ;;  %v1318_v13 = vpop.f32.mrb[31].mxu1 }
 0x11a   :  { %v1239_v11 = vadd.f32 %v1238_v8, %v1237_v6  ;;  %v1872_v12 = vadd.f32 %v1310_v59, %v1236_v5  ;;  %v1319_v14 = vadd.f32 %v1318_v13, %v1317_v10 }
 0x11c   :  { %v1874_v15 = vadd.f32 %v1313_v0, %v1239_v11 }
 0x11e   :  { %v1240_v16 = vpop.f32.mrb[20].mxu0  ;;  %v1320_v18 = vpop.f32.mrb[32].mxu1 }
 0x11f   :  { %v1241_v17 = vpop.f32.mrb[21].mxu0  ;;  %v1321_v21 = vpop.f32.mrb[33].mxu1 }
 0x120   :  { %v1242_v19 = vadd.f32 %v1241_v17, %v1240_v16  ;;  %v1243_v20 = vpop.f32.mrb[22].mxu0  ;;  %v1322_v24 = vadd.f32 %v1321_v21, %v1320_v18  ;;  %v1323_v26 = vpop.f32.mrb[34].mxu1 }
 0x121   :  { %v1244_v23 = vpop.f32.mrb[23].mxu0  ;;  %v1324_v30 = vpop.f32.mrb[35].mxu1 }
 0x122   :  { %v1245_v27 = vadd.f32 %v1244_v23, %v1243_v20  ;;  %v1876_v28 = vadd.f32 %v1316_v9, %v1242_v19  ;;  %v1325_v31 = vadd.f32 %v1324_v30, %v1323_v26 }
 0x124   :  { %v1878_v32 = vadd.f32 %v1319_v14, %v1245_v27 }
 0x126   :  { %v1246_v33 = vpop.f32.mrb[24].mxu0  ;;  %v1326_v36 = vpop.f32.mrb[36].mxu1 }
 0x127   :  { %v1247_v34 = vpop.f32.mrb[25].mxu0  ;;  %v1327_v39 = vpop.f32.mrb[37].mxu1 }
 0x128   :  { %v1248_v37 = vadd.f32 %v1247_v34, %v1246_v33  ;;  %v1249_v38 = vpop.f32.mrb[26].mxu0  ;;  %v1328_v41 = vadd.f32 %v1327_v39, %v1326_v36  ;;  %v1329_v42 = vpop.f32.mrb[38].mxu1 }
 0x129   :  { %v1250_v40 = vpop.f32.mrb[27].mxu0  ;;  %v1330_v45 = vpop.f32.mrb[39].mxu1 }
 0x12a   :  { %v1251_v43 = vadd.f32 %v1250_v40, %v1249_v38  ;;  %v1880_v44 = vadd.f32 %v1322_v24, %v1248_v37  ;;  %v1331_v46 = vadd.f32 %v1330_v45, %v1329_v42 }
 0x12c   :  { %v1882_v47 = vadd.f32 %v1325_v31, %v1251_v43 }
 0x12e   :  { %v1252_v49 = vpop.f32.mrb[28].mxu0  ;;  %v1368_v52 = vpop.f32.mrb[0].mxu1 }
 0x12f   :  { %v1253_v50 = vpop.f32.mrb[29].mxu0  ;;  %v987_v55 = vpop.f32.mrb[1].mxu1 }
 0x130   :  { %v1254_v53 = vadd.f32 %v1253_v50, %v1252_v49  ;;  %v1255_v54 = vpop.f32.mrb[30].mxu0  ;;  %v1369_v57 = vpop.f32.mrb[2].mxu1 }
 0x131   :  { %v1256_v56 = vpop.f32.mrb[31].mxu0  ;;  %v990_v60 = vpop.f32.mrb[3].mxu1 }
 0x132   :  { %v1257_v58 = vadd.f32 %v1256_v56, %v1255_v54  ;;  %v1884_v59 = vadd.f32 %v1328_v41, %v1254_v53 }
 0x134   :  { %v1886_v61 = vadd.f32 %v1331_v46, %v1257_v58 }
 0x136   :  { %v1284_v63 = vpop.f32.mrb[32].mxu0  ;;  %v1372_v2 = vpop.f32.mrb[4].mxu1 }
 0x137   :  { %v1285_v0 = vpop.f32.mrb[33].mxu0  ;;  %v1407_v6 = vadd.f32 %v1868_v62, %v1372_v2  ;;  %v1003_v7 = vpop.f32.mrb[5].mxu1 }
 0x138   :  { %v1286_v4 = vadd.f32 %v1285_v0, %v1284_v63  ;;  %v1287_v5 = vpop.f32.mrb[34].mxu0  ;;  %v1409_v10 = vadd.f32 %v1864_v48, %v1003_v7  ;;  %v1373_v11 = vpop.f32.mrb[6].mxu1 }
 0x139   :  { %v1288_v8 = vpop.f32.mrb[35].mxu0  ;;  %v1063_v14 = vadd.f32 %v1407_v6, %v1891_v3  ;;  %v1411_v16 = vadd.f32 %v1870_v1, %v1373_v11  ;;  %v1006_v17 = vpop.f32.mrb[7].mxu1 }
 0x13a   :  { %v1400_v9 = vadd.f32 %v1286_v4, %v1856_v22  ;;  %v1289_v13 = vadd.f32 %v1288_v8, %v1287_v5  ;;  %v1061_v19 = vadd.f32 %v1409_v10, %v1891_v3  ;;  %v1413_v62 = vadd.f32 %v1866_v51, %v1006_v17 }
 0x13b   :  { %1079 = vst.msk [vmem:[%s1994_s5 + $0x30] sm:$0xff] %vm385_vm0, %v1063_v14  ;;  %v1064_v22 = vadd.f32 %v1411_v16, %v1891_v3 }
 0x13c   :  { %v1401_v18 = vadd.f32 %v1400_v9, %v987_v55  ;;  %v1404_v20 = vadd.f32 %v1289_v13, %v1858_v25  ;;  %1077 = vst.msk [vmem:[%s1994_s5 + $0x20] sm:$0xff] %vm385_vm0, %v1061_v19  ;;  %v1062_v21 = vadd.f32 %v1413_v62, %v1891_v3 }
 0x13d   :  { %1080 = vst.msk [vmem:[%s1994_s5 + $0x38] sm:$0xff] %vm385_vm0, %v1064_v22 }
 0x13e   :  { %v1057_v48 = vadd.f32 %v1401_v18, %v1891_v3  ;;  %v1405_v1 = vadd.f32 %v1404_v20, %v990_v60  ;;  %v1290_v25 = vpop.f32.mrb[36].mxu0  ;;  %1078 = vst.msk [vmem:[%s1994_s5 + $0x28] sm:$0xff] %vm385_vm0, %v1062_v21  ;;  %v1376_v24 = vpop.f32.mrb[8].mxu1 }
 0x13f   :  { %v1291_v51 = vpop.f32.mrb[37].mxu0  ;;  %v1415_v30 = vadd.f32 %v1876_v28, %v1376_v24  ;;  %v1019_v31 = vpop.f32.mrb[9].mxu1 }
 0x140   :  { %1073 = vst.msk [vmem:[%s1994_s5] sm:$0xff] %vm385_vm0, %v1057_v48  ;;  %v1058_v23 = vadd.f32 %v1405_v1, %v1891_v3  ;;  %v1292_v26 = vadd.f32 %v1291_v51, %v1290_v25  ;;  %v1293_v27 = vpop.f32.mrb[38].mxu0  ;;  %v1417_v36 = vadd.f32 %v1872_v12, %v1019_v31  ;;  %v1377_v37 = vpop.f32.mrb[10].mxu1 }
 0x141   :  { %v1294_v33 = vpop.f32.mrb[39].mxu0  ;;  %v1067_v39 = vadd.f32 %v1415_v30, %v1891_v3  ;;  %v1419_v40 = vadd.f32 %v1878_v32, %v1377_v37  ;;  %v1022_v41 = vpop.f32.mrb[11].mxu1 }
 0x142   :  { %1074 = vst.msk [vmem:[%s1994_s5 + $0x8] sm:$0xff] %vm385_vm0, %v1058_v23  ;;  %v1398_v34 = vadd.f32 %v1292_v26, %v1860_v29  ;;  %v1295_v38 = vadd.f32 %v1294_v33, %v1293_v27  ;;  %v1065_v28 = vadd.f32 %v1417_v36, %v1891_v3  ;;  %v1421_v45 = vadd.f32 %v1874_v15, %v1022_v41 }
 0x143   :  { %1083 = vst.msk [vmem:[%s1994_s5 + $0x50] sm:$0xff] %vm385_vm0, %v1067_v39  ;;  %v1068_v29 = vadd.f32 %v1419_v40, %v1891_v3 }
 0x144   :  { %v1399_v42 = vadd.f32 %v1398_v34, %v1368_v52  ;;  %v1402_v43 = vadd.f32 %v1295_v38, %v1862_v35  ;;  %1081 = vst.msk [vmem:[%s1994_s5 + $0x40] sm:$0xff] %vm385_vm0, %v1065_v28  ;;  %v1066_v46 = vadd.f32 %v1421_v45, %v1891_v3 }
 0x145   :  { %1084 = vst.msk [vmem:[%s1994_s5 + $0x58] sm:$0xff] %vm385_vm0, %v1068_v29 }
 0x146   :  { %v1059_v12 = vadd.f32 %v1399_v42, %v1891_v3  ;;  %v1403_v32 = vadd.f32 %v1402_v43, %v1369_v57  ;;  %1082 = vst.msk [vmem:[%s1994_s5 + $0x48] sm:$0xff] %vm385_vm0, %v1066_v46  ;;  %v1380_v15 = vpop.f32.mrb[12].mxu1 }
 0x147   :  { %v1423_v49 = vadd.f32 %v1884_v59, %v1380_v15  ;;  %v1035_v50 = vpop.f32.mrb[13].mxu1 }
 0x148   :  { %1075 = vst.msk [vmem:[%s1994_s5 + $0x10] sm:$0xff] %vm385_vm0, %v1059_v12  ;;  %v1060_v35 = vadd.f32 %v1403_v32, %v1891_v3  ;;  %v1425_v52 = vadd.f32 %v1880_v44, %v1035_v50  ;;  %v1381_v53 = vpop.f32.mrb[14].mxu1 }
 0x149   :  { %v1071_v54 = vadd.f32 %v1423_v49, %v1891_v3  ;;  %v1427_v55 = vadd.f32 %v1886_v61, %v1381_v53  ;;  %v1038_v56 = vpop.f32.mrb[15].mxu1 }
 0x14a   :  { %1076 = vst.msk [vmem:[%s1994_s5 + $0x18] sm:$0xff] %vm385_vm0, %v1060_v35  ;;  %v1069_v57 = vadd.f32 %v1425_v52, %v1891_v3  ;;  %v1429_v58 = vadd.f32 %v1882_v47, %v1038_v56 }
 0x14b   :  { %1087 = vst.msk [vmem:[%s1994_s5 + $0x70] sm:$0xff] %vm385_vm0, %v1071_v54  ;;  %v1072_v59 = vadd.f32 %v1427_v55, %v1891_v3 }
 0x14c   :  { %1085 = vst.msk [vmem:[%s1994_s5 + $0x60] sm:$0xff] %vm385_vm0, %v1069_v57  ;;  %v1070_v44 = vadd.f32 %v1429_v58, %v1891_v3 }
 0x14d   :  { %1088 = vst.msk [vmem:[%s1994_s5 + $0x78] sm:$0xff] %vm385_vm0, %v1072_v59 }
 0x14e   :  { %1086 = vst.msk [vmem:[%s1994_s5 + $0x68] sm:$0xff] %vm385_vm0, %v1070_v44 }

// kernel: unet_forward.53
= control target key start
LH: loop header
LB: loop body
LE: loop exit
PB: predicated region body
PF: predicated region fallthrough
CT: control target
= control target key end

     0   :  { %v1133_v0 = vmov 0   ;;  %vm448_vm0 = vcmask 130048   ;;  %vm834_vm1 = vcmask 7168   ;;  %s1730_s1 = inlined_call_operand.vmem [shape: bf16[144,1], index: 1, kind: input, shape index: {}]   ;;  %s1731_s0 = inlined_call_operand.vmem [shape: bf16[512,144], index: 0, kind: input, shape index: {}]   ;;  %s1732_s2 = inlined_call_operand.<no memory space> [shape: f32[1,1], index: 2, kind: input, shape index: {}]   ;;  %s1733_s3 = inlined_call_operand.vmem [shape: f32[512,1], index: 3, kind: output, shape index: {}]  }
   0x1   :  { %545 = vmatprep.subr.bf16.mxu0 %v1133_v0  ;;  %1009 = vmatprep.subr.bf16.mxu1 %v1133_v0  ;;  %v1028_v1 = vld [vmem:[%s1730_s1] sm:$0xff]   ;;  %v1029_v2 = vld [vmem:[%s1730_s1 + $0x8] sm:$0xff]   ;;  %v1030_v3 = vld [vmem:[%s1730_s1 + $0x10] sm:$0xff]   ;;  %v8_v12 = vstv %s1732_s2 }
   0x2   :  { %546 = vmatpush1.bf16.msra.mxu0 %v1028_v1  ;;  %1018 = vmatpush1.bf16.msra.mxu1 %v1028_v1  ;;  %v1031_v4 = vld [vmem:[%s1730_s1 + $0x18] sm:$0xff]   ;;  %v1039_v5 = vld [vmem:[%s1731_s0 + $0x4] ss:$8 sps:$4 sm:$0xff]   ;;  %v1034_v9 = vld [vmem:[%s1730_s1 + $0x30] sm:$0xff]   ;;  %9 = vst [vmem:[#allocation2] sm:$0x1] %v8_v12 }
   0x3   :  { %547 = vmatprep.subr.bf16.mxu0 %v1133_v0  ;;  %1010 = vmatprep.subr.bf16.mxu1 %v1133_v0  ;;  %v1042_v6 = vld [vmem:[%s1731_s0 + $0x104] ss:$8 sps:$4 sm:$0xff]   ;;  %v1035_v10 = vld [vmem:[%s1730_s1 + $0x38] sm:$0xff]   ;;  %v1037_v13 = vld [vmem:[%s1731_s0] ss:$8 sps:$4 sm:$0xff]  }
   0x4   :  { %977 = vmatprep.mubr.msk.bf16.mxu0 %vm448_vm0, %v1039_v5  ;;  %993 = vmatprep.mubr.msk.bf16.mxu1 %vm448_vm0, %v1042_v6  ;;  %v1032_v7 = vld [vmem:[%s1730_s1 + $0x20] sm:$0xff]   ;;  %v1033_v8 = vld [vmem:[%s1730_s1 + $0x28] sm:$0xff]   ;;  %v1043_v15 = vld [vmem:[%s1731_s0 + $0x14] ss:$8 sps:$4 sm:$0xff]  }
   0x5   :  { %v1036_v11 = vld [vmem:[%s1730_s1 + $0x40] sm:$0xff]   ;;  %v1045_v16 = vld [vmem:[%s1731_s0 + $0x114] ss:$8 sps:$4 sm:$0xff]   ;;  %v1047_v17 = vld [vmem:[%s1731_s0 + $0x10] ss:$8 sps:$4 sm:$0xff]  }
   0x6   :  { %548 = vmatpush1.bf16.msra.mxu0 %v1029_v2  ;;  %1019 = vmatpush1.bf16.msra.mxu1 %v1029_v2  ;;  %v1040_v14 = vld [vmem:[%s1731_s0 + $0x100] ss:$8 sps:$4 sm:$0xff]   ;;  %v1048_v18 = vld [vmem:[%s1731_s0 + $0x110] ss:$8 sps:$4 sm:$0xff]   ;;  %v1049_v19 = vld [vmem:[%s1731_s0 + $0x24] ss:$8 sps:$4 sm:$0xff]  }
   0x7   :  { %549 = vmatprep.subr.bf16.mxu0 %v1133_v0  ;;  %1011 = vmatprep.subr.bf16.mxu1 %v1133_v0  ;;  %v1051_v20 = vld [vmem:[%s1731_s0 + $0x124] ss:$8 sps:$4 sm:$0xff]   ;;  %v1053_v21 = vld [vmem:[%s1731_s0 + $0x20] ss:$8 sps:$4 sm:$0xff]   ;;  %v1055_v23 = vld [vmem:[%s1731_s0 + $0x34] ss:$8 sps:$4 sm:$0xff]  }
   0x8   :  { %v1054_v22 = vld [vmem:[%s1731_s0 + $0x120] ss:$8 sps:$4 sm:$0xff]   ;;  %v1057_v24 = vld [vmem:[%s1731_s0 + $0x134] ss:$8 sps:$4 sm:$0xff]   ;;  %v1059_v25 = vld [vmem:[%s1731_s0 + $0x30] ss:$8 sps:$4 sm:$0xff]  }
   0x9   :  { %v1060_v26 = vld [vmem:[%s1731_s0 + $0x130] ss:$8 sps:$4 sm:$0xff]   ;;  %v1061_v27 = vld [vmem:[%s1731_s0 + $0x44] ss:$8 sps:$4 sm:$0xff]   ;;  %v1065_v29 = vld [vmem:[%s1731_s0 + $0x40] ss:$8 sps:$4 sm:$0xff]  }
   0xa   :  { %550 = vmatpush1.bf16.msra.mxu0 %v1030_v3  ;;  %1020 = vmatpush1.bf16.msra.mxu1 %v1030_v3  ;;  %v1063_v28 = vld [vmem:[%s1731_s0 + $0x144] ss:$8 sps:$4 sm:$0xff]   ;;  %v1066_v30 = vld [vmem:[%s1731_s0 + $0x140] ss:$8 sps:$4 sm:$0xff]   ;;  %v1067_v31 = vld [vmem:[%s1731_s0 + $0x54] ss:$8 sps:$4 sm:$0xff]  }
   0xb   :  { %551 = vmatprep.subr.bf16.mxu0 %v1133_v0  ;;  %1012 = vmatprep.subr.bf16.mxu1 %v1133_v0  ;;  %v1069_v32 = vld [vmem:[%s1731_s0 + $0x154] ss:$8 sps:$4 sm:$0xff]   ;;  %v1071_v33 = vld [vmem:[%s1731_s0 + $0x50] ss:$8 sps:$4 sm:$0xff]   ;;  %v1073_v35 = vld [vmem:[%s1731_s0 + $0x64] ss:$8 sps:$4 sm:$0xff]  }
   0xc   :  { %v1072_v34 = vld [vmem:[%s1731_s0 + $0x150] ss:$8 sps:$4 sm:$0xff]   ;;  %v1075_v36 = vld [vmem:[%s1731_s0 + $0x164] ss:$8 sps:$4 sm:$0xff]   ;;  %v1077_v37 = vld [vmem:[%s1731_s0 + $0x60] ss:$8 sps:$4 sm:$0xff]  }
   0xd   :  { %v1078_v38 = vld [vmem:[%s1731_s0 + $0x160] ss:$8 sps:$4 sm:$0xff]   ;;  %v1079_v39 = vld [vmem:[%s1731_s0 + $0x74] ss:$8 sps:$4 sm:$0xff]   ;;  %v1083_v41 = vld [vmem:[%s1731_s0 + $0x70] ss:$8 sps:$4 sm:$0xff]  }
   0xe   :  { %552 = vmatpush1.bf16.msra.mxu0 %v1031_v4  ;;  %1021 = vmatpush1.bf16.msra.mxu1 %v1031_v4  ;;  %v1081_v40 = vld [vmem:[%s1731_s0 + $0x174] ss:$8 sps:$4 sm:$0xff]   ;;  %v1084_v42 = vld [vmem:[%s1731_s0 + $0x170] ss:$8 sps:$4 sm:$0xff]   ;;  %v1085_v43 = vld [vmem:[%s1731_s0 + $0x84] ss:$8 sps:$4 sm:$0xff]  }
   0xf   :  { %553 = vmatprep.subr.bf16.mxu0 %v1133_v0  ;;  %1013 = vmatprep.subr.bf16.mxu1 %v1133_v0  ;;  %v1087_v44 = vld [vmem:[%s1731_s0 + $0x184] ss:$8 sps:$4 sm:$0xff]   ;;  %v1089_v45 = vld [vmem:[%s1731_s0 + $0x80] ss:$8 sps:$4 sm:$0xff]   ;;  %v1091_v47 = vld [vmem:[%s1731_s0 + $0x94] ss:$8 sps:$4 sm:$0xff]  }
  0x10   :  { %v1090_v46 = vld [vmem:[%s1731_s0 + $0x180] ss:$8 sps:$4 sm:$0xff]   ;;  %v1093_v48 = vld [vmem:[%s1731_s0 + $0x194] ss:$8 sps:$4 sm:$0xff]   ;;  %v1095_v49 = vld [vmem:[%s1731_s0 + $0x90] ss:$8 sps:$4 sm:$0xff]  }
  0x11   :  { %v1096_v50 = vld [vmem:[%s1731_s0 + $0x190] ss:$8 sps:$4 sm:$0xff]   ;;  %v1097_v51 = vld [vmem:[%s1731_s0 + $0xa4] ss:$8 sps:$4 sm:$0xff]   ;;  %v1101_v53 = vld [vmem:[%s1731_s0 + $0xa0] ss:$8 sps:$4 sm:$0xff]  }
  0x12   :  { %554 = vmatpush1.bf16.msra.mxu0 %v1032_v7  ;;  %1022 = vmatpush1.bf16.msra.mxu1 %v1032_v7  ;;  %v1099_v52 = vld [vmem:[%s1731_s0 + $0x1a4] ss:$8 sps:$4 sm:$0xff]   ;;  %v1102_v54 = vld [vmem:[%s1731_s0 + $0x1a0] ss:$8 sps:$4 sm:$0xff]   ;;  %v1103_v55 = vld [vmem:[%s1731_s0 + $0xb4] ss:$8 sps:$4 sm:$0xff]  }
  0x13   :  { %555 = vmatprep.subr.bf16.mxu0 %v1133_v0  ;;  %1014 = vmatprep.subr.bf16.mxu1 %v1133_v0  ;;  %v1105_v56 = vld [vmem:[%s1731_s0 + $0x1b4] ss:$8 sps:$4 sm:$0xff]   ;;  %v1107_v57 = vld [vmem:[%s1731_s0 + $0xb0] ss:$8 sps:$4 sm:$0xff]   ;;  %v1109_v59 = vld [vmem:[%s1731_s0 + $0xc4] ss:$8 sps:$4 sm:$0xff]  }
  0x14   :  { %v1108_v58 = vld [vmem:[%s1731_s0 + $0x1b0] ss:$8 sps:$4 sm:$0xff]   ;;  %v1111_v60 = vld [vmem:[%s1731_s0 + $0x1c4] ss:$8 sps:$4 sm:$0xff]   ;;  %v1113_v61 = vld [vmem:[%s1731_s0 + $0xc0] ss:$8 sps:$4 sm:$0xff]  }
  0x15   :  { %v1114_v62 = vld [vmem:[%s1731_s0 + $0x1c0] ss:$8 sps:$4 sm:$0xff]   ;;  %v1115_v63 = vld [vmem:[%s1731_s0 + $0xd4] ss:$8 sps:$4 sm:$0xff]   ;;  %v1119_v1 = vld [vmem:[%s1731_s0 + $0xd0] ss:$8 sps:$4 sm:$0xff]  }
  0x16   :  { %556 = vmatpush1.bf16.msra.mxu0 %v1033_v8  ;;  %1023 = vmatpush1.bf16.msra.mxu1 %v1033_v8  ;;  %v1120_v2 = vld [vmem:[%s1731_s0 + $0x1d0] ss:$8 sps:$4 sm:$0xff]   ;;  %v1121_v3 = vld [vmem:[%s1731_s0 + $0xe4] ss:$8 sps:$4 sm:$0xff]   ;;  %v1125_v5 = vld [vmem:[%s1731_s0 + $0xe0] ss:$8 sps:$4 sm:$0xff]  }
  0x17   :  { %557 = vmatprep.subr.bf16.mxu0 %v1133_v0  ;;  %1015 = vmatprep.subr.bf16.mxu1 %v1133_v0  ;;  %v1123_v4 = vld [vmem:[%s1731_s0 + $0x1e4] ss:$8 sps:$4 sm:$0xff]   ;;  %v1126_v6 = vld [vmem:[%s1731_s0 + $0x1e0] ss:$8 sps:$4 sm:$0xff]   ;;  %v1127_v7 = vld [vmem:[%s1731_s0 + $0xf4] ss:$8 sps:$4 sm:$0xff]  }
  0x18   :  { %v1129_v8 = vld [vmem:[%s1731_s0 + $0x1f4] ss:$8 sps:$4 sm:$0xff]  }
  0x1a   :  { %558 = vmatpush1.bf16.msra.mxu0 %v1034_v9  ;;  %1024 = vmatpush1.bf16.msra.mxu1 %v1034_v9  ;;  %v1131_v9 = vld [vmem:[%s1731_s0 + $0xf0] ss:$8 sps:$4 sm:$0xff]  }
  0x1b   :  { %559 = vmatprep.subr.bf16.mxu0 %v1133_v0  ;;  %1016 = vmatprep.subr.bf16.mxu1 %v1133_v0 }
  0x1e   :  { %560 = vmatpush1.bf16.msra.mxu0 %v1035_v10  ;;  %1025 = vmatpush1.bf16.msra.mxu1 %v1035_v10  ;;  %v1132_v10 = vld [vmem:[%s1731_s0 + $0x1f0] ss:$8 sps:$4 sm:$0xff]  }
  0x1f   :  { %561 = vmatprep.subr.bf16.mxu0 %v1133_v0  ;;  %1017 = vmatprep.subr.bf16.mxu1 %v1133_v0  ;;  %v1117_v0 = vld [vmem:[%s1731_s0 + $0x1d4] ss:$8 sps:$4 sm:$0xff]  }
  0x22   :  { %562 = vmatpush1.bf16.msra.mxu0 %v1036_v11  ;;  %1026 = vmatpush1.bf16.msra.mxu1 %v1036_v11  ;;  %v1408_v11 = vld [vmem:[#allocation2] ss:$0 sm:$0xff] }
  0x25   :  { %578 = vmatmul.mubr.bf16.vlgmr.msra.gmra.mrb[0].mxu0 %v1037_v13  ;;  %706 = vmatmul.mubr.bf16.vlgmr.msra.gmra.mrb[0].mxu1 %v1040_v14 }
  0x26   :  { %978 = vmatprep.mubr.msk.bf16.mxu0 %vm448_vm0, %v1043_v15  ;;  %994 = vmatprep.mubr.msk.bf16.mxu1 %vm448_vm0, %v1045_v16 }
  0x2d   :  { %586 = vmatmul.mubr.bf16.gmra.mrb[4].mxu0 %v1047_v17  ;;  %714 = vmatmul.mubr.bf16.gmra.mrb[4].mxu1 %v1048_v18 }
  0x2e   :  { %979 = vmatprep.mubr.msk.bf16.mxu0 %vm448_vm0, %v1049_v19  ;;  %995 = vmatprep.mubr.msk.bf16.mxu1 %vm448_vm0, %v1051_v20 }
  0x35   :  { %594 = vmatmul.mubr.bf16.gmra.mrb[8].mxu0 %v1053_v21  ;;  %722 = vmatmul.mubr.bf16.gmra.mrb[8].mxu1 %v1054_v22 }
  0x36   :  { %980 = vmatprep.mubr.msk.bf16.mxu0 %vm448_vm0, %v1055_v23  ;;  %996 = vmatprep.mubr.msk.bf16.mxu1 %vm448_vm0, %v1057_v24 }
  0x3d   :  { %602 = vmatmul.mubr.bf16.gmra.mrb[12].mxu0 %v1059_v25  ;;  %730 = vmatmul.mubr.bf16.gmra.mrb[12].mxu1 %v1060_v26 }
  0x3e   :  { %981 = vmatprep.mubr.msk.bf16.mxu0 %vm448_vm0, %v1061_v27  ;;  %997 = vmatprep.mubr.msk.bf16.mxu1 %vm448_vm0, %v1063_v28 }
  0x45   :  { %610 = vmatmul.mubr.bf16.gmra.mrb[16].mxu0 %v1065_v29  ;;  %738 = vmatmul.mubr.bf16.gmra.mrb[16].mxu1 %v1066_v30 }
  0x46   :  { %982 = vmatprep.mubr.msk.bf16.mxu0 %vm448_vm0, %v1067_v31  ;;  %998 = vmatprep.mubr.msk.bf16.mxu1 %vm448_vm0, %v1069_v32 }
  0x4d   :  { %618 = vmatmul.mubr.bf16.gmra.mrb[20].mxu0 %v1071_v33  ;;  %746 = vmatmul.mubr.bf16.gmra.mrb[20].mxu1 %v1072_v34 }
  0x4e   :  { %983 = vmatprep.mubr.msk.bf16.mxu0 %vm448_vm0, %v1073_v35  ;;  %999 = vmatprep.mubr.msk.bf16.mxu1 %vm448_vm0, %v1075_v36 }
  0x55   :  { %626 = vmatmul.mubr.bf16.gmra.mrb[24].mxu0 %v1077_v37  ;;  %754 = vmatmul.mubr.bf16.gmra.mrb[24].mxu1 %v1078_v38 }
  0x56   :  { %984 = vmatprep.mubr.msk.bf16.mxu0 %vm448_vm0, %v1079_v39  ;;  %1000 = vmatprep.mubr.msk.bf16.mxu1 %vm448_vm0, %v1081_v40 }
  0x5d   :  { %634 = vmatmul.mubr.bf16.gmra.mrb[28].mxu0 %v1083_v41  ;;  %762 = vmatmul.mubr.bf16.gmra.mrb[28].mxu1 %v1084_v42 }
  0x5e   :  { %985 = vmatprep.mubr.msk.bf16.mxu0 %vm448_vm0, %v1085_v43  ;;  %1001 = vmatprep.mubr.msk.bf16.mxu1 %vm448_vm0, %v1087_v44 }
  0x65   :  { %642 = vmatmul.mubr.bf16.gmra.mrb[32].mxu0 %v1089_v45  ;;  %770 = vmatmul.mubr.bf16.gmra.mrb[32].mxu1 %v1090_v46 }
  0x66   :  { %986 = vmatprep.mubr.msk.bf16.mxu0 %vm448_vm0, %v1091_v47  ;;  %1002 = vmatprep.mubr.msk.bf16.mxu1 %vm448_vm0, %v1093_v48 }
  0x6d   :  { %650 = vmatmul.mubr.bf16.gmra.mrb[36].mxu0 %v1095_v49  ;;  %778 = vmatmul.mubr.bf16.gmra.mrb[36].mxu1 %v1096_v50 }
  0x6e   :  { %987 = vmatprep.mubr.msk.bf16.mxu0 %vm448_vm0, %v1097_v51  ;;  %1003 = vmatprep.mubr.msk.bf16.mxu1 %vm448_vm0, %v1099_v52 }
  0x75   :  { %658 = vmatmul.mubr.bf16.gmra.mrb[40].mxu0 %v1101_v53  ;;  %786 = vmatmul.mubr.bf16.gmra.mrb[40].mxu1 %v1102_v54 }
  0x76   :  { %988 = vmatprep.mubr.msk.bf16.mxu0 %vm448_vm0, %v1103_v55  ;;  %1004 = vmatprep.mubr.msk.bf16.mxu1 %vm448_vm0, %v1105_v56 }
  0x7d   :  { %666 = vmatmul.mubr.bf16.gmra.mrb[44].mxu0 %v1107_v57  ;;  %794 = vmatmul.mubr.bf16.gmra.mrb[44].mxu1 %v1108_v58 }
  0x7e   :  { %989 = vmatprep.mubr.msk.bf16.mxu0 %vm448_vm0, %v1109_v59  ;;  %1005 = vmatprep.mubr.msk.bf16.mxu1 %vm448_vm0, %v1111_v60 }
  0x85   :  { %674 = vmatmul.mubr.bf16.gmra.mrb[48].mxu0 %v1113_v61  ;;  %802 = vmatmul.mubr.bf16.gmra.mrb[48].mxu1 %v1114_v62 }
  0x86   :  { %990 = vmatprep.mubr.msk.bf16.mxu0 %vm448_vm0, %v1115_v63  ;;  %1006 = vmatprep.mubr.msk.bf16.mxu1 %vm448_vm0, %v1117_v0 }
  0x8d   :  { %682 = vmatmul.mubr.bf16.gmra.mrb[52].mxu0 %v1119_v1  ;;  %810 = vmatmul.mubr.bf16.gmra.mrb[52].mxu1 %v1120_v2 }
  0x8e   :  { %991 = vmatprep.mubr.msk.bf16.mxu0 %vm448_vm0, %v1121_v3  ;;  %1007 = vmatprep.mubr.msk.bf16.mxu1 %vm448_vm0, %v1123_v4 }
  0x95   :  { %690 = vmatmul.mubr.bf16.gmra.mrb[56].mxu0 %v1125_v5  ;;  %818 = vmatmul.mubr.bf16.gmra.mrb[56].mxu1 %v1126_v6 }
  0x96   :  { %992 = vmatprep.mubr.msk.bf16.mxu0 %vm448_vm0, %v1127_v7  ;;  %1008 = vmatprep.mubr.msk.bf16.mxu1 %vm448_vm0, %v1129_v8 }
  0x9d   :  { %698 = vmatmul.mubr.bf16.gmra.mrb[60].mxu0 %v1131_v9  ;;  %826 = vmatmul.mubr.bf16.gmra.mrb[60].mxu1 %v1132_v10 }
  0xf8   :  { %v579_v12 = vpop.f32.mrb[0].mxu0  ;;  %v707_v13 = vpop.f32.mrb[0].mxu1 }
  0xf9   :  { %v580_v14 = vadd.f32 %v1408_v11, %v579_v12  ;;  %v708_v15 = vadd.f32 %v1408_v11, %v707_v13  ;;  %v581_v16 = vpop.f32.mrb[1].mxu0  ;;  %v709_v17 = vpop.f32.mrb[1].mxu1 }
  0xfa   :  { %v582_v18 = vpop.f32.mrb[2].mxu0  ;;  %v710_v19 = vpop.f32.mrb[2].mxu1 }
  0xfb   :  { %835 = vst.msk [vmem:[%s1733_s3] sm:$0xff] %vm834_vm1, %v580_v14  ;;  %867 = vst.msk [vmem:[%s1733_s3 + $0x100] sm:$0xff] %vm834_vm1, %v708_v15  ;;  %v583_v20 = vadd.f32 %v1408_v11, %v582_v18  ;;  %v711_v21 = vadd.f32 %v1408_v11, %v710_v19  ;;  %v584_v22 = vpop.f32.mrb[3].mxu0  ;;  %v712_v23 = vpop.f32.mrb[3].mxu1 }
  0xfd   :  { %836 = vst.msk [vmem:[%s1733_s3 + $0x8] sm:$0xff] %vm834_vm1, %v583_v20  ;;  %868 = vst.msk [vmem:[%s1733_s3 + $0x108] sm:$0xff] %vm834_vm1, %v711_v21 }
 0x100   :  { %v587_v24 = vpop.f32.mrb[4].mxu0  ;;  %v715_v25 = vpop.f32.mrb[4].mxu1 }
 0x101   :  { %v588_v26 = vadd.f32 %v1408_v11, %v587_v24  ;;  %v716_v27 = vadd.f32 %v1408_v11, %v715_v25  ;;  %v589_v28 = vpop.f32.mrb[5].mxu0  ;;  %v717_v29 = vpop.f32.mrb[5].mxu1 }
 0x102   :  { %v590_v30 = vpop.f32.mrb[6].mxu0  ;;  %v718_v31 = vpop.f32.mrb[6].mxu1 }
 0x103   :  { %837 = vst.msk [vmem:[%s1733_s3 + $0x10] sm:$0xff] %vm834_vm1, %v588_v26  ;;  %869 = vst.msk [vmem:[%s1733_s3 + $0x110] sm:$0xff] %vm834_vm1, %v716_v27  ;;  %v591_v32 = vadd.f32 %v1408_v11, %v590_v30  ;;  %v719_v33 = vadd.f32 %v1408_v11, %v718_v31  ;;  %v592_v34 = vpop.f32.mrb[7].mxu0  ;;  %v720_v35 = vpop.f32.mrb[7].mxu1 }
 0x105   :  { %838 = vst.msk [vmem:[%s1733_s3 + $0x18] sm:$0xff] %vm834_vm1, %v591_v32  ;;  %870 = vst.msk [vmem:[%s1733_s3 + $0x118] sm:$0xff] %vm834_vm1, %v719_v33 }
 0x108   :  { %v595_v36 = vpop.f32.mrb[8].mxu0  ;;  %v723_v37 = vpop.f32.mrb[8].mxu1 }
 0x109   :  { %v596_v38 = vadd.f32 %v1408_v11, %v595_v36  ;;  %v724_v39 = vadd.f32 %v1408_v11, %v723_v37  ;;  %v597_v40 = vpop.f32.mrb[9].mxu0  ;;  %v725_v41 = vpop.f32.mrb[9].mxu1 }
 0x10a   :  { %v598_v42 = vpop.f32.mrb[10].mxu0  ;;  %v726_v43 = vpop.f32.mrb[10].mxu1 }
 0x10b   :  { %839 = vst.msk [vmem:[%s1733_s3 + $0x20] sm:$0xff] %vm834_vm1, %v596_v38  ;;  %871 = vst.msk [vmem:[%s1733_s3 + $0x120] sm:$0xff] %vm834_vm1, %v724_v39  ;;  %v599_v44 = vadd.f32 %v1408_v11, %v598_v42  ;;  %v727_v45 = vadd.f32 %v1408_v11, %v726_v43  ;;  %v600_v46 = vpop.f32.mrb[11].mxu0  ;;  %v728_v47 = vpop.f32.mrb[11].mxu1 }
 0x10d   :  { %840 = vst.msk [vmem:[%s1733_s3 + $0x28] sm:$0xff] %vm834_vm1, %v599_v44  ;;  %872 = vst.msk [vmem:[%s1733_s3 + $0x128] sm:$0xff] %vm834_vm1, %v727_v45 }
 0x110   :  { %v603_v48 = vpop.f32.mrb[12].mxu0  ;;  %v731_v49 = vpop.f32.mrb[12].mxu1 }
 0x111   :  { %v604_v50 = vadd.f32 %v1408_v11, %v603_v48  ;;  %v732_v51 = vadd.f32 %v1408_v11, %v731_v49  ;;  %v605_v52 = vpop.f32.mrb[13].mxu0  ;;  %v733_v53 = vpop.f32.mrb[13].mxu1 }
 0x112   :  { %v606_v54 = vpop.f32.mrb[14].mxu0  ;;  %v734_v55 = vpop.f32.mrb[14].mxu1 }
 0x113   :  { %841 = vst.msk [vmem:[%s1733_s3 + $0x30] sm:$0xff] %vm834_vm1, %v604_v50  ;;  %873 = vst.msk [vmem:[%s1733_s3 + $0x130] sm:$0xff] %vm834_vm1, %v732_v51  ;;  %v607_v56 = vadd.f32 %v1408_v11, %v606_v54  ;;  %v735_v57 = vadd.f32 %v1408_v11, %v734_v55  ;;  %v608_v58 = vpop.f32.mrb[15].mxu0  ;;  %v736_v59 = vpop.f32.mrb[15].mxu1 }
 0x115   :  { %842 = vst.msk [vmem:[%s1733_s3 + $0x38] sm:$0xff] %vm834_vm1, %v607_v56  ;;  %874 = vst.msk [vmem:[%s1733_s3 + $0x138] sm:$0xff] %vm834_vm1, %v735_v57 }
 0x118   :  { %v611_v60 = vpop.f32.mrb[16].mxu0  ;;  %v739_v61 = vpop.f32.mrb[16].mxu1 }
 0x119   :  { %v612_v62 = vadd.f32 %v1408_v11, %v611_v60  ;;  %v740_v63 = vadd.f32 %v1408_v11, %v739_v61  ;;  %v613_v0 = vpop.f32.mrb[17].mxu0  ;;  %v741_v1 = vpop.f32.mrb[17].mxu1 }
 0x11a   :  { %v614_v2 = vpop.f32.mrb[18].mxu0  ;;  %v742_v3 = vpop.f32.mrb[18].mxu1 }
 0x11b   :  { %843 = vst.msk [vmem:[%s1733_s3 + $0x40] sm:$0xff] %vm834_vm1, %v612_v62  ;;  %875 = vst.msk [vmem:[%s1733_s3 + $0x140] sm:$0xff] %vm834_vm1, %v740_v63  ;;  %v615_v4 = vadd.f32 %v1408_v11, %v614_v2  ;;  %v743_v5 = vadd.f32 %v1408_v11, %v742_v3  ;;  %v616_v6 = vpop.f32.mrb[19].mxu0  ;;  %v744_v7 = vpop.f32.mrb[19].mxu1 }
 0x11d   :  { %844 = vst.msk [vmem:[%s1733_s3 + $0x48] sm:$0xff] %vm834_vm1, %v615_v4  ;;  %876 = vst.msk [vmem:[%s1733_s3 + $0x148] sm:$0xff] %vm834_vm1, %v743_v5 }
 0x120   :  { %v619_v8 = vpop.f32.mrb[20].mxu0  ;;  %v747_v9 = vpop.f32.mrb[20].mxu1 }
 0x121   :  { %v620_v10 = vadd.f32 %v1408_v11, %v619_v8  ;;  %v748_v12 = vadd.f32 %v1408_v11, %v747_v9  ;;  %v621_v13 = vpop.f32.mrb[21].mxu0  ;;  %v749_v14 = vpop.f32.mrb[21].mxu1 }
 0x122   :  { %v622_v15 = vpop.f32.mrb[22].mxu0  ;;  %v750_v16 = vpop.f32.mrb[22].mxu1 }
 0x123   :  { %845 = vst.msk [vmem:[%s1733_s3 + $0x50] sm:$0xff] %vm834_vm1, %v620_v10  ;;  %877 = vst.msk [vmem:[%s1733_s3 + $0x150] sm:$0xff] %vm834_vm1, %v748_v12  ;;  %v623_v17 = vadd.f32 %v1408_v11, %v622_v15  ;;  %v751_v18 = vadd.f32 %v1408_v11, %v750_v16  ;;  %v624_v19 = vpop.f32.mrb[23].mxu0  ;;  %v752_v20 = vpop.f32.mrb[23].mxu1 }
 0x125   :  { %846 = vst.msk [vmem:[%s1733_s3 + $0x58] sm:$0xff] %vm834_vm1, %v623_v17  ;;  %878 = vst.msk [vmem:[%s1733_s3 + $0x158] sm:$0xff] %vm834_vm1, %v751_v18 }
 0x128   :  { %v627_v21 = vpop.f32.mrb[24].mxu0  ;;  %v755_v22 = vpop.f32.mrb[24].mxu1 }
 0x129   :  { %v628_v23 = vadd.f32 %v1408_v11, %v627_v21  ;;  %v756_v24 = vadd.f32 %v1408_v11, %v755_v22  ;;  %v629_v25 = vpop.f32.mrb[25].mxu0  ;;  %v757_v26 = vpop.f32.mrb[25].mxu1 }
 0x12a   :  { %v630_v27 = vpop.f32.mrb[26].mxu0  ;;  %v758_v28 = vpop.f32.mrb[26].mxu1 }
 0x12b   :  { %847 = vst.msk [vmem:[%s1733_s3 + $0x60] sm:$0xff] %vm834_vm1, %v628_v23  ;;  %879 = vst.msk [vmem:[%s1733_s3 + $0x160] sm:$0xff] %vm834_vm1, %v756_v24  ;;  %v631_v29 = vadd.f32 %v1408_v11, %v630_v27  ;;  %v759_v30 = vadd.f32 %v1408_v11, %v758_v28  ;;  %v632_v31 = vpop.f32.mrb[27].mxu0  ;;  %v760_v32 = vpop.f32.mrb[27].mxu1 }
 0x12d   :  { %848 = vst.msk [vmem:[%s1733_s3 + $0x68] sm:$0xff] %vm834_vm1, %v631_v29  ;;  %880 = vst.msk [vmem:[%s1733_s3 + $0x168] sm:$0xff] %vm834_vm1, %v759_v30 }
 0x130   :  { %v635_v33 = vpop.f32.mrb[28].mxu0  ;;  %v763_v34 = vpop.f32.mrb[28].mxu1 }
 0x131   :  { %v636_v35 = vadd.f32 %v1408_v11, %v635_v33  ;;  %v764_v36 = vadd.f32 %v1408_v11, %v763_v34  ;;  %v637_v37 = vpop.f32.mrb[29].mxu0  ;;  %v765_v38 = vpop.f32.mrb[29].mxu1 }
 0x132   :  { %v638_v39 = vpop.f32.mrb[30].mxu0  ;;  %v766_v40 = vpop.f32.mrb[30].mxu1 }
 0x133   :  { %849 = vst.msk [vmem:[%s1733_s3 + $0x70] sm:$0xff] %vm834_vm1, %v636_v35  ;;  %881 = vst.msk [vmem:[%s1733_s3 + $0x170] sm:$0xff] %vm834_vm1, %v764_v36  ;;  %v639_v41 = vadd.f32 %v1408_v11, %v638_v39  ;;  %v767_v42 = vadd.f32 %v1408_v11, %v766_v40  ;;  %v640_v43 = vpop.f32.mrb[31].mxu0  ;;  %v768_v44 = vpop.f32.mrb[31].mxu1 }
 0x135   :  { %850 = vst.msk [vmem:[%s1733_s3 + $0x78] sm:$0xff] %vm834_vm1, %v639_v41  ;;  %882 = vst.msk [vmem:[%s1733_s3 + $0x178] sm:$0xff] %vm834_vm1, %v767_v42 }
 0x138   :  { %v643_v45 = vpop.f32.mrb[32].mxu0  ;;  %v771_v46 = vpop.f32.mrb[32].mxu1 }
 0x139   :  { %v644_v47 = vadd.f32 %v1408_v11, %v643_v45  ;;  %v772_v48 = vadd.f32 %v1408_v11, %v771_v46  ;;  %v645_v49 = vpop.f32.mrb[33].mxu0  ;;  %v773_v50 = vpop.f32.mrb[33].mxu1 }
 0x13a   :  { %v646_v51 = vpop.f32.mrb[34].mxu0  ;;  %v774_v52 = vpop.f32.mrb[34].mxu1 }
 0x13b   :  { %851 = vst.msk [vmem:[%s1733_s3 + $0x80] sm:$0xff] %vm834_vm1, %v644_v47  ;;  %883 = vst.msk [vmem:[%s1733_s3 + $0x180] sm:$0xff] %vm834_vm1, %v772_v48  ;;  %v647_v53 = vadd.f32 %v1408_v11, %v646_v51  ;;  %v775_v54 = vadd.f32 %v1408_v11, %v774_v52  ;;  %v648_v55 = vpop.f32.mrb[35].mxu0  ;;  %v776_v56 = vpop.f32.mrb[35].mxu1 }
 0x13d   :  { %852 = vst.msk [vmem:[%s1733_s3 + $0x88] sm:$0xff] %vm834_vm1, %v647_v53  ;;  %884 = vst.msk [vmem:[%s1733_s3 + $0x188] sm:$0xff] %vm834_vm1, %v775_v54 }
 0x140   :  { %v651_v57 = vpop.f32.mrb[36].mxu0  ;;  %v779_v58 = vpop.f32.mrb[36].mxu1 }
 0x141   :  { %v652_v59 = vadd.f32 %v1408_v11, %v651_v57  ;;  %v780_v60 = vadd.f32 %v1408_v11, %v779_v58  ;;  %v653_v61 = vpop.f32.mrb[37].mxu0  ;;  %v781_v62 = vpop.f32.mrb[37].mxu1 }
 0x142   :  { %v654_v63 = vpop.f32.mrb[38].mxu0  ;;  %v782_v0 = vpop.f32.mrb[38].mxu1 }
 0x143   :  { %853 = vst.msk [vmem:[%s1733_s3 + $0x90] sm:$0xff] %vm834_vm1, %v652_v59  ;;  %885 = vst.msk [vmem:[%s1733_s3 + $0x190] sm:$0xff] %vm834_vm1, %v780_v60  ;;  %v655_v1 = vadd.f32 %v1408_v11, %v654_v63  ;;  %v783_v2 = vadd.f32 %v1408_v11, %v782_v0  ;;  %v656_v3 = vpop.f32.mrb[39].mxu0  ;;  %v784_v4 = vpop.f32.mrb[39].mxu1 }
 0x145   :  { %854 = vst.msk [vmem:[%s1733_s3 + $0x98] sm:$0xff] %vm834_vm1, %v655_v1  ;;  %886 = vst.msk [vmem:[%s1733_s3 + $0x198] sm:$0xff] %vm834_vm1, %v783_v2 }
 0x148   :  { %v659_v5 = vpop.f32.mrb[40].mxu0  ;;  %v787_v6 = vpop.f32.mrb[40].mxu1 }
 0x149   :  { %v660_v7 = vadd.f32 %v1408_v11, %v659_v5  ;;  %v788_v8 = vadd.f32 %v1408_v11, %v787_v6  ;;  %v661_v9 = vpop.f32.mrb[41].mxu0  ;;  %v789_v10 = vpop.f32.mrb[41].mxu1 }
 0x14a   :  { %v662_v12 = vpop.f32.mrb[42].mxu0  ;;  %v790_v13 = vpop.f32.mrb[42].mxu1 }
 0x14b   :  { %855 = vst.msk [vmem:[%s1733_s3 + $0xa0] sm:$0xff] %vm834_vm1, %v660_v7  ;;  %887 = vst.msk [vmem:[%s1733_s3 + $0x1a0] sm:$0xff] %vm834_vm1, %v788_v8  ;;  %v663_v14 = vadd.f32 %v1408_v11, %v662_v12  ;;  %v791_v15 = vadd.f32 %v1408_v11, %v790_v13  ;;  %v664_v16 = vpop.f32.mrb[43].mxu0  ;;  %v792_v17 = vpop.f32.mrb[43].mxu1 }
 0x14d   :  { %856 = vst.msk [vmem:[%s1733_s3 + $0xa8] sm:$0xff] %vm834_vm1, %v663_v14  ;;  %888 = vst.msk [vmem:[%s1733_s3 + $0x1a8] sm:$0xff] %vm834_vm1, %v791_v15 }
 0x150   :  { %v667_v18 = vpop.f32.mrb[44].mxu0  ;;  %v795_v19 = vpop.f32.mrb[44].mxu1 }
 0x151   :  { %v668_v20 = vadd.f32 %v1408_v11, %v667_v18  ;;  %v796_v21 = vadd.f32 %v1408_v11, %v795_v19  ;;  %v669_v22 = vpop.f32.mrb[45].mxu0  ;;  %v797_v23 = vpop.f32.mrb[45].mxu1 }
 0x152   :  { %v670_v24 = vpop.f32.mrb[46].mxu0  ;;  %v798_v25 = vpop.f32.mrb[46].mxu1 }
 0x153   :  { %857 = vst.msk [vmem:[%s1733_s3 + $0xb0] sm:$0xff] %vm834_vm1, %v668_v20  ;;  %889 = vst.msk [vmem:[%s1733_s3 + $0x1b0] sm:$0xff] %vm834_vm1, %v796_v21  ;;  %v671_v26 = vadd.f32 %v1408_v11, %v670_v24  ;;  %v799_v27 = vadd.f32 %v1408_v11, %v798_v25  ;;  %v672_v28 = vpop.f32.mrb[47].mxu0  ;;  %v800_v29 = vpop.f32.mrb[47].mxu1 }
 0x155   :  { %858 = vst.msk [vmem:[%s1733_s3 + $0xb8] sm:$0xff] %vm834_vm1, %v671_v26  ;;  %890 = vst.msk [vmem:[%s1733_s3 + $0x1b8] sm:$0xff] %vm834_vm1, %v799_v27 }
 0x158   :  { %v675_v30 = vpop.f32.mrb[48].mxu0  ;;  %v803_v31 = vpop.f32.mrb[48].mxu1 }
 0x159   :  { %v676_v32 = vadd.f32 %v1408_v11, %v675_v30  ;;  %v804_v33 = vadd.f32 %v1408_v11, %v803_v31  ;;  %v677_v34 = vpop.f32.mrb[49].mxu0  ;;  %v805_v35 = vpop.f32.mrb[49].mxu1 }
 0x15a   :  { %v678_v36 = vpop.f32.mrb[50].mxu0  ;;  %v806_v37 = vpop.f32.mrb[50].mxu1 }
 0x15b   :  { %859 = vst.msk [vmem:[%s1733_s3 + $0xc0] sm:$0xff] %vm834_vm1, %v676_v32  ;;  %891 = vst.msk [vmem:[%s1733_s3 + $0x1c0] sm:$0xff] %vm834_vm1, %v804_v33  ;;  %v679_v38 = vadd.f32 %v1408_v11, %v678_v36  ;;  %v807_v39 = vadd.f32 %v1408_v11, %v806_v37  ;;  %v680_v40 = vpop.f32.mrb[51].mxu0  ;;  %v808_v41 = vpop.f32.mrb[51].mxu1 }
 0x15d   :  { %860 = vst.msk [vmem:[%s1733_s3 + $0xc8] sm:$0xff] %vm834_vm1, %v679_v38  ;;  %892 = vst.msk [vmem:[%s1733_s3 + $0x1c8] sm:$0xff] %vm834_vm1, %v807_v39 }
 0x160   :  { %v683_v42 = vpop.f32.mrb[52].mxu0  ;;  %v811_v43 = vpop.f32.mrb[52].mxu1 }
 0x161   :  { %v684_v44 = vadd.f32 %v1408_v11, %v683_v42  ;;  %v812_v45 = vadd.f32 %v1408_v11, %v811_v43  ;;  %v685_v46 = vpop.f32.mrb[53].mxu0  ;;  %v813_v47 = vpop.f32.mrb[53].mxu1 }
 0x162   :  { %v686_v48 = vpop.f32.mrb[54].mxu0  ;;  %v814_v49 = vpop.f32.mrb[54].mxu1 }
 0x163   :  { %861 = vst.msk [vmem:[%s1733_s3 + $0xd0] sm:$0xff] %vm834_vm1, %v684_v44  ;;  %893 = vst.msk [vmem:[%s1733_s3 + $0x1d0] sm:$0xff] %vm834_vm1, %v812_v45  ;;  %v687_v50 = vadd.f32 %v1408_v11, %v686_v48  ;;  %v815_v51 = vadd.f32 %v1408_v11, %v814_v49  ;;  %v688_v52 = vpop.f32.mrb[55].mxu0  ;;  %v816_v53 = vpop.f32.mrb[55].mxu1 }
 0x165   :  { %862 = vst.msk [vmem:[%s1733_s3 + $0xd8] sm:$0xff] %vm834_vm1, %v687_v50  ;;  %894 = vst.msk [vmem:[%s1733_s3 + $0x1d8] sm:$0xff] %vm834_vm1, %v815_v51 }
 0x168   :  { %v691_v54 = vpop.f32.mrb[56].mxu0  ;;  %v819_v55 = vpop.f32.mrb[56].mxu1 }
 0x169   :  { %v692_v56 = vadd.f32 %v1408_v11, %v691_v54  ;;  %v820_v57 = vadd.f32 %v1408_v11, %v819_v55  ;;  %v693_v58 = vpop.f32.mrb[57].mxu0  ;;  %v821_v59 = vpop.f32.mrb[57].mxu1 }
 0x16a   :  { %v694_v60 = vpop.f32.mrb[58].mxu0  ;;  %v822_v61 = vpop.f32.mrb[58].mxu1 }
 0x16b   :  { %863 = vst.msk [vmem:[%s1733_s3 + $0xe0] sm:$0xff] %vm834_vm1, %v692_v56  ;;  %895 = vst.msk [vmem:[%s1733_s3 + $0x1e0] sm:$0xff] %vm834_vm1, %v820_v57  ;;  %v695_v62 = vadd.f32 %v1408_v11, %v694_v60  ;;  %v823_v63 = vadd.f32 %v1408_v11, %v822_v61  ;;  %v696_v0 = vpop.f32.mrb[59].mxu0  ;;  %v824_v1 = vpop.f32.mrb[59].mxu1 }
 0x16d   :  { %864 = vst.msk [vmem:[%s1733_s3 + $0xe8] sm:$0xff] %vm834_vm1, %v695_v62  ;;  %896 = vst.msk [vmem:[%s1733_s3 + $0x1e8] sm:$0xff] %vm834_vm1, %v823_v63 }
 0x170   :  { %v699_v2 = vpop.f32.mrb[60].mxu0  ;;  %v827_v3 = vpop.f32.mrb[60].mxu1 }
 0x171   :  { %v700_v4 = vadd.f32 %v1408_v11, %v699_v2  ;;  %v828_v5 = vadd.f32 %v1408_v11, %v827_v3  ;;  %v701_v6 = vpop.f32.mrb[61].mxu0  ;;  %v829_v7 = vpop.f32.mrb[61].mxu1 }
 0x172   :  { %v702_v8 = vpop.f32.mrb[62].mxu0  ;;  %v830_v9 = vpop.f32.mrb[62].mxu1 }
 0x173   :  { %865 = vst.msk [vmem:[%s1733_s3 + $0xf0] sm:$0xff] %vm834_vm1, %v700_v4  ;;  %897 = vst.msk [vmem:[%s1733_s3 + $0x1f0] sm:$0xff] %vm834_vm1, %v828_v5  ;;  %v703_v10 = vadd.f32 %v1408_v11, %v702_v8  ;;  %v831_v12 = vadd.f32 %v1408_v11, %v830_v9  ;;  %v704_v13 = vpop.f32.mrb[63].mxu0  ;;  %v832_v14 = vpop.f32.mrb[63].mxu1 }
 0x175   :  { %866 = vst.msk [vmem:[%s1733_s3 + $0xf8] sm:$0xff] %vm834_vm1, %v703_v10  ;;  %898 = vst.msk [vmem:[%s1733_s3 + $0x1f8] sm:$0xff] %vm834_vm1, %v831_v12 }

// kernel: unet_forward.51
= control target key start
LH: loop header
LB: loop body
LE: loop exit
PB: predicated region body
PF: predicated region fallthrough
CT: control target
= control target key end

     0   :  { %v2201_v0 = vmov 0   ;;  %vm527_vm0 = vcmask 130048   ;;  %s3059_s3 = inlined_call_operand.vmem [shape: bf16[144,16], index: 3, kind: input, shape index: {}]   ;;  %s3060_s2 = inlined_call_operand.vmem [shape: bf16[144,16], index: 2, kind: input, shape index: {}]   ;;  %s3061_s1 = inlined_call_operand.vmem [shape: bf16[512,144], index: 1, kind: input, shape index: {}]   ;;  %s3062_s0 = inlined_call_operand.vmem [shape: bf16[512,144], index: 0, kind: input, shape index: {}]   ;;  %s3063_s4 = inlined_call_operand.vmem [shape: f32[1,16], index: 4, kind: input, shape index: {}]   ;;  %s3064_s5 = inlined_call_operand.vmem [shape: f32[512,16], index: 5, kind: output, shape index: {}]  }
   0x1   :  { %624 = vmatprep.subr.bf16.mxu0 %v2201_v0  ;;  %1351 = vmatprep.subr.bf16.mxu1 %v2201_v0  ;;  %v1991_v1 = vld [vmem:[%s3059_s3] sm:$0xff]   ;;  %v1993_v3 = vld [vmem:[%s3059_s3 + $0x8] sm:$0xff]   ;;  %v1995_v5 = vld [vmem:[%s3059_s3 + $0x10] sm:$0xff]  }
   0x2   :  { %v1992_v2 = vld [vmem:[%s3060_s2] sm:$0xff]   ;;  %625 = vmatpush1.bf16.msra.mxu0 %v1991_v1  ;;  %v1994_v4 = vld [vmem:[%s3060_s2 + $0x8] sm:$0xff]   ;;  %v1996_v6 = vld [vmem:[%s3060_s2 + $0x10] sm:$0xff]  }
   0x3   :  { %1352 = vmatpush1.bf16.msra.mxu1 %v1992_v2  ;;  %626 = vmatprep.subr.bf16.mxu0 %v2201_v0  ;;  %v1997_v7 = vld [vmem:[%s3059_s3 + $0x18] sm:$0xff]   ;;  %v1999_v9 = vld [vmem:[%s3059_s3 + $0x20] sm:$0xff]   ;;  %v2001_v11 = vld [vmem:[%s3059_s3 + $0x28] sm:$0xff]  }
   0x4   :  { %1353 = vmatprep.subr.bf16.mxu1 %v2201_v0  ;;  %v1998_v8 = vld [vmem:[%s3060_s2 + $0x18] sm:$0xff]   ;;  %v2000_v10 = vld [vmem:[%s3060_s2 + $0x20] sm:$0xff]   ;;  %v2002_v12 = vld [vmem:[%s3060_s2 + $0x28] sm:$0xff]  }
   0x5   :  { %v2011_v13 = vld [vmem:[%s3061_s1 + $0x4] ss:$8 sps:$4 sm:$0xff]   ;;  %v2003_v15 = vld [vmem:[%s3059_s3 + $0x30] sm:$0xff]   ;;  %v2005_v17 = vld [vmem:[%s3059_s3 + $0x38] sm:$0xff]  }
   0x6   :  { %627 = vmatpush1.bf16.msra.mxu0 %v1993_v3  ;;  %v2014_v14 = vld [vmem:[%s3062_s0 + $0x4] ss:$8 sps:$4 sm:$0xff]   ;;  %1852 = vmatprep.mubr.msk.bf16.mxu0 %vm527_vm0, %v2011_v13  ;;  %v2004_v16 = vld [vmem:[%s3060_s2 + $0x30] sm:$0xff]   ;;  %v2006_v18 = vld [vmem:[%s3060_s2 + $0x38] sm:$0xff]  }
   0x7   :  { %1354 = vmatpush1.bf16.msra.mxu1 %v1994_v4  ;;  %628 = vmatprep.subr.bf16.mxu0 %v2201_v0  ;;  %v2007_v19 = vld [vmem:[%s3059_s3 + $0x40] sm:$0xff]   ;;  %v2015_v23 = vld [vmem:[%s3061_s1 + $0x14] ss:$8 sps:$4 sm:$0xff]   ;;  %v2019_v25 = vld [vmem:[%s3061_s1 + $0x10] ss:$8 sps:$4 sm:$0xff]  }
   0x8   :  { %1355 = vmatprep.subr.bf16.mxu1 %v2201_v0  ;;  %1957 = vmatprep.mubr.msk.bf16.mxu1 %vm527_vm0, %v2014_v14  ;;  %v2008_v20 = vld [vmem:[%s3060_s2 + $0x40] sm:$0xff]   ;;  %v2017_v24 = vld [vmem:[%s3062_s0 + $0x14] ss:$8 sps:$4 sm:$0xff]   ;;  %v2020_v26 = vld [vmem:[%s3062_s0 + $0x10] ss:$8 sps:$4 sm:$0xff]  }
   0x9   :  { %v2009_v21 = vld [vmem:[%s3061_s1] ss:$8 sps:$4 sm:$0xff]   ;;  %v2021_v27 = vld [vmem:[%s3061_s1 + $0x24] ss:$8 sps:$4 sm:$0xff]   ;;  %v2027_v31 = vld [vmem:[%s3061_s1 + $0x34] ss:$8 sps:$4 sm:$0xff]  }
   0xa   :  { %629 = vmatpush1.bf16.msra.mxu0 %v1995_v5  ;;  %v2012_v22 = vld [vmem:[%s3062_s0] ss:$8 sps:$4 sm:$0xff]   ;;  %v2023_v28 = vld [vmem:[%s3062_s0 + $0x24] ss:$8 sps:$4 sm:$0xff]   ;;  %v2029_v32 = vld [vmem:[%s3062_s0 + $0x34] ss:$8 sps:$4 sm:$0xff]  }
   0xb   :  { %1356 = vmatpush1.bf16.msra.mxu1 %v1996_v6  ;;  %630 = vmatprep.subr.bf16.mxu0 %v2201_v0  ;;  %v2025_v29 = vld [vmem:[%s3061_s1 + $0x20] ss:$8 sps:$4 sm:$0xff]   ;;  %v2031_v33 = vld [vmem:[%s3061_s1 + $0x30] ss:$8 sps:$4 sm:$0xff]   ;;  %v2033_v35 = vld [vmem:[%s3061_s1 + $0x44] ss:$8 sps:$4 sm:$0xff]  }
   0xc   :  { %1357 = vmatprep.subr.bf16.mxu1 %v2201_v0  ;;  %v2026_v30 = vld [vmem:[%s3062_s0 + $0x20] ss:$8 sps:$4 sm:$0xff]   ;;  %v2032_v34 = vld [vmem:[%s3062_s0 + $0x30] ss:$8 sps:$4 sm:$0xff]   ;;  %v2035_v36 = vld [vmem:[%s3062_s0 + $0x44] ss:$8 sps:$4 sm:$0xff]  }
   0xd   :  { %v2037_v37 = vld [vmem:[%s3061_s1 + $0x40] ss:$8 sps:$4 sm:$0xff]   ;;  %v2039_v39 = vld [vmem:[%s3061_s1 + $0x54] ss:$8 sps:$4 sm:$0xff]   ;;  %v2043_v41 = vld [vmem:[%s3061_s1 + $0x50] ss:$8 sps:$4 sm:$0xff]  }
   0xe   :  { %631 = vmatpush1.bf16.msra.mxu0 %v1997_v7  ;;  %v2038_v38 = vld [vmem:[%s3062_s0 + $0x40] ss:$8 sps:$4 sm:$0xff]   ;;  %v2041_v40 = vld [vmem:[%s3062_s0 + $0x54] ss:$8 sps:$4 sm:$0xff]   ;;  %v2044_v42 = vld [vmem:[%s3062_s0 + $0x50] ss:$8 sps:$4 sm:$0xff]  }
   0xf   :  { %1358 = vmatpush1.bf16.msra.mxu1 %v1998_v8  ;;  %632 = vmatprep.subr.bf16.mxu0 %v2201_v0  ;;  %v2045_v43 = vld [vmem:[%s3061_s1 + $0x64] ss:$8 sps:$4 sm:$0xff]   ;;  %v2049_v45 = vld [vmem:[%s3061_s1 + $0x60] ss:$8 sps:$4 sm:$0xff]   ;;  %v2051_v47 = vld [vmem:[%s3061_s1 + $0x74] ss:$8 sps:$4 sm:$0xff]  }
  0x10   :  { %1359 = vmatprep.subr.bf16.mxu1 %v2201_v0  ;;  %v2047_v44 = vld [vmem:[%s3062_s0 + $0x64] ss:$8 sps:$4 sm:$0xff]   ;;  %v2050_v46 = vld [vmem:[%s3062_s0 + $0x60] ss:$8 sps:$4 sm:$0xff]   ;;  %v2053_v48 = vld [vmem:[%s3062_s0 + $0x74] ss:$8 sps:$4 sm:$0xff]  }
  0x11   :  { %v2055_v49 = vld [vmem:[%s3061_s1 + $0x70] ss:$8 sps:$4 sm:$0xff]   ;;  %v2057_v51 = vld [vmem:[%s3061_s1 + $0x84] ss:$8 sps:$4 sm:$0xff]   ;;  %v2061_v53 = vld [vmem:[%s3061_s1 + $0x80] ss:$8 sps:$4 sm:$0xff]  }
  0x12   :  { %633 = vmatpush1.bf16.msra.mxu0 %v1999_v9  ;;  %v2056_v50 = vld [vmem:[%s3062_s0 + $0x70] ss:$8 sps:$4 sm:$0xff]   ;;  %v2059_v52 = vld [vmem:[%s3062_s0 + $0x84] ss:$8 sps:$4 sm:$0xff]   ;;  %v2062_v54 = vld [vmem:[%s3062_s0 + $0x80] ss:$8 sps:$4 sm:$0xff]  }
  0x13   :  { %1360 = vmatpush1.bf16.msra.mxu1 %v2000_v10  ;;  %634 = vmatprep.subr.bf16.mxu0 %v2201_v0  ;;  %v2063_v55 = vld [vmem:[%s3061_s1 + $0x94] ss:$8 sps:$4 sm:$0xff]   ;;  %v2067_v57 = vld [vmem:[%s3061_s1 + $0x90] ss:$8 sps:$4 sm:$0xff]   ;;  %v2069_v59 = vld [vmem:[%s3061_s1 + $0xa4] ss:$8 sps:$4 sm:$0xff]  }
  0x14   :  { %1361 = vmatprep.subr.bf16.mxu1 %v2201_v0  ;;  %v2065_v56 = vld [vmem:[%s3062_s0 + $0x94] ss:$8 sps:$4 sm:$0xff]   ;;  %v2068_v58 = vld [vmem:[%s3062_s0 + $0x90] ss:$8 sps:$4 sm:$0xff]   ;;  %v2071_v60 = vld [vmem:[%s3062_s0 + $0xa4] ss:$8 sps:$4 sm:$0xff]  }
  0x15   :  { %v2073_v61 = vld [vmem:[%s3061_s1 + $0xa0] ss:$8 sps:$4 sm:$0xff]   ;;  %v2075_v63 = vld [vmem:[%s3061_s1 + $0xb4] ss:$8 sps:$4 sm:$0xff]   ;;  %v2079_v1 = vld [vmem:[%s3061_s1 + $0xb0] ss:$8 sps:$4 sm:$0xff]  }
  0x16   :  { %635 = vmatpush1.bf16.msra.mxu0 %v2001_v11  ;;  %v2074_v62 = vld [vmem:[%s3062_s0 + $0xa0] ss:$8 sps:$4 sm:$0xff]   ;;  %v2080_v2 = vld [vmem:[%s3062_s0 + $0xb0] ss:$8 sps:$4 sm:$0xff]   ;;  %v2081_v3 = vld [vmem:[%s3061_s1 + $0xc4] ss:$8 sps:$4 sm:$0xff]  }
  0x17   :  { %1362 = vmatpush1.bf16.msra.mxu1 %v2002_v12  ;;  %636 = vmatprep.subr.bf16.mxu0 %v2201_v0  ;;  %v2083_v4 = vld [vmem:[%s3062_s0 + $0xc4] ss:$8 sps:$4 sm:$0xff]   ;;  %v2085_v5 = vld [vmem:[%s3061_s1 + $0xc0] ss:$8 sps:$4 sm:$0xff]   ;;  %v2087_v7 = vld [vmem:[%s3061_s1 + $0xd4] ss:$8 sps:$4 sm:$0xff]  }
  0x18   :  { %1363 = vmatprep.subr.bf16.mxu1 %v2201_v0  ;;  %v2086_v6 = vld [vmem:[%s3062_s0 + $0xc0] ss:$8 sps:$4 sm:$0xff]   ;;  %v2089_v8 = vld [vmem:[%s3062_s0 + $0xd4] ss:$8 sps:$4 sm:$0xff]   ;;  %v2091_v9 = vld [vmem:[%s3061_s1 + $0xd0] ss:$8 sps:$4 sm:$0xff]  }
  0x19   :  { %v2092_v10 = vld [vmem:[%s3062_s0 + $0xd0] ss:$8 sps:$4 sm:$0xff]   ;;  %v2093_v11 = vld [vmem:[%s3061_s1 + $0xe4] ss:$8 sps:$4 sm:$0xff]   ;;  %v2097_v13 = vld [vmem:[%s3061_s1 + $0xe0] ss:$8 sps:$4 sm:$0xff]  }
  0x1a   :  { %637 = vmatpush1.bf16.msra.mxu0 %v2003_v15  ;;  %v2095_v12 = vld [vmem:[%s3062_s0 + $0xe4] ss:$8 sps:$4 sm:$0xff]   ;;  %v2098_v14 = vld [vmem:[%s3062_s0 + $0xe0] ss:$8 sps:$4 sm:$0xff]   ;;  %v2099_v15 = vld [vmem:[%s3061_s1 + $0xf4] ss:$8 sps:$4 sm:$0xff]  }
  0x1b   :  { %1364 = vmatpush1.bf16.msra.mxu1 %v2004_v16  ;;  %638 = vmatprep.subr.bf16.mxu0 %v2201_v0  ;;  %v2101_v16 = vld [vmem:[%s3062_s0 + $0xf4] ss:$8 sps:$4 sm:$0xff]  }
  0x1c   :  { %1365 = vmatprep.subr.bf16.mxu1 %v2201_v0 }
  0x1e   :  { %639 = vmatpush1.bf16.msra.mxu0 %v2005_v17  ;;  %v2103_v17 = vld [vmem:[%s3061_s1 + $0xf0] ss:$8 sps:$4 sm:$0xff]  }
  0x1f   :  { %1366 = vmatpush1.bf16.msra.mxu1 %v2006_v18  ;;  %640 = vmatprep.subr.bf16.mxu0 %v2201_v0  ;;  %v2104_v18 = vld [vmem:[%s3062_s0 + $0xf0] ss:$8 sps:$4 sm:$0xff]  }
  0x20   :  { %1367 = vmatprep.subr.bf16.mxu1 %v2201_v0  ;;  %v2077_v0 = vld [vmem:[%s3062_s0 + $0xb4] ss:$8 sps:$4 sm:$0xff]  }
  0x22   :  { %641 = vmatpush1.bf16.msra.mxu0 %v2007_v19  ;;  %v2105_v19 = vld [vmem:[%s3061_s1 + $0x104] ss:$8 sps:$4 sm:$0xff]  }
  0x23   :  { %1368 = vmatpush1.bf16.msra.mxu1 %v2008_v20  ;;  %v2107_v20 = vld [vmem:[%s3062_s0 + $0x104] ss:$8 sps:$4 sm:$0xff]  }
  0x25   :  { %657 = vmatmul.mubr.bf16.vlgmr.msra.gmra.mrb[0].mxu0 %v2009_v21  ;;  %v2109_v21 = vld [vmem:[%s3061_s1 + $0x100] ss:$8 sps:$4 sm:$0xff]  }
  0x26   :  { %1384 = vmatmul.mubr.bf16.vlgmr.msra.gmra.mrb[0].mxu1 %v2012_v22  ;;  %1853 = vmatprep.mubr.msk.bf16.mxu0 %vm527_vm0, %v2015_v23  ;;  %v2110_v22 = vld [vmem:[%s3062_s0 + $0x100] ss:$8 sps:$4 sm:$0xff]   ;;  %v2111_v23 = vld [vmem:[%s3061_s1 + $0x114] ss:$8 sps:$4 sm:$0xff]  }
  0x27   :  { %1958 = vmatprep.mubr.msk.bf16.mxu1 %vm527_vm0, %v2017_v24  ;;  %v2113_v24 = vld [vmem:[%s3062_s0 + $0x114] ss:$8 sps:$4 sm:$0xff]  }
  0x2d   :  { %665 = vmatmul.mubr.bf16.gmra.mrb[4].mxu0 %v2019_v25  ;;  %v2115_v25 = vld [vmem:[%s3061_s1 + $0x110] ss:$8 sps:$4 sm:$0xff]  }
  0x2e   :  { %1392 = vmatmul.mubr.bf16.gmra.mrb[4].mxu1 %v2020_v26  ;;  %1854 = vmatprep.mubr.msk.bf16.mxu0 %vm527_vm0, %v2021_v27  ;;  %v2116_v26 = vld [vmem:[%s3062_s0 + $0x110] ss:$8 sps:$4 sm:$0xff]   ;;  %v2117_v27 = vld [vmem:[%s3061_s1 + $0x124] ss:$8 sps:$4 sm:$0xff]  }
  0x2f   :  { %1959 = vmatprep.mubr.msk.bf16.mxu1 %vm527_vm0, %v2023_v28  ;;  %v2119_v28 = vld [vmem:[%s3062_s0 + $0x124] ss:$8 sps:$4 sm:$0xff]  }
  0x35   :  { %673 = vmatmul.mubr.bf16.gmra.mrb[8].mxu0 %v2025_v29  ;;  %v2121_v29 = vld [vmem:[%s3061_s1 + $0x120] ss:$8 sps:$4 sm:$0xff]  }
  0x36   :  { %1400 = vmatmul.mubr.bf16.gmra.mrb[8].mxu1 %v2026_v30  ;;  %1855 = vmatprep.mubr.msk.bf16.mxu0 %vm527_vm0, %v2027_v31  ;;  %v2122_v30 = vld [vmem:[%s3062_s0 + $0x120] ss:$8 sps:$4 sm:$0xff]   ;;  %v2123_v31 = vld [vmem:[%s3061_s1 + $0x134] ss:$8 sps:$4 sm:$0xff]  }
  0x37   :  { %1960 = vmatprep.mubr.msk.bf16.mxu1 %vm527_vm0, %v2029_v32  ;;  %v2125_v32 = vld [vmem:[%s3062_s0 + $0x134] ss:$8 sps:$4 sm:$0xff]  }
  0x3d   :  { %681 = vmatmul.mubr.bf16.gmra.mrb[12].mxu0 %v2031_v33  ;;  %v2127_v33 = vld [vmem:[%s3061_s1 + $0x130] ss:$8 sps:$4 sm:$0xff]  }
  0x3e   :  { %1408 = vmatmul.mubr.bf16.gmra.mrb[12].mxu1 %v2032_v34  ;;  %1856 = vmatprep.mubr.msk.bf16.mxu0 %vm527_vm0, %v2033_v35  ;;  %v2128_v34 = vld [vmem:[%s3062_s0 + $0x130] ss:$8 sps:$4 sm:$0xff]   ;;  %v2129_v35 = vld [vmem:[%s3061_s1 + $0x144] ss:$8 sps:$4 sm:$0xff]  }
  0x3f   :  { %1961 = vmatprep.mubr.msk.bf16.mxu1 %vm527_vm0, %v2035_v36  ;;  %v2131_v36 = vld [vmem:[%s3062_s0 + $0x144] ss:$8 sps:$4 sm:$0xff]  }
  0x45   :  { %689 = vmatmul.mubr.bf16.gmra.mrb[16].mxu0 %v2037_v37  ;;  %v2133_v37 = vld [vmem:[%s3061_s1 + $0x140] ss:$8 sps:$4 sm:$0xff]  }
  0x46   :  { %1416 = vmatmul.mubr.bf16.gmra.mrb[16].mxu1 %v2038_v38  ;;  %1857 = vmatprep.mubr.msk.bf16.mxu0 %vm527_vm0, %v2039_v39  ;;  %v2134_v38 = vld [vmem:[%s3062_s0 + $0x140] ss:$8 sps:$4 sm:$0xff]   ;;  %v2135_v39 = vld [vmem:[%s3061_s1 + $0x154] ss:$8 sps:$4 sm:$0xff]  }
  0x47   :  { %1962 = vmatprep.mubr.msk.bf16.mxu1 %vm527_vm0, %v2041_v40  ;;  %v2137_v40 = vld [vmem:[%s3062_s0 + $0x154] ss:$8 sps:$4 sm:$0xff]  }
  0x4d   :  { %697 = vmatmul.mubr.bf16.gmra.mrb[20].mxu0 %v2043_v41  ;;  %v2139_v41 = vld [vmem:[%s3061_s1 + $0x150] ss:$8 sps:$4 sm:$0xff]  }
  0x4e   :  { %1424 = vmatmul.mubr.bf16.gmra.mrb[20].mxu1 %v2044_v42  ;;  %1858 = vmatprep.mubr.msk.bf16.mxu0 %vm527_vm0, %v2045_v43  ;;  %v2140_v42 = vld [vmem:[%s3062_s0 + $0x150] ss:$8 sps:$4 sm:$0xff]   ;;  %v2141_v43 = vld [vmem:[%s3061_s1 + $0x164] ss:$8 sps:$4 sm:$0xff]  }
  0x4f   :  { %1963 = vmatprep.mubr.msk.bf16.mxu1 %vm527_vm0, %v2047_v44  ;;  %v2143_v44 = vld [vmem:[%s3062_s0 + $0x164] ss:$8 sps:$4 sm:$0xff]  }
  0x55   :  { %705 = vmatmul.mubr.bf16.gmra.mrb[24].mxu0 %v2049_v45  ;;  %v2145_v45 = vld [vmem:[%s3061_s1 + $0x160] ss:$8 sps:$4 sm:$0xff]  }
  0x56   :  { %1432 = vmatmul.mubr.bf16.gmra.mrb[24].mxu1 %v2050_v46  ;;  %1859 = vmatprep.mubr.msk.bf16.mxu0 %vm527_vm0, %v2051_v47  ;;  %v2146_v46 = vld [vmem:[%s3062_s0 + $0x160] ss:$8 sps:$4 sm:$0xff]   ;;  %v2147_v47 = vld [vmem:[%s3061_s1 + $0x174] ss:$8 sps:$4 sm:$0xff]  }
  0x57   :  { %1964 = vmatprep.mubr.msk.bf16.mxu1 %vm527_vm0, %v2053_v48  ;;  %v2149_v48 = vld [vmem:[%s3062_s0 + $0x174] ss:$8 sps:$4 sm:$0xff]  }
  0x5d   :  { %713 = vmatmul.mubr.bf16.gmra.mrb[28].mxu0 %v2055_v49  ;;  %v2151_v49 = vld [vmem:[%s3061_s1 + $0x170] ss:$8 sps:$4 sm:$0xff]  }
  0x5e   :  { %1440 = vmatmul.mubr.bf16.gmra.mrb[28].mxu1 %v2056_v50  ;;  %1860 = vmatprep.mubr.msk.bf16.mxu0 %vm527_vm0, %v2057_v51  ;;  %v2152_v50 = vld [vmem:[%s3062_s0 + $0x170] ss:$8 sps:$4 sm:$0xff]   ;;  %v2153_v51 = vld [vmem:[%s3061_s1 + $0x184] ss:$8 sps:$4 sm:$0xff]  }
  0x5f   :  { %1965 = vmatprep.mubr.msk.bf16.mxu1 %vm527_vm0, %v2059_v52  ;;  %v2155_v52 = vld [vmem:[%s3062_s0 + $0x184] ss:$8 sps:$4 sm:$0xff]  }
  0x65   :  { %721 = vmatmul.mubr.bf16.gmra.mrb[32].mxu0 %v2061_v53  ;;  %v2157_v53 = vld [vmem:[%s3061_s1 + $0x180] ss:$8 sps:$4 sm:$0xff]  }
  0x66   :  { %1448 = vmatmul.mubr.bf16.gmra.mrb[32].mxu1 %v2062_v54  ;;  %1861 = vmatprep.mubr.msk.bf16.mxu0 %vm527_vm0, %v2063_v55  ;;  %v2158_v54 = vld [vmem:[%s3062_s0 + $0x180] ss:$8 sps:$4 sm:$0xff]   ;;  %v2159_v55 = vld [vmem:[%s3061_s1 + $0x194] ss:$8 sps:$4 sm:$0xff]  }
  0x67   :  { %1966 = vmatprep.mubr.msk.bf16.mxu1 %vm527_vm0, %v2065_v56  ;;  %v2161_v56 = vld [vmem:[%s3062_s0 + $0x194] ss:$8 sps:$4 sm:$0xff]  }
  0x6d   :  { %729 = vmatmul.mubr.bf16.gmra.mrb[36].mxu0 %v2067_v57  ;;  %v2163_v57 = vld [vmem:[%s3061_s1 + $0x190] ss:$8 sps:$4 sm:$0xff]  }
  0x6e   :  { %1456 = vmatmul.mubr.bf16.gmra.mrb[36].mxu1 %v2068_v58  ;;  %1862 = vmatprep.mubr.msk.bf16.mxu0 %vm527_vm0, %v2069_v59  ;;  %v2164_v58 = vld [vmem:[%s3062_s0 + $0x190] ss:$8 sps:$4 sm:$0xff]   ;;  %v2165_v59 = vld [vmem:[%s3061_s1 + $0x1a4] ss:$8 sps:$4 sm:$0xff]  }
  0x6f   :  { %1967 = vmatprep.mubr.msk.bf16.mxu1 %vm527_vm0, %v2071_v60  ;;  %v2167_v60 = vld [vmem:[%s3062_s0 + $0x1a4] ss:$8 sps:$4 sm:$0xff]  }
  0x75   :  { %737 = vmatmul.mubr.bf16.gmra.mrb[40].mxu0 %v2073_v61  ;;  %v2169_v61 = vld [vmem:[%s3061_s1 + $0x1a0] ss:$8 sps:$4 sm:$0xff]  }
  0x76   :  { %1464 = vmatmul.mubr.bf16.gmra.mrb[40].mxu1 %v2074_v62  ;;  %1863 = vmatprep.mubr.msk.bf16.mxu0 %vm527_vm0, %v2075_v63  ;;  %v2170_v62 = vld [vmem:[%s3062_s0 + $0x1a0] ss:$8 sps:$4 sm:$0xff]   ;;  %v2171_v63 = vld [vmem:[%s3061_s1 + $0x1b4] ss:$8 sps:$4 sm:$0xff]  }
  0x77   :  { %1968 = vmatprep.mubr.msk.bf16.mxu1 %vm527_vm0, %v2077_v0  ;;  %v2173_v0 = vld [vmem:[%s3062_s0 + $0x1b4] ss:$8 sps:$4 sm:$0xff]  }
  0x7d   :  { %745 = vmatmul.mubr.bf16.gmra.mrb[44].mxu0 %v2079_v1 }
  0x7e   :  { %1472 = vmatmul.mubr.bf16.gmra.mrb[44].mxu1 %v2080_v2  ;;  %1864 = vmatprep.mubr.msk.bf16.mxu0 %vm527_vm0, %v2081_v3  ;;  %v2675_v3 = vld [vmem:[%s3063_s4] ss:$0 sm:$0xff] }
  0x7f   :  { %1969 = vmatprep.mubr.msk.bf16.mxu1 %vm527_vm0, %v2083_v4 }
  0x85   :  { %753 = vmatmul.mubr.bf16.gmra.mrb[48].mxu0 %v2085_v5  ;;  %v2175_v5 = vld [vmem:[%s3061_s1 + $0x1b0] ss:$8 sps:$4 sm:$0xff]  }
  0x86   :  { %1480 = vmatmul.mubr.bf16.gmra.mrb[48].mxu1 %v2086_v6  ;;  %1865 = vmatprep.mubr.msk.bf16.mxu0 %vm527_vm0, %v2087_v7 }
  0x87   :  { %1970 = vmatprep.mubr.msk.bf16.mxu1 %vm527_vm0, %v2089_v8 }
  0x8d   :  { %761 = vmatmul.mubr.bf16.gmra.mrb[52].mxu0 %v2091_v9  ;;  %v2176_v9 = vld [vmem:[%s3062_s0 + $0x1b0] ss:$8 sps:$4 sm:$0xff]  }
  0x8e   :  { %1488 = vmatmul.mubr.bf16.gmra.mrb[52].mxu1 %v2092_v10  ;;  %1866 = vmatprep.mubr.msk.bf16.mxu0 %vm527_vm0, %v2093_v11  ;;  %v2177_v10 = vld [vmem:[%s3061_s1 + $0x1c4] ss:$8 sps:$4 sm:$0xff]  }
  0x8f   :  { %1971 = vmatprep.mubr.msk.bf16.mxu1 %vm527_vm0, %v2095_v12 }
  0x95   :  { %769 = vmatmul.mubr.bf16.gmra.mrb[56].mxu0 %v2097_v13  ;;  %v2179_v13 = vld [vmem:[%s3062_s0 + $0x1c4] ss:$8 sps:$4 sm:$0xff]  }
  0x96   :  { %1496 = vmatmul.mubr.bf16.gmra.mrb[56].mxu1 %v2098_v14  ;;  %1867 = vmatprep.mubr.msk.bf16.mxu0 %vm527_vm0, %v2099_v15 }
  0x97   :  { %1972 = vmatprep.mubr.msk.bf16.mxu1 %vm527_vm0, %v2101_v16 }
  0x9d   :  { %777 = vmatmul.mubr.bf16.gmra.mrb[60].mxu0 %v2103_v17 }
  0x9e   :  { %1504 = vmatmul.mubr.bf16.gmra.mrb[60].mxu1 %v2104_v18  ;;  %1868 = vmatprep.mubr.msk.bf16.mxu0 %vm527_vm0, %v2105_v19 }
  0x9f   :  { %1973 = vmatprep.mubr.msk.bf16.mxu1 %vm527_vm0, %v2107_v20 }
  0xa5   :  { %785 = vmatmul.mubr.bf16.gmra.mrb[64].mxu0 %v2109_v21  ;;  %v2181_v21 = vld [vmem:[%s3061_s1 + $0x1c0] ss:$8 sps:$4 sm:$0xff]  }
  0xa6   :  { %1512 = vmatmul.mubr.bf16.gmra.mrb[64].mxu1 %v2110_v22  ;;  %1869 = vmatprep.mubr.msk.bf16.mxu0 %vm527_vm0, %v2111_v23 }
  0xa7   :  { %1974 = vmatprep.mubr.msk.bf16.mxu1 %vm527_vm0, %v2113_v24 }
  0xad   :  { %793 = vmatmul.mubr.bf16.gmra.mrb[68].mxu0 %v2115_v25  ;;  %v2182_v25 = vld [vmem:[%s3062_s0 + $0x1c0] ss:$8 sps:$4 sm:$0xff]  }
  0xae   :  { %1520 = vmatmul.mubr.bf16.gmra.mrb[68].mxu1 %v2116_v26  ;;  %1870 = vmatprep.mubr.msk.bf16.mxu0 %vm527_vm0, %v2117_v27  ;;  %v2183_v26 = vld [vmem:[%s3061_s1 + $0x1d4] ss:$8 sps:$4 sm:$0xff]  }
  0xaf   :  { %1975 = vmatprep.mubr.msk.bf16.mxu1 %vm527_vm0, %v2119_v28 }
  0xb5   :  { %801 = vmatmul.mubr.bf16.gmra.mrb[72].mxu0 %v2121_v29  ;;  %v2185_v29 = vld [vmem:[%s3062_s0 + $0x1d4] ss:$8 sps:$4 sm:$0xff]  }
  0xb6   :  { %1528 = vmatmul.mubr.bf16.gmra.mrb[72].mxu1 %v2122_v30  ;;  %1871 = vmatprep.mubr.msk.bf16.mxu0 %vm527_vm0, %v2123_v31 }
  0xb7   :  { %1976 = vmatprep.mubr.msk.bf16.mxu1 %vm527_vm0, %v2125_v32 }
  0xbd   :  { %809 = vmatmul.mubr.bf16.gmra.mrb[76].mxu0 %v2127_v33 }
  0xbe   :  { %1536 = vmatmul.mubr.bf16.gmra.mrb[76].mxu1 %v2128_v34  ;;  %1872 = vmatprep.mubr.msk.bf16.mxu0 %vm527_vm0, %v2129_v35 }
  0xbf   :  { %1977 = vmatprep.mubr.msk.bf16.mxu1 %vm527_vm0, %v2131_v36 }
  0xc5   :  { %817 = vmatmul.mubr.bf16.gmra.mrb[80].mxu0 %v2133_v37  ;;  %v2187_v37 = vld [vmem:[%s3061_s1 + $0x1d0] ss:$8 sps:$4 sm:$0xff]  }
  0xc6   :  { %1544 = vmatmul.mubr.bf16.gmra.mrb[80].mxu1 %v2134_v38  ;;  %1873 = vmatprep.mubr.msk.bf16.mxu0 %vm527_vm0, %v2135_v39 }
  0xc7   :  { %1978 = vmatprep.mubr.msk.bf16.mxu1 %vm527_vm0, %v2137_v40 }
  0xcd   :  { %825 = vmatmul.mubr.bf16.gmra.mrb[84].mxu0 %v2139_v41  ;;  %v2188_v41 = vld [vmem:[%s3062_s0 + $0x1d0] ss:$8 sps:$4 sm:$0xff]  }
  0xce   :  { %1552 = vmatmul.mubr.bf16.gmra.mrb[84].mxu1 %v2140_v42  ;;  %1874 = vmatprep.mubr.msk.bf16.mxu0 %vm527_vm0, %v2141_v43  ;;  %v2189_v42 = vld [vmem:[%s3061_s1 + $0x1e4] ss:$8 sps:$4 sm:$0xff]  }
  0xcf   :  { %1979 = vmatprep.mubr.msk.bf16.mxu1 %vm527_vm0, %v2143_v44 }
  0xd5   :  { %833 = vmatmul.mubr.bf16.gmra.mrb[88].mxu0 %v2145_v45  ;;  %v2191_v45 = vld [vmem:[%s3062_s0 + $0x1e4] ss:$8 sps:$4 sm:$0xff]  }
  0xd6   :  { %1560 = vmatmul.mubr.bf16.gmra.mrb[88].mxu1 %v2146_v46  ;;  %1875 = vmatprep.mubr.msk.bf16.mxu0 %vm527_vm0, %v2147_v47 }
  0xd7   :  { %1980 = vmatprep.mubr.msk.bf16.mxu1 %vm527_vm0, %v2149_v48 }
  0xdd   :  { %841 = vmatmul.mubr.bf16.gmra.mrb[92].mxu0 %v2151_v49 }
  0xde   :  { %1568 = vmatmul.mubr.bf16.gmra.mrb[92].mxu1 %v2152_v50  ;;  %1876 = vmatprep.mubr.msk.bf16.mxu0 %vm527_vm0, %v2153_v51 }
  0xdf   :  { %1981 = vmatprep.mubr.msk.bf16.mxu1 %vm527_vm0, %v2155_v52 }
  0xe5   :  { %849 = vmatmul.mubr.bf16.gmra.mrb[96].mxu0 %v2157_v53  ;;  %v2193_v53 = vld [vmem:[%s3061_s1 + $0x1e0] ss:$8 sps:$4 sm:$0xff]  }
  0xe6   :  { %1576 = vmatmul.mubr.bf16.gmra.mrb[96].mxu1 %v2158_v54  ;;  %1877 = vmatprep.mubr.msk.bf16.mxu0 %vm527_vm0, %v2159_v55 }
  0xe7   :  { %1982 = vmatprep.mubr.msk.bf16.mxu1 %vm527_vm0, %v2161_v56 }
  0xed   :  { %857 = vmatmul.mubr.bf16.gmra.mrb[100].mxu0 %v2163_v57  ;;  %v2194_v57 = vld [vmem:[%s3062_s0 + $0x1e0] ss:$8 sps:$4 sm:$0xff]  }
  0xee   :  { %1584 = vmatmul.mubr.bf16.gmra.mrb[100].mxu1 %v2164_v58  ;;  %1878 = vmatprep.mubr.msk.bf16.mxu0 %vm527_vm0, %v2165_v59  ;;  %v2195_v58 = vld [vmem:[%s3061_s1 + $0x1f4] ss:$8 sps:$4 sm:$0xff]  }
  0xef   :  { %1983 = vmatprep.mubr.msk.bf16.mxu1 %vm527_vm0, %v2167_v60 }
  0xf5   :  { %865 = vmatmul.mubr.bf16.gmra.mrb[104].mxu0 %v2169_v61  ;;  %v2197_v61 = vld [vmem:[%s3062_s0 + $0x1f4] ss:$8 sps:$4 sm:$0xff]  }
  0xf6   :  { %1592 = vmatmul.mubr.bf16.gmra.mrb[104].mxu1 %v2170_v62  ;;  %1879 = vmatprep.mubr.msk.bf16.mxu0 %vm527_vm0, %v2171_v63 }
  0xf7   :  { %1984 = vmatprep.mubr.msk.bf16.mxu1 %vm527_vm0, %v2173_v0 }
  0xf8   :  { %v658_v1 = vpop.f32.mrb[0].mxu0 }
  0xf9   :  { %v1385_v2 = vpop.f32.mrb[0].mxu1  ;;  %v660_v4 = vpop.f32.mrb[1].mxu0 }
  0xfa   :  { %v1386_v6 = vadd.f32 %v1385_v2, %v658_v1  ;;  %v1387_v7 = vpop.f32.mrb[1].mxu1  ;;  %v661_v8 = vpop.f32.mrb[2].mxu0 }
  0xfb   :  { %v1388_v11 = vpop.f32.mrb[2].mxu1  ;;  %v663_v12 = vpop.f32.mrb[3].mxu0 }
  0xfc   :  { %v1647_v14 = vadd.f32 %v2675_v3, %v1386_v6  ;;  %v1389_v15 = vadd.f32 %v1388_v11, %v661_v8  ;;  %v1390_v16 = vpop.f32.mrb[3].mxu1  ;;  %v2199_v6 = vld [vmem:[%s3061_s1 + $0x1f0] ss:$8 sps:$4 sm:$0xff]  }
  0xfd   :  { %873 = vmatmul.mubr.bf16.gmra.mrb[108].mxu0 %v2175_v5 }
  0xfe   :  { %1711 = vst.msk [vmem:[%s3064_s5] sm:$0xff] %vm527_vm0, %v1647_v14  ;;  %v1648_v17 = vadd.f32 %v2675_v3, %v1389_v15  ;;  %1600 = vmatmul.mubr.bf16.gmra.mrb[108].mxu1 %v2176_v9  ;;  %1880 = vmatprep.mubr.msk.bf16.mxu0 %vm527_vm0, %v2177_v10  ;;  %v2200_v10 = vld [vmem:[%s3062_s0 + $0x1f0] ss:$8 sps:$4 sm:$0xff]  }
  0xff   :  { %1985 = vmatprep.mubr.msk.bf16.mxu1 %vm527_vm0, %v2179_v13 }
 0x100   :  { %1712 = vst.msk [vmem:[%s3064_s5 + $0x8] sm:$0xff] %vm527_vm0, %v1648_v17  ;;  %v666_v18 = vpop.f32.mrb[4].mxu0 }
 0x101   :  { %v1393_v19 = vpop.f32.mrb[4].mxu1  ;;  %v668_v20 = vpop.f32.mrb[5].mxu0 }
 0x102   :  { %v1394_v22 = vadd.f32 %v1393_v19, %v666_v18  ;;  %v1395_v23 = vpop.f32.mrb[5].mxu1  ;;  %v669_v24 = vpop.f32.mrb[6].mxu0 }
 0x103   :  { %v1396_v27 = vpop.f32.mrb[6].mxu1  ;;  %v671_v28 = vpop.f32.mrb[7].mxu0 }
 0x104   :  { %v1649_v30 = vadd.f32 %v2675_v3, %v1394_v22  ;;  %v1397_v31 = vadd.f32 %v1396_v27, %v669_v24  ;;  %v1398_v32 = vpop.f32.mrb[7].mxu1 }
 0x105   :  { %881 = vmatmul.mubr.bf16.gmra.mrb[112].mxu0 %v2181_v21 }
 0x106   :  { %1713 = vst.msk [vmem:[%s3064_s5 + $0x10] sm:$0xff] %vm527_vm0, %v1649_v30  ;;  %v1650_v33 = vadd.f32 %v2675_v3, %v1397_v31  ;;  %1608 = vmatmul.mubr.bf16.gmra.mrb[112].mxu1 %v2182_v25  ;;  %1881 = vmatprep.mubr.msk.bf16.mxu0 %vm527_vm0, %v2183_v26 }
 0x107   :  { %1986 = vmatprep.mubr.msk.bf16.mxu1 %vm527_vm0, %v2185_v29 }
 0x108   :  { %1714 = vst.msk [vmem:[%s3064_s5 + $0x18] sm:$0xff] %vm527_vm0, %v1650_v33  ;;  %v674_v34 = vpop.f32.mrb[8].mxu0 }
 0x109   :  { %v1401_v35 = vpop.f32.mrb[8].mxu1  ;;  %v676_v36 = vpop.f32.mrb[9].mxu0 }
 0x10a   :  { %v1402_v38 = vadd.f32 %v1401_v35, %v674_v34  ;;  %v1403_v39 = vpop.f32.mrb[9].mxu1  ;;  %v677_v40 = vpop.f32.mrb[10].mxu0 }
 0x10b   :  { %v1404_v43 = vpop.f32.mrb[10].mxu1  ;;  %v679_v44 = vpop.f32.mrb[11].mxu0 }
 0x10c   :  { %v1651_v46 = vadd.f32 %v2675_v3, %v1402_v38  ;;  %v1405_v47 = vadd.f32 %v1404_v43, %v677_v40  ;;  %v1406_v48 = vpop.f32.mrb[11].mxu1 }
 0x10d   :  { %889 = vmatmul.mubr.bf16.gmra.mrb[116].mxu0 %v2187_v37 }
 0x10e   :  { %1715 = vst.msk [vmem:[%s3064_s5 + $0x20] sm:$0xff] %vm527_vm0, %v1651_v46  ;;  %v1652_v49 = vadd.f32 %v2675_v3, %v1405_v47  ;;  %1616 = vmatmul.mubr.bf16.gmra.mrb[116].mxu1 %v2188_v41  ;;  %1882 = vmatprep.mubr.msk.bf16.mxu0 %vm527_vm0, %v2189_v42 }
 0x10f   :  { %1987 = vmatprep.mubr.msk.bf16.mxu1 %vm527_vm0, %v2191_v45 }
 0x110   :  { %1716 = vst.msk [vmem:[%s3064_s5 + $0x28] sm:$0xff] %vm527_vm0, %v1652_v49  ;;  %v682_v50 = vpop.f32.mrb[12].mxu0 }
 0x111   :  { %v1409_v51 = vpop.f32.mrb[12].mxu1  ;;  %v684_v52 = vpop.f32.mrb[13].mxu0 }
 0x112   :  { %v1410_v54 = vadd.f32 %v1409_v51, %v682_v50  ;;  %v1411_v55 = vpop.f32.mrb[13].mxu1  ;;  %v685_v56 = vpop.f32.mrb[14].mxu0 }
 0x113   :  { %v1412_v59 = vpop.f32.mrb[14].mxu1  ;;  %v687_v60 = vpop.f32.mrb[15].mxu0 }
 0x114   :  { %v1653_v62 = vadd.f32 %v2675_v3, %v1410_v54  ;;  %v1413_v63 = vadd.f32 %v1412_v59, %v685_v56  ;;  %v1414_v0 = vpop.f32.mrb[15].mxu1 }
 0x115   :  { %897 = vmatmul.mubr.bf16.gmra.mrb[120].mxu0 %v2193_v53 }
 0x116   :  { %1717 = vst.msk [vmem:[%s3064_s5 + $0x30] sm:$0xff] %vm527_vm0, %v1653_v62  ;;  %v1654_v1 = vadd.f32 %v2675_v3, %v1413_v63  ;;  %1624 = vmatmul.mubr.bf16.gmra.mrb[120].mxu1 %v2194_v57  ;;  %1883 = vmatprep.mubr.msk.bf16.mxu0 %vm527_vm0, %v2195_v58 }
 0x117   :  { %1988 = vmatprep.mubr.msk.bf16.mxu1 %vm527_vm0, %v2197_v61 }
 0x118   :  { %1718 = vst.msk [vmem:[%s3064_s5 + $0x38] sm:$0xff] %vm527_vm0, %v1654_v1  ;;  %v690_v2 = vpop.f32.mrb[16].mxu0 }
 0x119   :  { %v1417_v4 = vpop.f32.mrb[16].mxu1  ;;  %v692_v5 = vpop.f32.mrb[17].mxu0 }
 0x11a   :  { %v1418_v7 = vadd.f32 %v1417_v4, %v690_v2  ;;  %v1419_v8 = vpop.f32.mrb[17].mxu1  ;;  %v693_v9 = vpop.f32.mrb[18].mxu0 }
 0x11b   :  { %v1420_v11 = vpop.f32.mrb[18].mxu1  ;;  %v695_v12 = vpop.f32.mrb[19].mxu0 }
 0x11c   :  { %v1655_v13 = vadd.f32 %v2675_v3, %v1418_v7  ;;  %v1421_v14 = vadd.f32 %v1420_v11, %v693_v9  ;;  %v1422_v15 = vpop.f32.mrb[19].mxu1 }
 0x11d   :  { %905 = vmatmul.mubr.bf16.gmra.mrb[124].mxu0 %v2199_v6 }
 0x11e   :  { %1719 = vst.msk [vmem:[%s3064_s5 + $0x40] sm:$0xff] %vm527_vm0, %v1655_v13  ;;  %v1656_v16 = vadd.f32 %v2675_v3, %v1421_v14  ;;  %1632 = vmatmul.mubr.bf16.gmra.mrb[124].mxu1 %v2200_v10 }
 0x120   :  { %1720 = vst.msk [vmem:[%s3064_s5 + $0x48] sm:$0xff] %vm527_vm0, %v1656_v16  ;;  %v698_v17 = vpop.f32.mrb[20].mxu0 }
 0x121   :  { %v1425_v18 = vpop.f32.mrb[20].mxu1  ;;  %v700_v19 = vpop.f32.mrb[21].mxu0 }
 0x122   :  { %v1426_v20 = vadd.f32 %v1425_v18, %v698_v17  ;;  %v1427_v21 = vpop.f32.mrb[21].mxu1  ;;  %v701_v22 = vpop.f32.mrb[22].mxu0 }
 0x123   :  { %v1428_v23 = vpop.f32.mrb[22].mxu1  ;;  %v703_v24 = vpop.f32.mrb[23].mxu0 }
 0x124   :  { %v1657_v25 = vadd.f32 %v2675_v3, %v1426_v20  ;;  %v1429_v26 = vadd.f32 %v1428_v23, %v701_v22  ;;  %v1430_v27 = vpop.f32.mrb[23].mxu1 }
 0x126   :  { %1721 = vst.msk [vmem:[%s3064_s5 + $0x50] sm:$0xff] %vm527_vm0, %v1657_v25  ;;  %v1658_v28 = vadd.f32 %v2675_v3, %v1429_v26 }
 0x128   :  { %1722 = vst.msk [vmem:[%s3064_s5 + $0x58] sm:$0xff] %vm527_vm0, %v1658_v28  ;;  %v706_v29 = vpop.f32.mrb[24].mxu0 }
 0x129   :  { %v1433_v30 = vpop.f32.mrb[24].mxu1  ;;  %v708_v31 = vpop.f32.mrb[25].mxu0 }
 0x12a   :  { %v1434_v32 = vadd.f32 %v1433_v30, %v706_v29  ;;  %v1435_v33 = vpop.f32.mrb[25].mxu1  ;;  %v709_v34 = vpop.f32.mrb[26].mxu0 }
 0x12b   :  { %v1436_v35 = vpop.f32.mrb[26].mxu1  ;;  %v711_v36 = vpop.f32.mrb[27].mxu0 }
 0x12c   :  { %v1659_v37 = vadd.f32 %v2675_v3, %v1434_v32  ;;  %v1437_v38 = vadd.f32 %v1436_v35, %v709_v34  ;;  %v1438_v39 = vpop.f32.mrb[27].mxu1 }
 0x12e   :  { %1723 = vst.msk [vmem:[%s3064_s5 + $0x60] sm:$0xff] %vm527_vm0, %v1659_v37  ;;  %v1660_v40 = vadd.f32 %v2675_v3, %v1437_v38 }
 0x130   :  { %1724 = vst.msk [vmem:[%s3064_s5 + $0x68] sm:$0xff] %vm527_vm0, %v1660_v40  ;;  %v714_v41 = vpop.f32.mrb[28].mxu0 }
 0x131   :  { %v1441_v42 = vpop.f32.mrb[28].mxu1  ;;  %v716_v43 = vpop.f32.mrb[29].mxu0 }
 0x132   :  { %v1442_v44 = vadd.f32 %v1441_v42, %v714_v41  ;;  %v1443_v45 = vpop.f32.mrb[29].mxu1  ;;  %v717_v46 = vpop.f32.mrb[30].mxu0 }
 0x133   :  { %v1444_v47 = vpop.f32.mrb[30].mxu1  ;;  %v719_v48 = vpop.f32.mrb[31].mxu0 }
 0x134   :  { %v1661_v49 = vadd.f32 %v2675_v3, %v1442_v44  ;;  %v1445_v50 = vadd.f32 %v1444_v47, %v717_v46  ;;  %v1446_v51 = vpop.f32.mrb[31].mxu1 }
 0x136   :  { %1725 = vst.msk [vmem:[%s3064_s5 + $0x70] sm:$0xff] %vm527_vm0, %v1661_v49  ;;  %v1662_v52 = vadd.f32 %v2675_v3, %v1445_v50 }
 0x138   :  { %1726 = vst.msk [vmem:[%s3064_s5 + $0x78] sm:$0xff] %vm527_vm0, %v1662_v52  ;;  %v722_v53 = vpop.f32.mrb[32].mxu0 }
 0x139   :  { %v1449_v54 = vpop.f32.mrb[32].mxu1  ;;  %v724_v55 = vpop.f32.mrb[33].mxu0 }
 0x13a   :  { %v1450_v56 = vadd.f32 %v1449_v54, %v722_v53  ;;  %v1451_v57 = vpop.f32.mrb[33].mxu1  ;;  %v725_v58 = vpop.f32.mrb[34].mxu0 }
 0x13b   :  { %v1452_v59 = vpop.f32.mrb[34].mxu1  ;;  %v727_v60 = vpop.f32.mrb[35].mxu0 }
 0x13c   :  { %v1663_v61 = vadd.f32 %v2675_v3, %v1450_v56  ;;  %v1453_v62 = vadd.f32 %v1452_v59, %v725_v58  ;;  %v1454_v63 = vpop.f32.mrb[35].mxu1 }
 0x13e   :  { %1727 = vst.msk [vmem:[%s3064_s5 + $0x80] sm:$0xff] %vm527_vm0, %v1663_v61  ;;  %v1664_v0 = vadd.f32 %v2675_v3, %v1453_v62 }
 0x140   :  { %1728 = vst.msk [vmem:[%s3064_s5 + $0x88] sm:$0xff] %vm527_vm0, %v1664_v0  ;;  %v730_v1 = vpop.f32.mrb[36].mxu0 }
 0x141   :  { %v1457_v2 = vpop.f32.mrb[36].mxu1  ;;  %v732_v4 = vpop.f32.mrb[37].mxu0 }
 0x142   :  { %v1458_v5 = vadd.f32 %v1457_v2, %v730_v1  ;;  %v1459_v6 = vpop.f32.mrb[37].mxu1  ;;  %v733_v7 = vpop.f32.mrb[38].mxu0 }
 0x143   :  { %v1460_v8 = vpop.f32.mrb[38].mxu1  ;;  %v735_v9 = vpop.f32.mrb[39].mxu0 }
 0x144   :  { %v1665_v10 = vadd.f32 %v2675_v3, %v1458_v5  ;;  %v1461_v11 = vadd.f32 %v1460_v8, %v733_v7  ;;  %v1462_v12 = vpop.f32.mrb[39].mxu1 }
 0x146   :  { %1729 = vst.msk [vmem:[%s3064_s5 + $0x90] sm:$0xff] %vm527_vm0, %v1665_v10  ;;  %v1666_v13 = vadd.f32 %v2675_v3, %v1461_v11 }
 0x148   :  { %1730 = vst.msk [vmem:[%s3064_s5 + $0x98] sm:$0xff] %vm527_vm0, %v1666_v13  ;;  %v738_v14 = vpop.f32.mrb[40].mxu0 }
 0x149   :  { %v1465_v15 = vpop.f32.mrb[40].mxu1  ;;  %v740_v16 = vpop.f32.mrb[41].mxu0 }
 0x14a   :  { %v1466_v17 = vadd.f32 %v1465_v15, %v738_v14  ;;  %v1467_v18 = vpop.f32.mrb[41].mxu1  ;;  %v741_v19 = vpop.f32.mrb[42].mxu0 }
 0x14b   :  { %v1468_v20 = vpop.f32.mrb[42].mxu1  ;;  %v743_v21 = vpop.f32.mrb[43].mxu0 }
 0x14c   :  { %v1667_v22 = vadd.f32 %v2675_v3, %v1466_v17  ;;  %v1469_v23 = vadd.f32 %v1468_v20, %v741_v19  ;;  %v1470_v24 = vpop.f32.mrb[43].mxu1 }
 0x14e   :  { %1731 = vst.msk [vmem:[%s3064_s5 + $0xa0] sm:$0xff] %vm527_vm0, %v1667_v22  ;;  %v1668_v25 = vadd.f32 %v2675_v3, %v1469_v23 }
 0x150   :  { %1732 = vst.msk [vmem:[%s3064_s5 + $0xa8] sm:$0xff] %vm527_vm0, %v1668_v25  ;;  %v746_v26 = vpop.f32.mrb[44].mxu0 }
 0x151   :  { %v1473_v27 = vpop.f32.mrb[44].mxu1  ;;  %v748_v28 = vpop.f32.mrb[45].mxu0 }
 0x152   :  { %v1474_v29 = vadd.f32 %v1473_v27, %v746_v26  ;;  %v1475_v30 = vpop.f32.mrb[45].mxu1  ;;  %v749_v31 = vpop.f32.mrb[46].mxu0 }
 0x153   :  { %v1476_v32 = vpop.f32.mrb[46].mxu1  ;;  %v751_v33 = vpop.f32.mrb[47].mxu0 }
 0x154   :  { %v1669_v34 = vadd.f32 %v2675_v3, %v1474_v29  ;;  %v1477_v35 = vadd.f32 %v1476_v32, %v749_v31  ;;  %v1478_v36 = vpop.f32.mrb[47].mxu1 }
 0x156   :  { %1733 = vst.msk [vmem:[%s3064_s5 + $0xb0] sm:$0xff] %vm527_vm0, %v1669_v34  ;;  %v1670_v37 = vadd.f32 %v2675_v3, %v1477_v35 }
 0x158   :  { %1734 = vst.msk [vmem:[%s3064_s5 + $0xb8] sm:$0xff] %vm527_vm0, %v1670_v37  ;;  %v754_v38 = vpop.f32.mrb[48].mxu0 }
 0x159   :  { %v1481_v39 = vpop.f32.mrb[48].mxu1  ;;  %v756_v40 = vpop.f32.mrb[49].mxu0 }
 0x15a   :  { %v1482_v41 = vadd.f32 %v1481_v39, %v754_v38  ;;  %v1483_v42 = vpop.f32.mrb[49].mxu1  ;;  %v757_v43 = vpop.f32.mrb[50].mxu0 }
 0x15b   :  { %v1484_v44 = vpop.f32.mrb[50].mxu1  ;;  %v759_v45 = vpop.f32.mrb[51].mxu0 }
 0x15c   :  { %v1671_v46 = vadd.f32 %v2675_v3, %v1482_v41  ;;  %v1485_v47 = vadd.f32 %v1484_v44, %v757_v43  ;;  %v1486_v48 = vpop.f32.mrb[51].mxu1 }
 0x15e   :  { %1735 = vst.msk [vmem:[%s3064_s5 + $0xc0] sm:$0xff] %vm527_vm0, %v1671_v46  ;;  %v1672_v49 = vadd.f32 %v2675_v3, %v1485_v47 }
 0x160   :  { %1736 = vst.msk [vmem:[%s3064_s5 + $0xc8] sm:$0xff] %vm527_vm0, %v1672_v49  ;;  %v762_v50 = vpop.f32.mrb[52].mxu0 }
 0x161   :  { %v1489_v51 = vpop.f32.mrb[52].mxu1  ;;  %v764_v52 = vpop.f32.mrb[53].mxu0 }
 0x162   :  { %v1490_v53 = vadd.f32 %v1489_v51, %v762_v50  ;;  %v1491_v54 = vpop.f32.mrb[53].mxu1  ;;  %v765_v55 = vpop.f32.mrb[54].mxu0 }
 0x163   :  { %v1492_v56 = vpop.f32.mrb[54].mxu1  ;;  %v767_v57 = vpop.f32.mrb[55].mxu0 }
 0x164   :  { %v1673_v58 = vadd.f32 %v2675_v3, %v1490_v53  ;;  %v1493_v59 = vadd.f32 %v1492_v56, %v765_v55  ;;  %v1494_v60 = vpop.f32.mrb[55].mxu1 }
 0x166   :  { %1737 = vst.msk [vmem:[%s3064_s5 + $0xd0] sm:$0xff] %vm527_vm0, %v1673_v58  ;;  %v1674_v61 = vadd.f32 %v2675_v3, %v1493_v59 }
 0x168   :  { %1738 = vst.msk [vmem:[%s3064_s5 + $0xd8] sm:$0xff] %vm527_vm0, %v1674_v61  ;;  %v770_v62 = vpop.f32.mrb[56].mxu0 }
 0x169   :  { %v1497_v63 = vpop.f32.mrb[56].mxu1  ;;  %v772_v0 = vpop.f32.mrb[57].mxu0 }
 0x16a   :  { %v1498_v1 = vadd.f32 %v1497_v63, %v770_v62  ;;  %v1499_v2 = vpop.f32.mrb[57].mxu1  ;;  %v773_v4 = vpop.f32.mrb[58].mxu0 }
 0x16b   :  { %v1500_v5 = vpop.f32.mrb[58].mxu1  ;;  %v775_v6 = vpop.f32.mrb[59].mxu0 }
 0x16c   :  { %v1675_v7 = vadd.f32 %v2675_v3, %v1498_v1  ;;  %v1501_v8 = vadd.f32 %v1500_v5, %v773_v4  ;;  %v1502_v9 = vpop.f32.mrb[59].mxu1 }
 0x16e   :  { %1739 = vst.msk [vmem:[%s3064_s5 + $0xe0] sm:$0xff] %vm527_vm0, %v1675_v7  ;;  %v1676_v10 = vadd.f32 %v2675_v3, %v1501_v8 }
 0x170   :  { %1740 = vst.msk [vmem:[%s3064_s5 + $0xe8] sm:$0xff] %vm527_vm0, %v1676_v10  ;;  %v778_v11 = vpop.f32.mrb[60].mxu0 }
 0x171   :  { %v1505_v12 = vpop.f32.mrb[60].mxu1  ;;  %v780_v13 = vpop.f32.mrb[61].mxu0 }
 0x172   :  { %v1506_v14 = vadd.f32 %v1505_v12, %v778_v11  ;;  %v1507_v15 = vpop.f32.mrb[61].mxu1  ;;  %v781_v16 = vpop.f32.mrb[62].mxu0 }
 0x173   :  { %v1508_v17 = vpop.f32.mrb[62].mxu1  ;;  %v783_v18 = vpop.f32.mrb[63].mxu0 }
 0x174   :  { %v1677_v19 = vadd.f32 %v2675_v3, %v1506_v14  ;;  %v1509_v20 = vadd.f32 %v1508_v17, %v781_v16  ;;  %v1510_v21 = vpop.f32.mrb[63].mxu1 }
 0x176   :  { %1741 = vst.msk [vmem:[%s3064_s5 + $0xf0] sm:$0xff] %vm527_vm0, %v1677_v19  ;;  %v1678_v22 = vadd.f32 %v2675_v3, %v1509_v20 }
 0x178   :  { %1742 = vst.msk [vmem:[%s3064_s5 + $0xf8] sm:$0xff] %vm527_vm0, %v1678_v22  ;;  %v786_v23 = vpop.f32.mrb[64].mxu0 }
 0x179   :  { %v1513_v24 = vpop.f32.mrb[64].mxu1  ;;  %v788_v25 = vpop.f32.mrb[65].mxu0 }
 0x17a   :  { %v1514_v26 = vadd.f32 %v1513_v24, %v786_v23  ;;  %v1515_v27 = vpop.f32.mrb[65].mxu1  ;;  %v789_v28 = vpop.f32.mrb[66].mxu0 }
 0x17b   :  { %v1516_v29 = vpop.f32.mrb[66].mxu1  ;;  %v791_v30 = vpop.f32.mrb[67].mxu0 }
 0x17c   :  { %v1679_v31 = vadd.f32 %v2675_v3, %v1514_v26  ;;  %v1517_v32 = vadd.f32 %v1516_v29, %v789_v28  ;;  %v1518_v33 = vpop.f32.mrb[67].mxu1 }
 0x17e   :  { %1743 = vst.msk [vmem:[%s3064_s5 + $0x100] sm:$0xff] %vm527_vm0, %v1679_v31  ;;  %v1680_v34 = vadd.f32 %v2675_v3, %v1517_v32 }
 0x180   :  { %1744 = vst.msk [vmem:[%s3064_s5 + $0x108] sm:$0xff] %vm527_vm0, %v1680_v34  ;;  %v794_v35 = vpop.f32.mrb[68].mxu0 }
 0x181   :  { %v1521_v36 = vpop.f32.mrb[68].mxu1  ;;  %v796_v37 = vpop.f32.mrb[69].mxu0 }
 0x182   :  { %v1522_v38 = vadd.f32 %v1521_v36, %v794_v35  ;;  %v1523_v39 = vpop.f32.mrb[69].mxu1  ;;  %v797_v40 = vpop.f32.mrb[70].mxu0 }
 0x183   :  { %v1524_v41 = vpop.f32.mrb[70].mxu1  ;;  %v799_v42 = vpop.f32.mrb[71].mxu0 }
 0x184   :  { %v1681_v43 = vadd.f32 %v2675_v3, %v1522_v38  ;;  %v1525_v44 = vadd.f32 %v1524_v41, %v797_v40  ;;  %v1526_v45 = vpop.f32.mrb[71].mxu1 }
 0x186   :  { %1745 = vst.msk [vmem:[%s3064_s5 + $0x110] sm:$0xff] %vm527_vm0, %v1681_v43  ;;  %v1682_v46 = vadd.f32 %v2675_v3, %v1525_v44 }
 0x188   :  { %1746 = vst.msk [vmem:[%s3064_s5 + $0x118] sm:$0xff] %vm527_vm0, %v1682_v46  ;;  %v802_v47 = vpop.f32.mrb[72].mxu0 }
 0x189   :  { %v1529_v48 = vpop.f32.mrb[72].mxu1  ;;  %v804_v49 = vpop.f32.mrb[73].mxu0 }
 0x18a   :  { %v1530_v50 = vadd.f32 %v1529_v48, %v802_v47  ;;  %v1531_v51 = vpop.f32.mrb[73].mxu1  ;;  %v805_v52 = vpop.f32.mrb[74].mxu0 }
 0x18b   :  { %v1532_v53 = vpop.f32.mrb[74].mxu1  ;;  %v807_v54 = vpop.f32.mrb[75].mxu0 }
 0x18c   :  { %v1683_v55 = vadd.f32 %v2675_v3, %v1530_v50  ;;  %v1533_v56 = vadd.f32 %v1532_v53, %v805_v52  ;;  %v1534_v57 = vpop.f32.mrb[75].mxu1 }
 0x18e   :  { %1747 = vst.msk [vmem:[%s3064_s5 + $0x120] sm:$0xff] %vm527_vm0, %v1683_v55  ;;  %v1684_v58 = vadd.f32 %v2675_v3, %v1533_v56 }
 0x190   :  { %1748 = vst.msk [vmem:[%s3064_s5 + $0x128] sm:$0xff] %vm527_vm0, %v1684_v58  ;;  %v810_v59 = vpop.f32.mrb[76].mxu0 }
 0x191   :  { %v1537_v60 = vpop.f32.mrb[76].mxu1  ;;  %v812_v61 = vpop.f32.mrb[77].mxu0 }
 0x192   :  { %v1538_v62 = vadd.f32 %v1537_v60, %v810_v59  ;;  %v1539_v63 = vpop.f32.mrb[77].mxu1  ;;  %v813_v0 = vpop.f32.mrb[78].mxu0 }
 0x193   :  { %v1540_v1 = vpop.f32.mrb[78].mxu1  ;;  %v815_v2 = vpop.f32.mrb[79].mxu0 }
 0x194   :  { %v1685_v4 = vadd.f32 %v2675_v3, %v1538_v62  ;;  %v1541_v5 = vadd.f32 %v1540_v1, %v813_v0  ;;  %v1542_v6 = vpop.f32.mrb[79].mxu1 }
 0x196   :  { %1749 = vst.msk [vmem:[%s3064_s5 + $0x130] sm:$0xff] %vm527_vm0, %v1685_v4  ;;  %v1686_v7 = vadd.f32 %v2675_v3, %v1541_v5 }
 0x198   :  { %1750 = vst.msk [vmem:[%s3064_s5 + $0x138] sm:$0xff] %vm527_vm0, %v1686_v7  ;;  %v818_v8 = vpop.f32.mrb[80].mxu0 }
 0x199   :  { %v1545_v9 = vpop.f32.mrb[80].mxu1  ;;  %v820_v10 = vpop.f32.mrb[81].mxu0 }
 0x19a   :  { %v1546_v11 = vadd.f32 %v1545_v9, %v818_v8  ;;  %v1547_v12 = vpop.f32.mrb[81].mxu1  ;;  %v821_v13 = vpop.f32.mrb[82].mxu0 }
 0x19b   :  { %v1548_v14 = vpop.f32.mrb[82].mxu1  ;;  %v823_v15 = vpop.f32.mrb[83].mxu0 }
 0x19c   :  { %v1687_v16 = vadd.f32 %v2675_v3, %v1546_v11  ;;  %v1549_v17 = vadd.f32 %v1548_v14, %v821_v13  ;;  %v1550_v18 = vpop.f32.mrb[83].mxu1 }
 0x19e   :  { %1751 = vst.msk [vmem:[%s3064_s5 + $0x140] sm:$0xff] %vm527_vm0, %v1687_v16  ;;  %v1688_v19 = vadd.f32 %v2675_v3, %v1549_v17 }
 0x1a0   :  { %1752 = vst.msk [vmem:[%s3064_s5 + $0x148] sm:$0xff] %vm527_vm0, %v1688_v19  ;;  %v826_v20 = vpop.f32.mrb[84].mxu0 }
 0x1a1   :  { %v1553_v21 = vpop.f32.mrb[84].mxu1  ;;  %v828_v22 = vpop.f32.mrb[85].mxu0 }
 0x1a2   :  { %v1554_v23 = vadd.f32 %v1553_v21, %v826_v20  ;;  %v1555_v24 = vpop.f32.mrb[85].mxu1  ;;  %v829_v25 = vpop.f32.mrb[86].mxu0 }
 0x1a3   :  { %v1556_v26 = vpop.f32.mrb[86].mxu1  ;;  %v831_v27 = vpop.f32.mrb[87].mxu0 }
 0x1a4   :  { %v1689_v28 = vadd.f32 %v2675_v3, %v1554_v23  ;;  %v1557_v29 = vadd.f32 %v1556_v26, %v829_v25  ;;  %v1558_v30 = vpop.f32.mrb[87].mxu1 }
 0x1a6   :  { %1753 = vst.msk [vmem:[%s3064_s5 + $0x150] sm:$0xff] %vm527_vm0, %v1689_v28  ;;  %v1690_v31 = vadd.f32 %v2675_v3, %v1557_v29 }
 0x1a8   :  { %1754 = vst.msk [vmem:[%s3064_s5 + $0x158] sm:$0xff] %vm527_vm0, %v1690_v31  ;;  %v834_v32 = vpop.f32.mrb[88].mxu0 }
 0x1a9   :  { %v1561_v33 = vpop.f32.mrb[88].mxu1  ;;  %v836_v34 = vpop.f32.mrb[89].mxu0 }
 0x1aa   :  { %v1562_v35 = vadd.f32 %v1561_v33, %v834_v32  ;;  %v1563_v36 = vpop.f32.mrb[89].mxu1  ;;  %v837_v37 = vpop.f32.mrb[90].mxu0 }
 0x1ab   :  { %v1564_v38 = vpop.f32.mrb[90].mxu1  ;;  %v839_v39 = vpop.f32.mrb[91].mxu0 }
 0x1ac   :  { %v1691_v40 = vadd.f32 %v2675_v3, %v1562_v35  ;;  %v1565_v41 = vadd.f32 %v1564_v38, %v837_v37  ;;  %v1566_v42 = vpop.f32.mrb[91].mxu1 }
 0x1ae   :  { %1755 = vst.msk [vmem:[%s3064_s5 + $0x160] sm:$0xff] %vm527_vm0, %v1691_v40  ;;  %v1692_v43 = vadd.f32 %v2675_v3, %v1565_v41 }
 0x1b0   :  { %1756 = vst.msk [vmem:[%s3064_s5 + $0x168] sm:$0xff] %vm527_vm0, %v1692_v43  ;;  %v842_v44 = vpop.f32.mrb[92].mxu0 }
 0x1b1   :  { %v1569_v45 = vpop.f32.mrb[92].mxu1  ;;  %v844_v46 = vpop.f32.mrb[93].mxu0 }
 0x1b2   :  { %v1570_v47 = vadd.f32 %v1569_v45, %v842_v44  ;;  %v1571_v48 = vpop.f32.mrb[93].mxu1  ;;  %v845_v49 = vpop.f32.mrb[94].mxu0 }
 0x1b3   :  { %v1572_v50 = vpop.f32.mrb[94].mxu1  ;;  %v847_v51 = vpop.f32.mrb[95].mxu0 }
 0x1b4   :  { %v1693_v52 = vadd.f32 %v2675_v3, %v1570_v47  ;;  %v1573_v53 = vadd.f32 %v1572_v50, %v845_v49  ;;  %v1574_v54 = vpop.f32.mrb[95].mxu1 }
 0x1b6   :  { %1757 = vst.msk [vmem:[%s3064_s5 + $0x170] sm:$0xff] %vm527_vm0, %v1693_v52  ;;  %v1694_v55 = vadd.f32 %v2675_v3, %v1573_v53 }
 0x1b8   :  { %1758 = vst.msk [vmem:[%s3064_s5 + $0x178] sm:$0xff] %vm527_vm0, %v1694_v55  ;;  %v850_v56 = vpop.f32.mrb[96].mxu0 }
 0x1b9   :  { %v1577_v57 = vpop.f32.mrb[96].mxu1  ;;  %v852_v58 = vpop.f32.mrb[97].mxu0 }
 0x1ba   :  { %v1578_v59 = vadd.f32 %v1577_v57, %v850_v56  ;;  %v1579_v60 = vpop.f32.mrb[97].mxu1  ;;  %v853_v61 = vpop.f32.mrb[98].mxu0 }
 0x1bb   :  { %v1580_v62 = vpop.f32.mrb[98].mxu1  ;;  %v855_v63 = vpop.f32.mrb[99].mxu0 }
 0x1bc   :  { %v1695_v0 = vadd.f32 %v2675_v3, %v1578_v59  ;;  %v1581_v1 = vadd.f32 %v1580_v62, %v853_v61  ;;  %v1582_v2 = vpop.f32.mrb[99].mxu1 }
 0x1be   :  { %1759 = vst.msk [vmem:[%s3064_s5 + $0x180] sm:$0xff] %vm527_vm0, %v1695_v0  ;;  %v1696_v4 = vadd.f32 %v2675_v3, %v1581_v1 }
 0x1c0   :  { %1760 = vst.msk [vmem:[%s3064_s5 + $0x188] sm:$0xff] %vm527_vm0, %v1696_v4  ;;  %v858_v5 = vpop.f32.mrb[100].mxu0 }
 0x1c1   :  { %v1585_v6 = vpop.f32.mrb[100].mxu1  ;;  %v860_v7 = vpop.f32.mrb[101].mxu0 }
 0x1c2   :  { %v1586_v8 = vadd.f32 %v1585_v6, %v858_v5  ;;  %v1587_v9 = vpop.f32.mrb[101].mxu1  ;;  %v861_v10 = vpop.f32.mrb[102].mxu0 }
 0x1c3   :  { %v1588_v11 = vpop.f32.mrb[102].mxu1  ;;  %v863_v12 = vpop.f32.mrb[103].mxu0 }
 0x1c4   :  { %v1697_v13 = vadd.f32 %v2675_v3, %v1586_v8  ;;  %v1589_v14 = vadd.f32 %v1588_v11, %v861_v10  ;;  %v1590_v15 = vpop.f32.mrb[103].mxu1 }
 0x1c6   :  { %1761 = vst.msk [vmem:[%s3064_s5 + $0x190] sm:$0xff] %vm527_vm0, %v1697_v13  ;;  %v1698_v16 = vadd.f32 %v2675_v3, %v1589_v14 }
 0x1c8   :  { %1762 = vst.msk [vmem:[%s3064_s5 + $0x198] sm:$0xff] %vm527_vm0, %v1698_v16  ;;  %v866_v17 = vpop.f32.mrb[104].mxu0 }
 0x1c9   :  { %v1593_v18 = vpop.f32.mrb[104].mxu1  ;;  %v868_v19 = vpop.f32.mrb[105].mxu0 }
 0x1ca   :  { %v1594_v20 = vadd.f32 %v1593_v18, %v866_v17  ;;  %v1595_v21 = vpop.f32.mrb[105].mxu1  ;;  %v869_v22 = vpop.f32.mrb[106].mxu0 }
 0x1cb   :  { %v1596_v23 = vpop.f32.mrb[106].mxu1  ;;  %v871_v24 = vpop.f32.mrb[107].mxu0 }
 0x1cc   :  { %v1699_v25 = vadd.f32 %v2675_v3, %v1594_v20  ;;  %v1597_v26 = vadd.f32 %v1596_v23, %v869_v22  ;;  %v1598_v27 = vpop.f32.mrb[107].mxu1 }
 0x1ce   :  { %1763 = vst.msk [vmem:[%s3064_s5 + $0x1a0] sm:$0xff] %vm527_vm0, %v1699_v25  ;;  %v1700_v28 = vadd.f32 %v2675_v3, %v1597_v26 }
 0x1d0   :  { %1764 = vst.msk [vmem:[%s3064_s5 + $0x1a8] sm:$0xff] %vm527_vm0, %v1700_v28  ;;  %v874_v29 = vpop.f32.mrb[108].mxu0 }
 0x1d1   :  { %v1601_v30 = vpop.f32.mrb[108].mxu1  ;;  %v876_v31 = vpop.f32.mrb[109].mxu0 }
 0x1d2   :  { %v1602_v32 = vadd.f32 %v1601_v30, %v874_v29  ;;  %v1603_v33 = vpop.f32.mrb[109].mxu1  ;;  %v877_v34 = vpop.f32.mrb[110].mxu0 }
 0x1d3   :  { %v1604_v35 = vpop.f32.mrb[110].mxu1  ;;  %v879_v36 = vpop.f32.mrb[111].mxu0 }
 0x1d4   :  { %v1701_v37 = vadd.f32 %v2675_v3, %v1602_v32  ;;  %v1605_v38 = vadd.f32 %v1604_v35, %v877_v34  ;;  %v1606_v39 = vpop.f32.mrb[111].mxu1 }
 0x1d6   :  { %1765 = vst.msk [vmem:[%s3064_s5 + $0x1b0] sm:$0xff] %vm527_vm0, %v1701_v37  ;;  %v1702_v40 = vadd.f32 %v2675_v3, %v1605_v38 }
 0x1d8   :  { %1766 = vst.msk [vmem:[%s3064_s5 + $0x1b8] sm:$0xff] %vm527_vm0, %v1702_v40  ;;  %v882_v41 = vpop.f32.mrb[112].mxu0 }
 0x1d9   :  { %v1609_v42 = vpop.f32.mrb[112].mxu1  ;;  %v884_v43 = vpop.f32.mrb[113].mxu0 }
 0x1da   :  { %v1610_v44 = vadd.f32 %v1609_v42, %v882_v41  ;;  %v1611_v45 = vpop.f32.mrb[113].mxu1  ;;  %v885_v46 = vpop.f32.mrb[114].mxu0 }
 0x1db   :  { %v1612_v47 = vpop.f32.mrb[114].mxu1  ;;  %v887_v48 = vpop.f32.mrb[115].mxu0 }
 0x1dc   :  { %v1703_v49 = vadd.f32 %v2675_v3, %v1610_v44  ;;  %v1613_v50 = vadd.f32 %v1612_v47, %v885_v46  ;;  %v1614_v51 = vpop.f32.mrb[115].mxu1 }
 0x1de   :  { %1767 = vst.msk [vmem:[%s3064_s5 + $0x1c0] sm:$0xff] %vm527_vm0, %v1703_v49  ;;  %v1704_v52 = vadd.f32 %v2675_v3, %v1613_v50 }
 0x1e0   :  { %1768 = vst.msk [vmem:[%s3064_s5 + $0x1c8] sm:$0xff] %vm527_vm0, %v1704_v52  ;;  %v890_v53 = vpop.f32.mrb[116].mxu0 }
 0x1e1   :  { %v1617_v54 = vpop.f32.mrb[116].mxu1  ;;  %v892_v55 = vpop.f32.mrb[117].mxu0 }
 0x1e2   :  { %v1618_v56 = vadd.f32 %v1617_v54, %v890_v53  ;;  %v1619_v57 = vpop.f32.mrb[117].mxu1  ;;  %v893_v58 = vpop.f32.mrb[118].mxu0 }
 0x1e3   :  { %v1620_v59 = vpop.f32.mrb[118].mxu1  ;;  %v895_v60 = vpop.f32.mrb[119].mxu0 }
 0x1e4   :  { %v1705_v61 = vadd.f32 %v2675_v3, %v1618_v56  ;;  %v1621_v62 = vadd.f32 %v1620_v59, %v893_v58  ;;  %v1622_v63 = vpop.f32.mrb[119].mxu1 }
 0x1e6   :  { %1769 = vst.msk [vmem:[%s3064_s5 + $0x1d0] sm:$0xff] %vm527_vm0, %v1705_v61  ;;  %v1706_v0 = vadd.f32 %v2675_v3, %v1621_v62 }
 0x1e8   :  { %1770 = vst.msk [vmem:[%s3064_s5 + $0x1d8] sm:$0xff] %vm527_vm0, %v1706_v0  ;;  %v898_v1 = vpop.f32.mrb[120].mxu0 }
 0x1e9   :  { %v1625_v2 = vpop.f32.mrb[120].mxu1  ;;  %v900_v4 = vpop.f32.mrb[121].mxu0 }
 0x1ea   :  { %v1626_v5 = vadd.f32 %v1625_v2, %v898_v1  ;;  %v1627_v6 = vpop.f32.mrb[121].mxu1  ;;  %v901_v7 = vpop.f32.mrb[122].mxu0 }
 0x1eb   :  { %v1628_v8 = vpop.f32.mrb[122].mxu1  ;;  %v903_v9 = vpop.f32.mrb[123].mxu0 }
 0x1ec   :  { %v1707_v10 = vadd.f32 %v2675_v3, %v1626_v5  ;;  %v1629_v11 = vadd.f32 %v1628_v8, %v901_v7  ;;  %v1630_v12 = vpop.f32.mrb[123].mxu1 }
 0x1ee   :  { %1771 = vst.msk [vmem:[%s3064_s5 + $0x1e0] sm:$0xff] %vm527_vm0, %v1707_v10  ;;  %v1708_v13 = vadd.f32 %v2675_v3, %v1629_v11 }
 0x1f0   :  { %1772 = vst.msk [vmem:[%s3064_s5 + $0x1e8] sm:$0xff] %vm527_vm0, %v1708_v13  ;;  %v906_v14 = vpop.f32.mrb[124].mxu0 }
 0x1f1   :  { %v1633_v15 = vpop.f32.mrb[124].mxu1  ;;  %v908_v16 = vpop.f32.mrb[125].mxu0 }
 0x1f2   :  { %v1634_v17 = vadd.f32 %v1633_v15, %v906_v14  ;;  %v1635_v18 = vpop.f32.mrb[125].mxu1  ;;  %v909_v19 = vpop.f32.mrb[126].mxu0 }
 0x1f3   :  { %v1636_v20 = vpop.f32.mrb[126].mxu1  ;;  %v911_v21 = vpop.f32.mrb[127].mxu0 }
 0x1f4   :  { %v1709_v22 = vadd.f32 %v2675_v3, %v1634_v17  ;;  %v1637_v23 = vadd.f32 %v1636_v20, %v909_v19  ;;  %v1638_v24 = vpop.f32.mrb[127].mxu1 }
 0x1f6   :  { %1773 = vst.msk [vmem:[%s3064_s5 + $0x1f0] sm:$0xff] %vm527_vm0, %v1709_v22  ;;  %v1710_v25 = vadd.f32 %v2675_v3, %v1637_v23 }
 0x1f8   :  { %1774 = vst.msk [vmem:[%s3064_s5 + $0x1f8] sm:$0xff] %vm527_vm0, %v1710_v25 }

</bundles_post_ra>
